<compile_context>
chip_gen: v7x
topology: tpu7x:2x2x1
jax: 0.10.0
libtpu: 0.0.40
codegen_flags: <defaults>
</compile_context>

<pallas_src>
import jax
import jax.numpy as jnp
import numpy as np
from jax.experimental import pallas as pl
from jax.experimental.pallas import tpu as pltpu

# ---------------------------------------------------------------------------
# Geometry (specialized for 3x32x32 inputs)
# ---------------------------------------------------------------------------
IN_H = IN_W = 32

S1 = 16                      # stem output spatial (32 / stride 2)
S2 = 8                       # after 3x3 / stride-2 maxpool
S3 = 4                       # after layer2 stride-2

G1_W = 19                    # stride-2 phase grid of the 38x38 padded input
G2_W = S2 + 2                # 10 : zero-bordered layer1 grid
G3_W = S3 + 2                # 6  : zero-bordered layer2 grid
G1, G2, G3 = G1_W * G1_W, G2_W * G2_W, G3_W * G3_W      # 361, 100, 36

# Per-level zero halo around / between images (lanes).  Must be >= the largest
# constant lane shift used at that level (stem/maxpool: 2*19+2 = 40;
# 3x3 convs: gw + 1).
M1, M2, M3 = 48, 16, 8

TAPS7 = [(i, j) for i in range(7) for j in range(7)]
TAPS3 = [(i, j) for i in range(3) for j in range(3)]

C1 = 8      # sublane channel padding for the 6-channel stages (stem / layer1)
C2 = 16     # sublane channel padding for the 12-channel stage (layer2)

# ---------------------------------------------------------------------------
# Packed-weight column layout (static Python offsets shared by host & kernel)
# ---------------------------------------------------------------------------
_W8_LAYOUT = [("w_stem", 49 * C1), ("b_stem", 1),
              ("w11a", 9 * C1), ("b11a", 1), ("w11b", 9 * C1), ("b11b", 1),
              ("w12a", 9 * C1), ("b12a", 1), ("w12b", 9 * C1), ("b12b", 1)]
_W16_LAYOUT = [("w21a", 9 * C1), ("b21a", 1), ("w21b", 9 * C2), ("b21b", 1),
               ("w21s", C1), ("b21s", 1),
               ("w22a", 9 * C2), ("b22a", 1), ("w22b", 9 * C2), ("b22b", 1)]


def _offsets(layout):
    offs, c = {}, 0
    for name, w in layout:
        offs[name] = (c, w)
        c += w
    return offs, c


OFF8, COLS8 = _offsets(_W8_LAYOUT)
OFF16, COLS16 = _offsets(_W16_LAYOUT)


# ---------------------------------------------------------------------------
# Static mask / selection / averaging matrices (host-side numpy constants)
# ---------------------------------------------------------------------------
def _interior_mask_flat(gw, s):
    m = np.zeros((gw, gw), np.float32)
    m[1:s + 1, 1:s + 1] = 1.0
    return m.reshape(-1)


def _build_statics(B):
    """Per-image blocks, then tiled / block-diagonalized for B lane-batched
    images (each image block is (G + M) lanes wide: grid followed by halo)."""
    P1, P2, P3 = G1 + M1, G2 + M2, G3 + M3

    mask1 = np.zeros((1, P1), np.float32)
    mask1[0, :G1] = _interior_mask_flat(G1_W, S1)
    mask2 = np.zeros((1, P2), np.float32)
    mask2[0, :G2] = _interior_mask_flat(G2_W, S2)
    mask3 = np.zeros((1, P3), np.float32)
    mask3[0, :G3] = _interior_mask_flat(G3_W, S3)

    sel1 = np.zeros((P1, P2), np.float32)          # maxpool subsample G1 -> G2
    for y in range(S2):
        for x in range(S2):
            sel1[(2 * y) * G1_W + 2 * x, (y + 1) * G2_W + (x + 1)] = 1.0

    sel2 = np.zeros((P2, P3), np.float32)          # stride-2 subsample G2 -> G3
    for y in range(S3):
        for x in range(S3):
            sel2[(2 * y + 1) * G2_W + (2 * x + 1), (y + 1) * G3_W + (x + 1)] = 1.0

    avg = np.zeros((P3, 1), np.float32)            # global average over interior
    for r in range(1, S3 + 1):
        for c in range(1, S3 + 1):
            avg[r * G3_W + c, 0] = 1.0 / float(S3 * S3)

    eye = np.eye(B, dtype=np.float32)
    return [jnp.asarray(np.tile(mask1, (1, B))),
            jnp.asarray(np.kron(eye, sel1)),
            jnp.asarray(np.tile(mask2, (1, B))),
            jnp.asarray(np.kron(eye, sel2)),
            jnp.asarray(np.tile(mask3, (1, B))),
            jnp.asarray(np.kron(eye, avg))]


# ---------------------------------------------------------------------------
# Deterministic parameter construction (shapes from my_network.__init__)
# ---------------------------------------------------------------------------
def make_conv_bn_params(key, cin, cout, k):
    kw_, kg, kb, km, kv = jax.random.split(key, 5)
    w = 0.1 * jax.random.normal(kw_, (k, k, cin, cout), jnp.float32)   # HWIO
    gamma = 1.0 + 0.1 * jax.random.normal(kg, (cout,), jnp.float32)
    beta = 0.1 * jax.random.normal(kb, (cout,), jnp.float32)
    r_mean = 0.1 * jax.random.normal(km, (cout,), jnp.float32)
    r_var = jax.random.uniform(kv, (cout,), jnp.float32, 0.5, 1.5)
    scale = gamma / jnp.sqrt(r_var + 1e-5)          # eval-mode BN folding
    bias = beta - r_mean * scale
    return (w, scale, bias)


def make_block_params(key, cin, cout, stride):
    k1, k2, k3 = jax.random.split(key, 3)
    return {
        'conv1': make_conv_bn_params(k1, cin, cout, 3),
        'conv2': make_conv_bn_params(k2, cout, cout, 3),
        'shortcut': (make_conv_bn_params(k3, cin, cout, 1)
                     if (stride != 1 or cin != cout) else None),
    }


def make_network_params(key):
    ks = jax.random.split(key, 5)
    return {
        'stem': make_conv_bn_params(ks[0], 3, 6, 7),
        'layer1': [make_block_params(ks[1], 6, 6, 1),
                   make_block_params(ks[2], 6, 6, 1)],
        'layer2': [make_block_params(ks[3], 6, 12, 2),
                   make_block_params(ks[4], 12, 12, 1)],
    }


# ---------------------------------------------------------------------------
# Host-side weight folding / packing (BN folded, channels sublane-padded)
# ---------------------------------------------------------------------------
def _fold_conv(w, scale, bias, cin_pad, cout_pad):
    """Return ((cout_pad, k*k*cin_pad) weight, (cout_pad, 1) bias).
    Layout is tap-major / cin-minor; padded channel rows & columns are zero."""
    kh, kw, cin, cout = w.shape
    ws = (w * scale[None, None, None, :]).transpose(3, 0, 1, 2)
    ws = ws.reshape(cout, kh * kw, cin)
    wmat = jnp.zeros((cout_pad, kh * kw, cin_pad), jnp.float32)
    wmat = wmat.at[:cout, :, :cin].set(ws)
    bcol = jnp.zeros((cout_pad, 1), jnp.float32).at[:cout, 0].set(bias)
    return wmat.reshape(cout_pad, kh * kw * cin_pad), bcol


def _pack_weights(params):
    l1, l2 = params['layer1'], params['layer2']
    m8, m16 = {}, {}
    m8['w_stem'], m8['b_stem'] = _fold_conv(*params['stem'], C1, C1)
    m8['w11a'], m8['b11a'] = _fold_conv(*l1[0]['conv1'], C1, C1)
    m8['w11b'], m8['b11b'] = _fold_conv(*l1[0]['conv2'], C1, C1)
    m8['w12a'], m8['b12a'] = _fold_conv(*l1[1]['conv1'], C1, C1)
    m8['w12b'], m8['b12b'] = _fold_conv(*l1[1]['conv2'], C1, C1)

    m16['w21a'], m16['b21a'] = _fold_conv(*l2[0]['conv1'], C1, C2)
    m16['w21b'], m16['b21b'] = _fold_conv(*l2[0]['conv2'], C2, C2)
    m16['w21s'], m16['b21s'] = _fold_conv(*l2[0]['shortcut'], C1, C2)
    m16['w22a'], m16['b22a'] = _fold_conv(*l2[1]['conv1'], C2, C2)
    m16['w22b'], m16['b22b'] = _fold_conv(*l2[1]['conv2'], C2, C2)

    def pack(mats, layout, rows):
        cols = []
        for name, width in layout:
            arr = mats[name]
            assert arr.shape == (rows, width), (name, arr.shape, (rows, width))
            cols.append(arr)
        return jnp.concatenate(cols, axis=1)

    return pack(m8, _W8_LAYOUT, C1), pack(m16, _W16_LAYOUT, C2)


# ---------------------------------------------------------------------------
# Host-side input prep: pad + stride-2 phase decomposition + lane batching
# ---------------------------------------------------------------------------
def _prep_phases(x_nchw, B):
    n = x_nchw.shape[0]
    n_steps = n // B
    x = x_nchw.astype(jnp.float32)
    xp = jnp.pad(x, ((0, 0), (0, 0), (3, 3), (3, 3)))                  # (N,3,38,38)
    ph = jnp.stack([xp[:, :, a::2, b::2] for a in range(2) for b in range(2)],
                   axis=1)                                             # (N,4,3,19,19)
    ph = ph.reshape(n, 4, 3, G1)
    # channel pad 3 -> 8 (sublane alignment) and append the per-image halo
    ph = jnp.pad(ph, ((0, 0), (0, 0), (0, C1 - 3), (0, M1)))           # (N,4,8,G1+M1)
    ph = ph.reshape(n_steps, B, 4 * C1, G1 + M1)
    ph = jnp.transpose(ph, (0, 2, 1, 3)).reshape(n_steps, 4 * C1, B * (G1 + M1))
    return jnp.pad(ph, ((0, 0), (0, 0), (M1, M1)))                     # (steps,32,PW1)


# ---------------------------------------------------------------------------
# Forward pass (mirrors my_network.forward) -- single fused pallas_call
# ---------------------------------------------------------------------------
def my_network_forward(x_nchw, params, images_per_step=None):
    n, c, h, w = x_nchw.shape
    assert (c, h, w) == (3, IN_H, IN_W), "kernel geometry is specialized for 3x32x32"

    # Lane-batching: default = whole batch in one grid step (best on 1-TC
    # v5e/v6e).  On v7x with n >= 4, pass images_per_step = n // 2 so a 2-step
    # "parallel" grid keeps both TensorCores busy while still amortizing taps.
    B = n if images_per_step is None else images_per_step
    assert n % B == 0 and B >= 1
    n_steps = n // B

    BG1, BG2, BG3 = B * (G1 + M1), B * (G2 + M2), B * (G3 + M3)
    PW1, PW2, PW3 = BG1 + 2 * M1, BG2 + 2 * M2, BG3 + 2 * M3

    phases = _prep_phases(x_nchw, B)
    statics = _build_statics(B)
    wp8, wp16 = _pack_weights(params)

    f32 = jnp.float32

    def kernel(phases_ref, mask1_ref, sel1_ref, mask2_ref, sel2_ref,
               mask3_ref, avg_ref, wp8_ref, wp16_ref, out_ref,
               act_g1, act_g2, tmp_g2, act_g3, tmp_g3, t_stem, t_g2):

        def w8(name):
            c0, width = OFF8[name]
            return wp8_ref[:, c0:c0 + width]

        def w16(name):
            c0, width = OFF16[name]
            return wp16_ref[:, c0:c0 + width]

        # ---- zero only the halo strips (read but never written) -------------
        for ref, marg, bg in ((act_g1, M1, BG1), (act_g2, M2, BG2),
                              (tmp_g2, M2, BG2), (act_g3, M3, BG3),
                              (tmp_g3, M3, BG3)):
            z = jnp.zeros((ref.shape[0], marg), f32)
            ref[:, 0:marg] = z
            ref[:, marg + bg:marg + bg + marg] = z

        # ---- stem: 7x7 / stride-2 conv (+folded BN) + ReLU -------------------
        # Each tap = constant lane shift of one stride-2 phase; taps are staged
        # 8-sublane aligned straight from the input ref, then one MXU matmul.
        for t, (i, j) in enumerate(TAPS7):
            p = (i % 2) * 2 + (j % 2)
            lo = M1 + (i // 2 - 1) * G1_W + (j // 2 - 1)
            t_stem[C1 * t:C1 * t + C1, :] = \
                phases_ref[C1 * p:C1 * p + C1, lo:lo + BG1]
        x = jnp.dot(w8("w_stem"), t_stem[...], preferred_element_type=f32)
        x = jnp.maximum(x + w8("b_stem"), 0.0) * mask1_ref[...]
        act_g1[:, M1:M1 + BG1] = x

        # ---- maxpool 3x3 / stride 2 / pad 1 (zero pad == -inf pad: x >= 0) ---
        m = act_g1[:, M1:M1 + BG1]
        for (i, j) in TAPS3[1:]:
            off = i * G1_W + j
            m = jnp.maximum(m, act_g1[:, M1 + off:M1 + off + BG1])
        act_g2[:, M2:M2 + BG2] = jnp.dot(m, sel1_ref[...],
                                         preferred_element_type=f32)

        # ---- conv helpers ----------------------------------------------------
        def conv3x3_staged(src_ref, wmat, bias, marg, bg, gw):
            """Stride-1 3x3 conv over the flattened grid as ONE MXU matmul;
            taps are staged 8-sublane aligned into t_g2."""
            for t, (i, j) in enumerate(TAPS3):
                off = (i - 1) * gw + (j - 1)
                t_g2[C1 * t:C1 * t + C1, :] = src_ref[:, marg + off:marg + off + bg]
            return jnp.dot(wmat, t_g2[...], preferred_element_type=f32) + bias

        def conv3x3_acc(src_ref, wname, bias, marg, bg, gw):
            """Tiny-grid stride-1 3x3 conv: accumulate 9 per-tap matmuls
            straight from shifted reads (no staging store/reload)."""
            c0, _ = OFF16[wname]
            acc = None
            for t, (i, j) in enumerate(TAPS3):
                off = (i - 1) * gw + (j - 1)
                contrib = jnp.dot(wp16_ref[:, c0 + C2 * t:c0 + C2 * t + C2],
                                  src_ref[:, marg + off:marg + off + bg],
                                  preferred_element_type=f32)
                acc = contrib if acc is None else acc + contrib
            return acc + bias

        # ---- layer1: 2 x BasicBlock(6 -> 6, stride 1, identity shortcut) -----
        mask2 = mask2_ref[...]
        for wa, ba, wb, bb in (("w11a", "b11a", "w11b", "b11b"),
                               ("w12a", "b12a", "w12b", "b12b")):
            resid = act_g2[:, M2:M2 + BG2]
            h = conv3x3_staged(act_g2, w8(wa), w8(ba), M2, BG2, G2_W)
            tmp_g2[:, M2:M2 + BG2] = jnp.maximum(h, 0.0) * mask2
            o = conv3x3_staged(tmp_g2, w8(wb), w8(bb), M2, BG2, G2_W) + resid
            act_g2[:, M2:M2 + BG2] = jnp.maximum(o, 0.0) * mask2

        # ---- layer2 block1: BasicBlock(6 -> 12, stride 2, 1x1 shortcut) ------
        mask3 = mask3_ref[...]
        d1 = conv3x3_staged(act_g2, w16("w21a"), w16("b21a"), M2, BG2, G2_W)
        d1 = jnp.maximum(d1, 0.0)                                       # (16, BG2)
        tmp_g3[:, M3:M3 + BG3] = jnp.dot(d1, sel2_ref[...],
                                         preferred_element_type=f32)    # (16, BG3)
        sc_in = jnp.dot(act_g2[:, M2:M2 + BG2], sel2_ref[...],
                        preferred_element_type=f32)                     # (8, BG3)
        sc = jnp.dot(w16("w21s"), sc_in, preferred_element_type=f32) + w16("b21s")
        d2 = conv3x3_acc(tmp_g3, "w21b", w16("b21b"), M3, BG3, G3_W)
        act_g3[:, M3:M3 + BG3] = jnp.maximum(d2 + sc, 0.0) * mask3

        # ---- layer2 block2: BasicBlock(12 -> 12, stride 1, identity) ---------
        resid = act_g3[:, M3:M3 + BG3]
        h = conv3x3_acc(act_g3, "w22a", w16("b22a"), M3, BG3, G3_W)
        tmp_g3[:, M3:M3 + BG3] = jnp.maximum(h, 0.0) * mask3
        o = conv3x3_acc(tmp_g3, "w22b", w16("b22b"), M3, BG3, G3_W) + resid
        act_g3[:, M3:M3 + BG3] = jnp.maximum(o, 0.0) * mask3

        # ---- global average pool over each image's 4x4 interior --------------
        out_ref[...] = jnp.dot(act_g3[:, M3:M3 + BG3], avg_ref[...],
                               preferred_element_type=f32)               # (16, B)

    def shared(arr):
        nd = arr.ndim
        return pl.BlockSpec(arr.shape, lambda s, _nd=nd: (0,) * _nd)

    in_specs = ([pl.BlockSpec((None, 4 * C1, PW1), lambda s: (s, 0, 0))]
                + [shared(a) for a in statics]
                + [shared(wp8), shared(wp16)])

    scratch = [
        pltpu.VMEM((C1, PW1), f32),        # act_g1 : masked stem output
        pltpu.VMEM((C1, PW2), f32),        # act_g2 : layer1 activation
        pltpu.VMEM((C1, PW2), f32),        # tmp_g2 : intra-block temp
        pltpu.VMEM((C2, PW3), f32),        # act_g3 : layer2 activation
        pltpu.VMEM((C2, PW3), f32),        # tmp_g3 : intra-block temp
        pltpu.VMEM((49 * C1, BG1), f32),   # t_stem : 8-row aligned stem taps
        pltpu.VMEM((9 * C1, BG2), f32),    # t_g2   : 8-row aligned 3x3 taps
    ]

    out = pl.pallas_call(
        kernel,
        out_shape=jax.ShapeDtypeStruct((n_steps, C2, B), f32),
        grid=(n_steps,),
        in_specs=in_specs,
        out_specs=pl.BlockSpec((None, C2, B), lambda s: (s, 0, 0)),
        scratch_shapes=scratch,
        compiler_params=pltpu.CompilerParams(
            dimension_semantics=("parallel",),      # v7x: grid steps on both TCs
        ),
    )(phases, *statics, wp8, wp16)

    # (steps, 16, B) -> (N, 12)  (channel rows 12..15 are zero padding)
    return out.transpose(0, 2, 1).reshape(n, C2)[:, :12]


if __name__ == "__main__":
    key = jax.random.PRNGKey(0)
    k_params, k_x = jax.random.split(key)
    params = make_network_params(k_params)
    x = jax.random.normal(k_x, (2, 3, 32, 32), jnp.float32)            # NCHW input

    fwd = jax.jit(my_network_forward)
    out = jax.block_until_ready(fwd(x, params))
    assert out.shape == (2, 12), out.shape
    assert bool(jnp.all(jnp.isfinite(out))), "non-finite output"
    print("KERNEL_OK")
</pallas_src>

<mosaic_0001>
module attributes {stable_mosaic.version = 11 : i64} {
  func.func @kernel(%arg0: i32, %arg1: memref<1x32x914xf32, #tpu.memory_space<vmem>>, %arg2: memref<1x818xf32, #tpu.memory_space<vmem>>, %arg3: memref<818x232xf32, #tpu.memory_space<vmem>>, %arg4: memref<1x232xf32, #tpu.memory_space<vmem>>, %arg5: memref<232x88xf32, #tpu.memory_space<vmem>>, %arg6: memref<1x88xf32, #tpu.memory_space<vmem>>, %arg7: memref<88x2xf32, #tpu.memory_space<vmem>>, %arg8: memref<8x685xf32, #tpu.memory_space<vmem>>, %arg9: memref<16x517xf32, #tpu.memory_space<vmem>>, %arg10: memref<1x16x2xf32, #tpu.memory_space<vmem>>, %arg11: memref<8x914xf32, #tpu.memory_space<vmem>>, %arg12: memref<8x264xf32, #tpu.memory_space<vmem>>, %arg13: memref<8x264xf32, #tpu.memory_space<vmem>>, %arg14: memref<16x104xf32, #tpu.memory_space<vmem>>, %arg15: memref<16x104xf32, #tpu.memory_space<vmem>>, %arg16: memref<392x818xf32, #tpu.memory_space<vmem>>, %arg17: memref<72x232xf32, #tpu.memory_space<vmem>>) attributes {dimension_semantics = [#tpu.dimension_semantics<parallel>], iteration_bounds = array<i64: 1>, scalar_prefetch = 0 : i64, scratch_operands = 7 : i64, tpu.core_type = #tpu.core_type<tc>, window_params = [{transform_indices = @transform_0, window_bounds = array<i64: 1, 32, 914>}, {pipeline_mode = #tpu.pipeline_mode<synchronous>, transform_indices = @transform_1, window_bounds = array<i64: 1, 818>}, {pipeline_mode = #tpu.pipeline_mode<synchronous>, transform_indices = @transform_2, window_bounds = array<i64: 818, 232>}, {pipeline_mode = #tpu.pipeline_mode<synchronous>, transform_indices = @transform_3, window_bounds = array<i64: 1, 232>}, {pipeline_mode = #tpu.pipeline_mode<synchronous>, transform_indices = @transform_4, window_bounds = array<i64: 232, 88>}, {pipeline_mode = #tpu.pipeline_mode<synchronous>, transform_indices = @transform_5, window_bounds = array<i64: 1, 88>}, {pipeline_mode = #tpu.pipeline_mode<synchronous>, transform_indices = @transform_6, window_bounds = array<i64: 88, 2>}, {pipeline_mode = #tpu.pipeline_mode<synchronous>, transform_indices = @transform_7, window_bounds = array<i64: 8, 685>}, {pipeline_mode = #tpu.pipeline_mode<synchronous>, transform_indices = @transform_8, window_bounds = array<i64: 16, 517>}, {transform_indices = @transform_9, window_bounds = array<i64: 1, 16, 2>}]} {
    %cst = arith.constant 0.000000e+00 : f32
    %0 = vector.broadcast %cst : f32 to vector<8x48xf32>
    %c0 = arith.constant 0 : index
    %c0_0 = arith.constant 0 : index
    %1 = vector.load %arg11[%c0, %c0_0] : memref<8x914xf32, #tpu.memory_space<vmem>>, vector<8x48xf32>
    tpu.vector_store %arg11[%c0, %c0_0], %0 {strides = array<i32>} : memref<8x914xf32, #tpu.memory_space<vmem>>, vector<8x48xf32>,
    %c0_1 = arith.constant 0 : index
    %c866 = arith.constant 866 : index
    %2 = vector.load %arg11[%c0_1, %c866] : memref<8x914xf32, #tpu.memory_space<vmem>>, vector<8x48xf32>
    tpu.vector_store %arg11[%c0_1, %c866], %0 {strides = array<i32>} : memref<8x914xf32, #tpu.memory_space<vmem>>, vector<8x48xf32>,
    %cst_2 = arith.constant 0.000000e+00 : f32
    %3 = vector.broadcast %cst_2 : f32 to vector<8x16xf32>
    %c0_3 = arith.constant 0 : index
    %c0_4 = arith.constant 0 : index
    %4 = vector.load %arg12[%c0_3, %c0_4] : memref<8x264xf32, #tpu.memory_space<vmem>>, vector<8x16xf32>
    tpu.vector_store %arg12[%c0_3, %c0_4], %3 {strides = array<i32>} : memref<8x264xf32, #tpu.memory_space<vmem>>, vector<8x16xf32>,
    %c0_5 = arith.constant 0 : index
    %c248 = arith.constant 248 : index
    %5 = vector.load %arg12[%c0_5, %c248] : memref<8x264xf32, #tpu.memory_space<vmem>>, vector<8x16xf32>
    tpu.vector_store %arg12[%c0_5, %c248], %3 {strides = array<i32>} : memref<8x264xf32, #tpu.memory_space<vmem>>, vector<8x16xf32>,
    %cst_6 = arith.constant 0.000000e+00 : f32
    %6 = vector.broadcast %cst_6 : f32 to vector<8x16xf32>
    %c0_7 = arith.constant 0 : index
    %c0_8 = arith.constant 0 : index
    %7 = vector.load %arg13[%c0_7, %c0_8] : memref<8x264xf32, #tpu.memory_space<vmem>>, vector<8x16xf32>
    tpu.vector_store %arg13[%c0_7, %c0_8], %6 {strides = array<i32>} : memref<8x264xf32, #tpu.memory_space<vmem>>, vector<8x16xf32>,
    %c0_9 = arith.constant 0 : index
    %c248_10 = arith.constant 248 : index
    %8 = vector.load %arg13[%c0_9, %c248_10] : memref<8x264xf32, #tpu.memory_space<vmem>>, vector<8x16xf32>
    tpu.vector_store %arg13[%c0_9, %c248_10], %6 {strides = array<i32>} : memref<8x264xf32, #tpu.memory_space<vmem>>, vector<8x16xf32>,
    %cst_11 = arith.constant 0.000000e+00 : f32
    %9 = vector.broadcast %cst_11 : f32 to vector<16x8xf32>
    %c0_12 = arith.constant 0 : index
    %c0_13 = arith.constant 0 : index
    %10 = vector.load %arg14[%c0_12, %c0_13] : memref<16x104xf32, #tpu.memory_space<vmem>>, vector<16x8xf32>
    tpu.vector_store %arg14[%c0_12, %c0_13], %9 {strides = array<i32>} : memref<16x104xf32, #tpu.memory_space<vmem>>, vector<16x8xf32>,
    %c0_14 = arith.constant 0 : index
    %c96 = arith.constant 96 : index
    %11 = vector.load %arg14[%c0_14, %c96] : memref<16x104xf32, #tpu.memory_space<vmem>>, vector<16x8xf32>
    tpu.vector_store %arg14[%c0_14, %c96], %9 {strides = array<i32>} : memref<16x104xf32, #tpu.memory_space<vmem>>, vector<16x8xf32>,
    %cst_15 = arith.constant 0.000000e+00 : f32
    %12 = vector.broadcast %cst_15 : f32 to vector<16x8xf32>
    %c0_16 = arith.constant 0 : index
    %c0_17 = arith.constant 0 : index
    %13 = vector.load %arg15[%c0_16, %c0_17] : memref<16x104xf32, #tpu.memory_space<vmem>>, vector<16x8xf32>
    tpu.vector_store %arg15[%c0_16, %c0_17], %12 {strides = array<i32>} : memref<16x104xf32, #tpu.memory_space<vmem>>, vector<16x8xf32>,
    %c0_18 = arith.constant 0 : index
    %c96_19 = arith.constant 96 : index
    %14 = vector.load %arg15[%c0_18, %c96_19] : memref<16x104xf32, #tpu.memory_space<vmem>>, vector<16x8xf32>
    tpu.vector_store %arg15[%c0_18, %c96_19], %12 {strides = array<i32>} : memref<16x104xf32, #tpu.memory_space<vmem>>, vector<16x8xf32>,
    %c0_20 = arith.constant 0 : index
    %c0_21 = arith.constant 0 : index
    %c28 = arith.constant 28 : index
    %15 = vector.load %arg1[%c0_20, %c0_21, %c28] : memref<1x32x914xf32, #tpu.memory_space<vmem>>, vector<1x8x818xf32>
    %16 = vector.shape_cast %15 : vector<1x8x818xf32> to vector<8x818xf32>
    %c0_22 = arith.constant 0 : index
    %c0_23 = arith.constant 0 : index
    %17 = vector.load %arg16[%c0_22, %c0_23] : memref<392x818xf32, #tpu.memory_space<vmem>>, vector<8x818xf32>
    tpu.vector_store %arg16[%c0_22, %c0_23], %16 {strides = array<i32>} : memref<392x818xf32, #tpu.memory_space<vmem>>, vector<8x818xf32>,
    %c0_24 = arith.constant 0 : index
    %c8 = arith.constant 8 : index
    %c28_25 = arith.constant 28 : index
    %18 = vector.load %arg1[%c0_24, %c8, %c28_25] : memref<1x32x914xf32, #tpu.memory_space<vmem>>, vector<1x8x818xf32>
    %19 = vector.shape_cast %18 : vector<1x8x818xf32> to vector<8x818xf32>
    %c8_26 = arith.constant 8 : index
    %c0_27 = arith.constant 0 : index
    %20 = vector.load %arg16[%c8_26, %c0_27] : memref<392x818xf32, #tpu.memory_space<vmem>>, vector<8x818xf32>
    tpu.vector_store %arg16[%c8_26, %c0_27], %19 {strides = array<i32>} : memref<392x818xf32, #tpu.memory_space<vmem>>, vector<8x818xf32>,
    %c0_28 = arith.constant 0 : index
    %c0_29 = arith.constant 0 : index
    %c29 = arith.constant 29 : index
    %21 = vector.load %arg1[%c0_28, %c0_29, %c29] : memref<1x32x914xf32, #tpu.memory_space<vmem>>, vector<1x8x818xf32>
    %22 = vector.shape_cast %21 : vector<1x8x818xf32> to vector<8x818xf32>
    %c16 = arith.constant 16 : index
    %c0_30 = arith.constant 0 : index
    %23 = vector.load %arg16[%c16, %c0_30] : memref<392x818xf32, #tpu.memory_space<vmem>>, vector<8x818xf32>
    tpu.vector_store %arg16[%c16, %c0_30], %22 {strides = array<i32>} : memref<392x818xf32, #tpu.memory_space<vmem>>, vector<8x818xf32>,
    %c0_31 = arith.constant 0 : index
    %c8_32 = arith.constant 8 : index
    %c29_33 = arith.constant 29 : index
    %24 = vector.load %arg1[%c0_31, %c8_32, %c29_33] : memref<1x32x914xf32, #tpu.memory_space<vmem>>, vector<1x8x818xf32>
    %25 = vector.shape_cast %24 : vector<1x8x818xf32> to vector<8x818xf32>
    %c24 = arith.constant 24 : index
    %c0_34 = arith.constant 0 : index
    %26 = vector.load %arg16[%c24, %c0_34] : memref<392x818xf32, #tpu.memory_space<vmem>>, vector<8x818xf32>
    tpu.vector_store %arg16[%c24, %c0_34], %25 {strides = array<i32>} : memref<392x818xf32, #tpu.memory_space<vmem>>, vector<8x818xf32>,
    %c0_35 = arith.constant 0 : index
    %c0_36 = arith.constant 0 : index
    %c30 = arith.constant 30 : index
    %27 = vector.load %arg1[%c0_35, %c0_36, %c30] : memref<1x32x914xf32, #tpu.memory_space<vmem>>, vector<1x8x818xf32>
    %28 = vector.shape_cast %27 : vector<1x8x818xf32> to vector<8x818xf32>
    %c32 = arith.constant 32 : index
    %c0_37 = arith.constant 0 : index
    %29 = vector.load %arg16[%c32, %c0_37] : memref<392x818xf32, #tpu.memory_space<vmem>>, vector<8x818xf32>
    tpu.vector_store %arg16[%c32, %c0_37], %28 {strides = array<i32>} : memref<392x818xf32, #tpu.memory_space<vmem>>, vector<8x818xf32>,
    %c0_38 = arith.constant 0 : index
    %c8_39 = arith.constant 8 : index
    %c30_40 = arith.constant 30 : index
    %30 = vector.load %arg1[%c0_38, %c8_39, %c30_40] : memref<1x32x914xf32, #tpu.memory_space<vmem>>, vector<1x8x818xf32>
    %31 = vector.shape_cast %30 : vector<1x8x818xf32> to vector<8x818xf32>
    %c40 = arith.constant 40 : index
    %c0_41 = arith.constant 0 : index
    %32 = vector.load %arg16[%c40, %c0_41] : memref<392x818xf32, #tpu.memory_space<vmem>>, vector<8x818xf32>
    tpu.vector_store %arg16[%c40, %c0_41], %31 {strides = array<i32>} : memref<392x818xf32, #tpu.memory_space<vmem>>, vector<8x818xf32>,
    %c0_42 = arith.constant 0 : index
    %c0_43 = arith.constant 0 : index
    %c31 = arith.constant 31 : index
    %33 = vector.load %arg1[%c0_42, %c0_43, %c31] : memref<1x32x914xf32, #tpu.memory_space<vmem>>, vector<1x8x818xf32>
    %34 = vector.shape_cast %33 : vector<1x8x818xf32> to vector<8x818xf32>
    %c48 = arith.constant 48 : index
    %c0_44 = arith.constant 0 : index
    %35 = vector.load %arg16[%c48, %c0_44] : memref<392x818xf32, #tpu.memory_space<vmem>>, vector<8x818xf32>
    tpu.vector_store %arg16[%c48, %c0_44], %34 {strides = array<i32>} : memref<392x818xf32, #tpu.memory_space<vmem>>, vector<8x818xf32>,
    %c0_45 = arith.constant 0 : index
    %c16_46 = arith.constant 16 : index
    %c28_47 = arith.constant 28 : index
    %36 = vector.load %arg1[%c0_45, %c16_46, %c28_47] : memref<1x32x914xf32, #tpu.memory_space<vmem>>, vector<1x8x818xf32>
    %37 = vector.shape_cast %36 : vector<1x8x818xf32> to vector<8x818xf32>
    %c56 = arith.constant 56 : index
    %c0_48 = arith.constant 0 : index
    %38 = vector.load %arg16[%c56, %c0_48] : memref<392x818xf32, #tpu.memory_space<vmem>>, vector<8x818xf32>
    tpu.vector_store %arg16[%c56, %c0_48], %37 {strides = array<i32>} : memref<392x818xf32, #tpu.memory_space<vmem>>, vector<8x818xf32>,
    %c0_49 = arith.constant 0 : index
    %c24_50 = arith.constant 24 : index
    %c28_51 = arith.constant 28 : index
    %39 = vector.load %arg1[%c0_49, %c24_50, %c28_51] : memref<1x32x914xf32, #tpu.memory_space<vmem>>, vector<1x8x818xf32>
    %40 = vector.shape_cast %39 : vector<1x8x818xf32> to vector<8x818xf32>
    %c64 = arith.constant 64 : index
    %c0_52 = arith.constant 0 : index
    %41 = vector.load %arg16[%c64, %c0_52] : memref<392x818xf32, #tpu.memory_space<vmem>>, vector<8x818xf32>
    tpu.vector_store %arg16[%c64, %c0_52], %40 {strides = array<i32>} : memref<392x818xf32, #tpu.memory_space<vmem>>, vector<8x818xf32>,
    %c0_53 = arith.constant 0 : index
    %c16_54 = arith.constant 16 : index
    %c29_55 = arith.constant 29 : index
    %42 = vector.load %arg1[%c0_53, %c16_54, %c29_55] : memref<1x32x914xf32, #tpu.memory_space<vmem>>, vector<1x8x818xf32>
    %43 = vector.shape_cast %42 : vector<1x8x818xf32> to vector<8x818xf32>
    %c72 = arith.constant 72 : index
    %c0_56 = arith.constant 0 : index
    %44 = vector.load %arg16[%c72, %c0_56] : memref<392x818xf32, #tpu.memory_space<vmem>>, vector<8x818xf32>
    tpu.vector_store %arg16[%c72, %c0_56], %43 {strides = array<i32>} : memref<392x818xf32, #tpu.memory_space<vmem>>, vector<8x818xf32>,
    %c0_57 = arith.constant 0 : index
    %c24_58 = arith.constant 24 : index
    %c29_59 = arith.constant 29 : index
    %45 = vector.load %arg1[%c0_57, %c24_58, %c29_59] : memref<1x32x914xf32, #tpu.memory_space<vmem>>, vector<1x8x818xf32>
    %46 = vector.shape_cast %45 : vector<1x8x818xf32> to vector<8x818xf32>
    %c80 = arith.constant 80 : index
    %c0_60 = arith.constant 0 : index
    %47 = vector.load %arg16[%c80, %c0_60] : memref<392x818xf32, #tpu.memory_space<vmem>>, vector<8x818xf32>
    tpu.vector_store %arg16[%c80, %c0_60], %46 {strides = array<i32>} : memref<392x818xf32, #tpu.memory_space<vmem>>, vector<8x818xf32>,
    %c0_61 = arith.constant 0 : index
    %c16_62 = arith.constant 16 : index
    %c30_63 = arith.constant 30 : index
    %48 = vector.load %arg1[%c0_61, %c16_62, %c30_63] : memref<1x32x914xf32, #tpu.memory_space<vmem>>, vector<1x8x818xf32>
    %49 = vector.shape_cast %48 : vector<1x8x818xf32> to vector<8x818xf32>
    %c88 = arith.constant 88 : index
    %c0_64 = arith.constant 0 : index
    %50 = vector.load %arg16[%c88, %c0_64] : memref<392x818xf32, #tpu.memory_space<vmem>>, vector<8x818xf32>
    tpu.vector_store %arg16[%c88, %c0_64], %49 {strides = array<i32>} : memref<392x818xf32, #tpu.memory_space<vmem>>, vector<8x818xf32>,
    %c0_65 = arith.constant 0 : index
    %c24_66 = arith.constant 24 : index
    %c30_67 = arith.constant 30 : index
    %51 = vector.load %arg1[%c0_65, %c24_66, %c30_67] : memref<1x32x914xf32, #tpu.memory_space<vmem>>, vector<1x8x818xf32>
    %52 = vector.shape_cast %51 : vector<1x8x818xf32> to vector<8x818xf32>
    %c96_68 = arith.constant 96 : index
    %c0_69 = arith.constant 0 : index
    %53 = vector.load %arg16[%c96_68, %c0_69] : memref<392x818xf32, #tpu.memory_space<vmem>>, vector<8x818xf32>
    tpu.vector_store %arg16[%c96_68, %c0_69], %52 {strides = array<i32>} : memref<392x818xf32, #tpu.memory_space<vmem>>, vector<8x818xf32>,
    %c0_70 = arith.constant 0 : index
    %c16_71 = arith.constant 16 : index
    %c31_72 = arith.constant 31 : index
    %54 = vector.load %arg1[%c0_70, %c16_71, %c31_72] : memref<1x32x914xf32, #tpu.memory_space<vmem>>, vector<1x8x818xf32>
    %55 = vector.shape_cast %54 : vector<1x8x818xf32> to vector<8x818xf32>
    %c104 = arith.constant 104 : index
    %c0_73 = arith.constant 0 : index
    %56 = vector.load %arg16[%c104, %c0_73] : memref<392x818xf32, #tpu.memory_space<vmem>>, vector<8x818xf32>
    tpu.vector_store %arg16[%c104, %c0_73], %55 {strides = array<i32>} : memref<392x818xf32, #tpu.memory_space<vmem>>, vector<8x818xf32>,
    %c0_74 = arith.constant 0 : index
    %c0_75 = arith.constant 0 : index
    %c47 = arith.constant 47 : index
    %57 = vector.load %arg1[%c0_74, %c0_75, %c47] : memref<1x32x914xf32, #tpu.memory_space<vmem>>, vector<1x8x818xf32>
    %58 = vector.shape_cast %57 : vector<1x8x818xf32> to vector<8x818xf32>
    %c112 = arith.constant 112 : index
    %c0_76 = arith.constant 0 : index
    %59 = vector.load %arg16[%c112, %c0_76] : memref<392x818xf32, #tpu.memory_space<vmem>>, vector<8x818xf32>
    tpu.vector_store %arg16[%c112, %c0_76], %58 {strides = array<i32>} : memref<392x818xf32, #tpu.memory_space<vmem>>, vector<8x818xf32>,
    %c0_77 = arith.constant 0 : index
    %c8_78 = arith.constant 8 : index
    %c47_79 = arith.constant 47 : index
    %60 = vector.load %arg1[%c0_77, %c8_78, %c47_79] : memref<1x32x914xf32, #tpu.memory_space<vmem>>, vector<1x8x818xf32>
    %61 = vector.shape_cast %60 : vector<1x8x818xf32> to vector<8x818xf32>
    %c120 = arith.constant 120 : index
    %c0_80 = arith.constant 0 : index
    %62 = vector.load %arg16[%c120, %c0_80] : memref<392x818xf32, #tpu.memory_space<vmem>>, vector<8x818xf32>
    tpu.vector_store %arg16[%c120, %c0_80], %61 {strides = array<i32>} : memref<392x818xf32, #tpu.memory_space<vmem>>, vector<8x818xf32>,
    %c0_81 = arith.constant 0 : index
    %c0_82 = arith.constant 0 : index
    %c48_83 = arith.constant 48 : index
    %63 = vector.load %arg1[%c0_81, %c0_82, %c48_83] : memref<1x32x914xf32, #tpu.memory_space<vmem>>, vector<1x8x818xf32>
    %64 = vector.shape_cast %63 : vector<1x8x818xf32> to vector<8x818xf32>
    %c128 = arith.constant 128 : index
    %c0_84 = arith.constant 0 : index
    %65 = vector.load %arg16[%c128, %c0_84] : memref<392x818xf32, #tpu.memory_space<vmem>>, vector<8x818xf32>
    tpu.vector_store %arg16[%c128, %c0_84], %64 {strides = array<i32>} : memref<392x818xf32, #tpu.memory_space<vmem>>, vector<8x818xf32>,
    %c0_85 = arith.constant 0 : index
    %c8_86 = arith.constant 8 : index
    %c48_87 = arith.constant 48 : index
    %66 = vector.load %arg1[%c0_85, %c8_86, %c48_87] : memref<1x32x914xf32, #tpu.memory_space<vmem>>, vector<1x8x818xf32>
    %67 = vector.shape_cast %66 : vector<1x8x818xf32> to vector<8x818xf32>
    %c136 = arith.constant 136 : index
    %c0_88 = arith.constant 0 : index
    %68 = vector.load %arg16[%c136, %c0_88] : memref<392x818xf32, #tpu.memory_space<vmem>>, vector<8x818xf32>
    tpu.vector_store %arg16[%c136, %c0_88], %67 {strides = array<i32>} : memref<392x818xf32, #tpu.memory_space<vmem>>, vector<8x818xf32>,
    %c0_89 = arith.constant 0 : index
    %c0_90 = arith.constant 0 : index
    %c49 = arith.constant 49 : index
    %69 = vector.load %arg1[%c0_89, %c0_90, %c49] : memref<1x32x914xf32, #tpu.memory_space<vmem>>, vector<1x8x818xf32>
    %70 = vector.shape_cast %69 : vector<1x8x818xf32> to vector<8x818xf32>
    %c144 = arith.constant 144 : index
    %c0_91 = arith.constant 0 : index
    %71 = vector.load %arg16[%c144, %c0_91] : memref<392x818xf32, #tpu.memory_space<vmem>>, vector<8x818xf32>
    tpu.vector_store %arg16[%c144, %c0_91], %70 {strides = array<i32>} : memref<392x818xf32, #tpu.memory_space<vmem>>, vector<8x818xf32>,
    %c0_92 = arith.constant 0 : index
    %c8_93 = arith.constant 8 : index
    %c49_94 = arith.constant 49 : index
    %72 = vector.load %arg1[%c0_92, %c8_93, %c49_94] : memref<1x32x914xf32, #tpu.memory_space<vmem>>, vector<1x8x818xf32>
    %73 = vector.shape_cast %72 : vector<1x8x818xf32> to vector<8x818xf32>
    %c152 = arith.constant 152 : index
    %c0_95 = arith.constant 0 : index
    %74 = vector.load %arg16[%c152, %c0_95] : memref<392x818xf32, #tpu.memory_space<vmem>>, vector<8x818xf32>
    tpu.vector_store %arg16[%c152, %c0_95], %73 {strides = array<i32>} : memref<392x818xf32, #tpu.memory_space<vmem>>, vector<8x818xf32>,
    %c0_96 = arith.constant 0 : index
    %c0_97 = arith.constant 0 : index
    %c50 = arith.constant 50 : index
    %75 = vector.load %arg1[%c0_96, %c0_97, %c50] : memref<1x32x914xf32, #tpu.memory_space<vmem>>, vector<1x8x818xf32>
    %76 = vector.shape_cast %75 : vector<1x8x818xf32> to vector<8x818xf32>
    %c160 = arith.constant 160 : index
    %c0_98 = arith.constant 0 : index
    %77 = vector.load %arg16[%c160, %c0_98] : memref<392x818xf32, #tpu.memory_space<vmem>>, vector<8x818xf32>
    tpu.vector_store %arg16[%c160, %c0_98], %76 {strides = array<i32>} : memref<392x818xf32, #tpu.memory_space<vmem>>, vector<8x818xf32>,
    %c0_99 = arith.constant 0 : index
    %c16_100 = arith.constant 16 : index
    %c47_101 = arith.constant 47 : index
    %78 = vector.load %arg1[%c0_99, %c16_100, %c47_101] : memref<1x32x914xf32, #tpu.memory_space<vmem>>, vector<1x8x818xf32>
    %79 = vector.shape_cast %78 : vector<1x8x818xf32> to vector<8x818xf32>
    %c168 = arith.constant 168 : index
    %c0_102 = arith.constant 0 : index
    %80 = vector.load %arg16[%c168, %c0_102] : memref<392x818xf32, #tpu.memory_space<vmem>>, vector<8x818xf32>
    tpu.vector_store %arg16[%c168, %c0_102], %79 {strides = array<i32>} : memref<392x818xf32, #tpu.memory_space<vmem>>, vector<8x818xf32>,
    %c0_103 = arith.constant 0 : index
    %c24_104 = arith.constant 24 : index
    %c47_105 = arith.constant 47 : index
    %81 = vector.load %arg1[%c0_103, %c24_104, %c47_105] : memref<1x32x914xf32, #tpu.memory_space<vmem>>, vector<1x8x818xf32>
    %82 = vector.shape_cast %81 : vector<1x8x818xf32> to vector<8x818xf32>
    %c176 = arith.constant 176 : index
    %c0_106 = arith.constant 0 : index
    %83 = vector.load %arg16[%c176, %c0_106] : memref<392x818xf32, #tpu.memory_space<vmem>>, vector<8x818xf32>
    tpu.vector_store %arg16[%c176, %c0_106], %82 {strides = array<i32>} : memref<392x818xf32, #tpu.memory_space<vmem>>, vector<8x818xf32>,
    %c0_107 = arith.constant 0 : index
    %c16_108 = arith.constant 16 : index
    %c48_109 = arith.constant 48 : index
    %84 = vector.load %arg1[%c0_107, %c16_108, %c48_109] : memref<1x32x914xf32, #tpu.memory_space<vmem>>, vector<1x8x818xf32>
    %85 = vector.shape_cast %84 : vector<1x8x818xf32> to vector<8x818xf32>
    %c184 = arith.constant 184 : index
    %c0_110 = arith.constant 0 : index
    %86 = vector.load %arg16[%c184, %c0_110] : memref<392x818xf32, #tpu.memory_space<vmem>>, vector<8x818xf32>
    tpu.vector_store %arg16[%c184, %c0_110], %85 {strides = array<i32>} : memref<392x818xf32, #tpu.memory_space<vmem>>, vector<8x818xf32>,
    %c0_111 = arith.constant 0 : index
    %c24_112 = arith.constant 24 : index
    %c48_113 = arith.constant 48 : index
    %87 = vector.load %arg1[%c0_111, %c24_112, %c48_113] : memref<1x32x914xf32, #tpu.memory_space<vmem>>, vector<1x8x818xf32>
    %88 = vector.shape_cast %87 : vector<1x8x818xf32> to vector<8x818xf32>
    %c192 = arith.constant 192 : index
    %c0_114 = arith.constant 0 : index
    %89 = vector.load %arg16[%c192, %c0_114] : memref<392x818xf32, #tpu.memory_space<vmem>>, vector<8x818xf32>
    tpu.vector_store %arg16[%c192, %c0_114], %88 {strides = array<i32>} : memref<392x818xf32, #tpu.memory_space<vmem>>, vector<8x818xf32>,
    %c0_115 = arith.constant 0 : index
    %c16_116 = arith.constant 16 : index
    %c49_117 = arith.constant 49 : index
    %90 = vector.load %arg1[%c0_115, %c16_116, %c49_117] : memref<1x32x914xf32, #tpu.memory_space<vmem>>, vector<1x8x818xf32>
    %91 = vector.shape_cast %90 : vector<1x8x818xf32> to vector<8x818xf32>
    %c200 = arith.constant 200 : index
    %c0_118 = arith.constant 0 : index
    %92 = vector.load %arg16[%c200, %c0_118] : memref<392x818xf32, #tpu.memory_space<vmem>>, vector<8x818xf32>
    tpu.vector_store %arg16[%c200, %c0_118], %91 {strides = array<i32>} : memref<392x818xf32, #tpu.memory_space<vmem>>, vector<8x818xf32>,
    %c0_119 = arith.constant 0 : index
    %c24_120 = arith.constant 24 : index
    %c49_121 = arith.constant 49 : index
    %93 = vector.load %arg1[%c0_119, %c24_120, %c49_121] : memref<1x32x914xf32, #tpu.memory_space<vmem>>, vector<1x8x818xf32>
    %94 = vector.shape_cast %93 : vector<1x8x818xf32> to vector<8x818xf32>
    %c208 = arith.constant 208 : index
    %c0_122 = arith.constant 0 : index
    %95 = vector.load %arg16[%c208, %c0_122] : memref<392x818xf32, #tpu.memory_space<vmem>>, vector<8x818xf32>
    tpu.vector_store %arg16[%c208, %c0_122], %94 {strides = array<i32>} : memref<392x818xf32, #tpu.memory_space<vmem>>, vector<8x818xf32>,
    %c0_123 = arith.constant 0 : index
    %c16_124 = arith.constant 16 : index
    %c50_125 = arith.constant 50 : index
    %96 = vector.load %arg1[%c0_123, %c16_124, %c50_125] : memref<1x32x914xf32, #tpu.memory_space<vmem>>, vector<1x8x818xf32>
    %97 = vector.shape_cast %96 : vector<1x8x818xf32> to vector<8x818xf32>
    %c216 = arith.constant 216 : index
    %c0_126 = arith.constant 0 : index
    %98 = vector.load %arg16[%c216, %c0_126] : memref<392x818xf32, #tpu.memory_space<vmem>>, vector<8x818xf32>
    tpu.vector_store %arg16[%c216, %c0_126], %97 {strides = array<i32>} : memref<392x818xf32, #tpu.memory_space<vmem>>, vector<8x818xf32>,
    %c0_127 = arith.constant 0 : index
    %c0_128 = arith.constant 0 : index
    %c66 = arith.constant 66 : index
    %99 = vector.load %arg1[%c0_127, %c0_128, %c66] : memref<1x32x914xf32, #tpu.memory_space<vmem>>, vector<1x8x818xf32>
    %100 = vector.shape_cast %99 : vector<1x8x818xf32> to vector<8x818xf32>
    %c224 = arith.constant 224 : index
    %c0_129 = arith.constant 0 : index
    %101 = vector.load %arg16[%c224, %c0_129] : memref<392x818xf32, #tpu.memory_space<vmem>>, vector<8x818xf32>
    tpu.vector_store %arg16[%c224, %c0_129], %100 {strides = array<i32>} : memref<392x818xf32, #tpu.memory_space<vmem>>, vector<8x818xf32>,
    %c0_130 = arith.constant 0 : index
    %c8_131 = arith.constant 8 : index
    %c66_132 = arith.constant 66 : index
    %102 = vector.load %arg1[%c0_130, %c8_131, %c66_132] : memref<1x32x914xf32, #tpu.memory_space<vmem>>, vector<1x8x818xf32>
    %103 = vector.shape_cast %102 : vector<1x8x818xf32> to vector<8x818xf32>
    %c232 = arith.constant 232 : index
    %c0_133 = arith.constant 0 : index
    %104 = vector.load %arg16[%c232, %c0_133] : memref<392x818xf32, #tpu.memory_space<vmem>>, vector<8x818xf32>
    tpu.vector_store %arg16[%c232, %c0_133], %103 {strides = array<i32>} : memref<392x818xf32, #tpu.memory_space<vmem>>, vector<8x818xf32>,
    %c0_134 = arith.constant 0 : index
    %c0_135 = arith.constant 0 : index
    %c67 = arith.constant 67 : index
    %105 = vector.load %arg1[%c0_134, %c0_135, %c67] : memref<1x32x914xf32, #tpu.memory_space<vmem>>, vector<1x8x818xf32>
    %106 = vector.shape_cast %105 : vector<1x8x818xf32> to vector<8x818xf32>
    %c240 = arith.constant 240 : index
    %c0_136 = arith.constant 0 : index
    %107 = vector.load %arg16[%c240, %c0_136] : memref<392x818xf32, #tpu.memory_space<vmem>>, vector<8x818xf32>
    tpu.vector_store %arg16[%c240, %c0_136], %106 {strides = array<i32>} : memref<392x818xf32, #tpu.memory_space<vmem>>, vector<8x818xf32>,
    %c0_137 = arith.constant 0 : index
    %c8_138 = arith.constant 8 : index
    %c67_139 = arith.constant 67 : index
    %108 = vector.load %arg1[%c0_137, %c8_138, %c67_139] : memref<1x32x914xf32, #tpu.memory_space<vmem>>, vector<1x8x818xf32>
    %109 = vector.shape_cast %108 : vector<1x8x818xf32> to vector<8x818xf32>
    %c248_140 = arith.constant 248 : index
    %c0_141 = arith.constant 0 : index
    %110 = vector.load %arg16[%c248_140, %c0_141] : memref<392x818xf32, #tpu.memory_space<vmem>>, vector<8x818xf32>
    tpu.vector_store %arg16[%c248_140, %c0_141], %109 {strides = array<i32>} : memref<392x818xf32, #tpu.memory_space<vmem>>, vector<8x818xf32>,
    %c0_142 = arith.constant 0 : index
    %c0_143 = arith.constant 0 : index
    %c68 = arith.constant 68 : index
    %111 = vector.load %arg1[%c0_142, %c0_143, %c68] : memref<1x32x914xf32, #tpu.memory_space<vmem>>, vector<1x8x818xf32>
    %112 = vector.shape_cast %111 : vector<1x8x818xf32> to vector<8x818xf32>
    %c256 = arith.constant 256 : index
    %c0_144 = arith.constant 0 : index
    %113 = vector.load %arg16[%c256, %c0_144] : memref<392x818xf32, #tpu.memory_space<vmem>>, vector<8x818xf32>
    tpu.vector_store %arg16[%c256, %c0_144], %112 {strides = array<i32>} : memref<392x818xf32, #tpu.memory_space<vmem>>, vector<8x818xf32>,
    %c0_145 = arith.constant 0 : index
    %c8_146 = arith.constant 8 : index
    %c68_147 = arith.constant 68 : index
    %114 = vector.load %arg1[%c0_145, %c8_146, %c68_147] : memref<1x32x914xf32, #tpu.memory_space<vmem>>, vector<1x8x818xf32>
    %115 = vector.shape_cast %114 : vector<1x8x818xf32> to vector<8x818xf32>
    %c264 = arith.constant 264 : index
    %c0_148 = arith.constant 0 : index
    %116 = vector.load %arg16[%c264, %c0_148] : memref<392x818xf32, #tpu.memory_space<vmem>>, vector<8x818xf32>
    tpu.vector_store %arg16[%c264, %c0_148], %115 {strides = array<i32>} : memref<392x818xf32, #tpu.memory_space<vmem>>, vector<8x818xf32>,
    %c0_149 = arith.constant 0 : index
    %c0_150 = arith.constant 0 : index
    %c69 = arith.constant 69 : index
    %117 = vector.load %arg1[%c0_149, %c0_150, %c69] : memref<1x32x914xf32, #tpu.memory_space<vmem>>, vector<1x8x818xf32>
    %118 = vector.shape_cast %117 : vector<1x8x818xf32> to vector<8x818xf32>
    %c272 = arith.constant 272 : index
    %c0_151 = arith.constant 0 : index
    %119 = vector.load %arg16[%c272, %c0_151] : memref<392x818xf32, #tpu.memory_space<vmem>>, vector<8x818xf32>
    tpu.vector_store %arg16[%c272, %c0_151], %118 {strides = array<i32>} : memref<392x818xf32, #tpu.memory_space<vmem>>, vector<8x818xf32>,
    %c0_152 = arith.constant 0 : index
    %c16_153 = arith.constant 16 : index
    %c66_154 = arith.constant 66 : index
    %120 = vector.load %arg1[%c0_152, %c16_153, %c66_154] : memref<1x32x914xf32, #tpu.memory_space<vmem>>, vector<1x8x818xf32>
    %121 = vector.shape_cast %120 : vector<1x8x818xf32> to vector<8x818xf32>
    %c280 = arith.constant 280 : index
    %c0_155 = arith.constant 0 : index
    %122 = vector.load %arg16[%c280, %c0_155] : memref<392x818xf32, #tpu.memory_space<vmem>>, vector<8x818xf32>
    tpu.vector_store %arg16[%c280, %c0_155], %121 {strides = array<i32>} : memref<392x818xf32, #tpu.memory_space<vmem>>, vector<8x818xf32>,
    %c0_156 = arith.constant 0 : index
    %c24_157 = arith.constant 24 : index
    %c66_158 = arith.constant 66 : index
    %123 = vector.load %arg1[%c0_156, %c24_157, %c66_158] : memref<1x32x914xf32, #tpu.memory_space<vmem>>, vector<1x8x818xf32>
    %124 = vector.shape_cast %123 : vector<1x8x818xf32> to vector<8x818xf32>
    %c288 = arith.constant 288 : index
    %c0_159 = arith.constant 0 : index
    %125 = vector.load %arg16[%c288, %c0_159] : memref<392x818xf32, #tpu.memory_space<vmem>>, vector<8x818xf32>
    tpu.vector_store %arg16[%c288, %c0_159], %124 {strides = array<i32>} : memref<392x818xf32, #tpu.memory_space<vmem>>, vector<8x818xf32>,
    %c0_160 = arith.constant 0 : index
    %c16_161 = arith.constant 16 : index
    %c67_162 = arith.constant 67 : index
    %126 = vector.load %arg1[%c0_160, %c16_161, %c67_162] : memref<1x32x914xf32, #tpu.memory_space<vmem>>, vector<1x8x818xf32>
    %127 = vector.shape_cast %126 : vector<1x8x818xf32> to vector<8x818xf32>
    %c296 = arith.constant 296 : index
    %c0_163 = arith.constant 0 : index
    %128 = vector.load %arg16[%c296, %c0_163] : memref<392x818xf32, #tpu.memory_space<vmem>>, vector<8x818xf32>
    tpu.vector_store %arg16[%c296, %c0_163], %127 {strides = array<i32>} : memref<392x818xf32, #tpu.memory_space<vmem>>, vector<8x818xf32>,
    %c0_164 = arith.constant 0 : index
    %c24_165 = arith.constant 24 : index
    %c67_166 = arith.constant 67 : index
    %129 = vector.load %arg1[%c0_164, %c24_165, %c67_166] : memref<1x32x914xf32, #tpu.memory_space<vmem>>, vector<1x8x818xf32>
    %130 = vector.shape_cast %129 : vector<1x8x818xf32> to vector<8x818xf32>
    %c304 = arith.constant 304 : index
    %c0_167 = arith.constant 0 : index
    %131 = vector.load %arg16[%c304, %c0_167] : memref<392x818xf32, #tpu.memory_space<vmem>>, vector<8x818xf32>
    tpu.vector_store %arg16[%c304, %c0_167], %130 {strides = array<i32>} : memref<392x818xf32, #tpu.memory_space<vmem>>, vector<8x818xf32>,
    %c0_168 = arith.constant 0 : index
    %c16_169 = arith.constant 16 : index
    %c68_170 = arith.constant 68 : index
    %132 = vector.load %arg1[%c0_168, %c16_169, %c68_170] : memref<1x32x914xf32, #tpu.memory_space<vmem>>, vector<1x8x818xf32>
    %133 = vector.shape_cast %132 : vector<1x8x818xf32> to vector<8x818xf32>
    %c312 = arith.constant 312 : index
    %c0_171 = arith.constant 0 : index
    %134 = vector.load %arg16[%c312, %c0_171] : memref<392x818xf32, #tpu.memory_space<vmem>>, vector<8x818xf32>
    tpu.vector_store %arg16[%c312, %c0_171], %133 {strides = array<i32>} : memref<392x818xf32, #tpu.memory_space<vmem>>, vector<8x818xf32>,
    %c0_172 = arith.constant 0 : index
    %c24_173 = arith.constant 24 : index
    %c68_174 = arith.constant 68 : index
    %135 = vector.load %arg1[%c0_172, %c24_173, %c68_174] : memref<1x32x914xf32, #tpu.memory_space<vmem>>, vector<1x8x818xf32>
    %136 = vector.shape_cast %135 : vector<1x8x818xf32> to vector<8x818xf32>
    %c320 = arith.constant 320 : index
    %c0_175 = arith.constant 0 : index
    %137 = vector.load %arg16[%c320, %c0_175] : memref<392x818xf32, #tpu.memory_space<vmem>>, vector<8x818xf32>
    tpu.vector_store %arg16[%c320, %c0_175], %136 {strides = array<i32>} : memref<392x818xf32, #tpu.memory_space<vmem>>, vector<8x818xf32>,
    %c0_176 = arith.constant 0 : index
    %c16_177 = arith.constant 16 : index
    %c69_178 = arith.constant 69 : index
    %138 = vector.load %arg1[%c0_176, %c16_177, %c69_178] : memref<1x32x914xf32, #tpu.memory_space<vmem>>, vector<1x8x818xf32>
    %139 = vector.shape_cast %138 : vector<1x8x818xf32> to vector<8x818xf32>
    %c328 = arith.constant 328 : index
    %c0_179 = arith.constant 0 : index
    %140 = vector.load %arg16[%c328, %c0_179] : memref<392x818xf32, #tpu.memory_space<vmem>>, vector<8x818xf32>
    tpu.vector_store %arg16[%c328, %c0_179], %139 {strides = array<i32>} : memref<392x818xf32, #tpu.memory_space<vmem>>, vector<8x818xf32>,
    %c0_180 = arith.constant 0 : index
    %c0_181 = arith.constant 0 : index
    %c85 = arith.constant 85 : index
    %141 = vector.load %arg1[%c0_180, %c0_181, %c85] : memref<1x32x914xf32, #tpu.memory_space<vmem>>, vector<1x8x818xf32>
    %142 = vector.shape_cast %141 : vector<1x8x818xf32> to vector<8x818xf32>
    %c336 = arith.constant 336 : index
    %c0_182 = arith.constant 0 : index
    %143 = vector.load %arg16[%c336, %c0_182] : memref<392x818xf32, #tpu.memory_space<vmem>>, vector<8x818xf32>
    tpu.vector_store %arg16[%c336, %c0_182], %142 {strides = array<i32>} : memref<392x818xf32, #tpu.memory_space<vmem>>, vector<8x818xf32>,
    %c0_183 = arith.constant 0 : index
    %c8_184 = arith.constant 8 : index
    %c85_185 = arith.constant 85 : index
    %144 = vector.load %arg1[%c0_183, %c8_184, %c85_185] : memref<1x32x914xf32, #tpu.memory_space<vmem>>, vector<1x8x818xf32>
    %145 = vector.shape_cast %144 : vector<1x8x818xf32> to vector<8x818xf32>
    %c344 = arith.constant 344 : index
    %c0_186 = arith.constant 0 : index
    %146 = vector.load %arg16[%c344, %c0_186] : memref<392x818xf32, #tpu.memory_space<vmem>>, vector<8x818xf32>
    tpu.vector_store %arg16[%c344, %c0_186], %145 {strides = array<i32>} : memref<392x818xf32, #tpu.memory_space<vmem>>, vector<8x818xf32>,
    %c0_187 = arith.constant 0 : index
    %c0_188 = arith.constant 0 : index
    %c86 = arith.constant 86 : index
    %147 = vector.load %arg1[%c0_187, %c0_188, %c86] : memref<1x32x914xf32, #tpu.memory_space<vmem>>, vector<1x8x818xf32>
    %148 = vector.shape_cast %147 : vector<1x8x818xf32> to vector<8x818xf32>
    %c352 = arith.constant 352 : index
    %c0_189 = arith.constant 0 : index
    %149 = vector.load %arg16[%c352, %c0_189] : memref<392x818xf32, #tpu.memory_space<vmem>>, vector<8x818xf32>
    tpu.vector_store %arg16[%c352, %c0_189], %148 {strides = array<i32>} : memref<392x818xf32, #tpu.memory_space<vmem>>, vector<8x818xf32>,
    %c0_190 = arith.constant 0 : index
    %c8_191 = arith.constant 8 : index
    %c86_192 = arith.constant 86 : index
    %150 = vector.load %arg1[%c0_190, %c8_191, %c86_192] : memref<1x32x914xf32, #tpu.memory_space<vmem>>, vector<1x8x818xf32>
    %151 = vector.shape_cast %150 : vector<1x8x818xf32> to vector<8x818xf32>
    %c360 = arith.constant 360 : index
    %c0_193 = arith.constant 0 : index
    %152 = vector.load %arg16[%c360, %c0_193] : memref<392x818xf32, #tpu.memory_space<vmem>>, vector<8x818xf32>
    tpu.vector_store %arg16[%c360, %c0_193], %151 {strides = array<i32>} : memref<392x818xf32, #tpu.memory_space<vmem>>, vector<8x818xf32>,
    %c0_194 = arith.constant 0 : index
    %c0_195 = arith.constant 0 : index
    %c87 = arith.constant 87 : index
    %153 = vector.load %arg1[%c0_194, %c0_195, %c87] : memref<1x32x914xf32, #tpu.memory_space<vmem>>, vector<1x8x818xf32>
    %154 = vector.shape_cast %153 : vector<1x8x818xf32> to vector<8x818xf32>
    %c368 = arith.constant 368 : index
    %c0_196 = arith.constant 0 : index
    %155 = vector.load %arg16[%c368, %c0_196] : memref<392x818xf32, #tpu.memory_space<vmem>>, vector<8x818xf32>
    tpu.vector_store %arg16[%c368, %c0_196], %154 {strides = array<i32>} : memref<392x818xf32, #tpu.memory_space<vmem>>, vector<8x818xf32>,
    %c0_197 = arith.constant 0 : index
    %c8_198 = arith.constant 8 : index
    %c87_199 = arith.constant 87 : index
    %156 = vector.load %arg1[%c0_197, %c8_198, %c87_199] : memref<1x32x914xf32, #tpu.memory_space<vmem>>, vector<1x8x818xf32>
    %157 = vector.shape_cast %156 : vector<1x8x818xf32> to vector<8x818xf32>
    %c376 = arith.constant 376 : index
    %c0_200 = arith.constant 0 : index
    %158 = vector.load %arg16[%c376, %c0_200] : memref<392x818xf32, #tpu.memory_space<vmem>>, vector<8x818xf32>
    tpu.vector_store %arg16[%c376, %c0_200], %157 {strides = array<i32>} : memref<392x818xf32, #tpu.memory_space<vmem>>, vector<8x818xf32>,
    %c0_201 = arith.constant 0 : index
    %c0_202 = arith.constant 0 : index
    %c88_203 = arith.constant 88 : index
    %159 = vector.load %arg1[%c0_201, %c0_202, %c88_203] : memref<1x32x914xf32, #tpu.memory_space<vmem>>, vector<1x8x818xf32>
    %160 = vector.shape_cast %159 : vector<1x8x818xf32> to vector<8x818xf32>
    %c384 = arith.constant 384 : index
    %c0_204 = arith.constant 0 : index
    %161 = vector.load %arg16[%c384, %c0_204] : memref<392x818xf32, #tpu.memory_space<vmem>>, vector<8x818xf32>
    tpu.vector_store %arg16[%c384, %c0_204], %160 {strides = array<i32>} : memref<392x818xf32, #tpu.memory_space<vmem>>, vector<8x818xf32>,
    %c0_205 = arith.constant 0 : index
    %c0_206 = arith.constant 0 : index
    %162 = vector.load %arg8[%c0_205, %c0_206] : memref<8x685xf32, #tpu.memory_space<vmem>>, vector<8x392xf32>
    %c0_207 = arith.constant 0 : index
    %c0_208 = arith.constant 0 : index
    %163 = vector.load %arg16[%c0_207, %c0_208] : memref<392x818xf32, #tpu.memory_space<vmem>>, vector<392x818xf32>
    %cst_209 = arith.constant dense<0.000000e+00> : vector<8x818xf32>
    %164 = tpu.matmul %162, %163, %cst_209 {dimension_numbers = #tpu.dot_dimension_numbers<[1], [0], [0], [1], [0, 0, 1, 1], [], []>} : vector<8x392xf32>, vector<392x818xf32>, vector<8x818xf32> -> vector<8x818xf32>
    %c0_210 = arith.constant 0 : index
    %c392 = arith.constant 392 : index
    %165 = vector.load %arg8[%c0_210, %c392] : memref<8x685xf32, #tpu.memory_space<vmem>>, vector<8x1xf32>
    %166 = vector.broadcast %165 : vector<8x1xf32> to vector<8x818xf32>
    %167 = arith.addf %164, %166 : vector<8x818xf32>
    %cst_211 = arith.constant 0.000000e+00 : f32
    %168 = vector.broadcast %cst_211 : f32 to vector<8x818xf32>
    %169 = arith.maximumf %167, %168 : vector<8x818xf32>
    %c0_212 = arith.constant 0 : index
    %c0_213 = arith.constant 0 : index
    %170 = vector.load %arg2[%c0_212, %c0_213] : memref<1x818xf32, #tpu.memory_space<vmem>>, vector<1x818xf32>
    %171 = vector.broadcast %170 : vector<1x818xf32> to vector<8x818xf32>
    %172 = arith.mulf %169, %171 : vector<8x818xf32>
    %c0_214 = arith.constant 0 : index
    %c48_215 = arith.constant 48 : index
    %173 = vector.load %arg11[%c0_214, %c48_215] : memref<8x914xf32, #tpu.memory_space<vmem>>, vector<8x818xf32>
    tpu.vector_store %arg11[%c0_214, %c48_215], %172 {strides = array<i32>} : memref<8x914xf32, #tpu.memory_space<vmem>>, vector<8x818xf32>,
    %c0_216 = arith.constant 0 : index
    %c48_217 = arith.constant 48 : index
    %174 = vector.load %arg11[%c0_216, %c48_217] : memref<8x914xf32, #tpu.memory_space<vmem>>, vector<8x818xf32>
    %c0_218 = arith.constant 0 : index
    %c49_219 = arith.constant 49 : index
    %175 = vector.load %arg11[%c0_218, %c49_219] : memref<8x914xf32, #tpu.memory_space<vmem>>, vector<8x818xf32>
    %176 = arith.maximumf %174, %175 : vector<8x818xf32>
    %c0_220 = arith.constant 0 : index
    %c50_221 = arith.constant 50 : index
    %177 = vector.load %arg11[%c0_220, %c50_221] : memref<8x914xf32, #tpu.memory_space<vmem>>, vector<8x818xf32>
    %178 = arith.maximumf %176, %177 : vector<8x818xf32>
    %c0_222 = arith.constant 0 : index
    %c67_223 = arith.constant 67 : index
    %179 = vector.load %arg11[%c0_222, %c67_223] : memref<8x914xf32, #tpu.memory_space<vmem>>, vector<8x818xf32>
    %180 = arith.maximumf %178, %179 : vector<8x818xf32>
    %c0_224 = arith.constant 0 : index
    %c68_225 = arith.constant 68 : index
    %181 = vector.load %arg11[%c0_224, %c68_225] : memref<8x914xf32, #tpu.memory_space<vmem>>, vector<8x818xf32>
    %182 = arith.maximumf %180, %181 : vector<8x818xf32>
    %c0_226 = arith.constant 0 : index
    %c69_227 = arith.constant 69 : index
    %183 = vector.load %arg11[%c0_226, %c69_227] : memref<8x914xf32, #tpu.memory_space<vmem>>, vector<8x818xf32>
    %184 = arith.maximumf %182, %183 : vector<8x818xf32>
    %c0_228 = arith.constant 0 : index
    %c86_229 = arith.constant 86 : index
    %185 = vector.load %arg11[%c0_228, %c86_229] : memref<8x914xf32, #tpu.memory_space<vmem>>, vector<8x818xf32>
    %186 = arith.maximumf %184, %185 : vector<8x818xf32>
    %c0_230 = arith.constant 0 : index
    %c87_231 = arith.constant 87 : index
    %187 = vector.load %arg11[%c0_230, %c87_231] : memref<8x914xf32, #tpu.memory_space<vmem>>, vector<8x818xf32>
    %188 = arith.maximumf %186, %187 : vector<8x818xf32>
    %c0_232 = arith.constant 0 : index
    %c88_233 = arith.constant 88 : index
    %189 = vector.load %arg11[%c0_232, %c88_233] : memref<8x914xf32, #tpu.memory_space<vmem>>, vector<8x818xf32>
    %190 = arith.maximumf %188, %189 : vector<8x818xf32>
    %c0_234 = arith.constant 0 : index
    %c0_235 = arith.constant 0 : index
    %191 = vector.load %arg3[%c0_234, %c0_235] : memref<818x232xf32, #tpu.memory_space<vmem>>, vector<818x232xf32>
    %cst_236 = arith.constant dense<0.000000e+00> : vector<8x232xf32>
    %192 = tpu.matmul %190, %191, %cst_236 {dimension_numbers = #tpu.dot_dimension_numbers<[1], [0], [0], [1], [0, 0, 1, 1], [], []>} : vector<8x818xf32>, vector<818x232xf32>, vector<8x232xf32> -> vector<8x232xf32>
    %c0_237 = arith.constant 0 : index
    %c16_238 = arith.constant 16 : index
    %193 = vector.load %arg12[%c0_237, %c16_238] : memref<8x264xf32, #tpu.memory_space<vmem>>, vector<8x232xf32>
    tpu.vector_store %arg12[%c0_237, %c16_238], %192 {strides = array<i32>} : memref<8x264xf32, #tpu.memory_space<vmem>>, vector<8x232xf32>,
    %c0_239 = arith.constant 0 : index
    %c0_240 = arith.constant 0 : index
    %194 = vector.load %arg4[%c0_239, %c0_240] : memref<1x232xf32, #tpu.memory_space<vmem>>, vector<1x232xf32>
    %c0_241 = arith.constant 0 : index
    %c16_242 = arith.constant 16 : index
    %195 = vector.load %arg12[%c0_241, %c16_242] : memref<8x264xf32, #tpu.memory_space<vmem>>, vector<8x232xf32>
    %c0_243 = arith.constant 0 : index
    %c393 = arith.constant 393 : index
    %196 = vector.load %arg8[%c0_243, %c393] : memref<8x685xf32, #tpu.memory_space<vmem>>, vector<8x72xf32>
    %c0_244 = arith.constant 0 : index
    %c465 = arith.constant 465 : index
    %197 = vector.load %arg8[%c0_244, %c465] : memref<8x685xf32, #tpu.memory_space<vmem>>, vector<8x1xf32>
    %c0_245 = arith.constant 0 : index
    %c5 = arith.constant 5 : index
    %198 = vector.load %arg12[%c0_245, %c5] : memref<8x264xf32, #tpu.memory_space<vmem>>, vector<8x232xf32>
    %c0_246 = arith.constant 0 : index
    %c0_247 = arith.constant 0 : index
    %199 = vector.load %arg17[%c0_246, %c0_247] : memref<72x232xf32, #tpu.memory_space<vmem>>, vector<8x232xf32>
    tpu.vector_store %arg17[%c0_246, %c0_247], %198 {strides = array<i32>} : memref<72x232xf32, #tpu.memory_space<vmem>>, vector<8x232xf32>,
    %c0_248 = arith.constant 0 : index
    %c6 = arith.constant 6 : index
    %200 = vector.load %arg12[%c0_248, %c6] : memref<8x264xf32, #tpu.memory_space<vmem>>, vector<8x232xf32>
    %c8_249 = arith.constant 8 : index
    %c0_250 = arith.constant 0 : index
    %201 = vector.load %arg17[%c8_249, %c0_250] : memref<72x232xf32, #tpu.memory_space<vmem>>, vector<8x232xf32>
    tpu.vector_store %arg17[%c8_249, %c0_250], %200 {strides = array<i32>} : memref<72x232xf32, #tpu.memory_space<vmem>>, vector<8x232xf32>,
    %c0_251 = arith.constant 0 : index
    %c7 = arith.constant 7 : index
    %202 = vector.load %arg12[%c0_251, %c7] : memref<8x264xf32, #tpu.memory_space<vmem>>, vector<8x232xf32>
    %c16_252 = arith.constant 16 : index
    %c0_253 = arith.constant 0 : index
    %203 = vector.load %arg17[%c16_252, %c0_253] : memref<72x232xf32, #tpu.memory_space<vmem>>, vector<8x232xf32>
    tpu.vector_store %arg17[%c16_252, %c0_253], %202 {strides = array<i32>} : memref<72x232xf32, #tpu.memory_space<vmem>>, vector<8x232xf32>,
    %c0_254 = arith.constant 0 : index
    %c15 = arith.constant 15 : index
    %204 = vector.load %arg12[%c0_254, %c15] : memref<8x264xf32, #tpu.memory_space<vmem>>, vector<8x232xf32>
    %c24_255 = arith.constant 24 : index
    %c0_256 = arith.constant 0 : index
    %205 = vector.load %arg17[%c24_255, %c0_256] : memref<72x232xf32, #tpu.memory_space<vmem>>, vector<8x232xf32>
    tpu.vector_store %arg17[%c24_255, %c0_256], %204 {strides = array<i32>} : memref<72x232xf32, #tpu.memory_space<vmem>>, vector<8x232xf32>,
    %c0_257 = arith.constant 0 : index
    %c16_258 = arith.constant 16 : index
    %206 = vector.load %arg12[%c0_257, %c16_258] : memref<8x264xf32, #tpu.memory_space<vmem>>, vector<8x232xf32>
    %c32_259 = arith.constant 32 : index
    %c0_260 = arith.constant 0 : index
    %207 = vector.load %arg17[%c32_259, %c0_260] : memref<72x232xf32, #tpu.memory_space<vmem>>, vector<8x232xf32>
    tpu.vector_store %arg17[%c32_259, %c0_260], %206 {strides = array<i32>} : memref<72x232xf32, #tpu.memory_space<vmem>>, vector<8x232xf32>,
    %c0_261 = arith.constant 0 : index
    %c17 = arith.constant 17 : index
    %208 = vector.load %arg12[%c0_261, %c17] : memref<8x264xf32, #tpu.memory_space<vmem>>, vector<8x232xf32>
    %c40_262 = arith.constant 40 : index
    %c0_263 = arith.constant 0 : index
    %209 = vector.load %arg17[%c40_262, %c0_263] : memref<72x232xf32, #tpu.memory_space<vmem>>, vector<8x232xf32>
    tpu.vector_store %arg17[%c40_262, %c0_263], %208 {strides = array<i32>} : memref<72x232xf32, #tpu.memory_space<vmem>>, vector<8x232xf32>,
    %c0_264 = arith.constant 0 : index
    %c25 = arith.constant 25 : index
    %210 = vector.load %arg12[%c0_264, %c25] : memref<8x264xf32, #tpu.memory_space<vmem>>, vector<8x232xf32>
    %c48_265 = arith.constant 48 : index
    %c0_266 = arith.constant 0 : index
    %211 = vector.load %arg17[%c48_265, %c0_266] : memref<72x232xf32, #tpu.memory_space<vmem>>, vector<8x232xf32>
    tpu.vector_store %arg17[%c48_265, %c0_266], %210 {strides = array<i32>} : memref<72x232xf32, #tpu.memory_space<vmem>>, vector<8x232xf32>,
    %c0_267 = arith.constant 0 : index
    %c26 = arith.constant 26 : index
    %212 = vector.load %arg12[%c0_267, %c26] : memref<8x264xf32, #tpu.memory_space<vmem>>, vector<8x232xf32>
    %c56_268 = arith.constant 56 : index
    %c0_269 = arith.constant 0 : index
    %213 = vector.load %arg17[%c56_268, %c0_269] : memref<72x232xf32, #tpu.memory_space<vmem>>, vector<8x232xf32>
    tpu.vector_store %arg17[%c56_268, %c0_269], %212 {strides = array<i32>} : memref<72x232xf32, #tpu.memory_space<vmem>>, vector<8x232xf32>,
    %c0_270 = arith.constant 0 : index
    %c27 = arith.constant 27 : index
    %214 = vector.load %arg12[%c0_270, %c27] : memref<8x264xf32, #tpu.memory_space<vmem>>, vector<8x232xf32>
    %c64_271 = arith.constant 64 : index
    %c0_272 = arith.constant 0 : index
    %215 = vector.load %arg17[%c64_271, %c0_272] : memref<72x232xf32, #tpu.memory_space<vmem>>, vector<8x232xf32>
    tpu.vector_store %arg17[%c64_271, %c0_272], %214 {strides = array<i32>} : memref<72x232xf32, #tpu.memory_space<vmem>>, vector<8x232xf32>,
    %c0_273 = arith.constant 0 : index
    %c0_274 = arith.constant 0 : index
    %216 = vector.load %arg17[%c0_273, %c0_274] : memref<72x232xf32, #tpu.memory_space<vmem>>, vector<72x232xf32>
    %cst_275 = arith.constant dense<0.000000e+00> : vector<8x232xf32>
    %217 = tpu.matmul %196, %216, %cst_275 {dimension_numbers = #tpu.dot_dimension_numbers<[1], [0], [0], [1], [0, 0, 1, 1], [], []>} : vector<8x72xf32>, vector<72x232xf32>, vector<8x232xf32> -> vector<8x232xf32>
    %218 = vector.broadcast %197 : vector<8x1xf32> to vector<8x232xf32>
    %219 = arith.addf %217, %218 : vector<8x232xf32>
    %cst_276 = arith.constant 0.000000e+00 : f32
    %220 = vector.broadcast %cst_276 : f32 to vector<8x232xf32>
    %221 = arith.maximumf %219, %220 : vector<8x232xf32>
    %222 = vector.broadcast %194 : vector<1x232xf32> to vector<8x232xf32>
    %223 = arith.mulf %221, %222 : vector<8x232xf32>
    %c0_277 = arith.constant 0 : index
    %c16_278 = arith.constant 16 : index
    %224 = vector.load %arg13[%c0_277, %c16_278] : memref<8x264xf32, #tpu.memory_space<vmem>>, vector<8x232xf32>
    tpu.vector_store %arg13[%c0_277, %c16_278], %223 {strides = array<i32>} : memref<8x264xf32, #tpu.memory_space<vmem>>, vector<8x232xf32>,
    %c0_279 = arith.constant 0 : index
    %c466 = arith.constant 466 : index
    %225 = vector.load %arg8[%c0_279, %c466] : memref<8x685xf32, #tpu.memory_space<vmem>>, vector<8x72xf32>
    %c0_280 = arith.constant 0 : index
    %c538 = arith.constant 538 : index
    %226 = vector.load %arg8[%c0_280, %c538] : memref<8x685xf32, #tpu.memory_space<vmem>>, vector<8x1xf32>
    %c0_281 = arith.constant 0 : index
    %c5_282 = arith.constant 5 : index
    %227 = vector.load %arg13[%c0_281, %c5_282] : memref<8x264xf32, #tpu.memory_space<vmem>>, vector<8x232xf32>
    %c0_283 = arith.constant 0 : index
    %c0_284 = arith.constant 0 : index
    %228 = vector.load %arg17[%c0_283, %c0_284] : memref<72x232xf32, #tpu.memory_space<vmem>>, vector<8x232xf32>
    tpu.vector_store %arg17[%c0_283, %c0_284], %227 {strides = array<i32>} : memref<72x232xf32, #tpu.memory_space<vmem>>, vector<8x232xf32>,
    %c0_285 = arith.constant 0 : index
    %c6_286 = arith.constant 6 : index
    %229 = vector.load %arg13[%c0_285, %c6_286] : memref<8x264xf32, #tpu.memory_space<vmem>>, vector<8x232xf32>
    %c8_287 = arith.constant 8 : index
    %c0_288 = arith.constant 0 : index
    %230 = vector.load %arg17[%c8_287, %c0_288] : memref<72x232xf32, #tpu.memory_space<vmem>>, vector<8x232xf32>
    tpu.vector_store %arg17[%c8_287, %c0_288], %229 {strides = array<i32>} : memref<72x232xf32, #tpu.memory_space<vmem>>, vector<8x232xf32>,
    %c0_289 = arith.constant 0 : index
    %c7_290 = arith.constant 7 : index
    %231 = vector.load %arg13[%c0_289, %c7_290] : memref<8x264xf32, #tpu.memory_space<vmem>>, vector<8x232xf32>
    %c16_291 = arith.constant 16 : index
    %c0_292 = arith.constant 0 : index
    %232 = vector.load %arg17[%c16_291, %c0_292] : memref<72x232xf32, #tpu.memory_space<vmem>>, vector<8x232xf32>
    tpu.vector_store %arg17[%c16_291, %c0_292], %231 {strides = array<i32>} : memref<72x232xf32, #tpu.memory_space<vmem>>, vector<8x232xf32>,
    %c0_293 = arith.constant 0 : index
    %c15_294 = arith.constant 15 : index
    %233 = vector.load %arg13[%c0_293, %c15_294] : memref<8x264xf32, #tpu.memory_space<vmem>>, vector<8x232xf32>
    %c24_295 = arith.constant 24 : index
    %c0_296 = arith.constant 0 : index
    %234 = vector.load %arg17[%c24_295, %c0_296] : memref<72x232xf32, #tpu.memory_space<vmem>>, vector<8x232xf32>
    tpu.vector_store %arg17[%c24_295, %c0_296], %233 {strides = array<i32>} : memref<72x232xf32, #tpu.memory_space<vmem>>, vector<8x232xf32>,
    %c0_297 = arith.constant 0 : index
    %c16_298 = arith.constant 16 : index
    %235 = vector.load %arg13[%c0_297, %c16_298] : memref<8x264xf32, #tpu.memory_space<vmem>>, vector<8x232xf32>
    %c32_299 = arith.constant 32 : index
    %c0_300 = arith.constant 0 : index
    %236 = vector.load %arg17[%c32_299, %c0_300] : memref<72x232xf32, #tpu.memory_space<vmem>>, vector<8x232xf32>
    tpu.vector_store %arg17[%c32_299, %c0_300], %235 {strides = array<i32>} : memref<72x232xf32, #tpu.memory_space<vmem>>, vector<8x232xf32>,
    %c0_301 = arith.constant 0 : index
    %c17_302 = arith.constant 17 : index
    %237 = vector.load %arg13[%c0_301, %c17_302] : memref<8x264xf32, #tpu.memory_space<vmem>>, vector<8x232xf32>
    %c40_303 = arith.constant 40 : index
    %c0_304 = arith.constant 0 : index
    %238 = vector.load %arg17[%c40_303, %c0_304] : memref<72x232xf32, #tpu.memory_space<vmem>>, vector<8x232xf32>
    tpu.vector_store %arg17[%c40_303, %c0_304], %237 {strides = array<i32>} : memref<72x232xf32, #tpu.memory_space<vmem>>, vector<8x232xf32>,
    %c0_305 = arith.constant 0 : index
    %c25_306 = arith.constant 25 : index
    %239 = vector.load %arg13[%c0_305, %c25_306] : memref<8x264xf32, #tpu.memory_space<vmem>>, vector<8x232xf32>
    %c48_307 = arith.constant 48 : index
    %c0_308 = arith.constant 0 : index
    %240 = vector.load %arg17[%c48_307, %c0_308] : memref<72x232xf32, #tpu.memory_space<vmem>>, vector<8x232xf32>
    tpu.vector_store %arg17[%c48_307, %c0_308], %239 {strides = array<i32>} : memref<72x232xf32, #tpu.memory_space<vmem>>, vector<8x232xf32>,
    %c0_309 = arith.constant 0 : index
    %c26_310 = arith.constant 26 : index
    %241 = vector.load %arg13[%c0_309, %c26_310] : memref<8x264xf32, #tpu.memory_space<vmem>>, vector<8x232xf32>
    %c56_311 = arith.constant 56 : index
    %c0_312 = arith.constant 0 : index
    %242 = vector.load %arg17[%c56_311, %c0_312] : memref<72x232xf32, #tpu.memory_space<vmem>>, vector<8x232xf32>
    tpu.vector_store %arg17[%c56_311, %c0_312], %241 {strides = array<i32>} : memref<72x232xf32, #tpu.memory_space<vmem>>, vector<8x232xf32>,
    %c0_313 = arith.constant 0 : index
    %c27_314 = arith.constant 27 : index
    %243 = vector.load %arg13[%c0_313, %c27_314] : memref<8x264xf32, #tpu.memory_space<vmem>>, vector<8x232xf32>
    %c64_315 = arith.constant 64 : index
    %c0_316 = arith.constant 0 : index
    %244 = vector.load %arg17[%c64_315, %c0_316] : memref<72x232xf32, #tpu.memory_space<vmem>>, vector<8x232xf32>
    tpu.vector_store %arg17[%c64_315, %c0_316], %243 {strides = array<i32>} : memref<72x232xf32, #tpu.memory_space<vmem>>, vector<8x232xf32>,
    %c0_317 = arith.constant 0 : index
    %c0_318 = arith.constant 0 : index
    %245 = vector.load %arg17[%c0_317, %c0_318] : memref<72x232xf32, #tpu.memory_space<vmem>>, vector<72x232xf32>
    %cst_319 = arith.constant dense<0.000000e+00> : vector<8x232xf32>
    %246 = tpu.matmul %225, %245, %cst_319 {dimension_numbers = #tpu.dot_dimension_numbers<[1], [0], [0], [1], [0, 0, 1, 1], [], []>} : vector<8x72xf32>, vector<72x232xf32>, vector<8x232xf32> -> vector<8x232xf32>
    %247 = vector.broadcast %226 : vector<8x1xf32> to vector<8x232xf32>
    %248 = arith.addf %246, %247 : vector<8x232xf32>
    %249 = arith.addf %248, %195 : vector<8x232xf32>
    %cst_320 = arith.constant 0.000000e+00 : f32
    %250 = vector.broadcast %cst_320 : f32 to vector<8x232xf32>
    %251 = arith.maximumf %249, %250 : vector<8x232xf32>
    %252 = vector.broadcast %194 : vector<1x232xf32> to vector<8x232xf32>
    %253 = arith.mulf %251, %252 : vector<8x232xf32>
    %c0_321 = arith.constant 0 : index
    %c16_322 = arith.constant 16 : index
    %254 = vector.load %arg12[%c0_321, %c16_322] : memref<8x264xf32, #tpu.memory_space<vmem>>, vector<8x232xf32>
    tpu.vector_store %arg12[%c0_321, %c16_322], %253 {strides = array<i32>} : memref<8x264xf32, #tpu.memory_space<vmem>>, vector<8x232xf32>,
    %c0_323 = arith.constant 0 : index
    %c16_324 = arith.constant 16 : index
    %255 = vector.load %arg12[%c0_323, %c16_324] : memref<8x264xf32, #tpu.memory_space<vmem>>, vector<8x232xf32>
    %c0_325 = arith.constant 0 : index
    %c539 = arith.constant 539 : index
    %256 = vector.load %arg8[%c0_325, %c539] : memref<8x685xf32, #tpu.memory_space<vmem>>, vector<8x72xf32>
    %c0_326 = arith.constant 0 : index
    %c611 = arith.constant 611 : index
    %257 = vector.load %arg8[%c0_326, %c611] : memref<8x685xf32, #tpu.memory_space<vmem>>, vector<8x1xf32>
    %c0_327 = arith.constant 0 : index
    %c5_328 = arith.constant 5 : index
    %258 = vector.load %arg12[%c0_327, %c5_328] : memref<8x264xf32, #tpu.memory_space<vmem>>, vector<8x232xf32>
    %c0_329 = arith.constant 0 : index
    %c0_330 = arith.constant 0 : index
    %259 = vector.load %arg17[%c0_329, %c0_330] : memref<72x232xf32, #tpu.memory_space<vmem>>, vector<8x232xf32>
    tpu.vector_store %arg17[%c0_329, %c0_330], %258 {strides = array<i32>} : memref<72x232xf32, #tpu.memory_space<vmem>>, vector<8x232xf32>,
    %c0_331 = arith.constant 0 : index
    %c6_332 = arith.constant 6 : index
    %260 = vector.load %arg12[%c0_331, %c6_332] : memref<8x264xf32, #tpu.memory_space<vmem>>, vector<8x232xf32>
    %c8_333 = arith.constant 8 : index
    %c0_334 = arith.constant 0 : index
    %261 = vector.load %arg17[%c8_333, %c0_334] : memref<72x232xf32, #tpu.memory_space<vmem>>, vector<8x232xf32>
    tpu.vector_store %arg17[%c8_333, %c0_334], %260 {strides = array<i32>} : memref<72x232xf32, #tpu.memory_space<vmem>>, vector<8x232xf32>,
    %c0_335 = arith.constant 0 : index
    %c7_336 = arith.constant 7 : index
    %262 = vector.load %arg12[%c0_335, %c7_336] : memref<8x264xf32, #tpu.memory_space<vmem>>, vector<8x232xf32>
    %c16_337 = arith.constant 16 : index
    %c0_338 = arith.constant 0 : index
    %263 = vector.load %arg17[%c16_337, %c0_338] : memref<72x232xf32, #tpu.memory_space<vmem>>, vector<8x232xf32>
    tpu.vector_store %arg17[%c16_337, %c0_338], %262 {strides = array<i32>} : memref<72x232xf32, #tpu.memory_space<vmem>>, vector<8x232xf32>,
    %c0_339 = arith.constant 0 : index
    %c15_340 = arith.constant 15 : index
    %264 = vector.load %arg12[%c0_339, %c15_340] : memref<8x264xf32, #tpu.memory_space<vmem>>, vector<8x232xf32>
    %c24_341 = arith.constant 24 : index
    %c0_342 = arith.constant 0 : index
    %265 = vector.load %arg17[%c24_341, %c0_342] : memref<72x232xf32, #tpu.memory_space<vmem>>, vector<8x232xf32>
    tpu.vector_store %arg17[%c24_341, %c0_342], %264 {strides = array<i32>} : memref<72x232xf32, #tpu.memory_space<vmem>>, vector<8x232xf32>,
    %c0_343 = arith.constant 0 : index
    %c16_344 = arith.constant 16 : index
    %266 = vector.load %arg12[%c0_343, %c16_344] : memref<8x264xf32, #tpu.memory_space<vmem>>, vector<8x232xf32>
    %c32_345 = arith.constant 32 : index
    %c0_346 = arith.constant 0 : index
    %267 = vector.load %arg17[%c32_345, %c0_346] : memref<72x232xf32, #tpu.memory_space<vmem>>, vector<8x232xf32>
    tpu.vector_store %arg17[%c32_345, %c0_346], %266 {strides = array<i32>} : memref<72x232xf32, #tpu.memory_space<vmem>>, vector<8x232xf32>,
    %c0_347 = arith.constant 0 : index
    %c17_348 = arith.constant 17 : index
    %268 = vector.load %arg12[%c0_347, %c17_348] : memref<8x264xf32, #tpu.memory_space<vmem>>, vector<8x232xf32>
    %c40_349 = arith.constant 40 : index
    %c0_350 = arith.constant 0 : index
    %269 = vector.load %arg17[%c40_349, %c0_350] : memref<72x232xf32, #tpu.memory_space<vmem>>, vector<8x232xf32>
    tpu.vector_store %arg17[%c40_349, %c0_350], %268 {strides = array<i32>} : memref<72x232xf32, #tpu.memory_space<vmem>>, vector<8x232xf32>,
    %c0_351 = arith.constant 0 : index
    %c25_352 = arith.constant 25 : index
    %270 = vector.load %arg12[%c0_351, %c25_352] : memref<8x264xf32, #tpu.memory_space<vmem>>, vector<8x232xf32>
    %c48_353 = arith.constant 48 : index
    %c0_354 = arith.constant 0 : index
    %271 = vector.load %arg17[%c48_353, %c0_354] : memref<72x232xf32, #tpu.memory_space<vmem>>, vector<8x232xf32>
    tpu.vector_store %arg17[%c48_353, %c0_354], %270 {strides = array<i32>} : memref<72x232xf32, #tpu.memory_space<vmem>>, vector<8x232xf32>,
    %c0_355 = arith.constant 0 : index
    %c26_356 = arith.constant 26 : index
    %272 = vector.load %arg12[%c0_355, %c26_356] : memref<8x264xf32, #tpu.memory_space<vmem>>, vector<8x232xf32>
    %c56_357 = arith.constant 56 : index
    %c0_358 = arith.constant 0 : index
    %273 = vector.load %arg17[%c56_357, %c0_358] : memref<72x232xf32, #tpu.memory_space<vmem>>, vector<8x232xf32>
    tpu.vector_store %arg17[%c56_357, %c0_358], %272 {strides = array<i32>} : memref<72x232xf32, #tpu.memory_space<vmem>>, vector<8x232xf32>,
    %c0_359 = arith.constant 0 : index
    %c27_360 = arith.constant 27 : index
    %274 = vector.load %arg12[%c0_359, %c27_360] : memref<8x264xf32, #tpu.memory_space<vmem>>, vector<8x232xf32>
    %c64_361 = arith.constant 64 : index
    %c0_362 = arith.constant 0 : index
    %275 = vector.load %arg17[%c64_361, %c0_362] : memref<72x232xf32, #tpu.memory_space<vmem>>, vector<8x232xf32>
    tpu.vector_store %arg17[%c64_361, %c0_362], %274 {strides = array<i32>} : memref<72x232xf32, #tpu.memory_space<vmem>>, vector<8x232xf32>,
    %c0_363 = arith.constant 0 : index
    %c0_364 = arith.constant 0 : index
    %276 = vector.load %arg17[%c0_363, %c0_364] : memref<72x232xf32, #tpu.memory_space<vmem>>, vector<72x232xf32>
    %cst_365 = arith.constant dense<0.000000e+00> : vector<8x232xf32>
    %277 = tpu.matmul %256, %276, %cst_365 {dimension_numbers = #tpu.dot_dimension_numbers<[1], [0], [0], [1], [0, 0, 1, 1], [], []>} : vector<8x72xf32>, vector<72x232xf32>, vector<8x232xf32> -> vector<8x232xf32>
    %278 = vector.broadcast %257 : vector<8x1xf32> to vector<8x232xf32>
    %279 = arith.addf %277, %278 : vector<8x232xf32>
    %cst_366 = arith.constant 0.000000e+00 : f32
    %280 = vector.broadcast %cst_366 : f32 to vector<8x232xf32>
    %281 = arith.maximumf %279, %280 : vector<8x232xf32>
    %282 = vector.broadcast %194 : vector<1x232xf32> to vector<8x232xf32>
    %283 = arith.mulf %281, %282 : vector<8x232xf32>
    %c0_367 = arith.constant 0 : index
    %c16_368 = arith.constant 16 : index
    %284 = vector.load %arg13[%c0_367, %c16_368] : memref<8x264xf32, #tpu.memory_space<vmem>>, vector<8x232xf32>
    tpu.vector_store %arg13[%c0_367, %c16_368], %283 {strides = array<i32>} : memref<8x264xf32, #tpu.memory_space<vmem>>, vector<8x232xf32>,
    %c0_369 = arith.constant 0 : index
    %c612 = arith.constant 612 : index
    %285 = vector.load %arg8[%c0_369, %c612] : memref<8x685xf32, #tpu.memory_space<vmem>>, vector<8x72xf32>
    %c0_370 = arith.constant 0 : index
    %c684 = arith.constant 684 : index
    %286 = vector.load %arg8[%c0_370, %c684] : memref<8x685xf32, #tpu.memory_space<vmem>>, vector<8x1xf32>
    %c0_371 = arith.constant 0 : index
    %c5_372 = arith.constant 5 : index
    %287 = vector.load %arg13[%c0_371, %c5_372] : memref<8x264xf32, #tpu.memory_space<vmem>>, vector<8x232xf32>
    %c0_373 = arith.constant 0 : index
    %c0_374 = arith.constant 0 : index
    %288 = vector.load %arg17[%c0_373, %c0_374] : memref<72x232xf32, #tpu.memory_space<vmem>>, vector<8x232xf32>
    tpu.vector_store %arg17[%c0_373, %c0_374], %287 {strides = array<i32>} : memref<72x232xf32, #tpu.memory_space<vmem>>, vector<8x232xf32>,
    %c0_375 = arith.constant 0 : index
    %c6_376 = arith.constant 6 : index
    %289 = vector.load %arg13[%c0_375, %c6_376] : memref<8x264xf32, #tpu.memory_space<vmem>>, vector<8x232xf32>
    %c8_377 = arith.constant 8 : index
    %c0_378 = arith.constant 0 : index
    %290 = vector.load %arg17[%c8_377, %c0_378] : memref<72x232xf32, #tpu.memory_space<vmem>>, vector<8x232xf32>
    tpu.vector_store %arg17[%c8_377, %c0_378], %289 {strides = array<i32>} : memref<72x232xf32, #tpu.memory_space<vmem>>, vector<8x232xf32>,
    %c0_379 = arith.constant 0 : index
    %c7_380 = arith.constant 7 : index
    %291 = vector.load %arg13[%c0_379, %c7_380] : memref<8x264xf32, #tpu.memory_space<vmem>>, vector<8x232xf32>
    %c16_381 = arith.constant 16 : index
    %c0_382 = arith.constant 0 : index
    %292 = vector.load %arg17[%c16_381, %c0_382] : memref<72x232xf32, #tpu.memory_space<vmem>>, vector<8x232xf32>
    tpu.vector_store %arg17[%c16_381, %c0_382], %291 {strides = array<i32>} : memref<72x232xf32, #tpu.memory_space<vmem>>, vector<8x232xf32>,
    %c0_383 = arith.constant 0 : index
    %c15_384 = arith.constant 15 : index
    %293 = vector.load %arg13[%c0_383, %c15_384] : memref<8x264xf32, #tpu.memory_space<vmem>>, vector<8x232xf32>
    %c24_385 = arith.constant 24 : index
    %c0_386 = arith.constant 0 : index
    %294 = vector.load %arg17[%c24_385, %c0_386] : memref<72x232xf32, #tpu.memory_space<vmem>>, vector<8x232xf32>
    tpu.vector_store %arg17[%c24_385, %c0_386], %293 {strides = array<i32>} : memref<72x232xf32, #tpu.memory_space<vmem>>, vector<8x232xf32>,
    %c0_387 = arith.constant 0 : index
    %c16_388 = arith.constant 16 : index
    %295 = vector.load %arg13[%c0_387, %c16_388] : memref<8x264xf32, #tpu.memory_space<vmem>>, vector<8x232xf32>
    %c32_389 = arith.constant 32 : index
    %c0_390 = arith.constant 0 : index
    %296 = vector.load %arg17[%c32_389, %c0_390] : memref<72x232xf32, #tpu.memory_space<vmem>>, vector<8x232xf32>
    tpu.vector_store %arg17[%c32_389, %c0_390], %295 {strides = array<i32>} : memref<72x232xf32, #tpu.memory_space<vmem>>, vector<8x232xf32>,
    %c0_391 = arith.constant 0 : index
    %c17_392 = arith.constant 17 : index
    %297 = vector.load %arg13[%c0_391, %c17_392] : memref<8x264xf32, #tpu.memory_space<vmem>>, vector<8x232xf32>
    %c40_393 = arith.constant 40 : index
    %c0_394 = arith.constant 0 : index
    %298 = vector.load %arg17[%c40_393, %c0_394] : memref<72x232xf32, #tpu.memory_space<vmem>>, vector<8x232xf32>
    tpu.vector_store %arg17[%c40_393, %c0_394], %297 {strides = array<i32>} : memref<72x232xf32, #tpu.memory_space<vmem>>, vector<8x232xf32>,
    %c0_395 = arith.constant 0 : index
    %c25_396 = arith.constant 25 : index
    %299 = vector.load %arg13[%c0_395, %c25_396] : memref<8x264xf32, #tpu.memory_space<vmem>>, vector<8x232xf32>
    %c48_397 = arith.constant 48 : index
    %c0_398 = arith.constant 0 : index
    %300 = vector.load %arg17[%c48_397, %c0_398] : memref<72x232xf32, #tpu.memory_space<vmem>>, vector<8x232xf32>
    tpu.vector_store %arg17[%c48_397, %c0_398], %299 {strides = array<i32>} : memref<72x232xf32, #tpu.memory_space<vmem>>, vector<8x232xf32>,
    %c0_399 = arith.constant 0 : index
    %c26_400 = arith.constant 26 : index
    %301 = vector.load %arg13[%c0_399, %c26_400] : memref<8x264xf32, #tpu.memory_space<vmem>>, vector<8x232xf32>
    %c56_401 = arith.constant 56 : index
    %c0_402 = arith.constant 0 : index
    %302 = vector.load %arg17[%c56_401, %c0_402] : memref<72x232xf32, #tpu.memory_space<vmem>>, vector<8x232xf32>
    tpu.vector_store %arg17[%c56_401, %c0_402], %301 {strides = array<i32>} : memref<72x232xf32, #tpu.memory_space<vmem>>, vector<8x232xf32>,
    %c0_403 = arith.constant 0 : index
    %c27_404 = arith.constant 27 : index
    %303 = vector.load %arg13[%c0_403, %c27_404] : memref<8x264xf32, #tpu.memory_space<vmem>>, vector<8x232xf32>
    %c64_405 = arith.constant 64 : index
    %c0_406 = arith.constant 0 : index
    %304 = vector.load %arg17[%c64_405, %c0_406] : memref<72x232xf32, #tpu.memory_space<vmem>>, vector<8x232xf32>
    tpu.vector_store %arg17[%c64_405, %c0_406], %303 {strides = array<i32>} : memref<72x232xf32, #tpu.memory_space<vmem>>, vector<8x232xf32>,
    %c0_407 = arith.constant 0 : index
    %c0_408 = arith.constant 0 : index
    %305 = vector.load %arg17[%c0_407, %c0_408] : memref<72x232xf32, #tpu.memory_space<vmem>>, vector<72x232xf32>
    %cst_409 = arith.constant dense<0.000000e+00> : vector<8x232xf32>
    %306 = tpu.matmul %285, %305, %cst_409 {dimension_numbers = #tpu.dot_dimension_numbers<[1], [0], [0], [1], [0, 0, 1, 1], [], []>} : vector<8x72xf32>, vector<72x232xf32>, vector<8x232xf32> -> vector<8x232xf32>
    %307 = vector.broadcast %286 : vector<8x1xf32> to vector<8x232xf32>
    %308 = arith.addf %306, %307 : vector<8x232xf32>
    %309 = arith.addf %308, %255 : vector<8x232xf32>
    %cst_410 = arith.constant 0.000000e+00 : f32
    %310 = vector.broadcast %cst_410 : f32 to vector<8x232xf32>
    %311 = arith.maximumf %309, %310 : vector<8x232xf32>
    %312 = vector.broadcast %194 : vector<1x232xf32> to vector<8x232xf32>
    %313 = arith.mulf %311, %312 : vector<8x232xf32>
    %c0_411 = arith.constant 0 : index
    %c16_412 = arith.constant 16 : index
    %314 = vector.load %arg12[%c0_411, %c16_412] : memref<8x264xf32, #tpu.memory_space<vmem>>, vector<8x232xf32>
    tpu.vector_store %arg12[%c0_411, %c16_412], %313 {strides = array<i32>} : memref<8x264xf32, #tpu.memory_space<vmem>>, vector<8x232xf32>,
    %c0_413 = arith.constant 0 : index
    %c0_414 = arith.constant 0 : index
    %315 = vector.load %arg6[%c0_413, %c0_414] : memref<1x88xf32, #tpu.memory_space<vmem>>, vector<1x88xf32>
    %c0_415 = arith.constant 0 : index
    %c0_416 = arith.constant 0 : index
    %316 = vector.load %arg9[%c0_415, %c0_416] : memref<16x517xf32, #tpu.memory_space<vmem>>, vector<16x72xf32>
    %c0_417 = arith.constant 0 : index
    %c72_418 = arith.constant 72 : index
    %317 = vector.load %arg9[%c0_417, %c72_418] : memref<16x517xf32, #tpu.memory_space<vmem>>, vector<16x1xf32>
    %c0_419 = arith.constant 0 : index
    %c5_420 = arith.constant 5 : index
    %318 = vector.load %arg12[%c0_419, %c5_420] : memref<8x264xf32, #tpu.memory_space<vmem>>, vector<8x232xf32>
    %c0_421 = arith.constant 0 : index
    %c0_422 = arith.constant 0 : index
    %319 = vector.load %arg17[%c0_421, %c0_422] : memref<72x232xf32, #tpu.memory_space<vmem>>, vector<8x232xf32>
    tpu.vector_store %arg17[%c0_421, %c0_422], %318 {strides = array<i32>} : memref<72x232xf32, #tpu.memory_space<vmem>>, vector<8x232xf32>,
    %c0_423 = arith.constant 0 : index
    %c6_424 = arith.constant 6 : index
    %320 = vector.load %arg12[%c0_423, %c6_424] : memref<8x264xf32, #tpu.memory_space<vmem>>, vector<8x232xf32>
    %c8_425 = arith.constant 8 : index
    %c0_426 = arith.constant 0 : index
    %321 = vector.load %arg17[%c8_425, %c0_426] : memref<72x232xf32, #tpu.memory_space<vmem>>, vector<8x232xf32>
    tpu.vector_store %arg17[%c8_425, %c0_426], %320 {strides = array<i32>} : memref<72x232xf32, #tpu.memory_space<vmem>>, vector<8x232xf32>,
    %c0_427 = arith.constant 0 : index
    %c7_428 = arith.constant 7 : index
    %322 = vector.load %arg12[%c0_427, %c7_428] : memref<8x264xf32, #tpu.memory_space<vmem>>, vector<8x232xf32>
    %c16_429 = arith.constant 16 : index
    %c0_430 = arith.constant 0 : index
    %323 = vector.load %arg17[%c16_429, %c0_430] : memref<72x232xf32, #tpu.memory_space<vmem>>, vector<8x232xf32>
    tpu.vector_store %arg17[%c16_429, %c0_430], %322 {strides = array<i32>} : memref<72x232xf32, #tpu.memory_space<vmem>>, vector<8x232xf32>,
    %c0_431 = arith.constant 0 : index
    %c15_432 = arith.constant 15 : index
    %324 = vector.load %arg12[%c0_431, %c15_432] : memref<8x264xf32, #tpu.memory_space<vmem>>, vector<8x232xf32>
    %c24_433 = arith.constant 24 : index
    %c0_434 = arith.constant 0 : index
    %325 = vector.load %arg17[%c24_433, %c0_434] : memref<72x232xf32, #tpu.memory_space<vmem>>, vector<8x232xf32>
    tpu.vector_store %arg17[%c24_433, %c0_434], %324 {strides = array<i32>} : memref<72x232xf32, #tpu.memory_space<vmem>>, vector<8x232xf32>,
    %c0_435 = arith.constant 0 : index
    %c16_436 = arith.constant 16 : index
    %326 = vector.load %arg12[%c0_435, %c16_436] : memref<8x264xf32, #tpu.memory_space<vmem>>, vector<8x232xf32>
    %c32_437 = arith.constant 32 : index
    %c0_438 = arith.constant 0 : index
    %327 = vector.load %arg17[%c32_437, %c0_438] : memref<72x232xf32, #tpu.memory_space<vmem>>, vector<8x232xf32>
    tpu.vector_store %arg17[%c32_437, %c0_438], %326 {strides = array<i32>} : memref<72x232xf32, #tpu.memory_space<vmem>>, vector<8x232xf32>,
    %c0_439 = arith.constant 0 : index
    %c17_440 = arith.constant 17 : index
    %328 = vector.load %arg12[%c0_439, %c17_440] : memref<8x264xf32, #tpu.memory_space<vmem>>, vector<8x232xf32>
    %c40_441 = arith.constant 40 : index
    %c0_442 = arith.constant 0 : index
    %329 = vector.load %arg17[%c40_441, %c0_442] : memref<72x232xf32, #tpu.memory_space<vmem>>, vector<8x232xf32>
    tpu.vector_store %arg17[%c40_441, %c0_442], %328 {strides = array<i32>} : memref<72x232xf32, #tpu.memory_space<vmem>>, vector<8x232xf32>,
    %c0_443 = arith.constant 0 : index
    %c25_444 = arith.constant 25 : index
    %330 = vector.load %arg12[%c0_443, %c25_444] : memref<8x264xf32, #tpu.memory_space<vmem>>, vector<8x232xf32>
    %c48_445 = arith.constant 48 : index
    %c0_446 = arith.constant 0 : index
    %331 = vector.load %arg17[%c48_445, %c0_446] : memref<72x232xf32, #tpu.memory_space<vmem>>, vector<8x232xf32>
    tpu.vector_store %arg17[%c48_445, %c0_446], %330 {strides = array<i32>} : memref<72x232xf32, #tpu.memory_space<vmem>>, vector<8x232xf32>,
    %c0_447 = arith.constant 0 : index
    %c26_448 = arith.constant 26 : index
    %332 = vector.load %arg12[%c0_447, %c26_448] : memref<8x264xf32, #tpu.memory_space<vmem>>, vector<8x232xf32>
    %c56_449 = arith.constant 56 : index
    %c0_450 = arith.constant 0 : index
    %333 = vector.load %arg17[%c56_449, %c0_450] : memref<72x232xf32, #tpu.memory_space<vmem>>, vector<8x232xf32>
    tpu.vector_store %arg17[%c56_449, %c0_450], %332 {strides = array<i32>} : memref<72x232xf32, #tpu.memory_space<vmem>>, vector<8x232xf32>,
    %c0_451 = arith.constant 0 : index
    %c27_452 = arith.constant 27 : index
    %334 = vector.load %arg12[%c0_451, %c27_452] : memref<8x264xf32, #tpu.memory_space<vmem>>, vector<8x232xf32>
    %c64_453 = arith.constant 64 : index
    %c0_454 = arith.constant 0 : index
    %335 = vector.load %arg17[%c64_453, %c0_454] : memref<72x232xf32, #tpu.memory_space<vmem>>, vector<8x232xf32>
    tpu.vector_store %arg17[%c64_453, %c0_454], %334 {strides = array<i32>} : memref<72x232xf32, #tpu.memory_space<vmem>>, vector<8x232xf32>,
    %c0_455 = arith.constant 0 : index
    %c0_456 = arith.constant 0 : index
    %336 = vector.load %arg17[%c0_455, %c0_456] : memref<72x232xf32, #tpu.memory_space<vmem>>, vector<72x232xf32>
    %cst_457 = arith.constant dense<0.000000e+00> : vector<16x232xf32>
    %337 = tpu.matmul %316, %336, %cst_457 {dimension_numbers = #tpu.dot_dimension_numbers<[1], [0], [0], [1], [0, 0, 1, 1], [], []>} : vector<16x72xf32>, vector<72x232xf32>, vector<16x232xf32> -> vector<16x232xf32>
    %338 = vector.broadcast %317 : vector<16x1xf32> to vector<16x232xf32>
    %339 = arith.addf %337, %338 : vector<16x232xf32>
    %cst_458 = arith.constant 0.000000e+00 : f32
    %340 = vector.broadcast %cst_458 : f32 to vector<16x232xf32>
    %341 = arith.maximumf %339, %340 : vector<16x232xf32>
    %c0_459 = arith.constant 0 : index
    %c0_460 = arith.constant 0 : index
    %342 = vector.load %arg5[%c0_459, %c0_460] : memref<232x88xf32, #tpu.memory_space<vmem>>, vector<232x88xf32>
    %cst_461 = arith.constant dense<0.000000e+00> : vector<16x88xf32>
    %343 = tpu.matmul %341, %342, %cst_461 {dimension_numbers = #tpu.dot_dimension_numbers<[1], [0], [0], [1], [0, 0, 1, 1], [], []>} : vector<16x232xf32>, vector<232x88xf32>, vector<16x88xf32> -> vector<16x88xf32>
    %c0_462 = arith.constant 0 : index
    %c8_463 = arith.constant 8 : index
    %344 = vector.load %arg15[%c0_462, %c8_463] : memref<16x104xf32, #tpu.memory_space<vmem>>, vector<16x88xf32>
    tpu.vector_store %arg15[%c0_462, %c8_463], %343 {strides = array<i32>} : memref<16x104xf32, #tpu.memory_space<vmem>>, vector<16x88xf32>,
    %c0_464 = arith.constant 0 : index
    %c16_465 = arith.constant 16 : index
    %345 = vector.load %arg12[%c0_464, %c16_465] : memref<8x264xf32, #tpu.memory_space<vmem>>, vector<8x232xf32>
    %c0_466 = arith.constant 0 : index
    %c0_467 = arith.constant 0 : index
    %346 = vector.load %arg5[%c0_466, %c0_467] : memref<232x88xf32, #tpu.memory_space<vmem>>, vector<232x88xf32>
    %cst_468 = arith.constant dense<0.000000e+00> : vector<8x88xf32>
    %347 = tpu.matmul %345, %346, %cst_468 {dimension_numbers = #tpu.dot_dimension_numbers<[1], [0], [0], [1], [0, 0, 1, 1], [], []>} : vector<8x232xf32>, vector<232x88xf32>, vector<8x88xf32> -> vector<8x88xf32>
    %c0_469 = arith.constant 0 : index
    %c218 = arith.constant 218 : index
    %348 = vector.load %arg9[%c0_469, %c218] : memref<16x517xf32, #tpu.memory_space<vmem>>, vector<16x8xf32>
    %cst_470 = arith.constant dense<0.000000e+00> : vector<16x88xf32>
    %349 = tpu.matmul %348, %347, %cst_470 {dimension_numbers = #tpu.dot_dimension_numbers<[1], [0], [0], [1], [0, 0, 1, 1], [], []>} : vector<16x8xf32>, vector<8x88xf32>, vector<16x88xf32> -> vector<16x88xf32>
    %c0_471 = arith.constant 0 : index
    %c226 = arith.constant 226 : index
    %350 = vector.load %arg9[%c0_471, %c226] : memref<16x517xf32, #tpu.memory_space<vmem>>, vector<16x1xf32>
    %351 = vector.broadcast %350 : vector<16x1xf32> to vector<16x88xf32>
    %352 = arith.addf %349, %351 : vector<16x88xf32>
    %c0_472 = arith.constant 0 : index
    %c217 = arith.constant 217 : index
    %353 = vector.load %arg9[%c0_472, %c217] : memref<16x517xf32, #tpu.memory_space<vmem>>, vector<16x1xf32>
    %c0_473 = arith.constant 0 : index
    %c73 = arith.constant 73 : index
    %354 = vector.load %arg9[%c0_473, %c73] : memref<16x517xf32, #tpu.memory_space<vmem>>, vector<16x16xf32>
    %c0_474 = arith.constant 0 : index
    %c1 = arith.constant 1 : index
    %355 = vector.load %arg15[%c0_474, %c1] : memref<16x104xf32, #tpu.memory_space<vmem>>, vector<16x88xf32>
    %cst_475 = arith.constant dense<0.000000e+00> : vector<16x88xf32>
    %356 = tpu.matmul %354, %355, %cst_475 {dimension_numbers = #tpu.dot_dimension_numbers<[1], [0], [0], [1], [0, 0, 1, 1], [], []>} : vector<16x16xf32>, vector<16x88xf32>, vector<16x88xf32> -> vector<16x88xf32>
    %c0_476 = arith.constant 0 : index
    %c89 = arith.constant 89 : index
    %357 = vector.load %arg9[%c0_476, %c89] : memref<16x517xf32, #tpu.memory_space<vmem>>, vector<16x16xf32>
    %c0_477 = arith.constant 0 : index
    %c2 = arith.constant 2 : index
    %358 = vector.load %arg15[%c0_477, %c2] : memref<16x104xf32, #tpu.memory_space<vmem>>, vector<16x88xf32>
    %cst_478 = arith.constant dense<0.000000e+00> : vector<16x88xf32>
    %359 = tpu.matmul %357, %358, %cst_478 {dimension_numbers = #tpu.dot_dimension_numbers<[1], [0], [0], [1], [0, 0, 1, 1], [], []>} : vector<16x16xf32>, vector<16x88xf32>, vector<16x88xf32> -> vector<16x88xf32>
    %360 = arith.addf %356, %359 : vector<16x88xf32>
    %c0_479 = arith.constant 0 : index
    %c105 = arith.constant 105 : index
    %361 = vector.load %arg9[%c0_479, %c105] : memref<16x517xf32, #tpu.memory_space<vmem>>, vector<16x16xf32>
    %c0_480 = arith.constant 0 : index
    %c3 = arith.constant 3 : index
    %362 = vector.load %arg15[%c0_480, %c3] : memref<16x104xf32, #tpu.memory_space<vmem>>, vector<16x88xf32>
    %cst_481 = arith.constant dense<0.000000e+00> : vector<16x88xf32>
    %363 = tpu.matmul %361, %362, %cst_481 {dimension_numbers = #tpu.dot_dimension_numbers<[1], [0], [0], [1], [0, 0, 1, 1], [], []>} : vector<16x16xf32>, vector<16x88xf32>, vector<16x88xf32> -> vector<16x88xf32>
    %364 = arith.addf %360, %363 : vector<16x88xf32>
    %c0_482 = arith.constant 0 : index
    %c121 = arith.constant 121 : index
    %365 = vector.load %arg9[%c0_482, %c121] : memref<16x517xf32, #tpu.memory_space<vmem>>, vector<16x16xf32>
    %c0_483 = arith.constant 0 : index
    %c7_484 = arith.constant 7 : index
    %366 = vector.load %arg15[%c0_483, %c7_484] : memref<16x104xf32, #tpu.memory_space<vmem>>, vector<16x88xf32>
    %cst_485 = arith.constant dense<0.000000e+00> : vector<16x88xf32>
    %367 = tpu.matmul %365, %366, %cst_485 {dimension_numbers = #tpu.dot_dimension_numbers<[1], [0], [0], [1], [0, 0, 1, 1], [], []>} : vector<16x16xf32>, vector<16x88xf32>, vector<16x88xf32> -> vector<16x88xf32>
    %368 = arith.addf %364, %367 : vector<16x88xf32>
    %c0_486 = arith.constant 0 : index
    %c137 = arith.constant 137 : index
    %369 = vector.load %arg9[%c0_486, %c137] : memref<16x517xf32, #tpu.memory_space<vmem>>, vector<16x16xf32>
    %c0_487 = arith.constant 0 : index
    %c8_488 = arith.constant 8 : index
    %370 = vector.load %arg15[%c0_487, %c8_488] : memref<16x104xf32, #tpu.memory_space<vmem>>, vector<16x88xf32>
    %cst_489 = arith.constant dense<0.000000e+00> : vector<16x88xf32>
    %371 = tpu.matmul %369, %370, %cst_489 {dimension_numbers = #tpu.dot_dimension_numbers<[1], [0], [0], [1], [0, 0, 1, 1], [], []>} : vector<16x16xf32>, vector<16x88xf32>, vector<16x88xf32> -> vector<16x88xf32>
    %372 = arith.addf %368, %371 : vector<16x88xf32>
    %c0_490 = arith.constant 0 : index
    %c153 = arith.constant 153 : index
    %373 = vector.load %arg9[%c0_490, %c153] : memref<16x517xf32, #tpu.memory_space<vmem>>, vector<16x16xf32>
    %c0_491 = arith.constant 0 : index
    %c9 = arith.constant 9 : index
    %374 = vector.load %arg15[%c0_491, %c9] : memref<16x104xf32, #tpu.memory_space<vmem>>, vector<16x88xf32>
    %cst_492 = arith.constant dense<0.000000e+00> : vector<16x88xf32>
    %375 = tpu.matmul %373, %374, %cst_492 {dimension_numbers = #tpu.dot_dimension_numbers<[1], [0], [0], [1], [0, 0, 1, 1], [], []>} : vector<16x16xf32>, vector<16x88xf32>, vector<16x88xf32> -> vector<16x88xf32>
    %376 = arith.addf %372, %375 : vector<16x88xf32>
    %c0_493 = arith.constant 0 : index
    %c169 = arith.constant 169 : index
    %377 = vector.load %arg9[%c0_493, %c169] : memref<16x517xf32, #tpu.memory_space<vmem>>, vector<16x16xf32>
    %c0_494 = arith.constant 0 : index
    %c13 = arith.constant 13 : index
    %378 = vector.load %arg15[%c0_494, %c13] : memref<16x104xf32, #tpu.memory_space<vmem>>, vector<16x88xf32>
    %cst_495 = arith.constant dense<0.000000e+00> : vector<16x88xf32>
    %379 = tpu.matmul %377, %378, %cst_495 {dimension_numbers = #tpu.dot_dimension_numbers<[1], [0], [0], [1], [0, 0, 1, 1], [], []>} : vector<16x16xf32>, vector<16x88xf32>, vector<16x88xf32> -> vector<16x88xf32>
    %380 = arith.addf %376, %379 : vector<16x88xf32>
    %c0_496 = arith.constant 0 : index
    %c185 = arith.constant 185 : index
    %381 = vector.load %arg9[%c0_496, %c185] : memref<16x517xf32, #tpu.memory_space<vmem>>, vector<16x16xf32>
    %c0_497 = arith.constant 0 : index
    %c14 = arith.constant 14 : index
    %382 = vector.load %arg15[%c0_497, %c14] : memref<16x104xf32, #tpu.memory_space<vmem>>, vector<16x88xf32>
    %cst_498 = arith.constant dense<0.000000e+00> : vector<16x88xf32>
    %383 = tpu.matmul %381, %382, %cst_498 {dimension_numbers = #tpu.dot_dimension_numbers<[1], [0], [0], [1], [0, 0, 1, 1], [], []>} : vector<16x16xf32>, vector<16x88xf32>, vector<16x88xf32> -> vector<16x88xf32>
    %384 = arith.addf %380, %383 : vector<16x88xf32>
    %c0_499 = arith.constant 0 : index
    %c201 = arith.constant 201 : index
    %385 = vector.load %arg9[%c0_499, %c201] : memref<16x517xf32, #tpu.memory_space<vmem>>, vector<16x16xf32>
    %c0_500 = arith.constant 0 : index
    %c15_501 = arith.constant 15 : index
    %386 = vector.load %arg15[%c0_500, %c15_501] : memref<16x104xf32, #tpu.memory_space<vmem>>, vector<16x88xf32>
    %cst_502 = arith.constant dense<0.000000e+00> : vector<16x88xf32>
    %387 = tpu.matmul %385, %386, %cst_502 {dimension_numbers = #tpu.dot_dimension_numbers<[1], [0], [0], [1], [0, 0, 1, 1], [], []>} : vector<16x16xf32>, vector<16x88xf32>, vector<16x88xf32> -> vector<16x88xf32>
    %388 = arith.addf %384, %387 : vector<16x88xf32>
    %389 = vector.broadcast %353 : vector<16x1xf32> to vector<16x88xf32>
    %390 = arith.addf %388, %389 : vector<16x88xf32>
    %391 = arith.addf %390, %352 : vector<16x88xf32>
    %cst_503 = arith.constant 0.000000e+00 : f32
    %392 = vector.broadcast %cst_503 : f32 to vector<16x88xf32>
    %393 = arith.maximumf %391, %392 : vector<16x88xf32>
    %394 = vector.broadcast %315 : vector<1x88xf32> to vector<16x88xf32>
    %395 = arith.mulf %393, %394 : vector<16x88xf32>
    %c0_504 = arith.constant 0 : index
    %c8_505 = arith.constant 8 : index
    %396 = vector.load %arg14[%c0_504, %c8_505] : memref<16x104xf32, #tpu.memory_space<vmem>>, vector<16x88xf32>
    tpu.vector_store %arg14[%c0_504, %c8_505], %395 {strides = array<i32>} : memref<16x104xf32, #tpu.memory_space<vmem>>, vector<16x88xf32>,
    %c0_506 = arith.constant 0 : index
    %c8_507 = arith.constant 8 : index
    %397 = vector.load %arg14[%c0_506, %c8_507] : memref<16x104xf32, #tpu.memory_space<vmem>>, vector<16x88xf32>
    %c0_508 = arith.constant 0 : index
    %c371 = arith.constant 371 : index
    %398 = vector.load %arg9[%c0_508, %c371] : memref<16x517xf32, #tpu.memory_space<vmem>>, vector<16x1xf32>
    %c0_509 = arith.constant 0 : index
    %c227 = arith.constant 227 : index
    %399 = vector.load %arg9[%c0_509, %c227] : memref<16x517xf32, #tpu.memory_space<vmem>>, vector<16x16xf32>
    %c0_510 = arith.constant 0 : index
    %c1_511 = arith.constant 1 : index
    %400 = vector.load %arg14[%c0_510, %c1_511] : memref<16x104xf32, #tpu.memory_space<vmem>>, vector<16x88xf32>
    %cst_512 = arith.constant dense<0.000000e+00> : vector<16x88xf32>
    %401 = tpu.matmul %399, %400, %cst_512 {dimension_numbers = #tpu.dot_dimension_numbers<[1], [0], [0], [1], [0, 0, 1, 1], [], []>} : vector<16x16xf32>, vector<16x88xf32>, vector<16x88xf32> -> vector<16x88xf32>
    %c0_513 = arith.constant 0 : index
    %c243 = arith.constant 243 : index
    %402 = vector.load %arg9[%c0_513, %c243] : memref<16x517xf32, #tpu.memory_space<vmem>>, vector<16x16xf32>
    %c0_514 = arith.constant 0 : index
    %c2_515 = arith.constant 2 : index
    %403 = vector.load %arg14[%c0_514, %c2_515] : memref<16x104xf32, #tpu.memory_space<vmem>>, vector<16x88xf32>
    %cst_516 = arith.constant dense<0.000000e+00> : vector<16x88xf32>
    %404 = tpu.matmul %402, %403, %cst_516 {dimension_numbers = #tpu.dot_dimension_numbers<[1], [0], [0], [1], [0, 0, 1, 1], [], []>} : vector<16x16xf32>, vector<16x88xf32>, vector<16x88xf32> -> vector<16x88xf32>
    %405 = arith.addf %401, %404 : vector<16x88xf32>
    %c0_517 = arith.constant 0 : index
    %c259 = arith.constant 259 : index
    %406 = vector.load %arg9[%c0_517, %c259] : memref<16x517xf32, #tpu.memory_space<vmem>>, vector<16x16xf32>
    %c0_518 = arith.constant 0 : index
    %c3_519 = arith.constant 3 : index
    %407 = vector.load %arg14[%c0_518, %c3_519] : memref<16x104xf32, #tpu.memory_space<vmem>>, vector<16x88xf32>
    %cst_520 = arith.constant dense<0.000000e+00> : vector<16x88xf32>
    %408 = tpu.matmul %406, %407, %cst_520 {dimension_numbers = #tpu.dot_dimension_numbers<[1], [0], [0], [1], [0, 0, 1, 1], [], []>} : vector<16x16xf32>, vector<16x88xf32>, vector<16x88xf32> -> vector<16x88xf32>
    %409 = arith.addf %405, %408 : vector<16x88xf32>
    %c0_521 = arith.constant 0 : index
    %c275 = arith.constant 275 : index
    %410 = vector.load %arg9[%c0_521, %c275] : memref<16x517xf32, #tpu.memory_space<vmem>>, vector<16x16xf32>
    %c0_522 = arith.constant 0 : index
    %c7_523 = arith.constant 7 : index
    %411 = vector.load %arg14[%c0_522, %c7_523] : memref<16x104xf32, #tpu.memory_space<vmem>>, vector<16x88xf32>
    %cst_524 = arith.constant dense<0.000000e+00> : vector<16x88xf32>
    %412 = tpu.matmul %410, %411, %cst_524 {dimension_numbers = #tpu.dot_dimension_numbers<[1], [0], [0], [1], [0, 0, 1, 1], [], []>} : vector<16x16xf32>, vector<16x88xf32>, vector<16x88xf32> -> vector<16x88xf32>
    %413 = arith.addf %409, %412 : vector<16x88xf32>
    %c0_525 = arith.constant 0 : index
    %c291 = arith.constant 291 : index
    %414 = vector.load %arg9[%c0_525, %c291] : memref<16x517xf32, #tpu.memory_space<vmem>>, vector<16x16xf32>
    %c0_526 = arith.constant 0 : index
    %c8_527 = arith.constant 8 : index
    %415 = vector.load %arg14[%c0_526, %c8_527] : memref<16x104xf32, #tpu.memory_space<vmem>>, vector<16x88xf32>
    %cst_528 = arith.constant dense<0.000000e+00> : vector<16x88xf32>
    %416 = tpu.matmul %414, %415, %cst_528 {dimension_numbers = #tpu.dot_dimension_numbers<[1], [0], [0], [1], [0, 0, 1, 1], [], []>} : vector<16x16xf32>, vector<16x88xf32>, vector<16x88xf32> -> vector<16x88xf32>
    %417 = arith.addf %413, %416 : vector<16x88xf32>
    %c0_529 = arith.constant 0 : index
    %c307 = arith.constant 307 : index
    %418 = vector.load %arg9[%c0_529, %c307] : memref<16x517xf32, #tpu.memory_space<vmem>>, vector<16x16xf32>
    %c0_530 = arith.constant 0 : index
    %c9_531 = arith.constant 9 : index
    %419 = vector.load %arg14[%c0_530, %c9_531] : memref<16x104xf32, #tpu.memory_space<vmem>>, vector<16x88xf32>
    %cst_532 = arith.constant dense<0.000000e+00> : vector<16x88xf32>
    %420 = tpu.matmul %418, %419, %cst_532 {dimension_numbers = #tpu.dot_dimension_numbers<[1], [0], [0], [1], [0, 0, 1, 1], [], []>} : vector<16x16xf32>, vector<16x88xf32>, vector<16x88xf32> -> vector<16x88xf32>
    %421 = arith.addf %417, %420 : vector<16x88xf32>
    %c0_533 = arith.constant 0 : index
    %c323 = arith.constant 323 : index
    %422 = vector.load %arg9[%c0_533, %c323] : memref<16x517xf32, #tpu.memory_space<vmem>>, vector<16x16xf32>
    %c0_534 = arith.constant 0 : index
    %c13_535 = arith.constant 13 : index
    %423 = vector.load %arg14[%c0_534, %c13_535] : memref<16x104xf32, #tpu.memory_space<vmem>>, vector<16x88xf32>
    %cst_536 = arith.constant dense<0.000000e+00> : vector<16x88xf32>
    %424 = tpu.matmul %422, %423, %cst_536 {dimension_numbers = #tpu.dot_dimension_numbers<[1], [0], [0], [1], [0, 0, 1, 1], [], []>} : vector<16x16xf32>, vector<16x88xf32>, vector<16x88xf32> -> vector<16x88xf32>
    %425 = arith.addf %421, %424 : vector<16x88xf32>
    %c0_537 = arith.constant 0 : index
    %c339 = arith.constant 339 : index
    %426 = vector.load %arg9[%c0_537, %c339] : memref<16x517xf32, #tpu.memory_space<vmem>>, vector<16x16xf32>
    %c0_538 = arith.constant 0 : index
    %c14_539 = arith.constant 14 : index
    %427 = vector.load %arg14[%c0_538, %c14_539] : memref<16x104xf32, #tpu.memory_space<vmem>>, vector<16x88xf32>
    %cst_540 = arith.constant dense<0.000000e+00> : vector<16x88xf32>
    %428 = tpu.matmul %426, %427, %cst_540 {dimension_numbers = #tpu.dot_dimension_numbers<[1], [0], [0], [1], [0, 0, 1, 1], [], []>} : vector<16x16xf32>, vector<16x88xf32>, vector<16x88xf32> -> vector<16x88xf32>
    %429 = arith.addf %425, %428 : vector<16x88xf32>
    %c0_541 = arith.constant 0 : index
    %c355 = arith.constant 355 : index
    %430 = vector.load %arg9[%c0_541, %c355] : memref<16x517xf32, #tpu.memory_space<vmem>>, vector<16x16xf32>
    %c0_542 = arith.constant 0 : index
    %c15_543 = arith.constant 15 : index
    %431 = vector.load %arg14[%c0_542, %c15_543] : memref<16x104xf32, #tpu.memory_space<vmem>>, vector<16x88xf32>
    %cst_544 = arith.constant dense<0.000000e+00> : vector<16x88xf32>
    %432 = tpu.matmul %430, %431, %cst_544 {dimension_numbers = #tpu.dot_dimension_numbers<[1], [0], [0], [1], [0, 0, 1, 1], [], []>} : vector<16x16xf32>, vector<16x88xf32>, vector<16x88xf32> -> vector<16x88xf32>
    %433 = arith.addf %429, %432 : vector<16x88xf32>
    %434 = vector.broadcast %398 : vector<16x1xf32> to vector<16x88xf32>
    %435 = arith.addf %433, %434 : vector<16x88xf32>
    %cst_545 = arith.constant 0.000000e+00 : f32
    %436 = vector.broadcast %cst_545 : f32 to vector<16x88xf32>
    %437 = arith.maximumf %435, %436 : vector<16x88xf32>
    %438 = vector.broadcast %315 : vector<1x88xf32> to vector<16x88xf32>
    %439 = arith.mulf %437, %438 : vector<16x88xf32>
    %c0_546 = arith.constant 0 : index
    %c8_547 = arith.constant 8 : index
    %440 = vector.load %arg15[%c0_546, %c8_547] : memref<16x104xf32, #tpu.memory_space<vmem>>, vector<16x88xf32>
    tpu.vector_store %arg15[%c0_546, %c8_547], %439 {strides = array<i32>} : memref<16x104xf32, #tpu.memory_space<vmem>>, vector<16x88xf32>,
    %c0_548 = arith.constant 0 : index
    %c516 = arith.constant 516 : index
    %441 = vector.load %arg9[%c0_548, %c516] : memref<16x517xf32, #tpu.memory_space<vmem>>, vector<16x1xf32>
    %c0_549 = arith.constant 0 : index
    %c372 = arith.constant 372 : index
    %442 = vector.load %arg9[%c0_549, %c372] : memref<16x517xf32, #tpu.memory_space<vmem>>, vector<16x16xf32>
    %c0_550 = arith.constant 0 : index
    %c1_551 = arith.constant 1 : index
    %443 = vector.load %arg15[%c0_550, %c1_551] : memref<16x104xf32, #tpu.memory_space<vmem>>, vector<16x88xf32>
    %cst_552 = arith.constant dense<0.000000e+00> : vector<16x88xf32>
    %444 = tpu.matmul %442, %443, %cst_552 {dimension_numbers = #tpu.dot_dimension_numbers<[1], [0], [0], [1], [0, 0, 1, 1], [], []>} : vector<16x16xf32>, vector<16x88xf32>, vector<16x88xf32> -> vector<16x88xf32>
    %c0_553 = arith.constant 0 : index
    %c388 = arith.constant 388 : index
    %445 = vector.load %arg9[%c0_553, %c388] : memref<16x517xf32, #tpu.memory_space<vmem>>, vector<16x16xf32>
    %c0_554 = arith.constant 0 : index
    %c2_555 = arith.constant 2 : index
    %446 = vector.load %arg15[%c0_554, %c2_555] : memref<16x104xf32, #tpu.memory_space<vmem>>, vector<16x88xf32>
    %cst_556 = arith.constant dense<0.000000e+00> : vector<16x88xf32>
    %447 = tpu.matmul %445, %446, %cst_556 {dimension_numbers = #tpu.dot_dimension_numbers<[1], [0], [0], [1], [0, 0, 1, 1], [], []>} : vector<16x16xf32>, vector<16x88xf32>, vector<16x88xf32> -> vector<16x88xf32>
    %448 = arith.addf %444, %447 : vector<16x88xf32>
    %c0_557 = arith.constant 0 : index
    %c404 = arith.constant 404 : index
    %449 = vector.load %arg9[%c0_557, %c404] : memref<16x517xf32, #tpu.memory_space<vmem>>, vector<16x16xf32>
    %c0_558 = arith.constant 0 : index
    %c3_559 = arith.constant 3 : index
    %450 = vector.load %arg15[%c0_558, %c3_559] : memref<16x104xf32, #tpu.memory_space<vmem>>, vector<16x88xf32>
    %cst_560 = arith.constant dense<0.000000e+00> : vector<16x88xf32>
    %451 = tpu.matmul %449, %450, %cst_560 {dimension_numbers = #tpu.dot_dimension_numbers<[1], [0], [0], [1], [0, 0, 1, 1], [], []>} : vector<16x16xf32>, vector<16x88xf32>, vector<16x88xf32> -> vector<16x88xf32>
    %452 = arith.addf %448, %451 : vector<16x88xf32>
    %c0_561 = arith.constant 0 : index
    %c420 = arith.constant 420 : index
    %453 = vector.load %arg9[%c0_561, %c420] : memref<16x517xf32, #tpu.memory_space<vmem>>, vector<16x16xf32>
    %c0_562 = arith.constant 0 : index
    %c7_563 = arith.constant 7 : index
    %454 = vector.load %arg15[%c0_562, %c7_563] : memref<16x104xf32, #tpu.memory_space<vmem>>, vector<16x88xf32>
    %cst_564 = arith.constant dense<0.000000e+00> : vector<16x88xf32>
    %455 = tpu.matmul %453, %454, %cst_564 {dimension_numbers = #tpu.dot_dimension_numbers<[1], [0], [0], [1], [0, 0, 1, 1], [], []>} : vector<16x16xf32>, vector<16x88xf32>, vector<16x88xf32> -> vector<16x88xf32>
    %456 = arith.addf %452, %455 : vector<16x88xf32>
    %c0_565 = arith.constant 0 : index
    %c436 = arith.constant 436 : index
    %457 = vector.load %arg9[%c0_565, %c436] : memref<16x517xf32, #tpu.memory_space<vmem>>, vector<16x16xf32>
    %c0_566 = arith.constant 0 : index
    %c8_567 = arith.constant 8 : index
    %458 = vector.load %arg15[%c0_566, %c8_567] : memref<16x104xf32, #tpu.memory_space<vmem>>, vector<16x88xf32>
    %cst_568 = arith.constant dense<0.000000e+00> : vector<16x88xf32>
    %459 = tpu.matmul %457, %458, %cst_568 {dimension_numbers = #tpu.dot_dimension_numbers<[1], [0], [0], [1], [0, 0, 1, 1], [], []>} : vector<16x16xf32>, vector<16x88xf32>, vector<16x88xf32> -> vector<16x88xf32>
    %460 = arith.addf %456, %459 : vector<16x88xf32>
    %c0_569 = arith.constant 0 : index
    %c452 = arith.constant 452 : index
    %461 = vector.load %arg9[%c0_569, %c452] : memref<16x517xf32, #tpu.memory_space<vmem>>, vector<16x16xf32>
    %c0_570 = arith.constant 0 : index
    %c9_571 = arith.constant 9 : index
    %462 = vector.load %arg15[%c0_570, %c9_571] : memref<16x104xf32, #tpu.memory_space<vmem>>, vector<16x88xf32>
    %cst_572 = arith.constant dense<0.000000e+00> : vector<16x88xf32>
    %463 = tpu.matmul %461, %462, %cst_572 {dimension_numbers = #tpu.dot_dimension_numbers<[1], [0], [0], [1], [0, 0, 1, 1], [], []>} : vector<16x16xf32>, vector<16x88xf32>, vector<16x88xf32> -> vector<16x88xf32>
    %464 = arith.addf %460, %463 : vector<16x88xf32>
    %c0_573 = arith.constant 0 : index
    %c468 = arith.constant 468 : index
    %465 = vector.load %arg9[%c0_573, %c468] : memref<16x517xf32, #tpu.memory_space<vmem>>, vector<16x16xf32>
    %c0_574 = arith.constant 0 : index
    %c13_575 = arith.constant 13 : index
    %466 = vector.load %arg15[%c0_574, %c13_575] : memref<16x104xf32, #tpu.memory_space<vmem>>, vector<16x88xf32>
    %cst_576 = arith.constant dense<0.000000e+00> : vector<16x88xf32>
    %467 = tpu.matmul %465, %466, %cst_576 {dimension_numbers = #tpu.dot_dimension_numbers<[1], [0], [0], [1], [0, 0, 1, 1], [], []>} : vector<16x16xf32>, vector<16x88xf32>, vector<16x88xf32> -> vector<16x88xf32>
    %468 = arith.addf %464, %467 : vector<16x88xf32>
    %c0_577 = arith.constant 0 : index
    %c484 = arith.constant 484 : index
    %469 = vector.load %arg9[%c0_577, %c484] : memref<16x517xf32, #tpu.memory_space<vmem>>, vector<16x16xf32>
    %c0_578 = arith.constant 0 : index
    %c14_579 = arith.constant 14 : index
    %470 = vector.load %arg15[%c0_578, %c14_579] : memref<16x104xf32, #tpu.memory_space<vmem>>, vector<16x88xf32>
    %cst_580 = arith.constant dense<0.000000e+00> : vector<16x88xf32>
    %471 = tpu.matmul %469, %470, %cst_580 {dimension_numbers = #tpu.dot_dimension_numbers<[1], [0], [0], [1], [0, 0, 1, 1], [], []>} : vector<16x16xf32>, vector<16x88xf32>, vector<16x88xf32> -> vector<16x88xf32>
    %472 = arith.addf %468, %471 : vector<16x88xf32>
    %c0_581 = arith.constant 0 : index
    %c500 = arith.constant 500 : index
    %473 = vector.load %arg9[%c0_581, %c500] : memref<16x517xf32, #tpu.memory_space<vmem>>, vector<16x16xf32>
    %c0_582 = arith.constant 0 : index
    %c15_583 = arith.constant 15 : index
    %474 = vector.load %arg15[%c0_582, %c15_583] : memref<16x104xf32, #tpu.memory_space<vmem>>, vector<16x88xf32>
    %cst_584 = arith.constant dense<0.000000e+00> : vector<16x88xf32>
    %475 = tpu.matmul %473, %474, %cst_584 {dimension_numbers = #tpu.dot_dimension_numbers<[1], [0], [0], [1], [0, 0, 1, 1], [], []>} : vector<16x16xf32>, vector<16x88xf32>, vector<16x88xf32> -> vector<16x88xf32>
    %476 = arith.addf %472, %475 : vector<16x88xf32>
    %477 = vector.broadcast %441 : vector<16x1xf32> to vector<16x88xf32>
    %478 = arith.addf %476, %477 : vector<16x88xf32>
    %479 = arith.addf %478, %397 : vector<16x88xf32>
    %cst_585 = arith.constant 0.000000e+00 : f32
    %480 = vector.broadcast %cst_585 : f32 to vector<16x88xf32>
    %481 = arith.maximumf %479, %480 : vector<16x88xf32>
    %482 = vector.broadcast %315 : vector<1x88xf32> to vector<16x88xf32>
    %483 = arith.mulf %481, %482 : vector<16x88xf32>
    %c0_586 = arith.constant 0 : index
    %c8_587 = arith.constant 8 : index
    %484 = vector.load %arg14[%c0_586, %c8_587] : memref<16x104xf32, #tpu.memory_space<vmem>>, vector<16x88xf32>
    tpu.vector_store %arg14[%c0_586, %c8_587], %483 {strides = array<i32>} : memref<16x104xf32, #tpu.memory_space<vmem>>, vector<16x88xf32>,
    %c0_588 = arith.constant 0 : index
    %c8_589 = arith.constant 8 : index
    %485 = vector.load %arg14[%c0_588, %c8_589] : memref<16x104xf32, #tpu.memory_space<vmem>>, vector<16x88xf32>
    %c0_590 = arith.constant 0 : index
    %c0_591 = arith.constant 0 : index
    %486 = vector.load %arg7[%c0_590, %c0_591] : memref<88x2xf32, #tpu.memory_space<vmem>>, vector<88x2xf32>
    %cst_592 = arith.constant dense<0.000000e+00> : vector<16x2xf32>
    %487 = tpu.matmul %485, %486, %cst_592 {dimension_numbers = #tpu.dot_dimension_numbers<[1], [0], [0], [1], [0, 0, 1, 1], [], []>} : vector<16x88xf32>, vector<88x2xf32>, vector<16x2xf32> -> vector<16x2xf32>
    %c0_593 = arith.constant 0 : index
    %c0_594 = arith.constant 0 : index
    %c0_595 = arith.constant 0 : index
    %488 = vector.load %arg10[%c0_593, %c0_594, %c0_595] : memref<1x16x2xf32, #tpu.memory_space<vmem>>, vector<1x16x2xf32>
    %489 = vector.shape_cast %488 : vector<1x16x2xf32> to vector<16x2xf32>
    %490 = vector.shape_cast %487 : vector<16x2xf32> to vector<1x16x2xf32>
    tpu.vector_store %arg10[%c0_593, %c0_594, %c0_595], %490 {strides = array<i32>} : memref<1x16x2xf32, #tpu.memory_space<vmem>>, vector<1x16x2xf32>,
    return
  }
  func.func @transform_0(%arg0: i32) -> (i32, i32, i32) {
    %c0_i32 = arith.constant 0 : i32
    %c0_i32_0 = arith.constant 0 : i32
    %c0_i32_1 = arith.constant 0 : i32
    return %arg0, %c0_i32, %c0_i32_0 : i32, i32, i32
  }
  func.func @transform_1(%arg0: i32) -> (i32, i32) {
    %c0_i32 = arith.constant 0 : i32
    %c0_i32_0 = arith.constant 0 : i32
    %c0_i32_1 = arith.constant 0 : i32
    return %c0_i32, %c0_i32_0 : i32, i32
  }
  func.func @transform_2(%arg0: i32) -> (i32, i32) {
    %c0_i32 = arith.constant 0 : i32
    %c0_i32_0 = arith.constant 0 : i32
    %c0_i32_1 = arith.constant 0 : i32
    return %c0_i32, %c0_i32_0 : i32, i32
  }
  func.func @transform_3(%arg0: i32) -> (i32, i32) {
    %c0_i32 = arith.constant 0 : i32
    %c0_i32_0 = arith.constant 0 : i32
    %c0_i32_1 = arith.constant 0 : i32
    return %c0_i32, %c0_i32_0 : i32, i32
  }
  func.func @transform_4(%arg0: i32) -> (i32, i32) {
    %c0_i32 = arith.constant 0 : i32
    %c0_i32_0 = arith.constant 0 : i32
    %c0_i32_1 = arith.constant 0 : i32
    return %c0_i32, %c0_i32_0 : i32, i32
  }
  func.func @transform_5(%arg0: i32) -> (i32, i32) {
    %c0_i32 = arith.constant 0 : i32
    %c0_i32_0 = arith.constant 0 : i32
    %c0_i32_1 = arith.constant 0 : i32
    return %c0_i32, %c0_i32_0 : i32, i32
  }
  func.func @transform_6(%arg0: i32) -> (i32, i32) {
    %c0_i32 = arith.constant 0 : i32
    %c0_i32_0 = arith.constant 0 : i32
    %c0_i32_1 = arith.constant 0 : i32
    return %c0_i32, %c0_i32_0 : i32, i32
  }
  func.func @transform_7(%arg0: i32) -> (i32, i32) {
    %c0_i32 = arith.constant 0 : i32
    %c0_i32_0 = arith.constant 0 : i32
    %c0_i32_1 = arith.constant 0 : i32
    return %c0_i32, %c0_i32_0 : i32, i32
  }
  func.func @transform_8(%arg0: i32) -> (i32, i32) {
    %c0_i32 = arith.constant 0 : i32
    %c0_i32_0 = arith.constant 0 : i32
    %c0_i32_1 = arith.constant 0 : i32
    return %c0_i32, %c0_i32_0 : i32, i32
  }
  func.func @transform_9(%arg0: i32) -> (i32, i32, i32) {
    %c0_i32 = arith.constant 0 : i32
    %c0_i32_0 = arith.constant 0 : i32
    %c0_i32_1 = arith.constant 0 : i32
    return %arg0, %c0_i32, %c0_i32_0 : i32, i32, i32
  }
}

</mosaic_0001>

<bundles_post_ra>
// kernel: my_network_forward.1
= control target key start
LH: loop header
LB: loop body
LE: loop exit
PB: predicated region body
PF: predicated region fallthrough
CT: control target
= control target key end

     0   :  { %s10353_s13 = smov 100   ;;  %s10354_s22 = smov 99   ;;  %vm84_vm0 = vcmask 818176   ;;  %vm182_vm1 = vcmask 809984   ;;  %vm14158_vm2 = vcmask 801792   ;;  %vm376_vm3 = vcmask 793600   ;;  %s14136_s0 = inlined_call_operand.vmem [shape: f32[1,32,914], index: 0, kind: input, shape index: {}]   ;;  %s14137_s7 = inlined_call_operand.vmem [shape: f32[8,685], index: 7, kind: input, shape index: {}]   ;;  %s14138_s1 = inlined_call_operand.vmem [shape: f32[1,818], index: 1, kind: input, shape index: {}]   ;;  %s14139_s2 = inlined_call_operand.vmem [shape: f32[818,232], index: 2, kind: input, shape index: {}]   ;;  %s14140_s3 = inlined_call_operand.vmem [shape: f32[1,232], index: 3, kind: input, shape index: {}]   ;;  %s14141_s8 = inlined_call_operand.vmem [shape: f32[16,517], index: 8, kind: input, shape index: {}]   ;;  %s14142_s4 = inlined_call_operand.vmem [shape: f32[232,88], index: 4, kind: input, shape index: {}]   ;;  %s14143_s5 = inlined_call_operand.vmem [shape: f32[1,88], index: 5, kind: input, shape index: {}]   ;;  %s14144_s6 = inlined_call_operand.vmem [shape: f32[88,2], index: 6, kind: input, shape index: {}]   ;;  %s14145_s9 = inlined_call_operand.vmem [shape: f32[1,16,2], index: 9, kind: output, shape index: {}]  }
   0x1   :  { %v10478_v0 = vld [vmem:[%s14136_s0 + $0x48] sm:$0xff]  ;;  %v10492_v2 = vld [vmem:[%s14136_s0 + $0x50] sm:$0xff]  ;;  %v10506_v4 = vld [vmem:[%s14136_s0 + $0x40] sm:$0xff]  ;;  %s10355_s23 = smov 98   ;;  %s10356_s24 = smov 97   ;;  %vm761_vm4 = vcmask 662528  }
   0x2   :  { %v10483_v1 = vld [vmem:[%s14136_s0 + $0x8] sm:$0xff]  ;;  %122 = vrot.lane.b32.xlu1 %v10478_v0, %s10353_s13  ;;  %v10497_v3 = vld [vmem:[%s14136_s0 + $0x10] sm:$0xff]  ;;  %v10511_v5 = vld [vmem:[%s14136_s0] sm:$0xff]  ;;  %s10357_s17 = smov 81   ;;  %s10358_s18 = smov 80   ;;  %vm858_vm5 = vcmask 654336  }
   0x3   :  { %72 = vrot.lane.b32.xlu0 %v10483_v1, %s10353_s13  ;;  %v10548_v6 = vld [vmem:[%s14136_s0 + $0x90] sm:$0xff]  ;;  %v10553_v7 = vld [vmem:[%s14136_s0 + $0x88] sm:$0xff]  ;;  %v10562_v8 = vld [vmem:[%s14136_s0 + $0x80] sm:$0xff]  ;;  %s10359_s30 = smov 79   ;;  %s10360_s10 = smov 78   ;;  %vm955_vm6 = vcmask 646144  }
   0x4   :  { %v10571_v9 = vld [vmem:[%s14136_s0 + $0xd0] sm:$0xff]  ;;  %v10576_v10 = vld [vmem:[%s14136_s0 + $0xc8] sm:$0xff]  ;;  %v10589_v11 = vld [vmem:[%s14136_s0 + $0xc0] sm:$0xff]  ;;  %s10361_s25 = smov 62   ;;  %s10362_s26 = smov 61   ;;  %vm14156_vm7 = vcmask 637952  }
   0x5   :  { %v10646_v12 = vld [vmem:[%s14136_s0 + $0x20] sm:$0xff]  ;;  %v10651_v13 = vld [vmem:[%s14136_s0 + $0x18] sm:$0xff]  ;;  %s10363_s15 = smov 60   ;;  %s10364_s12 = smov 59   ;;  %vm1437_vm8 = vcmask 506880   ;;  %vm1534_vm9 = vcmask 498688  }
   0x6   :  { %124 = vrot.lane.b32.xlu1 %v10492_v2, %s10353_s13  ;;  %v10660_v14 = vld [vmem:[%s14136_s0 + $0x60] sm:$0xff]  ;;  %v10665_v15 = vld [vmem:[%s14136_s0 + $0x58] sm:$0xff]  ;;  %s10365_s28 = smov 43   ;;  %vm1631_vm10 = vcmask 490496   ;;  %s10366_s21 = smov 42   ;;  %vm1728_vm11 = vcmask 482304  }
   0x7   :  { %74 = vrot.lane.b32.xlu0 %v10497_v3, %s10353_s13  ;;  %s10367_s27 = smov 41   ;;  %vm14157_vm12 = vcmask 64512   ;;  %s10368_s14 = smov 40   ;;  %vm2117_vm13 = vcmask 351232   ;;  %vm2224_vm14 = vcmask 343040   ;;  %vm2331_vm15 = vcmask 334848  }
   0x8   :  { %s10374_s16 = smov 126   ;;  %s10376_s19 = smov 108  }
   0x9   :  { %s10377_s20 = smov 107   ;;  %s10379_s29 = smov 89  }
   0xa   :  { %120 = vrot.lane.b32.xlu1 %v10506_v4, %s10353_s13  ;;  %s10387_s11 = smov 113  }
   0xb   :  { %70 = vrot.lane.b32.xlu0 %v10511_v5, %s10353_s13 }
   0xe   :  { %172 = vrot.lane.b32.xlu1 %v10497_v3, %s10354_s22 }
   0xf   :  { %170 = vrot.lane.b32.xlu0 %v10483_v1, %s10354_s22 }
  0x12   :  { %221 = vrot.lane.b32.xlu1 %v10492_v2, %s10354_s22 }
  0x13   :  { %219 = vrot.lane.b32.xlu0 %v10478_v0, %s10354_s22 }
  0x16   :  { %217 = vrot.lane.b32.xlu1 %v10506_v4, %s10354_s22 }
  0x17   :  { %168 = vrot.lane.b32.xlu0 %v10511_v5, %s10354_s22 }
  0x1a   :  { %269 = vrot.lane.b32.xlu1 %v10497_v3, %s10355_s23 }
  0x1b   :  { %267 = vrot.lane.b32.xlu0 %v10483_v1, %s10355_s23 }
  0x1e   :  { %318 = vrot.lane.b32.xlu1 %v10492_v2, %s10355_s23 }
  0x1f   :  { %316 = vrot.lane.b32.xlu0 %v10478_v0, %s10355_s23 }
  0x22   :  { %314 = vrot.lane.b32.xlu1 %v10506_v4, %s10355_s23 }
  0x23   :  { %265 = vrot.lane.b32.xlu0 %v10511_v5, %s10355_s23 }
  0x26   :  { %366 = vrot.lane.b32.xlu1 %v10497_v3, %s10356_s24 }
  0x27   :  { %364 = vrot.lane.b32.xlu0 %v10483_v1, %s10356_s24 }
  0x2a   :  { %415 = vrot.lane.b32.xlu1 %v10548_v6, %s10353_s13 }
  0x2b   :  { %413 = vrot.lane.b32.xlu0 %v10553_v7, %s10353_s13 }
  0x2e   :  { %411 = vrot.lane.b32.xlu1 %v10562_v8, %s10353_s13 }
  0x2f   :  { %362 = vrot.lane.b32.xlu0 %v10511_v5, %s10356_s24 }
  0x32   :  { %463 = vrot.lane.b32.xlu1 %v10571_v9, %s10353_s13 }
  0x33   :  { %461 = vrot.lane.b32.xlu0 %v10576_v10, %s10353_s13 }
  0x36   :  { %511 = vrot.lane.b32.xlu1 %v10548_v6, %s10354_s22 }
  0x37   :  { %509 = vrot.lane.b32.xlu0 %v10553_v7, %s10354_s22 }
  0x3a   :  { %507 = vrot.lane.b32.xlu1 %v10562_v8, %s10354_s22 }
  0x3b   :  { %459 = vrot.lane.b32.xlu0 %v10589_v11, %s10353_s13 }
  0x3e   :  { %559 = vrot.lane.b32.xlu1 %v10571_v9, %s10354_s22 }
  0x3f   :  { %557 = vrot.lane.b32.xlu0 %v10576_v10, %s10354_s22 }
  0x42   :  { %607 = vrot.lane.b32.xlu1 %v10548_v6, %s10355_s23 }
  0x43   :  { %605 = vrot.lane.b32.xlu0 %v10553_v7, %s10355_s23 }
  0x46   :  { %603 = vrot.lane.b32.xlu1 %v10562_v8, %s10355_s23 }
  0x47   :  { %555 = vrot.lane.b32.xlu0 %v10589_v11, %s10354_s22 }
  0x4a   :  { %655 = vrot.lane.b32.xlu1 %v10571_v9, %s10355_s23 }
  0x4b   :  { %653 = vrot.lane.b32.xlu0 %v10576_v10, %s10355_s23 }
  0x4e   :  { %703 = vrot.lane.b32.xlu1 %v10548_v6, %s10356_s24 }
  0x4f   :  { %701 = vrot.lane.b32.xlu0 %v10553_v7, %s10356_s24 }
  0x52   :  { %699 = vrot.lane.b32.xlu1 %v10562_v8, %s10356_s24 }
  0x53   :  { %651 = vrot.lane.b32.xlu0 %v10589_v11, %s10355_s23 }
  0x56   :  { %751 = vrot.lane.b32.xlu1 %v10497_v3, %s10357_s17 }
  0x57   :  { %749 = vrot.lane.b32.xlu0 %v10483_v1, %s10357_s17 }
  0x5a   :  { %800 = vrot.lane.b32.xlu1 %v10492_v2, %s10357_s17 }
  0x5b   :  { %798 = vrot.lane.b32.xlu0 %v10478_v0, %s10357_s17 }
  0x5e   :  { %796 = vrot.lane.b32.xlu1 %v10506_v4, %s10357_s17 }
  0x5f   :  { %747 = vrot.lane.b32.xlu0 %v10511_v5, %s10357_s17 }
  0x62   :  { %848 = vrot.lane.b32.xlu1 %v10497_v3, %s10358_s18 }
  0x63   :  { %846 = vrot.lane.b32.xlu0 %v10483_v1, %s10358_s18 }
  0x66   :  { %897 = vrot.lane.b32.xlu1 %v10492_v2, %s10358_s18 }
  0x67   :  { %895 = vrot.lane.b32.xlu0 %v10478_v0, %s10358_s18 }
  0x6a   :  { %893 = vrot.lane.b32.xlu1 %v10506_v4, %s10358_s18 }
  0x6b   :  { %844 = vrot.lane.b32.xlu0 %v10511_v5, %s10358_s18 }
  0x6e   :  { %78 = vrot.lane.b32.xlu1 %v10646_v12, %s10353_s13 }
  0x6f   :  { %76 = vrot.lane.b32.xlu0 %v10651_v13, %s10353_s13 }
  0x72   :  { %128 = vrot.lane.b32.xlu1 %v10660_v14, %s10353_s13 }
  0x73   :  { %126 = vrot.lane.b32.xlu0 %v10665_v15, %s10353_s13 }
  0x74   :  { %v123_v16 = vpop.permute.xlu1 %122 }
  0x75   :  { %v73_v17 = vpop.permute.xlu0 %72 }
  0x76   :  { %945 = vrot.lane.b32.xlu1 %v10497_v3, %s10359_s30 }
  0x77   :  { %943 = vrot.lane.b32.xlu0 %v10483_v1, %s10359_s30 }
  0x78   :  { %v10675_v18 = vpop.permute.xlu1 %124 }
  0x79   :  { %v10677_v19 = vpop.permute.xlu0 %74  ;;  %v135_v20 = vsel %vm84_vm0, %v123_v16, %v10675_v18 }
  0x7a   :  { %v86_v21 = vsel %vm84_vm0, %v73_v17, %v10677_v19  ;;  %994 = vrot.lane.b32.xlu1 %v10492_v2, %s10359_s30 }
  0x7b   :  { %992 = vrot.lane.b32.xlu0 %v10478_v0, %s10359_s30  ;;  %v9091_v22 = vpack.c.bf16 %v135_v20, %v86_v21 }
  0x7c   :  { %v121_v23 = vpop.permute.xlu1 %120 }
  0x7d   :  { %v71_v24 = vpop.permute.xlu0 %70  ;;  %9092 = vmatprep.subr.bf16.mxu0 %v9091_v22  ;;  %v134_v25 = vsel %vm84_vm0, %v121_v23, %v123_v16 }
  0x7e   :  { %v85_v26 = vsel %vm84_vm0, %v71_v24, %v73_v17  ;;  %990 = vrot.lane.b32.xlu1 %v10506_v4, %s10359_s30 }
  0x7f   :  { %941 = vrot.lane.b32.xlu0 %v10511_v5, %s10359_s30  ;;  %v9093_v27 = vpack.c.bf16 %v134_v25, %v85_v26  ;;  %v10778_v25 = vld [vmem:[%s14136_s0 + $0xa0] sm:$0xff]  ;;  %v10783_v26 = vld [vmem:[%s14136_s0 + $0x98] sm:$0xff] }
  0x80   :  { %v10693_v28 = vpop.permute.xlu1 %172 }
  0x81   :  { %v171_v29 = vpop.permute.xlu0 %170  ;;  %9094 = vmatpush1.bf16.msra.mxu0 %v9093_v27 }
  0x82   :  { %v184_v30 = vsel %vm182_vm1, %v171_v29, %v10693_v28  ;;  %176 = vrot.lane.b32.xlu1 %v10646_v12, %s10354_s22 }
  0x83   :  { %174 = vrot.lane.b32.xlu0 %v10651_v13, %s10354_s22 }
  0x84   :  { %v10701_v31 = vpop.permute.xlu1 %221 }
  0x85   :  { %v220_v32 = vpop.permute.xlu0 %219 }
  0x86   :  { %v232_v33 = vsel %vm182_vm1, %v220_v32, %v10701_v31  ;;  %225 = vrot.lane.b32.xlu1 %v10660_v14, %s10354_s22 }
  0x87   :  { %223 = vrot.lane.b32.xlu0 %v10665_v15, %s10354_s22  ;;  %v9095_v34 = vpack.c.bf16 %v232_v33, %v184_v30 }
  0x88   :  { %v218_v35 = vpop.permute.xlu1 %217 }
  0x89   :  { %v169_v36 = vpop.permute.xlu0 %168  ;;  %9096 = vmatprep.subr.bf16.mxu0 %v9095_v34  ;;  %v231_v37 = vsel %vm182_vm1, %v218_v35, %v220_v32 }
  0x8a   :  { %v183_v38 = vsel %vm182_vm1, %v169_v36, %v171_v29  ;;  %1042 = vrot.lane.b32.xlu1 %v10497_v3, %s10360_s10 }
  0x8b   :  { %1040 = vrot.lane.b32.xlu0 %v10483_v1, %s10360_s10  ;;  %v9097_v39 = vpack.c.bf16 %v231_v37, %v183_v38 }
  0x8c   :  { %v10715_v40 = vpop.permute.xlu1 %269 }
  0x8d   :  { %v268_v41 = vpop.permute.xlu0 %267  ;;  %9098 = vmatpush1.bf16.msra.mxu0 %v9097_v39 }
  0x8e   :  { %v281_v42 = vsel %vm14158_vm2, %v268_v41, %v10715_v40  ;;  %1091 = vrot.lane.b32.xlu1 %v10548_v6, %s10357_s17 }
  0x8f   :  { %1089 = vrot.lane.b32.xlu0 %v10553_v7, %s10357_s17 }
  0x90   :  { %v10723_v43 = vpop.permute.xlu1 %318 }
  0x91   :  { %v317_v44 = vpop.permute.xlu0 %316 }
  0x92   :  { %v329_v45 = vsel %vm14158_vm2, %v317_v44, %v10723_v43  ;;  %1087 = vrot.lane.b32.xlu1 %v10562_v8, %s10357_s17 }
  0x93   :  { %1038 = vrot.lane.b32.xlu0 %v10511_v5, %s10360_s10  ;;  %v9099_v46 = vpack.c.bf16 %v329_v45, %v281_v42 }
  0x94   :  { %v315_v47 = vpop.permute.xlu1 %314 }
  0x95   :  { %v266_v48 = vpop.permute.xlu0 %265  ;;  %9100 = vmatprep.subr.bf16.mxu0 %v9099_v46  ;;  %v328_v49 = vsel %vm14158_vm2, %v315_v47, %v317_v44 }
  0x96   :  { %v280_v50 = vsel %vm14158_vm2, %v266_v48, %v268_v41  ;;  %273 = vrot.lane.b32.xlu1 %v10646_v12, %s10355_s23  ;;  %v10816_v48 = vld [vmem:[%s14136_s0 + $0xe0] sm:$0xff] }
  0x97   :  { %271 = vrot.lane.b32.xlu0 %v10651_v13, %s10355_s23  ;;  %v9101_v51 = vpack.c.bf16 %v328_v49, %v280_v50  ;;  %v10821_v49 = vld [vmem:[%s14136_s0 + $0xd8] sm:$0xff] }
  0x98   :  { %v10737_v52 = vpop.permute.xlu1 %366 }
  0x99   :  { %v365_v53 = vpop.permute.xlu0 %364  ;;  %9102 = vmatpush1.bf16.msra.mxu0 %v9101_v51 }
  0x9a   :  { %v378_v54 = vsel %vm376_vm3, %v365_v53, %v10737_v52  ;;  %322 = vrot.lane.b32.xlu1 %v10660_v14, %s10355_s23 }
  0x9b   :  { %320 = vrot.lane.b32.xlu0 %v10665_v15, %s10355_s23 }
  0x9c   :  { %v10745_v55 = vpop.permute.xlu1 %415 }
  0x9d   :  { %v414_v56 = vpop.permute.xlu0 %413 }
  0x9e   :  { %v426_v57 = vsel %vm84_vm0, %v414_v56, %v10745_v55  ;;  %1139 = vrot.lane.b32.xlu1 %v10571_v9, %s10357_s17 }
  0x9f   :  { %1137 = vrot.lane.b32.xlu0 %v10576_v10, %s10357_s17  ;;  %v9103_v58 = vpack.c.bf16 %v426_v57, %v378_v54 }
  0xa0   :  { %v412_v59 = vpop.permute.xlu1 %411 }
  0xa1   :  { %v363_v60 = vpop.permute.xlu0 %362  ;;  %9104 = vmatprep.subr.bf16.mxu0 %v9103_v58  ;;  %v425_v61 = vsel %vm84_vm0, %v412_v59, %v414_v56 }
  0xa2   :  { %v377_v62 = vsel %vm376_vm3, %v363_v60, %v365_v53  ;;  %1187 = vrot.lane.b32.xlu1 %v10548_v6, %s10358_s18 }
  0xa3   :  { %1185 = vrot.lane.b32.xlu0 %v10553_v7, %s10358_s18  ;;  %v9105_v63 = vpack.c.bf16 %v425_v61, %v377_v62 }
  0xa4   :  { %v10759_v16 = vpop.permute.xlu1 %463 }
  0xa5   :  { %v462_v17 = vpop.permute.xlu0 %461  ;;  %9106 = vmatpush1.bf16.msra.mxu0 %v9105_v63 }
  0xa6   :  { %v474_v20 = vsel %vm84_vm0, %v462_v17, %v10759_v16  ;;  %1183 = vrot.lane.b32.xlu1 %v10562_v8, %s10358_s18 }
  0xa7   :  { %1135 = vrot.lane.b32.xlu0 %v10589_v11, %s10357_s17 }
  0xa8   :  { %v10767_v21 = vpop.permute.xlu1 %511 }
  0xa9   :  { %v510_v22 = vpop.permute.xlu0 %509 }
  0xaa   :  { %v522_v23 = vsel %vm182_vm1, %v510_v22, %v10767_v21  ;;  %370 = vrot.lane.b32.xlu1 %v10646_v12, %s10356_s24 }
  0xab   :  { %368 = vrot.lane.b32.xlu0 %v10651_v13, %s10356_s24  ;;  %v9107_v24 = vpack.c.bf16 %v522_v23, %v474_v20 }
  0xac   :  { %v508_v27 = vpop.permute.xlu1 %507 }
  0xad   :  { %v460_v29 = vpop.permute.xlu0 %459  ;;  %9108 = vmatprep.subr.bf16.mxu0 %v9107_v24  ;;  %v521_v30 = vsel %vm182_vm1, %v508_v27, %v510_v22 }
  0xae   :  { %v473_v32 = vsel %vm84_vm0, %v460_v29, %v462_v17  ;;  %419 = vrot.lane.b32.xlu1 %v10778_v25, %s10353_s13 }
  0xaf   :  { %417 = vrot.lane.b32.xlu0 %v10783_v26, %s10353_s13  ;;  %v9109_v33 = vpack.c.bf16 %v521_v30, %v473_v32 }
  0xb0   :  { %v10791_v34 = vpop.permute.xlu1 %559 }
  0xb1   :  { %v558_v35 = vpop.permute.xlu0 %557  ;;  %9110 = vmatpush1.bf16.msra.mxu0 %v9109_v33 }
  0xb2   :  { %v570_v36 = vsel %vm182_vm1, %v558_v35, %v10791_v34  ;;  %1235 = vrot.lane.b32.xlu1 %v10571_v9, %s10358_s18 }
  0xb3   :  { %1233 = vrot.lane.b32.xlu0 %v10576_v10, %s10358_s18 }
  0xb4   :  { %v10799_v37 = vpop.permute.xlu1 %607 }
  0xb5   :  { %v606_v38 = vpop.permute.xlu0 %605 }
  0xb6   :  { %v618_v39 = vsel %vm14158_vm2, %v606_v38, %v10799_v37  ;;  %1283 = vrot.lane.b32.xlu1 %v10548_v6, %s10359_s30 }
  0xb7   :  { %1281 = vrot.lane.b32.xlu0 %v10553_v7, %s10359_s30  ;;  %v9111_v41 = vpack.c.bf16 %v618_v39, %v570_v36 }
  0xb8   :  { %v604_v42 = vpop.permute.xlu1 %603 }
  0xb9   :  { %v556_v44 = vpop.permute.xlu0 %555  ;;  %9112 = vmatprep.subr.bf16.mxu0 %v9111_v41  ;;  %v617_v45 = vsel %vm14158_vm2, %v604_v42, %v606_v38 }
  0xba   :  { %v569_v46 = vsel %vm182_vm1, %v556_v44, %v558_v35  ;;  %1279 = vrot.lane.b32.xlu1 %v10562_v8, %s10359_s30 }
  0xbb   :  { %1231 = vrot.lane.b32.xlu0 %v10589_v11, %s10358_s18  ;;  %v9113_v47 = vpack.c.bf16 %v617_v45, %v569_v46 }
  0xbc   :  { %v10823_v50 = vpop.permute.xlu1 %655 }
  0xbd   :  { %v654_v51 = vpop.permute.xlu0 %653  ;;  %9114 = vmatpush1.bf16.msra.mxu0 %v9113_v47 }
  0xbe   :  { %v666_v53 = vsel %vm14158_vm2, %v654_v51, %v10823_v50  ;;  %467 = vrot.lane.b32.xlu1 %v10816_v48, %s10353_s13 }
  0xbf   :  { %465 = vrot.lane.b32.xlu0 %v10821_v49, %s10353_s13 }
  0xc0   :  { %v10831_v54 = vpop.permute.xlu1 %703 }
  0xc1   :  { %v702_v56 = vpop.permute.xlu0 %701 }
  0xc2   :  { %v714_v57 = vsel %vm376_vm3, %v702_v56, %v10831_v54  ;;  %515 = vrot.lane.b32.xlu1 %v10778_v25, %s10354_s22 }
  0xc3   :  { %513 = vrot.lane.b32.xlu0 %v10783_v26, %s10354_s22  ;;  %v9115_v58 = vpack.c.bf16 %v714_v57, %v666_v53 }
  0xc4   :  { %v700_v59 = vpop.permute.xlu1 %699 }
  0xc5   :  { %v652_v60 = vpop.permute.xlu0 %651  ;;  %9116 = vmatprep.subr.bf16.mxu0 %v9115_v58  ;;  %v713_v61 = vsel %vm376_vm3, %v700_v59, %v702_v56 }
  0xc6   :  { %v665_v62 = vsel %vm14158_vm2, %v652_v60, %v654_v51  ;;  %1331 = vrot.lane.b32.xlu1 %v10571_v9, %s10359_s30 }
  0xc7   :  { %1329 = vrot.lane.b32.xlu0 %v10576_v10, %s10359_s30  ;;  %v9117_v63 = vpack.c.bf16 %v713_v61, %v665_v62 }
  0xc8   :  { %v10845_v17 = vpop.permute.xlu1 %751 }
  0xc9   :  { %v750_v20 = vpop.permute.xlu0 %749  ;;  %9118 = vmatpush1.bf16.msra.mxu0 %v9117_v63 }
  0xca   :  { %v763_v22 = vsel %vm761_vm4, %v750_v20, %v10845_v17  ;;  %1379 = vrot.lane.b32.xlu1 %v10548_v6, %s10360_s10 }
  0xcb   :  { %1377 = vrot.lane.b32.xlu0 %v10553_v7, %s10360_s10 }
  0xcc   :  { %v10853_v23 = vpop.permute.xlu1 %800 }
  0xcd   :  { %v799_v9 = vpop.permute.xlu0 %798 }
  0xce   :  { %v811_v10 = vsel %vm761_vm4, %v799_v9, %v10853_v23  ;;  %1375 = vrot.lane.b32.xlu1 %v10562_v8, %s10360_s10 }
  0xcf   :  { %1327 = vrot.lane.b32.xlu0 %v10589_v11, %s10359_s30  ;;  %v9119_v24 = vpack.c.bf16 %v811_v10, %v763_v22 }
  0xd0   :  { %v797_v27 = vpop.permute.xlu1 %796 }
  0xd1   :  { %v748_v29 = vpop.permute.xlu0 %747  ;;  %9120 = vmatprep.subr.bf16.mxu0 %v9119_v24  ;;  %v810_v6 = vsel %vm761_vm4, %v797_v27, %v799_v9 }
  0xd2   :  { %v762_v7 = vsel %vm761_vm4, %v748_v29, %v750_v20  ;;  %563 = vrot.lane.b32.xlu1 %v10816_v48, %s10354_s22 }
  0xd3   :  { %561 = vrot.lane.b32.xlu0 %v10821_v49, %s10354_s22  ;;  %v9121_v30 = vpack.c.bf16 %v810_v6, %v762_v7 }
  0xd4   :  { %v10867_v8 = vpop.permute.xlu1 %848 }
  0xd5   :  { %v847_v32 = vpop.permute.xlu0 %846  ;;  %9122 = vmatpush1.bf16.msra.mxu0 %v9121_v30 }
  0xd6   :  { %v860_v11 = vsel %vm858_vm5, %v847_v32, %v10867_v8  ;;  %611 = vrot.lane.b32.xlu1 %v10778_v25, %s10355_s23 }
  0xd7   :  { %609 = vrot.lane.b32.xlu0 %v10783_v26, %s10355_s23 }
  0xd8   :  { %v10875_v33 = vpop.permute.xlu1 %897 }
  0xd9   :  { %v896_v35 = vpop.permute.xlu0 %895 }
  0xda   :  { %v908_v36 = vsel %vm858_vm5, %v896_v35, %v10875_v33  ;;  %1427 = vrot.lane.b32.xlu1 %v10497_v3, %s10361_s25 }
  0xdb   :  { %1425 = vrot.lane.b32.xlu0 %v10483_v1, %s10361_s25  ;;  %v9123_v38 = vpack.c.bf16 %v908_v36, %v860_v11 }
  0xdc   :  { %v894_v39 = vpop.permute.xlu1 %893 }
  0xdd   :  { %v845_v41 = vpop.permute.xlu0 %844  ;;  %9124 = vmatprep.subr.bf16.mxu0 %v9123_v38  ;;  %v907_v42 = vsel %vm858_vm5, %v894_v39, %v896_v35  ;;  %v10965_v38 = vld [vmem:[%s14136_s0 + $0x10] sm:$0xff]  ;;  %v10970_v39 = vld [vmem:[%s14136_s0 + $0x8] sm:$0xff] }
  0xde   :  { %v859_v44 = vsel %vm858_vm5, %v845_v41, %v847_v32  ;;  %1476 = vrot.lane.b32.xlu1 %v10492_v2, %s10361_s25 }
  0xdf   :  { %1474 = vrot.lane.b32.xlu0 %v10478_v0, %s10361_s25  ;;  %v9125_v45 = vpack.c.bf16 %v907_v42, %v859_v44 }
  0xe0   :  { %v10889_v46 = vpop.permute.xlu1 %78 }
  0xe1   :  { %v77_v47 = vpop.permute.xlu0 %76  ;;  %9126 = vmatpush1.bf16.msra.mxu0 %v9125_v45 }
  0xe2   :  { %v87_v51 = vsel %vm84_vm0, %v10677_v19, %v77_v47  ;;  %v88_v53 = vsel %vm84_vm0, %v77_v47, %v10889_v46  ;;  %1472 = vrot.lane.b32.xlu1 %v10506_v4, %s10361_s25  ;;  %v10983_v47 = vld [vmem:[%s14136_s0 + $0x50] sm:$0xff] }
  0xe3   :  { %1423 = vrot.lane.b32.xlu0 %v10511_v5, %s10361_s25 }
  0xe4   :  { %v10899_v56 = vpop.permute.xlu1 %128 }
  0xe5   :  { %v127_v57 = vpop.permute.xlu0 %126 }
  0xe6   :  { %v136_v58 = vsel %vm84_vm0, %v10675_v18, %v127_v57  ;;  %v137_v59 = vsel %vm84_vm0, %v127_v57, %v10899_v56  ;;  %659 = vrot.lane.b32.xlu1 %v10816_v48, %s10355_s23 }
  0xe7   :  { %657 = vrot.lane.b32.xlu0 %v10821_v49, %s10355_s23  ;;  %v9187_v19 = vpack.c.bf16 %v137_v59, %v88_v53  ;;  %v9189_v60 = vpack.c.bf16 %v136_v58, %v87_v51  ;;  %v10988_v51 = vld [vmem:[%s14136_s0 + $0x48] sm:$0xff] }
  0xe8   :  { %v10909_v61 = vpop.permute.xlu1 %945 }
  0xe9   :  { %v944_v62 = vpop.permute.xlu0 %943  ;;  %9188 = vmatprep.subr.bf16.mxu1 %v9187_v19 }
  0xea   :  { %v957_v63 = vsel %vm955_vm6, %v944_v62, %v10909_v61  ;;  %9190 = vmatpush1.bf16.msra.mxu1 %v9189_v60  ;;  %707 = vrot.lane.b32.xlu1 %v10778_v25, %s10356_s24  ;;  %v10999_v60 = vld [vmem:[%s14136_s0 + $0x40] sm:$0xff] }
  0xeb   :  { %705 = vrot.lane.b32.xlu0 %v10783_v26, %s10356_s24 }
  0xec   :  { %v10917_v18 = vpop.permute.xlu1 %994 }
  0xed   :  { %v993_v20 = vpop.permute.xlu0 %992 }
  0xee   :  { %v1005_v22 = vsel %vm955_vm6, %v993_v20, %v10917_v18  ;;  %1524 = vrot.lane.b32.xlu1 %v10497_v3, %s10362_s26 }
  0xef   :  { %1522 = vrot.lane.b32.xlu0 %v10483_v1, %s10362_s26  ;;  %v9127_v9 = vpack.c.bf16 %v1005_v22, %v957_v63 }
  0xf0   :  { %v991_v10 = vpop.permute.xlu1 %990 }
  0xf1   :  { %v942_v24 = vpop.permute.xlu0 %941  ;;  %9128 = vmatprep.subr.bf16.mxu0 %v9127_v9  ;;  %v1004_v27 = vsel %vm955_vm6, %v991_v10, %v993_v20 }
  0xf2   :  { %v956_v29 = vsel %vm955_vm6, %v942_v24, %v944_v62  ;;  %1573 = vrot.lane.b32.xlu1 %v10492_v2, %s10362_s26  ;;  %v11004_v62 = vld [vmem:[%s14136_s0] sm:$0xff] }
  0xf3   :  { %1571 = vrot.lane.b32.xlu0 %v10478_v0, %s10362_s26  ;;  %v9129_v6 = vpack.c.bf16 %v1004_v27, %v956_v29 }
  0xf4   :  { %v10931_v7 = vpop.permute.xlu1 %176 }
  0xf5   :  { %v175_v3 = vpop.permute.xlu0 %174  ;;  %9130 = vmatpush1.bf16.msra.mxu0 %v9129_v6 }
  0xf6   :  { %v185_v1 = vsel %vm182_vm1, %v10693_v28, %v175_v3  ;;  %v186_v30 = vsel %vm182_vm1, %v175_v3, %v10931_v7  ;;  %1569 = vrot.lane.b32.xlu1 %v10506_v4, %s10362_s26 }
  0xf7   :  { %1520 = vrot.lane.b32.xlu0 %v10511_v5, %s10362_s26 }
  0xf8   :  { %v10941_v2 = vpop.permute.xlu1 %225 }
  0xf9   :  { %v224_v0 = vpop.permute.xlu0 %223 }
  0xfa   :  { %v233_v32 = vsel %vm182_vm1, %v10701_v31, %v224_v0  ;;  %v234_v11 = vsel %vm182_vm1, %v224_v0, %v10941_v2  ;;  %755 = vrot.lane.b32.xlu1 %v10646_v12, %s10357_s17  ;;  %v2461_v31 = vld [vmem:[%s14137_s7 + $0x8] sm:$0xff] }
  0xfb   :  { %753 = vrot.lane.b32.xlu0 %v10651_v13, %s10357_s17  ;;  %v9191_v4 = vpack.c.bf16 %v234_v11, %v186_v30  ;;  %v9193_v28 = vpack.c.bf16 %v233_v32, %v185_v1  ;;  %2878 = vmatprep.mubr.f32.mxu0 %v2461_v31 }
  0xfc   :  { %v10951_v35 = vpop.permute.xlu1 %1042  ;;  %3020 = vmatprep.mubr.f32.mxu1 %v2461_v31 }
  0xfd   :  { %v1041_v5 = vpop.permute.xlu0 %1040  ;;  %9192 = vmatprep.subr.bf16.mxu1 %v9191_v4 }
  0xfe   :  { %v1054_v36 = vsel %vm14156_vm7, %v1041_v5, %v10951_v35  ;;  %9194 = vmatpush1.bf16.msra.mxu1 %v9193_v28  ;;  %804 = vrot.lane.b32.xlu1 %v10660_v14, %s10357_s17 }
  0xff   :  { %802 = vrot.lane.b32.xlu0 %v10665_v15, %s10357_s17 }
 0x100   :  { %v10972_v41 = vpop.permute.xlu1 %1091 }
 0x101   :  { %v1090_v42 = vpop.permute.xlu0 %1089 }
 0x102   :  { %v1102_v44 = vsel %vm761_vm4, %v1090_v42, %v10972_v41  ;;  %1621 = vrot.lane.b32.xlu1 %v10965_v38, %s10363_s15 }
 0x103   :  { %1619 = vrot.lane.b32.xlu0 %v10970_v39, %s10363_s15  ;;  %v9131_v45 = vpack.c.bf16 %v1102_v44, %v1054_v36  ;;  %v11061_v36 = vld [vmem:[%s14136_s0 + $0x80] sm:$0xff] }
 0x104   :  { %v1088_v53 = vpop.permute.xlu1 %1087 }
 0x105   :  { %v1039_v57 = vpop.permute.xlu0 %1038  ;;  %9132 = vmatprep.subr.bf16.mxu0 %v9131_v45  ;;  %v1101_v58 = vsel %vm761_vm4, %v1088_v53, %v1090_v42  ;;  %v11076_v53 = vld [vmem:[%s14136_s0 + $0x20] sm:$0xff] }
 0x106   :  { %v1053_v59 = vsel %vm14156_vm7, %v1039_v57, %v1041_v5  ;;  %1670 = vrot.lane.b32.xlu1 %v10983_v47, %s10363_s15  ;;  %v11081_v57 = vld [vmem:[%s14136_s0 + $0x18] sm:$0xff] }
 0x107   :  { %1668 = vrot.lane.b32.xlu0 %v10988_v51, %s10363_s15  ;;  %v9133_v19 = vpack.c.bf16 %v1101_v58, %v1053_v59 }
 0x108   :  { %v11006_v63 = vpop.permute.xlu1 %273 }
 0x109   :  { %v272_v20 = vpop.permute.xlu0 %271  ;;  %9134 = vmatpush1.bf16.msra.mxu0 %v9133_v19 }
 0x10a   :  { %v282_v22 = vsel %vm14158_vm2, %v10715_v40, %v272_v20  ;;  %v283_v9 = vsel %vm14158_vm2, %v272_v20, %v11006_v63  ;;  %1666 = vrot.lane.b32.xlu1 %v10999_v60, %s10363_s15 }
 0x10b   :  { %1617 = vrot.lane.b32.xlu0 %v11004_v62, %s10363_s15 }
 0x10c   :  { %v11016_v10 = vpop.permute.xlu1 %322 }
 0x10d   :  { %v321_v24 = vpop.permute.xlu0 %320 }
 0x10e   :  { %v330_v27 = vsel %vm14158_vm2, %v10723_v43, %v321_v24  ;;  %v331_v29 = vsel %vm14158_vm2, %v321_v24, %v11016_v10  ;;  %852 = vrot.lane.b32.xlu1 %v10646_v12, %s10358_s18 }
 0x10f   :  { %850 = vrot.lane.b32.xlu0 %v10651_v13, %s10358_s18  ;;  %v9195_v40 = vpack.c.bf16 %v331_v29, %v283_v9  ;;  %v9197_v6 = vpack.c.bf16 %v330_v27, %v282_v22  ;;  %v11096_v9 = vld [vmem:[%s14136_s0 + $0x60] sm:$0xff] }
 0x110   :  { %v11026_v3 = vpop.permute.xlu1 %1139 }
 0x111   :  { %v1138_v1 = vpop.permute.xlu0 %1137  ;;  %9196 = vmatprep.subr.bf16.mxu1 %v9195_v40  ;;  %v11114_v40 = vld [vmem:[%s14136_s0 + $0xd0] sm:$0xff] }
 0x112   :  { %v1150_v30 = vsel %vm761_vm4, %v1138_v1, %v11026_v3  ;;  %9198 = vmatpush1.bf16.msra.mxu1 %v9197_v6  ;;  %901 = vrot.lane.b32.xlu1 %v10660_v14, %s10358_s18  ;;  %v11045_v14 = vld [vmem:[%s14136_s0 + $0x90] sm:$0xff]  ;;  %v11119_v6 = vld [vmem:[%s14136_s0 + $0xc8] sm:$0xff] }
 0x113   :  { %899 = vrot.lane.b32.xlu0 %v10665_v15, %s10358_s18  ;;  %v11050_v15 = vld [vmem:[%s14136_s0 + $0x88] sm:$0xff] }
 0x114   :  { %v11034_v12 = vpop.permute.xlu1 %1187 }
 0x115   :  { %v1186_v43 = vpop.permute.xlu0 %1185 }
 0x116   :  { %v1198_v13 = vsel %vm858_vm5, %v1186_v43, %v11034_v12  ;;  %1718 = vrot.lane.b32.xlu1 %v10965_v38, %s10364_s12 }
 0x117   :  { %1716 = vrot.lane.b32.xlu0 %v10970_v39, %s10364_s12  ;;  %v9135_v0 = vpack.c.bf16 %v1198_v13, %v1150_v30 }
 0x118   :  { %v1184_v32 = vpop.permute.xlu1 %1183 }
 0x119   :  { %v1136_v11 = vpop.permute.xlu0 %1135  ;;  %9136 = vmatprep.subr.bf16.mxu0 %v9135_v0  ;;  %v1197_v4 = vsel %vm858_vm5, %v1184_v32, %v1186_v43 }
 0x11a   :  { %v1149_v28 = vsel %vm761_vm4, %v1136_v11, %v1138_v1  ;;  %1767 = vrot.lane.b32.xlu1 %v11045_v14, %s10361_s25 }
 0x11b   :  { %1765 = vrot.lane.b32.xlu0 %v11050_v15, %s10361_s25  ;;  %v9137_v5 = vpack.c.bf16 %v1197_v4, %v1149_v28 }
 0x11c   :  { %v11063_v31 = vpop.permute.xlu1 %370 }
 0x11d   :  { %v369_v42 = vpop.permute.xlu0 %368  ;;  %9138 = vmatpush1.bf16.msra.mxu0 %v9137_v5  ;;  %v11138_v5 = vld [vmem:[%s14136_s0 + $0xc0] sm:$0xff] }
 0x11e   :  { %v379_v44 = vsel %vm376_vm3, %v10737_v52, %v369_v42  ;;  %v380_v45 = vsel %vm376_vm3, %v369_v42, %v11063_v31  ;;  %1763 = vrot.lane.b32.xlu1 %v11061_v36, %s10361_s25 }
 0x11f   :  { %1714 = vrot.lane.b32.xlu0 %v11004_v62, %s10364_s12 }
 0x120   :  { %v11083_v52 = vpop.permute.xlu1 %419 }
 0x121   :  { %v418_v58 = vpop.permute.xlu0 %417 }
 0x122   :  { %v427_v59 = vsel %vm84_vm0, %v10745_v55, %v418_v58  ;;  %v428_v19 = vsel %vm84_vm0, %v418_v58, %v11083_v52  ;;  %949 = vrot.lane.b32.xlu1 %v11076_v53, %s10359_s30  ;;  %v11101_v55 = vld [vmem:[%s14136_s0 + $0x58] sm:$0xff] }
 0x123   :  { %947 = vrot.lane.b32.xlu0 %v11081_v57, %s10359_s30  ;;  %v9199_v20 = vpack.c.bf16 %v428_v19, %v380_v45  ;;  %v9201_v22 = vpack.c.bf16 %v427_v59, %v379_v44 }
 0x124   :  { %v11103_v24 = vpop.permute.xlu1 %1235 }
 0x125   :  { %v1234_v27 = vpop.permute.xlu0 %1233  ;;  %9200 = vmatprep.subr.bf16.mxu1 %v9199_v20 }
 0x126   :  { %v1246_v29 = vsel %vm858_vm5, %v1234_v27, %v11103_v24  ;;  %9202 = vmatpush1.bf16.msra.mxu1 %v9201_v22  ;;  %998 = vrot.lane.b32.xlu1 %v11096_v9, %s10359_s30 }
 0x127   :  { %996 = vrot.lane.b32.xlu0 %v11101_v55, %s10359_s30 }
 0x128   :  { %v11121_v1 = vpop.permute.xlu1 %1283 }
 0x129   :  { %v1282_v30 = vpop.permute.xlu0 %1281 }
 0x12a   :  { %v1294_v43 = vsel %vm955_vm6, %v1282_v30, %v11121_v1  ;;  %1815 = vrot.lane.b32.xlu1 %v11114_v40, %s10361_s25 }
 0x12b   :  { %1813 = vrot.lane.b32.xlu0 %v11119_v6, %s10361_s25  ;;  %v9139_v13 = vpack.c.bf16 %v1294_v43, %v1246_v29 }
 0x12c   :  { %v1280_v0 = vpop.permute.xlu1 %1279 }
 0x12d   :  { %v1232_v32 = vpop.permute.xlu0 %1231  ;;  %9140 = vmatprep.subr.bf16.mxu0 %v9139_v13  ;;  %v1293_v11 = vsel %vm955_vm6, %v1280_v0, %v1282_v30 }
 0x12e   :  { %v1245_v4 = vsel %vm858_vm5, %v1232_v32, %v1234_v27  ;;  %1863 = vrot.lane.b32.xlu1 %v11045_v14, %s10362_s26 }
 0x12f   :  { %1861 = vrot.lane.b32.xlu0 %v11050_v15, %s10362_s26  ;;  %v9141_v28 = vpack.c.bf16 %v1293_v11, %v1245_v4 }
 0x130   :  { %v11140_v42 = vpop.permute.xlu1 %467 }
 0x131   :  { %v466_v44 = vpop.permute.xlu0 %465  ;;  %9142 = vmatpush1.bf16.msra.mxu0 %v9141_v28 }
 0x132   :  { %v475_v45 = vsel %vm84_vm0, %v10759_v16, %v466_v44  ;;  %v476_v58 = vsel %vm84_vm0, %v466_v44, %v11140_v42  ;;  %1859 = vrot.lane.b32.xlu1 %v11061_v36, %s10362_s26 }
 0x133   :  { %1811 = vrot.lane.b32.xlu0 %v11138_v5, %s10361_s25 }
 0x134   :  { %v11150_v59 = vpop.permute.xlu1 %515 }
 0x135   :  { %v514_v19 = vpop.permute.xlu0 %513 }
 0x136   :  { %v523_v20 = vsel %vm182_vm1, %v10767_v21, %v514_v19  ;;  %v524_v22 = vsel %vm182_vm1, %v514_v19, %v11150_v59  ;;  %1046 = vrot.lane.b32.xlu1 %v11076_v53, %s10360_s10 }
 0x137   :  { %1044 = vrot.lane.b32.xlu0 %v11081_v57, %s10360_s10  ;;  %v9203_v16 = vpack.c.bf16 %v524_v22, %v476_v58  ;;  %v9205_v27 = vpack.c.bf16 %v523_v20, %v475_v45 }
 0x138   :  { %v11160_v29 = vpop.permute.xlu1 %1331 }
 0x139   :  { %v1330_v30 = vpop.permute.xlu0 %1329  ;;  %9204 = vmatprep.subr.bf16.mxu1 %v9203_v16 }
 0x13a   :  { %v1342_v43 = vsel %vm955_vm6, %v1330_v30, %v11160_v29  ;;  %9206 = vmatpush1.bf16.msra.mxu1 %v9205_v27  ;;  %1095 = vrot.lane.b32.xlu1 %v10778_v25, %s10357_s17 }
 0x13b   :  { %1093 = vrot.lane.b32.xlu0 %v10783_v26, %s10357_s17 }
 0x13c   :  { %v11168_v21 = vpop.permute.xlu1 %1379 }
 0x13d   :  { %v1378_v13 = vpop.permute.xlu0 %1377 }
 0x13e   :  { %v1390_v0 = vsel %vm14156_vm7, %v1378_v13, %v11168_v21  ;;  %1911 = vrot.lane.b32.xlu1 %v11114_v40, %s10362_s26 }
 0x13f   :  { %1909 = vrot.lane.b32.xlu0 %v11119_v6, %s10362_s26  ;;  %v9143_v32 = vpack.c.bf16 %v1390_v0, %v1342_v43 }
 0x140   :  { %v1376_v11 = vpop.permute.xlu1 %1375 }
 0x141   :  { %v1328_v4 = vpop.permute.xlu0 %1327  ;;  %9144 = vmatprep.subr.bf16.mxu0 %v9143_v32  ;;  %v1389_v28 = vsel %vm14156_vm7, %v1376_v11, %v1378_v13 }
 0x142   :  { %v1341_v44 = vsel %vm955_vm6, %v1328_v4, %v1330_v30  ;;  %1959 = vrot.lane.b32.xlu1 %v11045_v14, %s10363_s15 }
 0x143   :  { %1957 = vrot.lane.b32.xlu0 %v11050_v15, %s10363_s15  ;;  %v9145_v45 = vpack.c.bf16 %v1389_v28, %v1341_v44 }
 0x144   :  { %v11182_v58 = vpop.permute.xlu1 %563 }
 0x145   :  { %v562_v19 = vpop.permute.xlu0 %561  ;;  %9146 = vmatpush1.bf16.msra.mxu0 %v9145_v45 }
 0x146   :  { %v571_v20 = vsel %vm182_vm1, %v10791_v34, %v562_v19  ;;  %v572_v22 = vsel %vm182_vm1, %v562_v19, %v11182_v58  ;;  %1955 = vrot.lane.b32.xlu1 %v11061_v36, %s10363_s15 }
 0x147   :  { %1907 = vrot.lane.b32.xlu0 %v11138_v5, %s10362_s26 }
 0x148   :  { %v11192_v16 = vpop.permute.xlu1 %611 }
 0x149   :  { %v610_v27 = vpop.permute.xlu0 %609 }
 0x14a   :  { %v619_v30 = vsel %vm14158_vm2, %v10799_v37, %v610_v27  ;;  %v620_v43 = vsel %vm14158_vm2, %v610_v27, %v11192_v16  ;;  %1143 = vrot.lane.b32.xlu1 %v10816_v48, %s10357_s17 }
 0x14b   :  { %1141 = vrot.lane.b32.xlu0 %v10821_v49, %s10357_s17  ;;  %v9207_v34 = vpack.c.bf16 %v620_v43, %v572_v22  ;;  %v9209_v13 = vpack.c.bf16 %v619_v30, %v571_v20 }
 0x14c   :  { %v11202_v0 = vpop.permute.xlu1 %1427 }
 0x14d   :  { %v1426_v32 = vpop.permute.xlu0 %1425  ;;  %9208 = vmatprep.subr.bf16.mxu1 %v9207_v34 }
 0x14e   :  { %v1439_v11 = vsel %vm1437_vm8, %v1426_v32, %v11202_v0  ;;  %9210 = vmatpush1.bf16.msra.mxu1 %v9209_v13  ;;  %1191 = vrot.lane.b32.xlu1 %v10778_v25, %s10358_s18 }
 0x14f   :  { %1189 = vrot.lane.b32.xlu0 %v10783_v26, %s10358_s18 }
 0x150   :  { %v11210_v37 = vpop.permute.xlu1 %1476 }
 0x151   :  { %v1475_v4 = vpop.permute.xlu0 %1474 }
 0x152   :  { %v1487_v28 = vsel %vm1437_vm8, %v1475_v4, %v11210_v37  ;;  %2007 = vrot.lane.b32.xlu1 %v11114_v40, %s10363_s15 }
 0x153   :  { %2005 = vrot.lane.b32.xlu0 %v11119_v6, %s10363_s15  ;;  %v9147_v44 = vpack.c.bf16 %v1487_v28, %v1439_v11 }
 0x154   :  { %v1473_v45 = vpop.permute.xlu1 %1472 }
 0x155   :  { %v1424_v19 = vpop.permute.xlu0 %1423  ;;  %9148 = vmatprep.subr.bf16.mxu0 %v9147_v44  ;;  %v1486_v25 = vsel %vm1437_vm8, %v1473_v45, %v1475_v4 }
 0x156   :  { %v1438_v26 = vsel %vm1437_vm8, %v1424_v19, %v1426_v32  ;;  %2055 = vrot.lane.b32.xlu1 %v11045_v14, %s10364_s12 }
 0x157   :  { %2053 = vrot.lane.b32.xlu0 %v11050_v15, %s10364_s12  ;;  %v9149_v20 = vpack.c.bf16 %v1486_v25, %v1438_v26 }
 0x158   :  { %v11224_v22 = vpop.permute.xlu1 %659 }
 0x159   :  { %v658_v40 = vpop.permute.xlu0 %657  ;;  %9150 = vmatpush1.bf16.msra.mxu0 %v9149_v20 }
 0x15a   :  { %v667_v6 = vsel %vm14158_vm2, %v10823_v50, %v658_v40  ;;  %v668_v27 = vsel %vm14158_vm2, %v658_v40, %v11224_v22  ;;  %2051 = vrot.lane.b32.xlu1 %v11061_v36, %s10364_s12  ;;  %v11281_v40 = vld [vmem:[%s14137_s7] sm:$0xff] }
 0x15b   :  { %2003 = vrot.lane.b32.xlu0 %v11138_v5, %s10363_s15  ;;  %v11247_v5 = vld [vmem:[%s14136_s0 + $0xa0] sm:$0xff] }
 0x15c   :  { %v11234_v14 = vpop.permute.xlu1 %707 }
 0x15d   :  { %v706_v15 = vpop.permute.xlu0 %705 }
 0x15e   :  { %v715_v30 = vsel %vm376_vm3, %v10831_v54, %v706_v15  ;;  %v716_v43 = vsel %vm376_vm3, %v706_v15, %v11234_v14  ;;  %1239 = vrot.lane.b32.xlu1 %v10816_v48, %s10358_s18  ;;  %v11252_v54 = vld [vmem:[%s14136_s0 + $0x98] sm:$0xff]  ;;  %v11294_v15 = vld [vmem:[%s14136_s0 + $0xe0] sm:$0xff] }
 0x15f   :  { %1237 = vrot.lane.b32.xlu0 %v10821_v49, %s10358_s18  ;;  %v9211_v50 = vpack.c.bf16 %v716_v43, %v668_v27  ;;  %v9213_v36 = vpack.c.bf16 %v715_v30, %v667_v6  ;;  %v11299_v30 = vld [vmem:[%s14136_s0 + $0xd8] sm:$0xff] }
 0x160   :  { %v11254_v34 = vpop.permute.xlu1 %1524 }
 0x161   :  { %v1523_v13 = vpop.permute.xlu0 %1522  ;;  %9212 = vmatprep.subr.bf16.mxu1 %v9211_v50 }
 0x162   :  { %v1536_v48 = vsel %vm1534_vm9, %v1523_v13, %v11254_v34  ;;  %9214 = vmatpush1.bf16.msra.mxu1 %v9213_v36  ;;  %1287 = vrot.lane.b32.xlu1 %v11247_v5, %s10359_s30 }
 0x163   :  { %1285 = vrot.lane.b32.xlu0 %v11252_v54, %s10359_s30 }
 0x164   :  { %v11262_v49 = vpop.permute.xlu1 %1573 }
 0x165   :  { %v1572_v32 = vpop.permute.xlu0 %1571 }
 0x166   :  { %v1584_v11 = vsel %vm1534_vm9, %v1572_v32, %v11262_v49  ;;  %2105 = vrot.lane.b32.xlu1 %v10965_v38, %s10365_s28 }
 0x167   :  { %2103 = vrot.lane.b32.xlu0 %v10970_v39, %s10365_s28  ;;  %v9151_v4 = vpack.c.bf16 %v1584_v11, %v1536_v48 }
 0x168   :  { %v1570_v28 = vpop.permute.xlu1 %1569 }
 0x169   :  { %v1521_v44 = vpop.permute.xlu0 %1520  ;;  %9152 = vmatprep.subr.bf16.mxu0 %v9151_v4  ;;  %v1583_v45 = vsel %vm1534_vm9, %v1570_v28, %v1572_v32 }
 0x16a   :  { %v1535_v19 = vsel %vm1534_vm9, %v1521_v44, %v1523_v13  ;;  %2159 = vrot.lane.b32.xlu1 %v10983_v47, %s10365_s28 }
 0x16b   :  { %2157 = vrot.lane.b32.xlu0 %v10988_v51, %s10365_s28  ;;  %v9153_v25 = vpack.c.bf16 %v1583_v45, %v1535_v19 }
 0x16c   :  { %v11276_v26 = vpop.permute.xlu1 %755 }
 0x16d   :  { %v754_v20 = vpop.permute.xlu0 %753  ;;  %9154 = vmatpush1.bf16.msra.mxu0 %v9153_v25 }
 0x16e   :  { %v764_v6 = vsel %vm761_vm4, %v10845_v17, %v754_v20  ;;  %v765_v27 = vsel %vm761_vm4, %v754_v20, %v11276_v26  ;;  %2155 = vrot.lane.b32.xlu1 %v10999_v60, %s10365_s28 }
 0x16f   :  { %2101 = vrot.lane.b32.xlu0 %v11004_v62, %s10365_s28 }
 0x170   :  { %2879 = vmatmul.mubr.f32.vlgmr.msra.gmra.mrb[0].mxu0 %v11281_v40  ;;  %v11302_v17 = vpop.permute.xlu1 %804 }
 0x171   :  { %v803_v43 = vpop.permute.xlu0 %802 }
 0x172   :  { %v812_v50 = vsel %vm761_vm4, %v10853_v23, %v803_v43  ;;  %v813_v36 = vsel %vm761_vm4, %v803_v43, %v11302_v17  ;;  %1335 = vrot.lane.b32.xlu1 %v11294_v15, %s10359_s30 }
 0x173   :  { %1333 = vrot.lane.b32.xlu0 %v11299_v30, %s10359_s30  ;;  %v9215_v13 = vpack.c.bf16 %v813_v36, %v765_v27  ;;  %v9217_v48 = vpack.c.bf16 %v812_v50, %v764_v6 }
 0x174   :  { %v11312_v32 = vpop.permute.xlu1 %1621 }
 0x175   :  { %v1620_v11 = vpop.permute.xlu0 %1619  ;;  %9216 = vmatprep.subr.bf16.mxu1 %v9215_v13 }
 0x176   :  { %v1633_v4 = vsel %vm1631_vm10, %v1620_v11, %v11312_v32  ;;  %9218 = vmatpush1.bf16.msra.mxu1 %v9217_v48  ;;  %1383 = vrot.lane.b32.xlu1 %v11247_v5, %s10360_s10 }
 0x177   :  { %1381 = vrot.lane.b32.xlu0 %v11252_v54, %s10360_s10 }
 0x178   :  { %v11320_v23 = vpop.permute.xlu1 %1670 }
 0x179   :  { %v1669_v28 = vpop.permute.xlu0 %1668 }
 0x17a   :  { %v1681_v44 = vsel %vm1631_vm10, %v1669_v28, %v11320_v23  ;;  %2212 = vrot.lane.b32.xlu1 %v10965_v38, %s10366_s21 }
 0x17b   :  { %2210 = vrot.lane.b32.xlu0 %v10970_v39, %s10366_s21  ;;  %v9155_v45 = vpack.c.bf16 %v1681_v44, %v1633_v4 }
 0x17c   :  { %v1667_v19 = vpop.permute.xlu1 %1666 }
 0x17d   :  { %v1618_v25 = vpop.permute.xlu0 %1617  ;;  %9156 = vmatprep.subr.bf16.mxu0 %v9155_v45  ;;  %v1680_v20 = vsel %vm1631_vm10, %v1667_v19, %v1669_v28 }
 0x17e   :  { %v1632_v6 = vsel %vm1631_vm10, %v1618_v25, %v1620_v11  ;;  %2266 = vrot.lane.b32.xlu1 %v10983_v47, %s10366_s21 }
 0x17f   :  { %2264 = vrot.lane.b32.xlu0 %v10988_v51, %s10366_s21  ;;  %v9157_v27 = vpack.c.bf16 %v1680_v20, %v1632_v6 }
 0x180   :  { %v11334_v43 = vpop.permute.xlu1 %852 }
 0x181   :  { %v851_v50 = vpop.permute.xlu0 %850  ;;  %9158 = vmatpush1.bf16.msra.mxu0 %v9157_v27 }
 0x182   :  { %v861_v36 = vsel %vm858_vm5, %v10867_v8, %v851_v50  ;;  %v862_v13 = vsel %vm858_vm5, %v851_v50, %v11334_v43  ;;  %2262 = vrot.lane.b32.xlu1 %v10999_v60, %s10366_s21 }
 0x183   :  { %2208 = vrot.lane.b32.xlu0 %v11004_v62, %s10366_s21 }
 0x184   :  { %v11344_v48 = vpop.permute.xlu1 %901 }
 0x185   :  { %v900_v11 = vpop.permute.xlu0 %899 }
 0x186   :  { %v909_v4 = vsel %vm858_vm5, %v10875_v33, %v900_v11  ;;  %v910_v28 = vsel %vm858_vm5, %v900_v11, %v11344_v48  ;;  %1431 = vrot.lane.b32.xlu1 %v11076_v53, %s10361_s25 }
 0x187   :  { %1429 = vrot.lane.b32.xlu0 %v11081_v57, %s10361_s25  ;;  %v9219_v8 = vpack.c.bf16 %v910_v28, %v862_v13  ;;  %v9221_v44 = vpack.c.bf16 %v909_v4, %v861_v36 }
 0x188   :  { %v11354_v45 = vpop.permute.xlu1 %1718 }
 0x189   :  { %v1717_v19 = vpop.permute.xlu0 %1716  ;;  %9220 = vmatprep.subr.bf16.mxu1 %v9219_v8 }
 0x18a   :  { %v1730_v25 = vsel %vm1728_vm11, %v1717_v19, %v11354_v45  ;;  %9222 = vmatpush1.bf16.msra.mxu1 %v9221_v44  ;;  %1480 = vrot.lane.b32.xlu1 %v11096_v9, %s10361_s25 }
 0x18b   :  { %1478 = vrot.lane.b32.xlu0 %v11101_v55, %s10361_s25 }
 0x18c   :  { %v11362_v33 = vpop.permute.xlu1 %1767 }
 0x18d   :  { %v1766_v20 = vpop.permute.xlu0 %1765 }
 0x18e   :  { %v1778_v6 = vsel %vm1437_vm8, %v1766_v20, %v11362_v33  ;;  %2319 = vrot.lane.b32.xlu1 %v10965_v38, %s10367_s27 }
 0x18f   :  { %2317 = vrot.lane.b32.xlu0 %v10970_v39, %s10367_s27  ;;  %v9159_v27 = vpack.c.bf16 %v1778_v6, %v1730_v25  ;;  %v11412_v6 = vld [vmem:[%s14136_s0 + $0x28] sm:$0xff] }
 0x190   :  { %v1764_v50 = vpop.permute.xlu1 %1763 }
 0x191   :  { %v1715_v36 = vpop.permute.xlu0 %1714  ;;  %9160 = vmatprep.subr.bf16.mxu0 %v9159_v27  ;;  %v1777_v13 = vsel %vm1437_vm8, %v1764_v50, %v1766_v20 }
 0x192   :  { %v1729_v11 = vsel %vm1728_vm11, %v1715_v36, %v1717_v19  ;;  %2373 = vrot.lane.b32.xlu1 %v10983_v47, %s10367_s27 }
 0x193   :  { %2371 = vrot.lane.b32.xlu0 %v10988_v51, %s10367_s27  ;;  %v9161_v4 = vpack.c.bf16 %v1777_v13, %v1729_v11  ;;  %v11425_v11 = vld [vmem:[%s14136_s0 + $0x70] sm:$0xff] }
 0x194   :  { %v11376_v28 = vpop.permute.xlu1 %949 }
 0x195   :  { %v948_v38 = vpop.permute.xlu0 %947  ;;  %9162 = vmatpush1.bf16.msra.mxu0 %v9161_v4  ;;  %v11430_v4 = vld [vmem:[%s14136_s0 + $0x68] sm:$0xff] }
 0x196   :  { %v958_v39 = vsel %vm955_vm6, %v10909_v61, %v948_v38  ;;  %v959_v8 = vsel %vm955_vm6, %v948_v38, %v11376_v28  ;;  %2369 = vrot.lane.b32.xlu1 %v10999_v60, %s10367_s27 }
 0x197   :  { %2315 = vrot.lane.b32.xlu0 %v11004_v62, %s10367_s27 }
 0x198   :  { %v11386_v47 = vpop.permute.xlu1 %998 }
 0x199   :  { %v997_v51 = vpop.permute.xlu0 %996 }
 0x19a   :  { %v1006_v44 = vsel %vm955_vm6, %v10917_v18, %v997_v51  ;;  %v1007_v19 = vsel %vm955_vm6, %v997_v51, %v11386_v47  ;;  %1528 = vrot.lane.b32.xlu1 %v11076_v53, %s10362_s26  ;;  %v11407_v18 = vld [vmem:[%s14136_s0 + $0x30] sm:$0xff] }
 0x19b   :  { %1526 = vrot.lane.b32.xlu0 %v11081_v57, %s10362_s26  ;;  %v9223_v61 = vpack.c.bf16 %v1007_v19, %v959_v8  ;;  %v9225_v60 = vpack.c.bf16 %v1006_v44, %v958_v39 }
 0x19c   :  { %v11396_v25 = vpop.permute.xlu1 %1815 }
 0x19d   :  { %v1814_v62 = vpop.permute.xlu0 %1813  ;;  %9224 = vmatprep.subr.bf16.mxu1 %v9223_v61 }
 0x19e   :  { %v1826_v20 = vsel %vm1437_vm8, %v1814_v62, %v11396_v25  ;;  %9226 = vmatpush1.bf16.msra.mxu1 %v9225_v60  ;;  %1577 = vrot.lane.b32.xlu1 %v11096_v9, %s10362_s26 }
 0x19f   :  { %1575 = vrot.lane.b32.xlu0 %v11101_v55, %s10362_s26 }
 0x1a0   :  { %v11414_v27 = vpop.permute.xlu1 %1863 }
 0x1a1   :  { %v1862_v50 = vpop.permute.xlu0 %1861 }
 0x1a2   :  { %v1874_v36 = vsel %vm1534_vm9, %v1862_v50, %v11414_v27  ;;  %82 = vrot.lane.b32.xlu1 %v11407_v18, %s10353_s13 }
 0x1a3   :  { %80 = vrot.lane.b32.xlu0 %v11412_v6, %s10353_s13  ;;  %v9163_v13 = vpack.c.bf16 %v1874_v36, %v1826_v20 }
 0x1a4   :  { %v1860_v38 = vpop.permute.xlu1 %1859 }
 0x1a5   :  { %v1812_v39 = vpop.permute.xlu0 %1811  ;;  %9164 = vmatprep.subr.bf16.mxu0 %v9163_v13  ;;  %v1873_v8 = vsel %vm1534_vm9, %v1860_v38, %v1862_v50 }
 0x1a6   :  { %v1825_v51 = vsel %vm1437_vm8, %v1812_v39, %v1814_v62  ;;  %132 = vrot.lane.b32.xlu1 %v11425_v11, %s10353_s13  ;;  %v11451_v62 = vld [vmem:[%s14137_s7 + $0x18] sm:$0xff] }
 0x1a7   :  { %130 = vrot.lane.b32.xlu0 %v11430_v4, %s10353_s13  ;;  %v9165_v44 = vpack.c.bf16 %v1873_v8, %v1825_v51  ;;  %8638 = vmatprep.mubr.msk.f32.mxu0 %vm14157_vm12, %v11451_v62  ;;  %v2408_v8 = vld [vmem:[%s14136_s0 + $0x10] sm:$0xff]  ;;  %v2407_v51 = vld [vmem:[%s14136_s0 + $0x8] sm:$0xff] }
 0x1a8   :  { %v11438_v19 = vpop.permute.xlu1 %1046 }
 0x1a9   :  { %14160 = vst [vmem:[#allocation9_spill] sm:$0xff] %v11438_v19  ;;  %v1045_v61 = vpop.permute.xlu0 %1044  ;;  %9166 = vmatpush1.bf16.msra.mxu0 %v9165_v44 }
 0x1aa   :  { %v1055_v60 = vsel %vm14156_vm7, %v10951_v35, %v1045_v61  ;;  %v1056_v20 = vsel %vm14156_vm7, %v1045_v61, %v11438_v19  ;;  %1625 = vrot.lane.b32.xlu1 %v11076_v53, %s10363_s15 }
 0x1ab   :  { %1623 = vrot.lane.b32.xlu0 %v11081_v57, %s10363_s15 }
 0x1ac   :  { %v11453_v50 = vpop.permute.xlu1 %1095 }
 0x1ad   :  { %14161 = vst [vmem:[#allocation10_spill] sm:$0xff] %v11453_v50  ;;  %v1094_v36 = vpop.permute.xlu0 %1093 }
 0x1ae   :  { %v1103_v35 = vsel %vm761_vm4, %v10972_v41, %v1094_v36  ;;  %v1104_v13 = vsel %vm761_vm4, %v1094_v36, %v11453_v50  ;;  %1674 = vrot.lane.b32.xlu1 %v11096_v9, %s10363_s15 }
 0x1af   :  { %1672 = vrot.lane.b32.xlu0 %v11101_v55, %s10363_s15  ;;  %v9227_v38 = vpack.c.bf16 %v1104_v13, %v1056_v20  ;;  %v9229_v39 = vpack.c.bf16 %v1103_v35, %v1055_v60  ;;  %v2406_v55 = vld [vmem:[%s14136_s0] sm:$0xff] }
 0x1b0   :  { %v11471_v41 = vpop.permute.xlu1 %1911 }
 0x1b1   :  { %v1910_v44 = vpop.permute.xlu0 %1909  ;;  %9228 = vmatprep.subr.bf16.mxu1 %v9227_v38 }
 0x1b2   :  { %v1922_v9 = vsel %vm1534_vm9, %v1910_v44, %v11471_v41  ;;  %9230 = vmatpush1.bf16.msra.mxu1 %v9229_v39  ;;  %2426 = vrot.lane.b32.xlu1 %v2408_v8, %s10368_s14 }
 0x1b3   :  { %2424 = vrot.lane.b32.xlu0 %v2407_v51, %s10368_s14 }
 0x1b4   :  { %v11480_v61 = vpop.permute.xlu1 %1959 }
 0x1b5   :  { %v1958_v60 = vpop.permute.xlu0 %1957 }
 0x1b6   :  { %v1970_v20 = vsel %vm1631_vm10, %v1958_v60, %v11480_v61  ;;  %178 = vrot.lane.b32.xlu1 %v11412_v6, %s10354_s22 }
 0x1b7   :  { %2422 = vrot.lane.b32.xlu0 %v2406_v55, %s10368_s14  ;;  %v9167_v36 = vpack.c.bf16 %v1970_v20, %v1922_v9 }
 0x1b8   :  { %v1956_v35 = vpop.permute.xlu1 %1955 }
 0x1b9   :  { %v1908_v13 = vpop.permute.xlu0 %1907  ;;  %9168 = vmatprep.subr.bf16.mxu0 %v9167_v36  ;;  %v1969_v38 = vsel %vm1631_vm10, %v1956_v35, %v1958_v60 }
 0x1ba   :  { %v1921_v39 = vsel %vm1534_vm9, %v1908_v13, %v1910_v44  ;;  %227 = vrot.lane.b32.xlu1 %v11430_v4, %s10354_s22 }
 0x1bb   :  { %180 = vrot.lane.b32.xlu0 %v11407_v18, %s10354_s22  ;;  %v9169_v8 = vpack.c.bf16 %v1969_v38, %v1921_v39 }
 0x1bc   :  { %v11493_v51 = vpop.permute.xlu1 %1143 }
 0x1bd   :  { %14162 = vst [vmem:[#allocation11_spill] sm:$0xff] %v11493_v51  ;;  %v1142_v50 = vpop.permute.xlu0 %1141  ;;  %9170 = vmatpush1.bf16.msra.mxu0 %v9169_v8 }
 0x1be   :  { %v1151_v9 = vsel %vm761_vm4, %v11026_v3, %v1142_v50  ;;  %v1152_v55 = vsel %vm761_vm4, %v1142_v50, %v11493_v51  ;;  %1720 = vrot.lane.b32.xlu1 %v11081_v57, %s10364_s12 }
 0x1bf   :  { %229 = vrot.lane.b32.xlu0 %v11425_v11, %s10354_s22 }
 0x1c0   :  { %v11503_v44 = vpop.permute.xlu1 %1191 }
 0x1c1   :  { %14163 = vst [vmem:[#allocation12_spill] sm:$0xff] %v11503_v44  ;;  %v1190_v60 = vpop.permute.xlu0 %1189 }
 0x1c2   :  { %v1199_v20 = vsel %vm858_vm5, %v11034_v12, %v1190_v60  ;;  %v1200_v36 = vsel %vm858_vm5, %v1190_v60, %v11503_v44  ;;  %1769 = vrot.lane.b32.xlu1 %v11252_v54, %s10361_s25 }
 0x1c3   :  { %1722 = vrot.lane.b32.xlu0 %v11076_v53, %s10364_s12  ;;  %v9231_v3 = vpack.c.bf16 %v1200_v36, %v1152_v55  ;;  %v9233_v57 = vpack.c.bf16 %v1199_v20, %v1151_v9 }
 0x1c4   :  { %v11513_v50 = vpop.permute.xlu1 %2007 }
 0x1c5   :  { %v2006_v35 = vpop.permute.xlu0 %2005  ;;  %9232 = vmatprep.subr.bf16.mxu1 %v9231_v3 }
 0x1c6   :  { %v2018_v13 = vsel %vm1631_vm10, %v2006_v35, %v11513_v50  ;;  %9234 = vmatpush1.bf16.msra.mxu1 %v9233_v57  ;;  %275 = vrot.lane.b32.xlu1 %v11412_v6, %s10355_s23 }
 0x1c7   :  { %1771 = vrot.lane.b32.xlu0 %v11247_v5, %s10361_s25 }
 0x1c8   :  { %v11521_v12 = vpop.permute.xlu1 %2055 }
 0x1c9   :  { %v2054_v38 = vpop.permute.xlu0 %2053 }
 0x1ca   :  { %v2066_v53 = vsel %vm1728_vm11, %v2054_v38, %v11521_v12  ;;  %324 = vrot.lane.b32.xlu1 %v11430_v4, %s10355_s23 }
 0x1cb   :  { %277 = vrot.lane.b32.xlu0 %v11407_v18, %s10355_s23  ;;  %v9171_v39 = vpack.c.bf16 %v2066_v53, %v2018_v13 }
 0x1cc   :  { %v2052_v8 = vpop.permute.xlu1 %2051 }
 0x1cd   :  { %v2004_v9 = vpop.permute.xlu0 %2003  ;;  %9172 = vmatprep.subr.bf16.mxu0 %v9171_v39  ;;  %v2065_v55 = vsel %vm1728_vm11, %v2052_v8, %v2054_v38 }
 0x1ce   :  { %v2017_v60 = vsel %vm1631_vm10, %v2004_v9, %v2006_v35  ;;  %1817 = vrot.lane.b32.xlu1 %v11299_v30, %s10361_s25  ;;  %v11558_v9 = vld [vmem:[%s14136_s0 + $0xa8] sm:$0xff] }
 0x1cf   :  { %326 = vrot.lane.b32.xlu0 %v11425_v11, %s10355_s23  ;;  %v9173_v20 = vpack.c.bf16 %v2065_v55, %v2017_v60 }
 0x1d0   :  { %v11535_v36 = vpop.permute.xlu1 %1239 }
 0x1d1   :  { %14164 = vst [vmem:[#allocation13_spill] sm:$0xff] %v11535_v36  ;;  %v1238_v3 = vpop.permute.xlu0 %1237  ;;  %9174 = vmatpush1.bf16.msra.mxu0 %v9173_v20  ;;  %v11571_v20 = vld [vmem:[%s14136_s0 + $0xb0] sm:$0xff] }
 0x1d2   :  { %v1247_v57 = vsel %vm858_vm5, %v11103_v24, %v1238_v3  ;;  %v1248_v13 = vsel %vm858_vm5, %v1238_v3, %v11535_v36  ;;  %1865 = vrot.lane.b32.xlu1 %v11252_v54, %s10362_s26  ;;  %v11590_v36 = vld [vmem:[%s14136_s0 + $0xe8] sm:$0xff] }
 0x1d3   :  { %1819 = vrot.lane.b32.xlu0 %v11294_v15, %s10361_s25 }
 0x1d4   :  { %v11545_v35 = vpop.permute.xlu1 %1287 }
 0x1d5   :  { %14165 = vst [vmem:[#allocation14_spill] sm:$0xff] %v11545_v35  ;;  %v1286_v38 = vpop.permute.xlu0 %1285 }
 0x1d6   :  { %v1295_v53 = vsel %vm955_vm6, %v11121_v1, %v1286_v38  ;;  %v1296_v39 = vsel %vm955_vm6, %v1286_v38, %v11545_v35  ;;  %372 = vrot.lane.b32.xlu1 %v11412_v6, %s10356_s24 }
 0x1d7   :  { %1867 = vrot.lane.b32.xlu0 %v11247_v5, %s10362_s26  ;;  %v9235_v24 = vpack.c.bf16 %v1296_v39, %v1248_v13  ;;  %v9237_v8 = vpack.c.bf16 %v1295_v53, %v1247_v57 }
 0x1d8   :  { %v11560_v55 = vpop.permute.xlu1 %2105 }
 0x1d9   :  { %v2104_v1 = vpop.permute.xlu0 %2103  ;;  %9236 = vmatprep.subr.bf16.mxu1 %v9235_v24 }
 0x1da   :  { %v2119_v60 = vsel %vm2117_vm13, %v2104_v1, %v11560_v55  ;;  %9238 = vmatpush1.bf16.msra.mxu1 %v9237_v8  ;;  %421 = vrot.lane.b32.xlu1 %v11558_v9, %s10353_s13 }
 0x1db   :  { %374 = vrot.lane.b32.xlu0 %v11407_v18, %s10356_s24 }
 0x1dc   :  { %v11573_v3 = vpop.permute.xlu1 %2159 }
 0x1dd   :  { %v2158_v57 = vpop.permute.xlu0 %2157 }
 0x1de   :  { %v2172_v13 = vsel %vm2117_vm13, %v2158_v57, %v11573_v3  ;;  %1913 = vrot.lane.b32.xlu1 %v11299_v30, %s10362_s26 }
 0x1df   :  { %423 = vrot.lane.b32.xlu0 %v11571_v20, %s10353_s13  ;;  %v9175_v38 = vpack.c.bf16 %v2172_v13, %v2119_v60 }
 0x1e0   :  { %v2156_v53 = vpop.permute.xlu1 %2155 }
 0x1e1   :  { %v2102_v39 = vpop.permute.xlu0 %2101  ;;  %9176 = vmatprep.subr.bf16.mxu0 %v9175_v38  ;;  %v2171_v24 = vsel %vm2117_vm13, %v2156_v53, %v2158_v57  ;;  %v11605_v38 = vld [vmem:[%s14136_s0 + $0xf0] sm:$0xff] }
 0x1e2   :  { %v2118_v8 = vsel %vm2117_vm13, %v2102_v39, %v2104_v1  ;;  %1961 = vrot.lane.b32.xlu1 %v11252_v54, %s10363_s15 }
 0x1e3   :  { %1915 = vrot.lane.b32.xlu0 %v11294_v15, %s10362_s26  ;;  %v9177_v35 = vpack.c.bf16 %v2171_v24, %v2118_v8 }
 0x1e4   :  { %v11592_v60 = vpop.permute.xlu1 %1335 }
 0x1e5   :  { %14166 = vst [vmem:[#allocation15_spill] sm:$0xff] %v11592_v60  ;;  %v1334_v13 = vpop.permute.xlu0 %1333  ;;  %9178 = vmatpush1.bf16.msra.mxu0 %v9177_v35 }
 0x1e6   :  { %v1343_v57 = vsel %vm955_vm6, %v11160_v29, %v1334_v13  ;;  %v1344_v1 = vsel %vm955_vm6, %v1334_v13, %v11592_v60  ;;  %469 = vrot.lane.b32.xlu1 %v11590_v36, %s10353_s13 }
 0x1e7   :  { %1963 = vrot.lane.b32.xlu0 %v11247_v5, %s10363_s15 }
 0x1e8   :  { %v11607_v53 = vpop.permute.xlu1 %1383 }
 0x1e9   :  { %14167 = vst [vmem:[#allocation16_spill] sm:$0xff] %v11607_v53  ;;  %v1382_v35 = vpop.permute.xlu0 %1381 }
 0x1ea   :  { %v1391_v29 = vsel %vm14156_vm7, %v11168_v21, %v1382_v35  ;;  %v1392_v39 = vsel %vm14156_vm7, %v1382_v35, %v11607_v53  ;;  %517 = vrot.lane.b32.xlu1 %v11558_v9, %s10354_s22  ;;  %vm104_vm7 = vcmask 408576  }
 0x1eb   :  { %471 = vrot.lane.b32.xlu0 %v11605_v38, %s10353_s13  ;;  %v9239_v24 = vpack.c.bf16 %v1392_v39, %v1344_v1  ;;  %v9241_v8 = vpack.c.bf16 %v1391_v29, %v1343_v57  ;;  %s10405_s13 = smov 7  }
 0x1ec   :  { %v11617_v13 = vpop.permute.xlu1 %2212 }
 0x1ed   :  { %v2211_v60 = vpop.permute.xlu0 %2210  ;;  %9240 = vmatprep.subr.bf16.mxu1 %v9239_v24 }
 0x1ee   :  { %v2226_v44 = vsel %vm2224_vm14, %v2211_v60, %v11617_v13  ;;  %9242 = vmatpush1.bf16.msra.mxu1 %v9241_v8  ;;  %2009 = vrot.lane.b32.xlu1 %v11299_v30, %s10363_s15 }
 0x1ef   :  { %519 = vrot.lane.b32.xlu0 %v11571_v20, %s10354_s22 }
 0x1f0   :  { %v11625_v21 = vpop.permute.xlu1 %2266 }
 0x1f1   :  { %v2265_v35 = vpop.permute.xlu0 %2264 }
 0x1f2   :  { %v2279_v57 = vsel %vm2224_vm14, %v2265_v35, %v11625_v21  ;;  %2057 = vrot.lane.b32.xlu1 %v11252_v54, %s10364_s12 }
 0x1f3   :  { %2011 = vrot.lane.b32.xlu0 %v11294_v15, %s10363_s15  ;;  %v9179_v1 = vpack.c.bf16 %v2279_v57, %v2226_v44 }
 0x1f4   :  { %v2263_v29 = vpop.permute.xlu1 %2262 }
 0x1f5   :  { %v2209_v39 = vpop.permute.xlu0 %2208  ;;  %9180 = vmatprep.subr.bf16.mxu0 %v9179_v1  ;;  %v2278_v30 = vsel %vm2224_vm14, %v2263_v29, %v2265_v35 }
 0x1f6   :  { %v2225_v24 = vsel %vm2224_vm14, %v2209_v39, %v2211_v60  ;;  %565 = vrot.lane.b32.xlu1 %v11590_v36, %s10354_s22  ;;  %v11667_v39 = vld [vmem:[%s14136_s0 + $0x58] sm:$0xff] }
 0x1f7   :  { %2059 = vrot.lane.b32.xlu0 %v11247_v5, %s10364_s12  ;;  %v9181_v8 = vpack.c.bf16 %v2278_v30, %v2225_v24  ;;  %v11652_v5 = vld [vmem:[%s14136_s0 + $0x18] sm:$0xff] }
 0x1f8   :  { %v11639_v53 = vpop.permute.xlu1 %1431 }
 0x1f9   :  { %14168 = vst [vmem:[#allocation17_spill] sm:$0xff] %v11639_v53  ;;  %v1430_v54 = vpop.permute.xlu0 %1429  ;;  %9182 = vmatpush1.bf16.msra.mxu0 %v9181_v8 }
 0x1fa   :  { %v1440_v15 = vsel %vm1437_vm8, %v11202_v0, %v1430_v54  ;;  %v1441_v44 = vsel %vm1437_vm8, %v1430_v54, %v11639_v53  ;;  %613 = vrot.lane.b32.xlu1 %v11558_v9, %s10355_s23  ;;  %v11685_v54 = vld [vmem:[%s14136_s0 + $0x60] sm:$0xff] }
 0x1fb   :  { %567 = vrot.lane.b32.xlu0 %v11605_v38, %s10354_s22  ;;  %s10375_s22 = smov 109  }
 0x1fc   :  { %v11654_v60 = vpop.permute.xlu1 %1480 }
 0x1fd   :  { %14169 = vst [vmem:[#allocation18_spill] sm:$0xff] %v11654_v60  ;;  %v1479_v35 = vpop.permute.xlu0 %1478 }
 0x1fe   :  { %v1488_v0 = vsel %vm1437_vm8, %v11210_v37, %v1479_v35  ;;  %v1489_v57 = vsel %vm1437_vm8, %v1479_v35, %v11654_v60  ;;  %2107 = vrot.lane.b32.xlu1 %v11652_v5, %s10365_s28  ;;  %v11672_v37 = vld [vmem:[%s14136_s0 + $0x20] sm:$0xff] }
 0x1ff   :  { %615 = vrot.lane.b32.xlu0 %v11571_v20, %s10355_s23  ;;  %v9243_v1 = vpack.c.bf16 %v1489_v57, %v1441_v44  ;;  %v9245_v29 = vpack.c.bf16 %v1488_v0, %v1440_v15 }
 0x200   :  { %v11674_v30 = vpop.permute.xlu1 %2319 }
 0x201   :  { %v2318_v24 = vpop.permute.xlu0 %2317  ;;  %9244 = vmatprep.subr.bf16.mxu1 %v9243_v1 }
 0x202   :  { %v2333_v8 = vsel %vm2331_vm15, %v2318_v24, %v11674_v30  ;;  %9246 = vmatpush1.bf16.msra.mxu1 %v9245_v29  ;;  %2161 = vrot.lane.b32.xlu1 %v11667_v39, %s10365_s28 }
 0x203   :  { %2109 = vrot.lane.b32.xlu0 %v11672_v37, %s10365_s28 }
 0x204   :  { %v11687_v15 = vpop.permute.xlu1 %2373 }
 0x205   :  { %v2372_v44 = vpop.permute.xlu0 %2371 }
 0x206   :  { %v2386_v35 = vsel %vm2331_vm15, %v2372_v44, %v11687_v15  ;;  %661 = vrot.lane.b32.xlu1 %v11590_v36, %s10355_s23 }
 0x207   :  { %2163 = vrot.lane.b32.xlu0 %v11685_v54, %s10365_s28  ;;  %v9183_v0 = vpack.c.bf16 %v2386_v35, %v2333_v8 }
 0x208   :  { %v2370_v57 = vpop.permute.xlu1 %2369 }
 0x209   :  { %v2316_v1 = vpop.permute.xlu0 %2315  ;;  %9184 = vmatprep.subr.bf16.mxu0 %v9183_v0  ;;  %v2385_v29 = vsel %vm2331_vm15, %v2370_v57, %v2372_v44 }
 0x20a   :  { %v2332_v60 = vsel %vm2331_vm15, %v2316_v1, %v2318_v24  ;;  %709 = vrot.lane.b32.xlu1 %v11558_v9, %s10356_s24 }
 0x20b   :  { %663 = vrot.lane.b32.xlu0 %v11605_v38, %s10355_s23  ;;  %v9185_v53 = vpack.c.bf16 %v2385_v29, %v2332_v60  ;;  %s10406_s23 = smov 120  }
 0x20c   :  { %v11701_v51 = vpop.permute.xlu1 %1528 }
 0x20d   :  { %v1527_v19 = vpop.permute.xlu0 %1526  ;;  %9186 = vmatpush1.bf16.msra.mxu0 %v9185_v53 }
 0x20e   :  { %v1537_v8 = vsel %vm1534_vm9, %v11254_v34, %v1527_v19  ;;  %v1538_v35 = vsel %vm1534_vm9, %v1527_v19, %v11701_v51  ;;  %2214 = vrot.lane.b32.xlu1 %v11652_v5, %s10366_s21 }
 0x20f   :  { %711 = vrot.lane.b32.xlu0 %v11571_v20, %s10356_s24  ;;  %s10373_s24 = smov 127  }
 0x210   :  { %v11711_v24 = vpop.permute.xlu1 %1577 }
 0x211   :  { %v1576_v44 = vpop.permute.xlu0 %1575 }
 0x212   :  { %v1585_v60 = vsel %vm1534_vm9, %v11262_v49, %v1576_v44  ;;  %v1586_v53 = vsel %vm1534_vm9, %v1576_v44, %v11711_v24  ;;  %2268 = vrot.lane.b32.xlu1 %v11667_v39, %s10366_s21 }
 0x213   :  { %2216 = vrot.lane.b32.xlu0 %v11672_v37, %s10366_s21  ;;  %v9247_v34 = vpack.c.bf16 %v1586_v53, %v1538_v35  ;;  %v9249_v19 = vpack.c.bf16 %v1585_v60, %v1537_v8 }
 0x214   :  { %v83_v0 = vpop.permute.xlu1 %82 }
 0x215   :  { %v81_v57 = vpop.permute.xlu0 %80  ;;  %9248 = vmatprep.subr.bf16.mxu1 %v9247_v34  ;;  %105 = vst.msk [vmem:[#allocation7 + $0x30] sm:$0xff] %vm104_vm7, %v83_v0 }
 0x216   :  { %v89_v49 = vsel %vm84_vm0, %v10889_v46, %v81_v57  ;;  %v90_v1 = vsel %vm84_vm0, %v81_v57, %v83_v0  ;;  %9250 = vmatpush1.bf16.msra.mxu1 %v9249_v19  ;;  %757 = vrot.lane.b32.xlu1 %v11412_v6, %s10357_s17 }
 0x217   :  { %2270 = vrot.lane.b32.xlu0 %v11685_v54, %s10366_s21 }
 0x218   :  { %v133_v29 = vpop.permute.xlu1 %132 }
 0x219   :  { %v131_v35 = vpop.permute.xlu0 %130  ;;  %3021 = vmatmul.mubr.f32.vlgmr.msra.gmra.mrb[0].mxu1 %v11281_v40  ;;  %153 = vst.msk [vmem:[#allocation7 + $0x68] sm:$0xff] %vm104_vm7, %v133_v29 }
 0x21a   :  { %v138_v8 = vsel %vm84_vm0, %v10899_v56, %v131_v35  ;;  %v139_v46 = vsel %vm84_vm0, %v131_v35, %v133_v29  ;;  %8639 = vmatprep.mubr.msk.f32.mxu1 %vm14157_vm12, %v11451_v62  ;;  %806 = vrot.lane.b32.xlu1 %v11430_v4, %s10357_s17  ;;  %vm14159_vm12 = vcmask 326656  }
 0x21b   :  { %759 = vrot.lane.b32.xlu0 %v11407_v18, %s10357_s17 }
 0x21c   :  { %v11740_v44 = vpop.permute.xlu1 %1625 }
 0x21d   :  { %v1624_v60 = vpop.permute.xlu0 %1623 }
 0x21e   :  { %v1634_v40 = vsel %vm1631_vm10, %v11312_v32, %v1624_v60  ;;  %v1635_v56 = vsel %vm1631_vm10, %v1624_v60, %v11740_v44  ;;  %2321 = vrot.lane.b32.xlu1 %v11652_v5, %s10367_s27 }
 0x21f   :  { %808 = vrot.lane.b32.xlu0 %v11425_v11, %s10357_s17 }
 0x220   :  { %v11750_v62 = vpop.permute.xlu1 %1674 }
 0x221   :  { %v1673_v53 = vpop.permute.xlu0 %1672 }
 0x222   :  { %v1682_v34 = vsel %vm1631_vm10, %v11320_v23, %v1673_v53  ;;  %v1683_v19 = vsel %vm1631_vm10, %v1673_v53, %v11750_v62  ;;  %2375 = vrot.lane.b32.xlu1 %v11667_v39, %s10367_s27  ;;  %v9285_v53 = vpack.c.bf16 %v138_v8, %v89_v49 }
 0x223   :  { %2323 = vrot.lane.b32.xlu0 %v11672_v37, %s10367_s27  ;;  %v9251_v32 = vpack.c.bf16 %v1683_v19, %v1635_v56  ;;  %v9253_v0 = vpack.c.bf16 %v1682_v34, %v1634_v40  ;;  %v11774_v56 = vld [vmem:[%s14137_s7 + $0x10] sm:$0xff] }
 0x224   :  { %v11760_v57 = vpop.permute.xlu1 %2426 }
 0x225   :  { %v2425_v29 = vpop.permute.xlu0 %2424  ;;  %9252 = vmatprep.subr.bf16.mxu1 %v9251_v32 }
 0x226   :  { %v2440_v35 = vsel %vm14159_vm12, %v2425_v29, %v11760_v57  ;;  %9254 = vmatpush1.bf16.msra.mxu1 %v9253_v0  ;;  %854 = vrot.lane.b32.xlu1 %v11412_v6, %s10358_s18  ;;  %v11788_v0 = vld [vmem:[%s14137_s7 + $0x8] sm:$0xff] }
 0x227   :  { %2377 = vrot.lane.b32.xlu0 %v11685_v54, %s10367_s27  ;;  %2917 = vmatprep.subr.mxu0 %v2440_v35  ;;  %v9283_v54 = vpack.c.bf16 %v139_v46, %v90_v1 }
 0x228   :  { %v179_v23 = vpop.permute.xlu1 %178 }
 0x229   :  { %v2423_v39 = vpop.permute.xlu0 %2422  ;;  %v187_v60 = vsel %vm182_vm1, %v10931_v7, %v179_v23 }
 0x22a   :  { %v2439_v40 = vsel %vm14159_vm12, %v2423_v39, %v2425_v29  ;;  %903 = vrot.lane.b32.xlu1 %v11430_v4, %s10358_s18 }
 0x22b   :  { %856 = vrot.lane.b32.xlu0 %v11407_v18, %s10358_s18  ;;  %2918 = vmatpush1.msra.mxu0 %v2439_v40 }
 0x22c   :  { %v228_v34 = vpop.permute.xlu1 %227  ;;  %9284 = vmatprep.subr.bf16.mxu0 %v9283_v54  ;;  %2950 = vmatmul.mubr.f32.vlgmr.msra.gmra.mrb[0].mxu0 %v11774_v56 }
 0x22d   :  { %v181_v19 = vpop.permute.xlu0 %180  ;;  %v235_v7 = vsel %vm182_vm1, %v10941_v2, %v228_v34  ;;  %9286 = vmatpush1.bf16.msra.mxu0 %v9285_v53  ;;  %3162 = vmatprep.mubr.f32.mxu0 %v11788_v0 }
 0x22e   :  { %v188_v32 = vsel %vm182_vm1, %v179_v23, %v181_v19  ;;  %202 = vst.msk [vmem:[#allocation7 + $0xa0] sm:$0xff] %vm104_vm7, %v181_v19  ;;  %2428 = vrot.lane.b32.xlu1 %v11652_v5, %s10368_s14  ;;  %v9289_v5 = vpack.c.bf16 %v235_v7, %v187_v60 }
 0x22f   :  { %905 = vrot.lane.b32.xlu0 %v11425_v11, %s10358_s18 }
 0x230   :  { %v1721_v49 = vpop.permute.xlu1 %1720 }
 0x231   :  { %v230_v2 = vpop.permute.xlu0 %229  ;;  %v1731_v1 = vsel %vm1728_vm11, %v11354_v45, %v1721_v49 }
 0x232   :  { %v236_v8 = vsel %vm182_vm1, %v228_v34, %v230_v2  ;;  %250 = vst.msk [vmem:[#allocation7 + $0xd8] sm:$0xff] %vm104_vm7, %v230_v2  ;;  %951 = vrot.lane.b32.xlu1 %v11412_v6, %s10359_s30 }
 0x233   :  { %2430 = vrot.lane.b32.xlu0 %v11672_v37, %s10368_s14  ;;  %v9287_v46 = vpack.c.bf16 %v236_v8, %v188_v32 }
 0x234   :  { %v1770_v29 = vpop.permute.xlu1 %1769 }
 0x235   :  { %v11803_v35 = vpop.permute.xlu0 %1722  ;;  %9288 = vmatprep.subr.bf16.mxu0 %v9287_v46  ;;  %v1779_v23 = vsel %vm1437_vm8, %v11362_v33, %v1770_v29 }
 0x236   :  { %v1732_v45 = vsel %vm1728_vm11, %v1721_v49, %v11803_v35  ;;  %9290 = vmatpush1.bf16.msra.mxu0 %v9289_v5  ;;  %1000 = vrot.lane.b32.xlu1 %v11430_v4, %s10359_s30  ;;  %v9257_v4 = vpack.c.bf16 %v1779_v23, %v1731_v1 }
 0x237   :  { %953 = vrot.lane.b32.xlu0 %v11407_v18, %s10359_s30  ;;  %v11826_v18 = vld [vmem:[%s14136_s0 + $0x30] sm:$0xff] }
 0x238   :  { %v276_v37 = vpop.permute.xlu1 %275 }
 0x239   :  { %v11813_v39 = vpop.permute.xlu0 %1771  ;;  %v284_v60 = vsel %vm14158_vm2, %v11006_v63, %v276_v37 }
 0x23a   :  { %v1780_v40 = vsel %vm1437_vm8, %v1770_v29, %v11813_v39  ;;  %1048 = vrot.lane.b32.xlu1 %v11412_v6, %s10360_s10 }
 0x23b   :  { %1002 = vrot.lane.b32.xlu0 %v11425_v11, %s10359_s30  ;;  %v9255_v33 = vpack.c.bf16 %v1780_v40, %v1732_v45 }
 0x23c   :  { %v325_v54 = vpop.permute.xlu1 %324 }
 0x23d   :  { %v278_v53 = vpop.permute.xlu0 %277  ;;  %9256 = vmatprep.subr.bf16.mxu1 %v9255_v33  ;;  %v332_v63 = vsel %vm14158_vm2, %v11016_v10, %v325_v54 }
 0x23e   :  { %v285_v34 = vsel %vm14158_vm2, %v276_v37, %v278_v53  ;;  %299 = vst.msk [vmem:[#allocation7 + $0x110] sm:$0xff] %vm104_vm7, %v278_v53  ;;  %9258 = vmatpush1.bf16.msra.mxu1 %v9257_v4  ;;  %1097 = vrot.lane.b32.xlu1 %v11558_v9, %s10357_s17  ;;  %v9293_v32 = vpack.c.bf16 %v332_v63, %v284_v60 }
 0x23f   :  { %1050 = vrot.lane.b32.xlu0 %v11826_v18, %s10360_s10 }
 0x240   :  { %v1818_v6 = vpop.permute.xlu1 %1817 }
 0x241   :  { %v327_v11 = vpop.permute.xlu0 %326  ;;  %v1827_v19 = vsel %vm1437_vm8, %v11396_v25, %v1818_v6 }
 0x242   :  { %v333_v7 = vsel %vm14158_vm2, %v325_v54, %v327_v11  ;;  %347 = vst.msk [vmem:[#allocation7 + $0x148] sm:$0xff] %vm104_vm7, %v327_v11  ;;  %1145 = vrot.lane.b32.xlu1 %v11590_v36, %s10357_s17 }
 0x243   :  { %1099 = vrot.lane.b32.xlu0 %v11571_v20, %s10357_s17  ;;  %v9291_v10 = vpack.c.bf16 %v333_v7, %v285_v34 }
 0x244   :  { %v1866_v49 = vpop.permute.xlu1 %1865 }
 0x245   :  { %v11844_v2 = vpop.permute.xlu0 %1819  ;;  %9292 = vmatprep.subr.bf16.mxu0 %v9291_v10  ;;  %v1875_v1 = vsel %vm1534_vm9, %v11414_v27, %v1866_v49 }
 0x246   :  { %v1828_v25 = vsel %vm1437_vm8, %v1818_v6, %v11844_v2  ;;  %9294 = vmatpush1.bf16.msra.mxu0 %v9293_v32  ;;  %1193 = vrot.lane.b32.xlu1 %v11558_v9, %s10358_s18  ;;  %v9261_v23 = vpack.c.bf16 %v1875_v1, %v1827_v19 }
 0x247   :  { %1147 = vrot.lane.b32.xlu0 %v11605_v38, %s10357_s17  ;;  %s10378_s17 = smov 90  }
 0x248   :  { %v373_v8 = vpop.permute.xlu1 %372 }
 0x249   :  { %v11854_v46 = vpop.permute.xlu0 %1867  ;;  %v381_v5 = vsel %vm376_vm3, %v11063_v31, %v373_v8 }
 0x24a   :  { %v1876_v29 = vsel %vm1534_vm9, %v1866_v49, %v11854_v46  ;;  %1241 = vrot.lane.b32.xlu1 %v11590_v36, %s10358_s18 }
 0x24b   :  { %1195 = vrot.lane.b32.xlu0 %v11571_v20, %s10358_s18  ;;  %v9259_v27 = vpack.c.bf16 %v1876_v29, %v1828_v25 }
 0x24c   :  { %v422_v45 = vpop.permute.xlu1 %421 }
 0x24d   :  { %v375_v37 = vpop.permute.xlu0 %374  ;;  %9260 = vmatprep.subr.bf16.mxu1 %v9259_v27  ;;  %v429_v60 = vsel %vm84_vm0, %v11083_v52, %v422_v45 }
 0x24e   :  { %v382_v40 = vsel %vm376_vm3, %v373_v8, %v375_v37  ;;  %396 = vst.msk [vmem:[#allocation7 + $0x180] sm:$0xff] %vm104_vm7, %v375_v37  ;;  %9262 = vmatpush1.bf16.msra.mxu1 %v9261_v23  ;;  %1289 = vrot.lane.b32.xlu1 %v11558_v9, %s10359_s30  ;;  %v9297_v53 = vpack.c.bf16 %v429_v60, %v381_v5 }
 0x24f   :  { %1243 = vrot.lane.b32.xlu0 %v11605_v38, %s10358_s18 }
 0x250   :  { %v1914_v31 = vpop.permute.xlu1 %1913 }
 0x251   :  { %v424_v33 = vpop.permute.xlu0 %423  ;;  %v1923_v4 = vsel %vm1534_vm9, %v11471_v41, %v1914_v31 }
 0x252   :  { %v430_v54 = vsel %vm84_vm0, %v422_v45, %v424_v33  ;;  %444 = vst.msk [vmem:[#allocation7 + $0x1b8] sm:$0xff] %vm104_vm7, %v424_v33  ;;  %1337 = vrot.lane.b32.xlu1 %v11590_v36, %s10359_s30  ;;  %v11893_v36 = vld [vmem:[%s14136_s0 + $0x28] sm:$0xff] }
 0x253   :  { %1291 = vrot.lane.b32.xlu0 %v11571_v20, %s10359_s30  ;;  %v9295_v52 = vpack.c.bf16 %v430_v54, %v382_v40 }
 0x254   :  { %v1962_v63 = vpop.permute.xlu1 %1961 }
 0x255   :  { %v11880_v34 = vpop.permute.xlu0 %1915  ;;  %9296 = vmatprep.subr.bf16.mxu0 %v9295_v52  ;;  %v1971_v6 = vsel %vm1631_vm10, %v11480_v61, %v1962_v63 }
 0x256   :  { %v1924_v41 = vsel %vm1534_vm9, %v1914_v31, %v11880_v34  ;;  %9298 = vmatpush1.bf16.msra.mxu0 %v9297_v53  ;;  %1385 = vrot.lane.b32.xlu1 %v11558_v9, %s10360_s10  ;;  %v9265_v10 = vpack.c.bf16 %v1971_v6, %v1923_v4 }
 0x257   :  { %1339 = vrot.lane.b32.xlu0 %v11605_v38, %s10359_s30  ;;  %v11908_v38 = vld [vmem:[%s14136_s0 + $0x68] sm:$0xff]  ;;  %s10386_s30 = smov 121  }
 0x258   :  { %v470_v11 = vpop.permute.xlu1 %469 }
 0x259   :  { %v11895_v19 = vpop.permute.xlu0 %1963  ;;  %v477_v61 = vsel %vm84_vm0, %v11140_v42, %v470_v11 }
 0x25a   :  { %v1972_v7 = vsel %vm1631_vm10, %v1962_v63, %v11895_v19  ;;  %1433 = vrot.lane.b32.xlu1 %v11893_v36, %s10361_s25 }
 0x25b   :  { %1387 = vrot.lane.b32.xlu0 %v11571_v20, %s10360_s10  ;;  %v9263_v9 = vpack.c.bf16 %v1972_v7, %v1924_v41  ;;  %v11921_v20 = vld [vmem:[%s14136_s0 + $0x70] sm:$0xff]  ;;  %s10403_s10 = smov 23  }
 0x25c   :  { %v518_v32 = vpop.permute.xlu1 %517 }
 0x25d   :  { %v472_v49 = vpop.permute.xlu0 %471  ;;  %9264 = vmatprep.subr.bf16.mxu1 %v9263_v9  ;;  %v525_v42 = vsel %vm182_vm1, %v11150_v59, %v518_v32  ;;  %v10369_v9 = vmov 8  }
 0x25e   :  { %v478_v1 = vsel %vm84_vm0, %v470_v11, %v472_v49  ;;  %492 = vst.msk [vmem:[#allocation7 + $0x1f0] sm:$0xff] %vm104_vm7, %v472_v49  ;;  %9266 = vmatpush1.bf16.msra.mxu1 %v9265_v10  ;;  %1482 = vrot.lane.b32.xlu1 %v11908_v38, %s10361_s25  ;;  %v9301_v27 = vpack.c.bf16 %v525_v42, %v477_v61  ;;  %v11970_v61 = vld [vmem:[%s14136_s0 + $0xa8] sm:$0xff]  ;;  %vm14171_vm0 = vcmask 637952  }
 0x25f   :  { %1435 = vrot.lane.b32.xlu0 %v11826_v18, %s10361_s25  ;;  %v1802_v42 = vld [vmem:[%s14136_s0 + $0xe8] sm:$0xff] }
 0x260   :  { %v2010_v25 = vpop.permute.xlu1 %2009  ;;  %10075 = vset.pattern.permute.xlu0 %v10369_v9 }
 0x261   :  { %v520_v8 = vpop.permute.xlu0 %519  ;;  %v2019_v59 = vsel %vm1631_vm10, %v11513_v50, %v2010_v25 }
 0x262   :  { %v526_v5 = vsel %vm182_vm1, %v518_v32, %v520_v8  ;;  %540 = vst.msk [vmem:[#allocation7 + $0x228] sm:$0xff] %vm104_vm7, %v520_v8  ;;  %1530 = vrot.lane.b32.xlu1 %v11893_v36, %s10362_s26 }
 0x263   :  { %1484 = vrot.lane.b32.xlu0 %v11921_v20, %s10361_s25  ;;  %v9299_v29 = vpack.c.bf16 %v526_v5, %v478_v1  ;;  %v1755_v1 = vld [vmem:[%s14136_s0 + $0xb0] sm:$0xff] }
 0x264   :  { %v2058_v23 = vpop.permute.xlu1 %2057 }
 0x265   :  { %v11931_v45 = vpop.permute.xlu0 %2011  ;;  %9300 = vmatprep.subr.bf16.mxu0 %v9299_v29  ;;  %v2067_v37 = vsel %vm1728_vm11, %v11521_v12, %v2058_v23  ;;  %v1803_v29 = vld [vmem:[%s14136_s0 + $0xf0] sm:$0xff] }
 0x266   :  { %v2020_v50 = vsel %vm1631_vm10, %v2010_v25, %v11931_v45  ;;  %9302 = vmatpush1.bf16.msra.mxu0 %v9301_v27  ;;  %1579 = vrot.lane.b32.xlu1 %v11908_v38, %s10362_s26  ;;  %v9269_v4 = vpack.c.bf16 %v2067_v37, %v2019_v59 }
 0x267   :  { %1532 = vrot.lane.b32.xlu0 %v11826_v18, %s10362_s26 }
 0x268   :  { %v566_v60 = vpop.permute.xlu1 %565 }
 0x269   :  { %v11941_v40 = vpop.permute.xlu0 %2059  ;;  %v573_v31 = vsel %vm182_vm1, %v11182_v58, %v566_v60 }
 0x26a   :  { %v2068_v33 = vsel %vm1728_vm11, %v2058_v23, %v11941_v40  ;;  %1627 = vrot.lane.b32.xlu1 %v11893_v36, %s10363_s15 }
 0x26b   :  { %1581 = vrot.lane.b32.xlu0 %v11921_v20, %s10362_s26  ;;  %v9267_v12 = vpack.c.bf16 %v2068_v33, %v2020_v50 }
 0x26c   :  { %v614_v54 = vpop.permute.xlu1 %613 }
 0x26d   :  { %v568_v52 = vpop.permute.xlu0 %567  ;;  %9268 = vmatprep.subr.bf16.mxu1 %v9267_v12  ;;  %v621_v53 = vsel %vm14158_vm2, %v11192_v16, %v614_v54 }
 0x26e   :  { %v574_v63 = vsel %vm182_vm1, %v566_v60, %v568_v52  ;;  %588 = vst.msk [vmem:[#allocation7 + $0x260] sm:$0xff] %vm104_vm7, %v568_v52  ;;  %9270 = vmatpush1.bf16.msra.mxu1 %v9269_v4  ;;  %1676 = vrot.lane.b32.xlu1 %v11908_v38, %s10363_s15  ;;  %v9305_v7 = vpack.c.bf16 %v621_v53, %v573_v31  ;;  %vm14173_vm1 = vmmov %vm14171_vm0 }
 0x26f   :  { %1629 = vrot.lane.b32.xlu0 %v11826_v18, %s10363_s15 }
 0x270   :  { %v2108_v58 = vpop.permute.xlu1 %2107 }
 0x271   :  { %v616_v6 = vpop.permute.xlu0 %615  ;;  %v2120_v41 = vsel %vm2117_vm13, %v11560_v55, %v2108_v58 }
 0x272   :  { %v622_v11 = vsel %vm14158_vm2, %v614_v54, %v616_v6  ;;  %636 = vst.msk [vmem:[#allocation7 + $0x298] sm:$0xff] %vm104_vm7, %v616_v6  ;;  %1724 = vrot.lane.b32.xlu1 %v11893_v36, %s10364_s12 }
 0x273   :  { %1678 = vrot.lane.b32.xlu0 %v11921_v20, %s10363_s15  ;;  %v9303_v16 = vpack.c.bf16 %v622_v11, %v574_v63 }
 0x274   :  { %v2162_v55 = vpop.permute.xlu1 %2161 }
 0x275   :  { %v11972_v10 = vpop.permute.xlu0 %2109  ;;  %9304 = vmatprep.subr.bf16.mxu0 %v9303_v16  ;;  %v2173_v32 = vsel %vm2117_vm13, %v11573_v3, %v2162_v55 }
 0x276   :  { %v2121_v49 = vsel %vm2117_vm13, %v2108_v58, %v11972_v10  ;;  %9306 = vmatpush1.bf16.msra.mxu0 %v9305_v7  ;;  %1773 = vrot.lane.b32.xlu1 %v11970_v61, %s10361_s25  ;;  %v9273_v27 = vpack.c.bf16 %v2173_v32, %v2120_v41 }
 0x277   :  { %1726 = vrot.lane.b32.xlu0 %v11826_v18, %s10364_s12 }
 0x278   :  { %v662_v25 = vpop.permute.xlu1 %661 }
 0x279   :  { %v11988_v3 = vpop.permute.xlu0 %2163  ;;  %v669_v8 = vsel %vm14158_vm2, %v11224_v22, %v662_v25 }
 0x27a   :  { %v2174_v59 = vsel %vm2117_vm13, %v2162_v55, %v11988_v3  ;;  %1821 = vrot.lane.b32.xlu1 %v1802_v42, %s10361_s25 }
 0x27b   :  { %1775 = vrot.lane.b32.xlu0 %v1755_v1, %s10361_s25  ;;  %v9271_v5 = vpack.c.bf16 %v2174_v59, %v2121_v49 }
 0x27c   :  { %v710_v23 = vpop.permute.xlu1 %709 }
 0x27d   :  { %v664_v37 = vpop.permute.xlu0 %663  ;;  %9272 = vmatprep.subr.bf16.mxu1 %v9271_v5  ;;  %v717_v50 = vsel %vm376_vm3, %v11234_v14, %v710_v23 }
 0x27e   :  { %v670_v22 = vsel %vm14158_vm2, %v662_v25, %v664_v37  ;;  %684 = vst.msk [vmem:[#allocation7 + $0x2d0] sm:$0xff] %vm104_vm7, %v664_v37  ;;  %9274 = vmatpush1.bf16.msra.mxu1 %v9273_v27  ;;  %1869 = vrot.lane.b32.xlu1 %v11970_v61, %s10362_s26  ;;  %v9309_v4 = vpack.c.bf16 %v717_v50, %v669_v8 }
 0x27f   :  { %1823 = vrot.lane.b32.xlu0 %v1803_v29, %s10361_s25  ;;  %s10380_s25 = smov 88  }
 0x280   :  { %v2215_v60 = vpop.permute.xlu1 %2214 }
 0x281   :  { %v712_v31 = vpop.permute.xlu0 %711  ;;  %v2227_v33 = vsel %vm2224_vm14, %v11617_v13, %v2215_v60 }
 0x282   :  { %v718_v12 = vsel %vm376_vm3, %v710_v23, %v712_v31  ;;  %732 = vst.msk [vmem:[#allocation7 + $0x308] sm:$0xff] %vm104_vm7, %v712_v31  ;;  %1917 = vrot.lane.b32.xlu1 %v1802_v42, %s10362_s26  ;;  %vm14176_vm3 = vcmask 64512  }
 0x283   :  { %1871 = vrot.lane.b32.xlu0 %v1755_v1, %s10362_s26  ;;  %v9307_v14 = vpack.c.bf16 %v718_v12, %v670_v22 }
 0x284   :  { %v2269_v54 = vpop.permute.xlu1 %2268 }
 0x285   :  { %v12012_v52 = vpop.permute.xlu0 %2216  ;;  %9308 = vmatprep.subr.bf16.mxu0 %v9307_v14  ;;  %v2280_v53 = vsel %vm2224_vm14, %v11625_v21, %v2269_v54 }
 0x286   :  { %v2228_v13 = vsel %vm2224_vm14, %v2215_v60, %v12012_v52  ;;  %9310 = vmatpush1.bf16.msra.mxu0 %v9309_v4  ;;  %1965 = vrot.lane.b32.xlu1 %v11970_v61, %s10363_s15  ;;  %v9277_v11 = vpack.c.bf16 %v2280_v53, %v2227_v33 }
 0x287   :  { %1919 = vrot.lane.b32.xlu0 %v1803_v29, %s10362_s26 }
 0x288   :  { %v758_v63 = vpop.permute.xlu1 %757 }
 0x289   :  { %v12021_v58 = vpop.permute.xlu0 %2270  ;;  %v766_v6 = vsel %vm761_vm4, %v11276_v26, %v758_v63 }
 0x28a   :  { %v2281_v41 = vsel %vm2224_vm14, %v2269_v54, %v12021_v58  ;;  %2013 = vrot.lane.b32.xlu1 %v1802_v42, %s10363_s15 }
 0x28b   :  { %1967 = vrot.lane.b32.xlu0 %v1755_v1, %s10363_s15  ;;  %v9275_v21 = vpack.c.bf16 %v2281_v41, %v2228_v13  ;;  %v2470_v13 = vld [vmem:[#allocation7 + $0x30] sm:$0xff] }
 0x28c   :  { %v807_v16 = vpop.permute.xlu1 %806 }
 0x28d   :  { %v760_v7 = vpop.permute.xlu0 %759  ;;  %9276 = vmatprep.subr.bf16.mxu1 %v9275_v21  ;;  %v814_v9 = vsel %vm761_vm4, %v11302_v17, %v807_v16 }
 0x28e   :  { %v767_v55 = vsel %vm761_vm4, %v758_v63, %v760_v7  ;;  %781 = vst.msk [vmem:[#allocation7 + $0x340] sm:$0xff] %vm104_vm7, %v760_v7  ;;  %9278 = vmatpush1.bf16.msra.mxu1 %v9277_v11  ;;  %2061 = vrot.lane.b32.xlu1 %v11970_v61, %s10364_s12  ;;  %v9313_v25 = vpack.c.bf16 %v814_v9, %v766_v6  ;;  %v2477_v63 = vld [vmem:[#allocation7 + $0x68] sm:$0xff] }
 0x28f   :  { %2015 = vrot.lane.b32.xlu0 %v1803_v29, %s10363_s15  ;;  %v9381_v7 = vpack.c.bf16 %v2477_v63, %v2470_v13  ;;  %v2092_v9 = vld [vmem:[%s14136_s0 + $0x38] sm:$0xff] }
 0x290   :  { %v2322_v26 = vpop.permute.xlu1 %2321 }
 0x291   :  { %v809_v32 = vpop.permute.xlu0 %808  ;;  %v2334_v49 = vsel %vm2331_vm15, %v11674_v30, %v2322_v26 }
 0x292   :  { %v815_v42 = vsel %vm761_vm4, %v807_v16, %v809_v32  ;;  %829 = vst.msk [vmem:[#allocation7 + $0x378] sm:$0xff] %vm104_vm7, %v809_v32  ;;  %2111 = vrot.lane.b32.xlu1 %v11893_v36, %s10365_s28 }
 0x293   :  { %2063 = vrot.lane.b32.xlu0 %v1755_v1, %s10364_s12  ;;  %v9311_v17 = vpack.c.bf16 %v815_v42, %v767_v55  ;;  %s10385_s12 = smov 122  }
 0x294   :  { %v2376_v8 = vpop.permute.xlu1 %2375 }
 0x295   :  { %v12043_v61 = vpop.permute.xlu0 %2323  ;;  %9312 = vmatprep.subr.bf16.mxu0 %v9311_v17  ;;  %v2387_v59 = vsel %vm2331_vm15, %v11687_v15, %v2376_v8  ;;  %v14172_v17 = vld [vmem:[#allocation10_spill] sm:$0xff] }
 0x296   :  { %v2335_v30 = vsel %vm2331_vm15, %v2322_v26, %v12043_v61  ;;  %9314 = vmatpush1.bf16.msra.mxu0 %v9313_v25  ;;  %2165 = vrot.lane.b32.xlu1 %v11908_v38, %s10365_s28  ;;  %v9281_v23 = vpack.c.bf16 %v2387_v59, %v2334_v49  ;;  %v14170_v26 = vld [vmem:[#allocation9_spill] sm:$0xff] }
 0x297   :  { %2113 = vrot.lane.b32.xlu0 %v11826_v18, %s10365_s28 }
 0x298   :  { %v855_v1 = vpop.permute.xlu1 %854 }
 0x299   :  { %v12053_v5 = vpop.permute.xlu0 %2377  ;;  %v863_v29 = vsel %vm858_vm5, %v11334_v43, %v855_v1 }
 0x29a   :  { %v2388_v27 = vsel %vm2331_vm15, %v2376_v8, %v12053_v5  ;;  %2218 = vrot.lane.b32.xlu1 %v11893_v36, %s10366_s21 }
 0x29b   :  { %2167 = vrot.lane.b32.xlu0 %v11921_v20, %s10365_s28  ;;  %v9279_v15 = vpack.c.bf16 %v2388_v27, %v2335_v30  ;;  %v14174_v27 = vld [vmem:[#allocation11_spill] sm:$0xff] }
 0x29c   :  { %v904_v37 = vpop.permute.xlu1 %903 }
 0x29d   :  { %v857_v50 = vpop.permute.xlu0 %856  ;;  %9280 = vmatprep.subr.bf16.mxu1 %v9279_v15  ;;  %v911_v22 = vsel %vm858_vm5, %v11344_v48, %v904_v37 }
 0x29e   :  { %v864_v60 = vsel %vm858_vm5, %v855_v1, %v857_v50  ;;  %878 = vst.msk [vmem:[#allocation7 + $0x3b0] sm:$0xff] %vm104_vm7, %v857_v50  ;;  %9282 = vmatpush1.bf16.msra.mxu1 %v9281_v23  ;;  %2272 = vrot.lane.b32.xlu1 %v11908_v38, %s10366_s21  ;;  %v9317_v14 = vpack.c.bf16 %v911_v22, %v863_v29  ;;  %v2484_v50 = vld [vmem:[#allocation7 + $0xa0] sm:$0xff] }
 0x29f   :  { %2220 = vrot.lane.b32.xlu0 %v11826_v18, %s10366_s21 }
 0x2a0   :  { %v2429_v43 = vpop.permute.xlu1 %2428 }
 0x2a1   :  { %v906_v31 = vpop.permute.xlu0 %905  ;;  %v2441_v33 = vsel %vm14159_vm12, %v11760_v57, %v2429_v43 }
 0x2a2   :  { %v912_v12 = vsel %vm858_vm5, %v904_v37, %v906_v31  ;;  %926 = vst.msk [vmem:[#allocation7 + $0x3e8] sm:$0xff] %vm104_vm7, %v906_v31  ;;  %2325 = vrot.lane.b32.xlu1 %v11893_v36, %s10367_s27 }
 0x2a3   :  { %2274 = vrot.lane.b32.xlu0 %v11921_v20, %s10366_s21  ;;  %v9315_v48 = vpack.c.bf16 %v912_v12, %v864_v60  ;;  %v14175_v12 = vld [vmem:[#allocation12_spill] sm:$0xff] }
 0x2a4   :  { %v952_v4 = vpop.permute.xlu1 %951 }
 0x2a5   :  { %v12079_v54 = vpop.permute.xlu0 %2430  ;;  %9316 = vmatprep.subr.bf16.mxu0 %v9315_v48  ;;  %v960_v53 = vsel %vm955_vm6, %v11376_v28, %v952_v4  ;;  %v2582_v21 = vld [vmem:[#allocation7 + $0x3b0] sm:$0xff] }
 0x2a6   :  { %v2442_v57 = vsel %vm14159_vm12, %v2429_v43, %v12079_v54  ;;  %9318 = vmatpush1.bf16.msra.mxu0 %v9317_v14  ;;  %2379 = vrot.lane.b32.xlu1 %v11908_v38, %s10367_s27 }
 0x2a7   :  { %2327 = vrot.lane.b32.xlu0 %v11826_v18, %s10367_s27  ;;  %3059 = vmatprep.subr.mxu1 %v2442_v57 }
 0x2a8   :  { %v1001_v6 = vpop.permute.xlu1 %1000  ;;  %3060 = vmatpush1.msra.mxu1 %v2441_v33 }
 0x2a9   :  { %v954_v41 = vpop.permute.xlu0 %953  ;;  %v2589_v11 = vld [vmem:[#allocation7 + $0x3e8] sm:$0xff]  ;;  %v1008_v28 = vsel %vm955_vm6, %v11386_v47, %v1001_v6  ;;  %3092 = vmatmul.mubr.f32.vlgmr.msra.gmra.mrb[0].mxu1 %v11774_v56 }
 0x2aa   :  { %v961_v16 = vsel %vm955_vm6, %v952_v4, %v954_v41  ;;  %975 = vst.msk [vmem:[#allocation7 + $0x420] sm:$0xff] %vm104_vm7, %v954_v41  ;;  %v9379_v38 = vpack.c.bf16 %v2589_v11, %v2582_v21  ;;  %2432 = vrot.lane.b32.xlu1 %v11893_v36, %s10368_s14  ;;  %3304 = vmatprep.mubr.f32.mxu1 %v11788_v0  ;;  %v2146_v0 = vld [vmem:[%s14136_s0 + $0x78] sm:$0xff]  ;;  %v10370_v4 = vmov 0.0   ;;  %s10388_s0 = smov 112  }
 0x2ab   :  { %2381 = vrot.lane.b32.xlu0 %v11921_v20, %s10367_s27  ;;  %v9321_v20 = vpack.c.bf16 %v1008_v28, %v960_v53  ;;  %43 = vst.msk [vmem:[#allocation3 + $0x10] sm:$0xff] %vm14176_vm3, %v10370_v4  ;;  %v2505_v53 = vld [vmem:[#allocation7 + $0x148] sm:$0xff] }
 0x2ac   :  { %9380 = vmatprep.subr.bf16.mxu1 %v9379_v38  ;;  %v1049_v47 = vpop.permute.xlu1 %1048  ;;  %v14182_v41 = vld [vmem:[#allocation13_spill] sm:$0xff] }
 0x2ad   :  { %v1003_v55 = vpop.permute.xlu0 %1002  ;;  %9382 = vmatpush3.bf16.msra.mxu1 %v9381_v7  ;;  %v1057_v56 = vsel %vm14171_vm0, %v14170_v26, %v1049_v47  ;;  %vm14177_vm0 = vmmov %vm14176_vm3 }
 0x2ae   :  { %v1009_v32 = vsel %vm955_vm6, %v1001_v6, %v1003_v55  ;;  %1023 = vst.msk [vmem:[#allocation7 + $0x458] sm:$0xff] %vm104_vm7, %v1003_v55  ;;  %2115 = vrot.lane.b32.xlu1 %v2092_v9, %s10365_s28  ;;  %vm14179_vm2 = vmmov %vm14177_vm0 }
 0x2af   :  { %2434 = vrot.lane.b32.xlu0 %v11826_v18, %s10368_s14  ;;  %v9319_v36 = vpack.c.bf16 %v1009_v32, %v961_v16  ;;  %v2491_v18 = vld [vmem:[#allocation7 + $0xd8] sm:$0xff]  ;;  %46 = vst.msk [vmem:[#allocation4 + $0x10] sm:$0xff] %vm14177_vm0, %v10370_v4  ;;  %vm14180_vm12 = vmmov %vm14177_vm0  ;;  %v2498_v16 = vld [vmem:[#allocation7 + $0x110] sm:$0xff] }
 0x2b0   :  { %v1098_v49 = vpop.permute.xlu1 %1097  ;;  %v9385_v22 = vpack.c.bf16 %v2491_v18, %v2484_v50  ;;  %48 = vst.msk [vmem:[#allocation5 + $0x8] sm:$0xff] %vm14179_vm2, %v10370_v4  ;;  %v9389_v38 = vpack.c.bf16 %v2505_v53, %v2498_v16  ;;  %vm14186_vm2 = vcmask 637952   ;;  %vm14191_vm3 = vmmov %vm14177_vm0 }
 0x2b1   :  { %v1051_v42 = vpop.permute.xlu0 %1050  ;;  %9320 = vmatprep.subr.bf16.mxu0 %v9319_v36  ;;  %v1105_v25 = vsel %vm761_vm4, %v14172_v17, %v1098_v49  ;;  %v2596_v1 = vld [vmem:[#allocation7 + $0x420] sm:$0xff]  ;;  %52 = vst.msk [vmem:[#allocation6] sm:$0xff] %vm14180_vm12, %v10370_v4  ;;  %vm14188_vm12 = vmmov %vm14186_vm2 }
 0x2b2   :  { %v1058_v8 = vsel %vm14173_vm1, %v1049_v47, %v1051_v42  ;;  %1072 = vst.msk [vmem:[#allocation7 + $0x490] sm:$0xff] %vm104_vm7, %v1051_v42  ;;  %9322 = vmatpush1.bf16.msra.mxu0 %v9321_v20  ;;  %2222 = vrot.lane.b32.xlu1 %v2092_v9, %s10366_s21  ;;  %v9325_v43 = vpack.c.bf16 %v1105_v25, %v1057_v56  ;;  %vm14178_vm1 = vmmov %vm14177_vm0  ;;  %v14183_v56 = vld [vmem:[#allocation14_spill] sm:$0xff]  ;;  %v14184_v25 = vld [vmem:[#allocation15_spill] sm:$0xff] }
 0x2b3   :  { %2169 = vrot.lane.b32.xlu0 %v2146_v0, %s10365_s28  ;;  %47 = vst.msk [vmem:[#allocation5] sm:$0xff] %vm14178_vm1, %v10370_v4  ;;  %vm3536_vm1 = vcmask 1031168   ;;  %s10390_s28 = smov 101  }
 0x2b4   :  { %v1146_v59 = vpop.permute.xlu1 %1145 }
 0x2b5   :  { %v1100_v30 = vpop.permute.xlu0 %1099  ;;  %v2603_v29 = vld [vmem:[#allocation7 + $0x458] sm:$0xff]  ;;  %v1153_v15 = vsel %vm761_vm4, %v14174_v27, %v1146_v59 }
 0x2b6   :  { %v1106_v23 = vsel %vm761_vm4, %v1098_v49, %v1100_v30  ;;  %1120 = vst.msk [vmem:[#allocation7 + $0x4c8] sm:$0xff] %vm104_vm7, %v1100_v30  ;;  %v9383_v37 = vpack.c.bf16 %v2603_v29, %v2596_v1  ;;  %2329 = vrot.lane.b32.xlu1 %v2092_v9, %s10367_s27  ;;  %v2512_v30 = vld [vmem:[#allocation7 + $0x180] sm:$0xff] }
 0x2b7   :  { %2276 = vrot.lane.b32.xlu0 %v2146_v0, %s10366_s21  ;;  %v9323_v60 = vpack.c.bf16 %v1106_v23, %v1058_v8  ;;  %s10407_s21 = smov 87  }
 0x2b8   :  { %9384 = vmatprep.subr.bf16.mxu1 %v9383_v37  ;;  %v1194_v31 = vpop.permute.xlu1 %1193  ;;  %v14185_v37 = vld [vmem:[#allocation16_spill] sm:$0xff] }
 0x2b9   :  { %9386 = vmatpush3.bf16.msra.mxu1 %v9385_v22  ;;  %v1148_v33 = vpop.permute.xlu0 %1147  ;;  %9324 = vmatprep.subr.bf16.mxu0 %v9323_v60  ;;  %v1201_v48 = vsel %vm858_vm5, %v14175_v12, %v1194_v31  ;;  %v2610_v63 = vld [vmem:[#allocation7 + $0x490] sm:$0xff]  ;;  %v2533_v60 = vld [vmem:[#allocation7 + $0x228] sm:$0xff] }
 0x2ba   :  { %v1154_v14 = vsel %vm761_vm4, %v1146_v59, %v1148_v33  ;;  %1168 = vst.msk [vmem:[#allocation7 + $0x500] sm:$0xff] %vm104_vm7, %v1148_v33  ;;  %9326 = vmatpush1.bf16.msra.mxu0 %v9325_v43  ;;  %vm14181_vm4 = vmmov %vm14177_vm0  ;;  %2436 = vrot.lane.b32.xlu1 %v2092_v9, %s10368_s14  ;;  %v12149_v9 = vld [vmem:[%s14137_s7 + $0x18] sm:$0xff]  ;;  %v9329_v47 = vpack.c.bf16 %v1201_v48, %v1153_v15  ;;  %s10391_s14 = smov 119  }
 0x2bb   :  { %53 = vst.msk [vmem:[#allocation6 + $0x8] sm:$0xff] %vm14181_vm4, %v10370_v4  ;;  %2383 = vrot.lane.b32.xlu0 %v2146_v0, %s10367_s27  ;;  %v2519_v0 = vld [vmem:[#allocation7 + $0x1b8] sm:$0xff]  ;;  %v14187_v48 = vld [vmem:[#allocation17_spill] sm:$0xff]  ;;  %vm3571_vm4 = vcmask 891904   ;;  %s10408_s27 = smov 114  }
 0x2bc   :  { %v1242_v57 = vpop.permute.xlu1 %1241  ;;  %v9393_v1 = vpack.c.bf16 %v2519_v0, %v2512_v30 }
 0x2bd   :  { %v1196_v13 = vpop.permute.xlu0 %1195  ;;  %v2617_v6 = vld [vmem:[#allocation7 + $0x4c8] sm:$0xff]  ;;  %v1249_v21 = vsel %vm858_vm5, %v14182_v41, %v1242_v57 }
 0x2be   :  { %v1202_v11 = vsel %vm858_vm5, %v1194_v31, %v1196_v13  ;;  %1216 = vst.msk [vmem:[#allocation7 + $0x538] sm:$0xff] %vm104_vm7, %v1196_v13  ;;  %v9387_v28 = vpack.c.bf16 %v2617_v6, %v2610_v63  ;;  %v2526_v13 = vld [vmem:[#allocation7 + $0x1f0] sm:$0xff] }
 0x2bf   :  { %v9327_v7 = vpack.c.bf16 %v1202_v11, %v1154_v14  ;;  %2809 = vperm.xlu0 %10075, %v12149_v9   ;;  %v9397_v63 = vpack.c.bf16 %v2533_v60, %v2526_v13  ;;  %v10351_v13 = vld [vmem:[%s14137_s7] sm:$0xff] }
 0x2c0   :  { %9388 = vmatprep.subr.bf16.mxu1 %v9387_v28  ;;  %v1290_v55 = vpop.permute.xlu1 %1289  ;;  %v14189_v28 = vld [vmem:[#allocation18_spill] sm:$0xff] }
 0x2c1   :  { %9390 = vmatpush3.bf16.msra.mxu1 %v9389_v38  ;;  %v1244_v26 = vpop.permute.xlu0 %1243  ;;  %9328 = vmatprep.subr.bf16.mxu0 %v9327_v7  ;;  %v1297_v32 = vsel %vm955_vm6, %v14183_v56, %v1290_v55  ;;  %v2624_v42 = vld [vmem:[#allocation7 + $0x500] sm:$0xff]  ;;  %v2547_v7 = vld [vmem:[#allocation7 + $0x298] sm:$0xff] }
 0x2c2   :  { %v1250_v36 = vsel %vm858_vm5, %v1242_v57, %v1244_v26  ;;  %1264 = vst.msk [vmem:[#allocation7 + $0x570] sm:$0xff] %vm104_vm7, %v1244_v26  ;;  %9330 = vmatpush1.bf16.msra.mxu0 %v9329_v47  ;;  %v9333_v27 = vpack.c.bf16 %v1297_v32, %v1249_v21 }
 0x2c4   :  { %v1338_v20 = vpop.permute.xlu1 %1337 }
 0x2c5   :  { %v1292_v49 = vpop.permute.xlu0 %1291  ;;  %v2631_v17 = vld [vmem:[#allocation7 + $0x538] sm:$0xff]  ;;  %v1345_v8 = vsel %vm955_vm6, %v14184_v25, %v1338_v20 }
 0x2c6   :  { %v1298_v18 = vsel %vm955_vm6, %v1290_v55, %v1292_v49  ;;  %1312 = vst.msk [vmem:[#allocation7 + $0x5a8] sm:$0xff] %vm104_vm7, %v1292_v49  ;;  %v9391_v59 = vpack.c.bf16 %v2631_v17, %v2624_v42 }
 0x2c7   :  { %v9331_v29 = vpack.c.bf16 %v1298_v18, %v1250_v36 }
 0x2c8   :  { %9392 = vmatprep.subr.bf16.mxu1 %v9391_v59  ;;  %v1386_v15 = vpop.permute.xlu1 %1385 }
 0x2c9   :  { %9394 = vmatpush3.bf16.msra.mxu1 %v9393_v1  ;;  %v1340_v23 = vpop.permute.xlu0 %1339  ;;  %9332 = vmatprep.subr.bf16.mxu0 %v9331_v29  ;;  %v1393_v50 = vsel %vm14186_vm2, %v14185_v37, %v1386_v15  ;;  %v2638_v33 = vld [vmem:[#allocation7 + $0x570] sm:$0xff]  ;;  %vm3606_vm2 = vcmask 883712  }
 0x2ca   :  { %v1346_v22 = vsel %vm955_vm6, %v1338_v20, %v1340_v23  ;;  %1360 = vst.msk [vmem:[#allocation7 + $0x5e0] sm:$0xff] %vm104_vm7, %v1340_v23  ;;  %9334 = vmatpush1.bf16.msra.mxu0 %v9333_v27  ;;  %v9337_v41 = vpack.c.bf16 %v1393_v50, %v1345_v8  ;;  %v2540_v20 = vld [vmem:[#allocation7 + $0x260] sm:$0xff]  ;;  %v2554_v50 = vld [vmem:[#allocation7 + $0x2d0] sm:$0xff]  ;;  %vm14190_vm6 = vmmov %vm14177_vm0  ;;  %vm3501_vm0 = vcmask 1039360  }
 0x2cb   :  { %v9401_v49 = vpack.c.bf16 %v2547_v7, %v2540_v20 }
 0x2cc   :  { %v1434_v43 = vpop.permute.xlu1 %1433 }
 0x2cd   :  { %v1388_v31 = vpop.permute.xlu0 %1387  ;;  %v2645_v12 = vld [vmem:[#allocation7 + $0x5a8] sm:$0xff]  ;;  %v1442_v14 = vsel %vm1437_vm8, %v14187_v48, %v1434_v43 }
 0x2ce   :  { %v1394_v53 = vsel %vm14188_vm12, %v1386_v15, %v1388_v31  ;;  %1408 = vst.msk [vmem:[#allocation7 + $0x618] sm:$0xff] %vm104_vm7, %v1388_v31  ;;  %v9395_v57 = vpack.c.bf16 %v2645_v12, %v2638_v33  ;;  %vm3641_vm12 = vcmask 875520  }
 0x2cf   :  { %v9335_v6 = vpack.c.bf16 %v1394_v53, %v1346_v22 }
 0x2d0   :  { %9396 = vmatprep.subr.bf16.mxu1 %v9395_v57  ;;  %v1483_v21 = vpop.permute.xlu1 %1482 }
 0x2d1   :  { %9398 = vmatpush3.bf16.msra.mxu1 %v9397_v63  ;;  %v1436_v11 = vpop.permute.xlu0 %1435  ;;  %9336 = vmatprep.subr.bf16.mxu0 %v9335_v6  ;;  %v1490_v16 = vsel %vm1437_vm8, %v14189_v28, %v1483_v21  ;;  %v2652_v26 = vld [vmem:[#allocation7 + $0x5e0] sm:$0xff] }
 0x2d2   :  { %v1443_v38 = vsel %vm1437_vm8, %v1434_v43, %v1436_v11  ;;  %1457 = vst.msk [vmem:[#allocation7 + $0x650] sm:$0xff] %vm104_vm7, %v1436_v11  ;;  %9338 = vmatpush1.bf16.msra.mxu0 %v9337_v41  ;;  %v9341_v17 = vpack.c.bf16 %v1490_v16, %v1442_v14  ;;  %v2568_v41 = vld [vmem:[#allocation7 + $0x340] sm:$0xff] }
 0x2d4   :  { %v1531_v47 = vpop.permute.xlu1 %1530 }
 0x2d5   :  { %v1485_v55 = vpop.permute.xlu0 %1484  ;;  %v2659_v56 = vld [vmem:[#allocation7 + $0x618] sm:$0xff]  ;;  %v1539_v32 = vsel %vm1534_vm9, %v11701_v51, %v1531_v47  ;;  %v2561_v51 = vld [vmem:[#allocation7 + $0x308] sm:$0xff] }
 0x2d6   :  { %v1491_v36 = vsel %vm1437_vm8, %v1483_v21, %v1485_v55  ;;  %1505 = vst.msk [vmem:[#allocation7 + $0x688] sm:$0xff] %vm104_vm7, %v1485_v55  ;;  %v9399_v0 = vpack.c.bf16 %v2659_v56, %v2652_v26 }
 0x2d7   :  { %v9339_v42 = vpack.c.bf16 %v1491_v36, %v1443_v38 }
 0x2d8   :  { %9400 = vmatprep.subr.bf16.mxu1 %v9399_v0  ;;  %v1580_v25 = vpop.permute.xlu1 %1579 }
 0x2d9   :  { %9402 = vmatpush3.bf16.msra.mxu1 %v9401_v49  ;;  %v1533_v8 = vpop.permute.xlu0 %1532  ;;  %9340 = vmatprep.subr.bf16.mxu0 %v9339_v42  ;;  %v1587_v18 = vsel %vm1534_vm9, %v11711_v24, %v1580_v25  ;;  %v2666_v29 = vld [vmem:[#allocation7 + $0x650] sm:$0xff]  ;;  %v9405_v24 = vpack.c.bf16 %v2561_v51, %v2554_v50 }
 0x2da   :  { %v1540_v59 = vsel %vm1534_vm9, %v1531_v47, %v1533_v8  ;;  %1554 = vst.msk [vmem:[#allocation7 + $0x6c0] sm:$0xff] %vm104_vm7, %v1533_v8  ;;  %9342 = vmatpush1.bf16.msra.mxu0 %v9341_v17  ;;  %v9345_v60 = vpack.c.bf16 %v1587_v18, %v1539_v32  ;;  %v10371_v47 = vmov 0.0|0.0  }
 0x2dc   :  { %v1628_v30 = vpop.permute.xlu1 %1627 }
 0x2dd   :  { %v1582_v1 = vpop.permute.xlu0 %1581  ;;  %v2673_v27 = vld [vmem:[#allocation7 + $0x688] sm:$0xff]  ;;  %v1636_v15 = vsel %vm1631_vm10, %v11740_v44, %v1628_v30  ;;  %v2575_v44 = vld [vmem:[#allocation7 + $0x378] sm:$0xff] }
 0x2de   :  { %v1588_v23 = vsel %vm1534_vm9, %v1580_v25, %v1582_v1  ;;  %1602 = vst.msk [vmem:[#allocation7 + $0x6f8] sm:$0xff] %vm104_vm7, %v1582_v1  ;;  %v9403_v37 = vpack.c.bf16 %v2673_v27, %v2666_v29  ;;  %v9409_v21 = vpack.c.bf16 %v2575_v44, %v2568_v41 }
 0x2df   :  { %v9343_v22 = vpack.c.bf16 %v1588_v23, %v1540_v59 }
 0x2e0   :  { %9404 = vmatprep.subr.bf16.mxu1 %v9403_v37  ;;  %v1677_v43 = vpop.permute.xlu1 %1676 }
 0x2e1   :  { %9406 = vmatpush3.bf16.msra.mxu1 %v9405_v24  ;;  %v1630_v31 = vpop.permute.xlu0 %1629  ;;  %9344 = vmatprep.subr.bf16.mxu0 %v9343_v22  ;;  %v1684_v33 = vsel %vm1631_vm10, %v11750_v62, %v1677_v43  ;;  %v2680_v53 = vld [vmem:[#allocation7 + $0x6c0] sm:$0xff] }
 0x2e2   :  { %v1637_v12 = vsel %vm1631_vm10, %v1628_v30, %v1630_v31  ;;  %1651 = vst.msk [vmem:[#allocation7 + $0x730] sm:$0xff] %vm104_vm7, %v1630_v31  ;;  %9346 = vmatpush1.bf16.msra.mxu0 %v9345_v60  ;;  %v9349_v28 = vpack.c.bf16 %v1684_v33, %v1636_v15 }
 0x2e4   :  { %v1725_v48 = vpop.permute.xlu1 %1724 }
 0x2e5   :  { %v1679_v14 = vpop.permute.xlu0 %1678  ;;  %v2687_v57 = vld [vmem:[#allocation7 + $0x6f8] sm:$0xff]  ;;  %3163 = vmatmul.mubr.f32.vlgmr.msra.gmra.mrb[2].mxu0 %v10351_v13  ;;  %v1733_v63 = vsel %vm1728_vm11, %v11803_v35, %v1725_v48 }
 0x2e6   :  { %v1685_v62 = vsel %vm1631_vm10, %v1677_v43, %v1679_v14  ;;  %1699 = vst.msk [vmem:[#allocation7 + $0x768] sm:$0xff] %vm104_vm7, %v1679_v14  ;;  %v9407_v6 = vpack.c.bf16 %v2687_v57, %v2680_v53  ;;  %8640 = vmatprep.mubr.msk.f32.mxu0 %vm14190_vm6, %v12149_v9  ;;  %vm3680_vm6 = vcmask 736256  }
 0x2e7   :  { %v9347_v11 = vpack.c.bf16 %v1685_v62, %v1637_v12 }
 0x2e8   :  { %9408 = vmatprep.subr.bf16.mxu1 %v9407_v6  ;;  %v1774_v16 = vpop.permute.xlu1 %1773 }
 0x2e9   :  { %9410 = vmatpush3.bf16.msra.mxu1 %v9409_v21  ;;  %v1727_v38 = vpop.permute.xlu0 %1726  ;;  %9348 = vmatprep.subr.bf16.mxu0 %v9347_v11  ;;  %v1781_v35 = vsel %vm1437_vm8, %v11813_v39, %v1774_v16  ;;  %v2694_v56 = vld [vmem:[#allocation7 + $0x730] sm:$0xff] }
 0x2ea   :  { %v1734_v7 = vsel %vm1728_vm11, %v1725_v48, %v1727_v38  ;;  %1748 = vst.msk [vmem:[#allocation7 + $0x7a0] sm:$0xff] %vm104_vm7, %v1727_v38  ;;  %9411 = vmatprep.subr.bf16.mxu1 %v10371_v47  ;;  %9350 = vmatpush1.bf16.msra.mxu0 %v9349_v28  ;;  %v9353_v49 = vpack.c.bf16 %v1781_v35, %v1733_v63 }
 0x2ec   :  { %3305 = vmatmul.mubr.f32.vlgmr.msra.gmra.mrb[2].mxu1 %v10351_v13  ;;  %v1822_v55 = vpop.permute.xlu1 %1821 }
 0x2ed   :  { %v1776_v26 = vpop.permute.xlu0 %1775  ;;  %v2701_v32 = vld [vmem:[#allocation7 + $0x768] sm:$0xff]  ;;  %8641 = vmatprep.mubr.msk.f32.mxu1 %vm14191_vm3, %v12149_v9  ;;  %v1829_v36 = vsel %vm1437_vm8, %v11844_v2, %v1822_v55  ;;  %vm3718_vm3 = vcmask 728064  }
 0x2ee   :  { %v1782_v39 = vsel %vm1437_vm8, %v1774_v16, %v1776_v26  ;;  %1796 = vst.msk [vmem:[#allocation7 + $0x7d8] sm:$0xff] %vm104_vm7, %v1776_v26  ;;  %v9412_v0 = vpack.c.bf16 %v2701_v32, %v2694_v56 }
 0x2ef   :  { %v9351_v20 = vpack.c.bf16 %v1782_v39, %v1734_v7 }
 0x2f0   :  { %9413 = vmatpush1.bf16.msra.mxu1 %v9412_v0  ;;  %v1870_v42 = vpop.permute.xlu1 %1869 }
 0x2f1   :  { %v1824_v17 = vpop.permute.xlu0 %1823  ;;  %9414 = vmatprep.subr.bf16.mxu1 %v10371_v47  ;;  %9352 = vmatprep.subr.bf16.mxu0 %v9351_v20  ;;  %v1877_v25 = vsel %vm1534_vm9, %v11854_v46, %v1870_v42  ;;  %v2708_v18 = vld [vmem:[#allocation7 + $0x7a0] sm:$0xff] }
 0x2f2   :  { %v1830_v9 = vsel %vm1437_vm8, %v1822_v55, %v1824_v17  ;;  %1844 = vst.msk [vmem:[#allocation7 + $0x810] sm:$0xff] %vm104_vm7, %v1824_v17  ;;  %9354 = vmatpush1.bf16.msra.mxu0 %v9353_v49  ;;  %v9357_v46 = vpack.c.bf16 %v1877_v25, %v1829_v36  ;;  %vm14192_vm8 = vcmask 326656  }
 0x2f4   :  { %v1918_v2 = vpop.permute.xlu1 %1917 }
 0x2f5   :  { %v1872_v8 = vpop.permute.xlu0 %1871  ;;  %v2715_v59 = vld [vmem:[#allocation7 + $0x7d8] sm:$0xff]  ;;  %v1925_v51 = vsel %vm1534_vm9, %v11880_v34, %v1918_v2 }
 0x2f6   :  { %v1878_v30 = vsel %vm1534_vm9, %v1870_v42, %v1872_v8  ;;  %1892 = vst.msk [vmem:[#allocation7 + $0x848] sm:$0xff] %vm104_vm7, %v1872_v8  ;;  %v9415_v1 = vpack.c.bf16 %v2715_v59, %v2708_v18 }
 0x2f7   :  { %v9355_v29 = vpack.c.bf16 %v1878_v30, %v1830_v9 }
 0x2f8   :  { %9416 = vmatpush1.bf16.msra.mxu1 %v9415_v1  ;;  %v1966_v27 = vpop.permute.xlu1 %1965 }
 0x2f9   :  { %v1920_v15 = vpop.permute.xlu0 %1919  ;;  %9417 = vmatprep.subr.bf16.mxu1 %v10371_v47  ;;  %9356 = vmatprep.subr.bf16.mxu0 %v9355_v29  ;;  %v1973_v23 = vsel %vm1631_vm10, %v11895_v19, %v1966_v27  ;;  %v2722_v24 = vld [vmem:[#allocation7 + $0x810] sm:$0xff] }
 0x2fa   :  { %v1926_v37 = vsel %vm1534_vm9, %v1918_v2, %v1920_v15  ;;  %1940 = vst.msk [vmem:[#allocation7 + $0x880] sm:$0xff] %vm104_vm7, %v1920_v15  ;;  %9358 = vmatpush1.bf16.msra.mxu0 %v9357_v46  ;;  %v9361_v19 = vpack.c.bf16 %v1973_v23, %v1925_v51  ;;  %vm14193_vm9 = vmmov %vm14192_vm8 }
 0x2fc   :  { %v2014_v34 = vpop.permute.xlu1 %2013 }
 0x2fd   :  { %v1968_v50 = vpop.permute.xlu0 %1967  ;;  %v2729_v22 = vld [vmem:[#allocation7 + $0x848] sm:$0xff]  ;;  %v2021_v60 = vsel %vm1631_vm10, %v11931_v45, %v2014_v34 }
 0x2fe   :  { %v1974_v43 = vsel %vm1631_vm10, %v1966_v27, %v1968_v50  ;;  %1988 = vst.msk [vmem:[#allocation7 + $0x8b8] sm:$0xff] %vm104_vm7, %v1968_v50  ;;  %v9418_v31 = vpack.c.bf16 %v2729_v22, %v2722_v24  ;;  %v10352_v22 = vld [vmem:[%s14137_s7 + $0x10] sm:$0xff] }
 0x2ff   :  { %v9359_v33 = vpack.c.bf16 %v1974_v43, %v1926_v37  ;;  %v12226_v12 = vpop.f32.mrb[0].mxu0 }
 0x300   :  { %9419 = vmatpush1.bf16.msra.mxu1 %v9418_v31  ;;  %v2062_v44 = vpop.permute.xlu1 %2061  ;;  %v12233_v53 = vpop.f32.mrb[1].mxu0 }
 0x301   :  { %v2016_v48 = vpop.permute.xlu0 %2015  ;;  %9420 = vmatprep.subr.bf16.mxu1 %v10371_v47  ;;  %9360 = vmatprep.subr.bf16.mxu0 %v9359_v33  ;;  %v2069_v14 = vsel %vm1728_vm11, %v11941_v40, %v2062_v44  ;;  %v2736_v63 = vld [vmem:[#allocation7 + $0x880] sm:$0xff] }
 0x302   :  { %v2022_v45 = vsel %vm1631_vm10, %v2014_v34, %v2016_v48  ;;  %2036 = vst.msk [vmem:[#allocation7 + $0x8f0] sm:$0xff] %vm104_vm7, %v2016_v48  ;;  %9362 = vmatpush1.bf16.msra.mxu0 %v9361_v19  ;;  %v9365_v11 = vpack.c.bf16 %v2069_v14, %v2021_v60  ;;  %vm14194_vm10 = vmmov %vm14192_vm8 }
 0x304   :  { %v2112_v57 = vpop.permute.xlu1 %2111 }
 0x305   :  { %v2064_v13 = vpop.permute.xlu0 %2063  ;;  %v2743_v62 = vld [vmem:[#allocation7 + $0x8b8] sm:$0xff]  ;;  %v2122_v6 = vsel %vm2117_vm13, %v11972_v10, %v2112_v57 }
 0x306   :  { %v2070_v41 = vsel %vm1728_vm11, %v2062_v44, %v2064_v13  ;;  %2084 = vst.msk [vmem:[#allocation7 + $0x928] sm:$0xff] %vm104_vm7, %v2064_v13  ;;  %v9421_v21 = vpack.c.bf16 %v2743_v62, %v2736_v63  ;;  %vm32_vm11 = vcmask 392192  }
 0x307   :  { %v9363_v40 = vpack.c.bf16 %v2070_v41, %v2022_v45  ;;  %v3389_v41 = vlaneseq  ;;  %33 = vst.msk [vmem:[#allocation2] sm:$0xff] %vm32_vm11, %v10370_v4 }
 0x308   :  { %9422 = vmatpush1.bf16.msra.mxu1 %v9421_v21  ;;  %v2166_v28 = vpop.permute.xlu1 %2165 }
 0x309   :  { %v2114_v16 = vpop.permute.xlu0 %2113  ;;  %9423 = vmatprep.subr.bf16.mxu1 %v10371_v47  ;;  %9364 = vmatprep.subr.bf16.mxu0 %v9363_v40  ;;  %v2175_v38 = vsel %vm2117_vm13, %v11988_v3, %v2166_v28  ;;  %v2750_v55 = vld [vmem:[#allocation7 + $0x8f0] sm:$0xff] }
 0x30a   :  { %v2123_v35 = vsel %vm2117_vm13, %v2112_v57, %v2114_v16  ;;  %9366 = vmatpush1.bf16.msra.mxu0 %v9365_v11  ;;  %v9369_v0 = vpack.c.bf16 %v2175_v38, %v2122_v6 }
 0x30c   :  { %v2219_v10 = vpop.permute.xlu1 %2218 }
 0x30d   :  { %v2168_v7 = vpop.permute.xlu0 %2167  ;;  %v2757_v26 = vld [vmem:[#allocation7 + $0x928] sm:$0xff]  ;;  %v2229_v56 = vsel %vm2224_vm14, %v12012_v52, %v2219_v10 }
 0x30e   :  { %v2176_v32 = vsel %vm2117_vm13, %v2166_v28, %v2168_v7  ;;  %v9424_v36 = vpack.c.bf16 %v2757_v26, %v2750_v55  ;;  %v12280_v28 = vshrl.u32 %v3389_v41, 7 }
 0x30f   :  { %v9367_v39 = vpack.c.bf16 %v2176_v32, %v2123_v35  ;;  %v12287_v35 = vld [vmem:[%s14138_s1] sm:$0x7f]  ;;  %s10372_s1 = smov 48  }
 0x310   :  { %9425 = vmatpush1.bf16.msra.mxu1 %v9424_v36  ;;  %v2273_v20 = vpop.permute.xlu1 %2272 }
 0x311   :  { %v2221_v49 = vpop.permute.xlu0 %2220  ;;  %9368 = vmatprep.subr.bf16.mxu0 %v9367_v39  ;;  %9426 = vmatprep.subr.bf16.mxu1 %v10371_v47  ;;  %v2282_v3 = vsel %vm2224_vm14, %v12021_v58, %v2273_v20 }
 0x312   :  { %v2230_v42 = vsel %vm2224_vm14, %v2219_v10, %v2221_v49  ;;  %9370 = vmatpush1.bf16.msra.mxu0 %v9369_v0  ;;  %v9373_v8 = vpack.c.bf16 %v2282_v3, %v2229_v56  ;;  %v3395_v10 = vsub.s32 1, %v12280_v28 }
 0x314   :  { %v2326_v17 = vpop.permute.xlu1 %2325  ;;  %v3396_v36 = vrot.slane %v12287_v35, %v3395_v10 }
 0x315   :  { %v2275_v25 = vpop.permute.xlu0 %2274  ;;  %v2336_v52 = vsel %vm2331_vm15, %v12043_v61, %v2326_v17 }
 0x316   :  { %v2283_v9 = vsel %vm2224_vm14, %v2273_v20, %v2275_v25 }
 0x317   :  { %v9371_v2 = vpack.c.bf16 %v2283_v9, %v2230_v42 }
 0x318   :  { %v2380_v18 = vpop.permute.xlu1 %2379 }
 0x319   :  { %v2328_v59 = vpop.permute.xlu0 %2327  ;;  %9372 = vmatprep.subr.bf16.mxu0 %v9371_v2  ;;  %v2389_v51 = vsel %vm2331_vm15, %v12053_v5, %v2380_v18 }
 0x31a   :  { %v2337_v58 = vsel %vm2331_vm15, %v2326_v17, %v2328_v59  ;;  %9374 = vmatpush1.bf16.msra.mxu0 %v9373_v8  ;;  %v9377_v27 = vpack.c.bf16 %v2389_v51, %v2336_v52 }
 0x31c   :  { %v2433_v30 = vpop.permute.xlu1 %2432 }
 0x31d   :  { %v2382_v1 = vpop.permute.xlu0 %2381  ;;  %v2443_v29 = vsel %vm14192_vm8, %v12079_v54, %v2433_v30  ;;  %vm3756_vm8 = vcmask 719872  }
 0x31e   :  { %v2390_v61 = vsel %vm2331_vm15, %v2380_v18, %v2382_v1 }
 0x31f   :  { %v9375_v46 = vpack.c.bf16 %v2390_v61, %v2337_v58 }
 0x320   :  { %v2116_v15 = vpop.permute.xlu1 %2115 }
 0x321   :  { %v2435_v23 = vpop.permute.xlu0 %2434  ;;  %9376 = vmatprep.subr.bf16.mxu0 %v9375_v46  ;;  %v2124_v37 = vsel %vm2117_vm13, %v2114_v16, %v2116_v15  ;;  %v3391_v16 = vsub.s32 0, %v12280_v28  ;;  %v3407_v15 = vsub.s32 4, %v12280_v28 }
 0x322   :  { %v2444_v34 = vsel %vm14193_vm9, %v2433_v30, %v2435_v23  ;;  %9378 = vmatpush1.bf16.msra.mxu0 %v9377_v27  ;;  %2138 = vst.msk [vmem:[#allocation7 + $0x960] sm:$0xff] %vm104_vm7, %v2124_v37  ;;  %v3411_v37 = vsub.s32 5, %v12280_v28  ;;  %vm14195_vm9 = vcmask 801792  }
 0x323   :  { %3201 = vmatprep.subr.mxu0 %v2444_v34  ;;  %v3392_v56 = vrot.slane %v12287_v35, %v3391_v16 }
 0x324   :  { %v2223_v5 = vpop.permute.xlu1 %2222 }
 0x325   :  { %v2170_v50 = vpop.permute.xlu0 %2169  ;;  %v2231_v24 = vsel %vm2224_vm14, %v2221_v49, %v2223_v5 }
 0x326   :  { %v2177_v54 = vsel %vm2117_vm13, %v2168_v7, %v2170_v50  ;;  %3202 = vmatpush1.msra.mxu0 %v2443_v29  ;;  %2245 = vst.msk [vmem:[#allocation7 + $0x9d0] sm:$0xff] %vm104_vm7, %v2231_v24  ;;  %vm3465_vm13 = vcmask 1047936   ;;  %v3408_v50 = vrot.slane %v12287_v35, %v3407_v15 }
 0x327   :  { %2191 = vst.msk [vmem:[#allocation7 + $0x998] sm:$0xff] %vm104_vm7, %v2177_v54  ;;  %3234 = vmatmul.mubr.f32.vlgmr.msra.gmra.mrb[2].mxu0 %v10352_v22 }
 0x328   :  { %4559 = vmatprep.mubr.f32.mxu0 %v10370_v4  ;;  %v2330_v60 = vpop.permute.xlu1 %2329 }
 0x329   :  { %v2277_v43 = vpop.permute.xlu0 %2276  ;;  %v2338_v31 = vsel %vm2331_vm15, %v2328_v59, %v2330_v60  ;;  %v2764_v45 = vld [vmem:[#allocation7 + $0x960] sm:$0xff] }
 0x32a   :  { %v2284_v33 = vsel %vm2224_vm14, %v2275_v25, %v2277_v43  ;;  %2352 = vst.msk [vmem:[#allocation7 + $0xa40] sm:$0xff] %vm104_vm7, %v2338_v31  ;;  %vm34_vm14 = vcmask 1048336  }
 0x32b   :  { %2298 = vst.msk [vmem:[#allocation7 + $0xa08] sm:$0xff] %vm104_vm7, %v2284_v33 }
 0x32c   :  { %v2437_v19 = vpop.permute.xlu1 %2436  ;;  %35 = vst.msk [vmem:[#allocation2 + $0x30] sm:$0xff] %vm34_vm14, %v10370_v4  ;;  %vm4338_vm14 = vcmask 850944  }
 0x32d   :  { %v2384_v44 = vpop.permute.xlu0 %2383  ;;  %v2445_v48 = vsel %vm14194_vm10, %v2435_v23, %v2437_v19  ;;  %v2778_v63 = vld [vmem:[#allocation7 + $0x9d0] sm:$0xff]  ;;  %vm38_vm10 = vcmask 130048  }
 0x32e   :  { %v2391_v14 = vsel %vm2331_vm15, %v2382_v1, %v2384_v44  ;;  %v2771_v57 = vld [vmem:[#allocation7 + $0x998] sm:$0xff]  ;;  %2459 = vst.msk [vmem:[#allocation7 + $0xab0] sm:$0xff] %vm104_vm7, %v2445_v48  ;;  %vm36_vm15 = vcmask 146432  }
 0x32f   :  { %2405 = vst.msk [vmem:[#allocation7 + $0xa78] sm:$0xff] %vm104_vm7, %v2391_v14  ;;  %v9427_v13 = vpack.c.bf16 %v2771_v57, %v2764_v45 }
 0x330   :  { %37 = vst.msk [vmem:[#allocation2 + $0x38] sm:$0xff] %vm36_vm15, %v10370_v4  ;;  %vm4348_vm15 = vcmask 998400  }
 0x331   :  { %9428 = vmatpush1.bf16.msra.mxu1 %v9427_v13  ;;  %v2792_v21 = vld [vmem:[#allocation7 + $0xa40] sm:$0xff]  ;;  %39 = vst.msk [vmem:[#allocation3] sm:$0xff] %vm38_vm10, %v10370_v4  ;;  %44 = vst.msk [vmem:[#allocation4] sm:$0xff] %vm38_vm10, %v10370_v4 }
 0x332   :  { %9429 = vmatprep.subr.bf16.mxu1 %v10371_v47  ;;  %v2785_v62 = vld [vmem:[#allocation7 + $0xa08] sm:$0xff] }
 0x333   :  { %v9430_v6 = vpack.c.bf16 %v2785_v62, %v2778_v63  ;;  %v3415_v63 = vsub.s32 6, %v12280_v28 }
 0x335   :  { %9431 = vmatpush1.bf16.msra.mxu1 %v9430_v6  ;;  %v2806_v38 = vld [vmem:[#allocation7 + $0xab0] sm:$0xff]  ;;  %v3416_v6 = vrot.slane %v12287_v35, %v3415_v63 }
 0x336   :  { %9432 = vmatprep.subr.bf16.mxu1 %v10371_v47  ;;  %v2799_v40 = vld [vmem:[#allocation7 + $0xa78] sm:$0xff]  ;;  %v3810_v63 = vld [vmem:[%s14139_s2 + $0x100] sm:$0xff] }
 0x337   :  { %v9433_v11 = vpack.c.bf16 %v2799_v40, %v2792_v21  ;;  %v3779_v21 = vld [vmem:[%s14139_s2 + $0x8] sm:$0xff]  ;;  %v3781_v40 = vld [vmem:[%s14139_s2 + $0x18] sm:$0xff] }
 0x339   :  { %9434 = vmatpush1.bf16.msra.mxu1 %v9433_v11  ;;  %v3778_v11 = vld [vmem:[%s14139_s2] sm:$0xff] }
 0x33a   :  { %3342 = vmatprep.subr.mxu1 %v10370_v4 }
 0x33d   :  { %3343 = vmatpush1.msra.mxu1 %v2806_v38  ;;  %v9435_v38 = vpack.c.bf16 %v3781_v40, %v3779_v21 }
 0x33e   :  { %3375 = vmatmul.mubr.f32.vlgmr.msra.gmra.mrb[4].mxu1 %v10352_v22  ;;  %v12290_v7 = vpop.permute.xlu0 %2809  ;;  %v3412_v22 = vrot.slane %v12287_v35, %v3411_v37  ;;  %v3798_v37 = vld [vmem:[%s14139_s2 + $0xa0] sm:$0xff] }
 0x33f   :  { %v9932_v55 = vadd.f32 %v12233_v53, %v12290_v7  ;;  %v9931_v26 = vadd.f32 %v12226_v12, %v12290_v7  ;;  %v3399_v12 = vsub.s32 2, %v12280_v28  ;;  %v3403_v53 = vsub.s32 3, %v12280_v28  ;;  %9436 = vmatprep.subr.bf16.mxu1 %v9435_v38  ;;  %v3815_v38 = vld [vmem:[%s14139_s2 + $0x128] sm:$0xff] }
 0x340   :  { %v10393_v28 = vmov 26  }
 0x341   :  { %v3381_v32 = vmax.f32 %v9932_v55, 0.0  ;;  %v3380_v39 = vmax.f32 %v9931_v26, 0.0  ;;  %v3400_v42 = vrot.slane %v12287_v35, %v3399_v12  ;;  %v3404_v52 = vrot.slane %v12287_v35, %v3403_v53  ;;  %v3780_v35 = vld [vmem:[%s14139_s2 + $0x10] sm:$0xff]  ;;  %v3785_v55 = vld [vmem:[%s14139_s2 + $0x38] sm:$0xff]  ;;  %v3786_v53 = vld [vmem:[%s14139_s2 + $0x40] sm:$0xff] }
 0x342   :  { %v9437_v26 = vpack.c.bf16 %v3780_v35, %v3778_v11  ;;  %v3817_v35 = vld [vmem:[%s14139_s2 + $0x138] sm:$0xff] }
 0x343   :  { %v3424_v0 = vmul.f32 %v3392_v56, %v3380_v39  ;;  %v3425_v20 = vmul.f32 %v3396_v36, %v3381_v32  ;;  %v3782_v32 = vld [vmem:[%s14139_s2 + $0x20] sm:$0xff]  ;;  %v3784_v36 = vld [vmem:[%s14139_s2 + $0x30] sm:$0xff]  ;;  %v3787_v39 = vld [vmem:[%s14139_s2 + $0x48] sm:$0xff] }
 0x344   :  { %9438 = vmatpush1.bf16.msra.mxu1 %v9437_v26  ;;  %v3816_v26 = vld [vmem:[%s14139_s2 + $0x130] sm:$0xff] }
 0x345   :  { %3438 = vrot.lane.b32.xlu1 %v3424_v0, %s10372_s1  ;;  %v3789_v0 = vld [vmem:[%s14139_s2 + $0x58] sm:$0xff] }
 0x346   :  { %v9443_v12 = vpack.c.bf16 %v3789_v0, %v3787_v39  ;;  %v3819_v0 = vld [vmem:[%s14139_s2 + $0x148] sm:$0xff] }
 0x349   :  { %3440 = vrot.lane.b32.xlu1 %v3425_v20, %s10372_s1  ;;  %v9441_v20 = vpack.c.bf16 %v3784_v36, %v3782_v32 }
 0x37c   :  { %v3093_v49 = vpop.f32.mrb[0].mxu1 }
 0x37d   :  { %v9933_v3 = vadd.f32 %v3093_v49, %v12290_v7  ;;  %v3095_v17 = vpop.f32.mrb[1].mxu1  ;;  %v3788_v49 = vld [vmem:[%s14139_s2 + $0x50] sm:$0xff] }
 0x37e   :  { %v9934_v25 = vadd.f32 %v3095_v17, %v12290_v7  ;;  %v9445_v17 = vpack.c.bf16 %v3788_v49, %v3786_v53  ;;  %v3818_v53 = vld [vmem:[%s14139_s2 + $0x140] sm:$0xff]  ;;  %v3820_v49 = vld [vmem:[%s14139_s2 + $0x150] sm:$0xff] }
 0x37f   :  { %v3382_v9 = vmax.f32 %v9933_v3, 0.0  ;;  %v3791_v3 = vld [vmem:[%s14139_s2 + $0x68] sm:$0xff] }
 0x380   :  { %v3383_v2 = vmax.f32 %v9934_v25, 0.0 }
 0x381   :  { %v3426_v8 = vmul.f32 %v3400_v42, %v3382_v9  ;;  %v3793_v42 = vld [vmem:[%s14139_s2 + $0x78] sm:$0xff]  ;;  %v3792_v9 = vld [vmem:[%s14139_s2 + $0x70] sm:$0xff] }
 0x382   :  { %v3427_v18 = vmul.f32 %v3404_v52, %v3383_v2  ;;  %v9447_v25 = vpack.c.bf16 %v3793_v42, %v3791_v3  ;;  %v3790_v52 = vld [vmem:[%s14139_s2 + $0x60] sm:$0xff]  ;;  %v3795_v2 = vld [vmem:[%s14139_s2 + $0x88] sm:$0xff]  ;;  %v9477_v3 = vpack.c.bf16 %v3820_v49, %v3818_v53 }
 0x383   :  { %3442 = vrot.lane.b32.xlu0 %v3426_v8, %s10372_s1  ;;  %v3797_v8 = vld [vmem:[%s14139_s2 + $0x98] sm:$0xff]  ;;  %v3823_v42 = vld [vmem:[%s14139_s2 + $0x168] sm:$0xff] }
 0x384   :  { %3444 = vrot.lane.b32.xlu1 %v3427_v18, %s10372_s1  ;;  %v9449_v18 = vpack.c.bf16 %v3792_v9, %v3790_v52 }
 0x3b7   :  { %v3439_v59 = vpop.permute.xlu1 %3438 }
 0x3b8   :  { %3466 = vst.msk [vmem:[#allocation2] sm:$0xff] %vm3465_vm13, %v3439_v59  ;;  %vm4321_vm13 = vcmask 982016  }
 0x3bb   :  { %v3441_v51 = vpop.permute.xlu1 %3440 }
 0x3bc   :  { %v12315_v58 = vsel %vm32_vm11, %v3439_v59, %v3441_v51  ;;  %v9451_v59 = vpack.c.bf16 %v3797_v8, %v3795_v2  ;;  %v3824_v2 = vld [vmem:[%s14139_s2 + $0x170] sm:$0xff] }
 0x3bf   :  { %v8745_v30 = vpop.f32.mrb[2].mxu1  ;;  %v12333_v19 = vld [vmem:[#allocation2] sm:$0xff] }
 0x3c0   :  { %v8746_v1 = vpop.f32.mrb[3].mxu1 }
 0x3c1   :  { %v8747_v29 = vadd.f32 %v8746_v1, %v8745_v30  ;;  %v3796_v30 = vld [vmem:[%s14139_s2 + $0x90] sm:$0xff]  ;;  %v3799_v1 = vld [vmem:[%s14139_s2 + $0xa8] sm:$0xff] }
 0x3c3   :  { %v3307_v14 = vadd.f32 %v8747_v29, %v12290_v7  ;;  %v3801_v29 = vld [vmem:[%s14139_s2 + $0xb8] sm:$0xff] }
 0x3c4   :  { %v9455_v15 = vpack.c.bf16 %v3801_v29, %v3799_v1 }
 0x3f5   :  { %v3443_v61 = vpop.permute.xlu0 %3442 }
 0x3f6   :  { %v12318_v46 = vsel %vm32_vm11, %v3441_v51, %v3443_v61  ;;  %v12320_v27 = vpop.permute.xlu1 %3444  ;;  %v3794_v51 = vld [vmem:[%s14139_s2 + $0x80] sm:$0xff] }
 0x3f7   :  { %v12325_v23 = vsel %vm32_vm11, %v3443_v61, %v12320_v27  ;;  %v10076_v44 = vpack.i.bf16 %v12318_v46, %v12315_v58  ;;  %v9453_v61 = vpack.c.bf16 %v3796_v30, %v3794_v51  ;;  %v3829_v51 = vld [vmem:[%s14139_s2 + $0x198] sm:$0xff]  ;;  %v3826_v30 = vld [vmem:[%s14139_s2 + $0x180] sm:$0xff] }
 0x3f8   :  { %v10081_v48 = vpack.i.bf16 %v12333_v19, %v12325_v23 }
 0x3fa   :  { %v3235_v34 = vpop.f32.mrb[2].mxu0 }
 0x3fb   :  { %v9935_v5 = vadd.f32 %v3235_v34, %v12290_v7  ;;  %v3237_v24 = vpop.f32.mrb[3].mxu0  ;;  %v3800_v34 = vld [vmem:[%s14139_s2 + $0xb0] sm:$0xff] }
 0x3fc   :  { %v9936_v54 = vadd.f32 %v3237_v24, %v12290_v7  ;;  %v3783_v7 = vld [vmem:[%s14139_s2 + $0x28] sm:$0xff]  ;;  %v9457_v24 = vpack.c.bf16 %v3800_v34, %v3798_v37  ;;  %v3833_v37 = vld [vmem:[%s14139_s2 + $0x1b8] sm:$0xff] }
 0x3fd   :  { %v3384_v60 = vmax.f32 %v9935_v5, 0.0  ;;  %v9439_v56 = vpack.c.bf16 %v3785_v55, %v3783_v7  ;;  %v3803_v5 = vld [vmem:[%s14139_s2 + $0xc8] sm:$0xff]  ;;  %v3814_v7 = vld [vmem:[%s14139_s2 + $0x120] sm:$0xff] }
 0x3fe   :  { %v3385_v43 = vmax.f32 %v9936_v54, 0.0  ;;  %v9473_v32 = vpack.c.bf16 %v3816_v26, %v3814_v7  ;;  %v3834_v7 = vld [vmem:[%s14139_s2 + $0x1c0] sm:$0xff] }
 0x3ff   :  { %v3428_v31 = vmul.f32 %v3408_v50, %v3384_v60  ;;  %9440 = vmatprep.subr.bf16.mxu1 %v9439_v56  ;;  %v3805_v50 = vld [vmem:[%s14139_s2 + $0xd8] sm:$0xff]  ;;  %v3804_v60 = vld [vmem:[%s14139_s2 + $0xd0] sm:$0xff] }
 0x400   :  { %v3429_v33 = vmul.f32 %v3412_v22, %v3385_v43  ;;  %9442 = vmatpush1.bf16.msra.mxu1 %v9441_v20  ;;  %v9459_v54 = vpack.c.bf16 %v3805_v50, %v3803_v5  ;;  %v3802_v22 = vld [vmem:[%s14139_s2 + $0xc0] sm:$0xff]  ;;  %v3807_v43 = vld [vmem:[%s14139_s2 + $0xe8] sm:$0xff]  ;;  %v3821_v20 = vld [vmem:[%s14139_s2 + $0x158] sm:$0xff] }
 0x401   :  { %3446 = vrot.lane.b32.xlu0 %v3428_v31, %s10372_s1  ;;  %9444 = vmatprep.subr.bf16.mxu1 %v9443_v12  ;;  %v3809_v31 = vld [vmem:[%s14139_s2 + $0xf8] sm:$0xff]  ;;  %v9475_v12 = vpack.c.bf16 %v3821_v20, %v3819_v0 }
 0x402   :  { %3448 = vrot.lane.b32.xlu1 %v3429_v33, %s10372_s1  ;;  %v9461_v33 = vpack.c.bf16 %v3804_v60, %v3802_v22  ;;  %v3830_v60 = vld [vmem:[%s14139_s2 + $0x1a0] sm:$0xff] }
 0x404   :  { %9446 = vmatpush1.bf16.msra.mxu1 %v9445_v17  ;;  %v3825_v17 = vld [vmem:[%s14139_s2 + $0x178] sm:$0xff] }
 0x405   :  { %10077 = vrot.lane.b32.xlu0 %v10076_v44, %s10373_s24  ;;  %9448 = vmatprep.subr.bf16.mxu1 %v9447_v25  ;;  %v3822_v25 = vld [vmem:[%s14139_s2 + $0x160] sm:$0xff]  ;;  %v9479_v9 = vpack.c.bf16 %v3825_v17, %v3823_v42 }
 0x406   :  { %10082 = vrot.lane.b32.xlu1 %v10081_v48, %s10373_s24 }
 0x408   :  { %9450 = vmatpush1.bf16.msra.mxu1 %v9449_v18  ;;  %v9481_v18 = vpack.c.bf16 %v3824_v2, %v3822_v25 }
 0x409   :  { %10087 = vrot.lane.b32.xlu0 %v10076_v44, %s10374_s16  ;;  %9452 = vmatprep.subr.bf16.mxu1 %v9451_v59  ;;  %v3827_v59 = vld [vmem:[%s14139_s2 + $0x188] sm:$0xff] }
 0x40a   :  { %10092 = vrot.lane.b32.xlu1 %v10081_v48, %s10374_s16  ;;  %v9483_v29 = vpack.c.bf16 %v3829_v51, %v3827_v59 }
 0x40c   :  { %9454 = vmatpush1.bf16.msra.mxu1 %v9453_v61  ;;  %v3828_v61 = vld [vmem:[%s14139_s2 + $0x190] sm:$0xff] }
 0x40d   :  { %10097 = vrot.lane.b32.xlu0 %v10076_v44, %s10375_s22  ;;  %9456 = vmatprep.subr.bf16.mxu1 %v9455_v15  ;;  %v3831_v15 = vld [vmem:[%s14139_s2 + $0x1a8] sm:$0xff] }
 0x40e   :  { %10102 = vrot.lane.b32.xlu1 %v10081_v48, %s10375_s22  ;;  %v9487_v22 = vpack.c.bf16 %v3833_v37, %v3831_v15 }
 0x410   :  { %9458 = vmatpush1.bf16.msra.mxu1 %v9457_v24 }
 0x411   :  { %v3376_v45 = vpop.f32.mrb[4].mxu1  ;;  %10107 = vrot.lane.b32.xlu0 %v10076_v44, %s10376_s19  ;;  %9460 = vmatprep.subr.bf16.mxu1 %v9459_v54  ;;  %v9485_v54 = vpack.c.bf16 %v3828_v61, %v3826_v30 }
 0x412   :  { %v3377_v57 = vadd.f32 %v3376_v45, %v3307_v14  ;;  %10112 = vrot.lane.b32.xlu1 %v10081_v48, %s10376_s19  ;;  %v3378_v13 = vpop.f32.mrb[5].mxu1  ;;  %v3808_v14 = vld [vmem:[%s14139_s2 + $0xf0] sm:$0xff] }
 0x413   :  { %v3813_v13 = vld [vmem:[%s14139_s2 + $0x118] sm:$0xff] }
 0x414   :  { %v3386_v62 = vmax.f32 %v3377_v57, 0.0  ;;  %9462 = vmatpush1.bf16.msra.mxu1 %v9461_v33  ;;  %v3811_v57 = vld [vmem:[%s14139_s2 + $0x108] sm:$0xff] }
 0x415   :  { %10117 = vrot.lane.b32.xlu0 %v10076_v44, %s10377_s20 }
 0x416   :  { %10122 = vrot.lane.b32.xlu1 %v10081_v48, %s10377_s20  ;;  %v3430_v41 = vmul.f32 %v3416_v6, %v3386_v62  ;;  %v9467_v62 = vpack.c.bf16 %v3813_v13, %v3811_v57  ;;  %v3812_v6 = vld [vmem:[%s14139_s2 + $0x110] sm:$0xff] }
 0x419   :  { %10127 = vrot.lane.b32.xlu0 %v10076_v44, %s10378_s17 }
 0x41a   :  { %10132 = vrot.lane.b32.xlu1 %v10081_v48, %s10378_s17 }
 0x41d   :  { %10137 = vrot.lane.b32.xlu0 %v10076_v44, %s10379_s29 }
 0x41e   :  { %10142 = vrot.lane.b32.xlu1 %v10081_v48, %s10379_s29 }
 0x421   :  { %10147 = vrot.lane.b32.xlu0 %v10076_v44, %s10380_s25  ;;  %v9463_v44 = vpack.c.bf16 %v3809_v31, %v3807_v43  ;;  %v3832_v43 = vld [vmem:[%s14139_s2 + $0x1b0] sm:$0xff] }
 0x422   :  { %10152 = vrot.lane.b32.xlu1 %v10081_v48, %s10380_s25  ;;  %v3806_v48 = vld [vmem:[%s14139_s2 + $0xe0] sm:$0xff] }
 0x423   :  { %v9465_v45 = vpack.c.bf16 %v3808_v14, %v3806_v48  ;;  %9464 = vmatprep.subr.bf16.mxu1 %v9463_v44  ;;  %v3835_v14 = vld [vmem:[%s14139_s2 + $0x1c8] sm:$0xff] }
 0x425   :  { %3450 = vrot.lane.b32.xlu0 %v3430_v41, %s10372_s1  ;;  %9466 = vmatpush1.bf16.msra.mxu1 %v9465_v45  ;;  %v9469_v41 = vpack.c.bf16 %v3812_v6, %v3810_v63  ;;  %v3837_v45 = vld [vmem:[%s14139_s2 + $0x1d8] sm:$0xff]  ;;  %v9489_v6 = vpack.c.bf16 %v3832_v43, %v3830_v60  ;;  %s10397_s1 = smov 28  }
 0x426   :  { %9468 = vmatprep.subr.bf16.mxu1 %v9467_v62 }
 0x429   :  { %9470 = vmatpush1.bf16.msra.mxu1 %v9469_v41 }
 0x473   :  { %v3447_v21 = vpop.permute.xlu0 %3446 }
 0x474   :  { %v12472_v40 = vsel %vm32_vm11, %v12320_v27, %v3447_v21  ;;  %v12474_v11 = vpop.permute.xlu1 %3448  ;;  %v9471_v27 = vpack.c.bf16 %v3817_v35, %v3815_v38  ;;  %v9491_v35 = vpack.c.bf16 %v3837_v45, %v3835_v14 }
 0x475   :  { %v12487_v55 = vsel %vm32_vm11, %v3447_v21, %v12474_v11 }
 0x476   :  { %v12494_v56 = vpack.i.bf16 %v12487_v55, %v12472_v40  ;;  %9472 = vmatprep.subr.bf16.mxu1 %v9471_v27  ;;  %v3836_v27 = vld [vmem:[%s14139_s2 + $0x1d0] sm:$0xff] }
 0x477   :  { %v12496_v36 = vpop.permute.xlu0 %10077  ;;  %9474 = vmatpush1.bf16.msra.mxu1 %v9473_v32  ;;  %v9493_v25 = vpack.c.bf16 %v3836_v27, %v3834_v7 }
 0x478   :  { %v12498_v39 = vpop.permute.xlu1 %10082  ;;  %10157 = vrot.lane.b32.xlu1 %v12494_v56, %s10373_s24  ;;  %10162 = vrot.lane.b32.xlu0 %v12494_v56, %s10374_s16  ;;  %v10080_v34 = vunpack.i.h.bf16 %v12496_v36  ;;  %v10079_v5 = vunpack.i.l.bf16 %v12496_v36 }
 0x479   :  { %9476 = vmatprep.subr.bf16.mxu1 %v9475_v12  ;;  %v10084_v24 = vunpack.i.l.bf16 %v12498_v39  ;;  %v10085_v31 = vunpack.i.h.bf16 %v12498_v39 }
 0x47a   :  { %v3503_v57 = vsel %vm3501_vm0, %v10079_v5, %v10080_v34 }
 0x47b   :  { %v12525_v52 = vpop.permute.xlu0 %10087  ;;  %9478 = vmatpush1.bf16.msra.mxu1 %v9477_v3  ;;  %v3504_v62 = vsel %vm3501_vm0, %v10080_v34, %v10084_v24  ;;  %v3516_v26 = vmax.f32 %v12315_v58, %v3503_v57  ;;  %v3502_v32 = vsel %vm3501_vm0, %v10085_v31, %v10079_v5 }
 0x47c   :  { %v12530_v8 = vpop.permute.xlu1 %10092  ;;  %10167 = vrot.lane.b32.xlu1 %v12494_v56, %s10375_s22  ;;  %10172 = vrot.lane.b32.xlu0 %v12494_v56, %s10376_s19  ;;  %v10090_v33 = vunpack.i.h.bf16 %v12525_v52  ;;  %v10089_v44 = vunpack.i.l.bf16 %v12525_v52  ;;  %v3517_v58 = vmax.f32 %v12318_v46, %v3504_v62  ;;  %v3515_v37 = vmax.f32 %v12333_v19, %v3502_v32  ;;  %v3841_v19 = vld [vmem:[%s14139_s2 + $0x1f8] sm:$0xff]  ;;  %v3838_v62 = vld [vmem:[%s14139_s2 + $0x1e0] sm:$0xff] }
 0x47d   :  { %9480 = vmatprep.subr.bf16.mxu1 %v9479_v9  ;;  %v10094_v13 = vunpack.i.l.bf16 %v12530_v8  ;;  %v10095_v42 = vunpack.i.h.bf16 %v12530_v8 }
 0x47e   :  { %v3538_v36 = vsel %vm3536_vm1, %v10089_v44, %v10090_v33 }
 0x47f   :  { %v12545_v1 = vpop.permute.xlu0 %10097  ;;  %9482 = vmatpush1.bf16.msra.mxu1 %v9481_v18  ;;  %v3539_v20 = vsel %vm3536_vm1, %v10090_v33, %v10094_v13  ;;  %v3839_v33 = vld [vmem:[%s14139_s2 + $0x1e8] sm:$0xff] }
 0x480   :  { %v12558_v50 = vpop.permute.xlu1 %10102  ;;  %10177 = vrot.lane.b32.xlu1 %v12494_v56, %s10377_s20  ;;  %10182 = vrot.lane.b32.xlu0 %v12494_v56, %s10378_s17  ;;  %v10100_v41 = vunpack.i.h.bf16 %v12545_v1  ;;  %v10099_v21 = vunpack.i.l.bf16 %v12545_v1  ;;  %v3552_v59 = vmax.f32 %v3517_v58, %v3539_v20  ;;  %v9495_v57 = vpack.c.bf16 %v3841_v19, %v3839_v33 }
 0x481   :  { %9484 = vmatprep.subr.bf16.mxu1 %v9483_v29  ;;  %v10104_v38 = vunpack.i.l.bf16 %v12558_v50  ;;  %v10105_v17 = vunpack.i.h.bf16 %v12558_v50 }
 0x482   :  { %v3573_v52 = vsel %vm3571_vm4, %v10099_v21, %v10100_v41 }
 0x483   :  { %v12574_v48 = vpop.permute.xlu0 %10107  ;;  %9486 = vmatpush1.bf16.msra.mxu1 %v9485_v54  ;;  %v3574_v9 = vsel %vm3571_vm4, %v10100_v41, %v10104_v38  ;;  %v3572_v60 = vsel %vm3571_vm4, %v10105_v17, %v10099_v21 }
 0x484   :  { %v12584_v63 = vpop.permute.xlu1 %10112  ;;  %10192 = vrot.lane.b32.xlu0 %v12494_v56, %s10379_s29  ;;  %9488 = vmatprep.subr.bf16.mxu1 %v9487_v22  ;;  %v10110_v12 = vunpack.i.h.bf16 %v12574_v48  ;;  %v10109_v53 = vunpack.i.l.bf16 %v12574_v48  ;;  %v3587_v5 = vmax.f32 %v3552_v59, %v3574_v9  ;;  %v3537_v22 = vsel %vm3536_vm1, %v10095_v42, %v10089_v44 }
 0x485   :  { %v10114_v49 = vunpack.i.l.bf16 %v12584_v63  ;;  %v10115_v43 = vunpack.i.h.bf16 %v12584_v63  ;;  %v3550_v20 = vmax.f32 %v3515_v37, %v3537_v22 }
 0x486   :  { %v3608_v30 = vsel %vm3606_vm2, %v10109_v53, %v10110_v12 }
 0x487   :  { %v12603_v0 = vpop.permute.xlu0 %10117  ;;  %9490 = vmatpush1.bf16.msra.mxu1 %v9489_v6  ;;  %v3609_v1 = vsel %vm3606_vm2, %v10110_v12, %v10114_v49  ;;  %v3840_v6 = vld [vmem:[%s14139_s2 + $0x1f0] sm:$0xff]  ;;  %v3607_v42 = vsel %vm3606_vm2, %v10115_v43, %v10109_v53 }
 0x488   :  { %v12611_v3 = vpop.permute.xlu1 %10122  ;;  %10197 = vrot.lane.b32.xlu0 %v12494_v56, %s10380_s25  ;;  %v10120_v2 = vunpack.i.h.bf16 %v12603_v0  ;;  %v10119_v18 = vunpack.i.l.bf16 %v12603_v0  ;;  %9492 = vmatprep.subr.bf16.mxu1 %v9491_v35  ;;  %v3551_v56 = vmax.f32 %v3516_v26, %v3538_v36  ;;  %v3622_v14 = vmax.f32 %v3587_v5, %v3609_v1 }
 0x489   :  { %v10124_v46 = vunpack.i.l.bf16 %v12611_v3  ;;  %v10125_v41 = vunpack.i.h.bf16 %v12611_v3  ;;  %v9497_v0 = vpack.c.bf16 %v3840_v6, %v3838_v62 }
 0x48a   :  { %v3586_v34 = vmax.f32 %v3551_v56, %v3573_v52  ;;  %v3643_v31 = vsel %vm3641_vm12, %v10119_v18, %v10120_v2 }
 0x48b   :  { %v10128_v51 = vpop.permute.xlu0 %10127  ;;  %9494 = vmatpush1.bf16.msra.mxu1 %v9493_v25  ;;  %v3644_v44 = vsel %vm3641_vm12, %v10120_v2, %v10124_v46  ;;  %v3585_v2 = vmax.f32 %v3550_v20, %v3572_v60  ;;  %v3642_v1 = vsel %vm3641_vm12, %v10125_v41, %v10119_v18 }
 0x48c   :  { %v10130_v29 = vunpack.i.h.bf16 %v10128_v51  ;;  %v10129_v61 = vunpack.i.l.bf16 %v10128_v51  ;;  %v12629_v15 = vpop.permute.xlu1 %10132  ;;  %v3621_v48 = vmax.f32 %v3586_v34, %v3608_v30  ;;  %9496 = vmatprep.subr.bf16.mxu1 %v9495_v57  ;;  %v3657_v12 = vmax.f32 %v3622_v14, %v3644_v44 }
 0x48d   :  { %v10134_v54 = vunpack.i.l.bf16 %v12629_v15  ;;  %v10135_v25 = vunpack.i.h.bf16 %v12629_v15  ;;  %v3620_v34 = vmax.f32 %v3585_v2, %v3607_v42 }
 0x48e   :  { %v3682_v21 = vsel %vm3680_vm6, %v10129_v61, %v10130_v29  ;;  %v3656_v26 = vmax.f32 %v3621_v48, %v3643_v31 }
 0x48f   :  { %v10138_v45 = vpop.permute.xlu0 %10137  ;;  %v3683_v32 = vsel %vm3680_vm6, %v10130_v29, %v10134_v54  ;;  %9498 = vmatpush1.bf16.msra.mxu1 %v9497_v0  ;;  %v3681_v43 = vsel %vm3680_vm6, %v10135_v25, %v10129_v61  ;;  %v3655_v18 = vmax.f32 %v3620_v34, %v3642_v1 }
 0x490   :  { %v10140_v35 = vunpack.i.h.bf16 %v10138_v45  ;;  %v10139_v7 = vunpack.i.l.bf16 %v10138_v45  ;;  %v12654_v27 = vpop.permute.xlu1 %10142  ;;  %v3696_v17 = vmax.f32 %v3656_v26, %v3682_v21  ;;  %v3697_v56 = vmax.f32 %v3657_v12, %v3683_v32  ;;  %v3843_v21 = vld [vmem:[%s14139_s2 + $0x208] sm:$0xff] }
 0x491   :  { %v10144_v36 = vunpack.i.l.bf16 %v12654_v27  ;;  %v10145_v53 = vunpack.i.h.bf16 %v12654_v27  ;;  %v3695_v45 = vmax.f32 %v3655_v18, %v3681_v43 }
 0x492   :  { %v3720_v58 = vsel %vm3718_vm3, %v10139_v7, %v10140_v35 }
 0x493   :  { %v3721_v52 = vsel %vm3718_vm3, %v10140_v35, %v10144_v36  ;;  %v10148_v9 = vpop.permute.xlu0 %10147  ;;  %v3734_v29 = vmax.f32 %v3696_v17, %v3720_v58  ;;  %v3719_v44 = vsel %vm3718_vm3, %v10145_v53, %v10139_v7  ;;  %v3845_v35 = vld [vmem:[%s14139_s2 + $0x218] sm:$0xff] }
 0x494   :  { %v10150_v59 = vunpack.i.h.bf16 %v10148_v9  ;;  %v10149_v51 = vunpack.i.l.bf16 %v10148_v9  ;;  %v12666_v30 = vpop.permute.xlu1 %10152  ;;  %v3735_v5 = vmax.f32 %v3697_v56, %v3721_v52  ;;  %v3733_v62 = vmax.f32 %v3695_v45, %v3719_v44 }
 0x495   :  { %v10154_v37 = vunpack.i.l.bf16 %v12666_v30  ;;  %v10155_v60 = vunpack.i.h.bf16 %v12666_v30  ;;  %v9499_v7 = vpack.c.bf16 %v3845_v35, %v3843_v21  ;;  %v3842_v30 = vld [vmem:[%s14139_s2 + $0x200] sm:$0xff] }
 0x496   :  { %v3758_v22 = vsel %vm3756_vm8, %v10149_v51, %v10150_v59 }
 0x497   :  { %v3772_v31 = vmax.f32 %v3734_v29, %v3758_v22  ;;  %v3759_v33 = vsel %vm3756_vm8, %v10150_v59, %v10154_v37  ;;  %v3451_v19 = vpop.permute.xlu0 %3450  ;;  %v3757_v61 = vsel %vm3756_vm8, %v10155_v60, %v10149_v51  ;;  %9500 = vmatprep.subr.bf16.mxu1 %v9499_v7 }
 0x498   :  { %v3773_v48 = vmax.f32 %v3735_v5, %v3759_v33  ;;  %v3457_v14 = vsel %vm32_vm11, %v12474_v11, %v3451_v19  ;;  %v3771_v6 = vmax.f32 %v3733_v62, %v3757_v61  ;;  %v12698_v11 = vld [vmem:[#allocation2 + $0x38] sm:$0xff]  ;;  %vm40_vm11 = vcmask 1048512  }
 0x499   :  { %3472 = vst.msk [vmem:[#allocation2 + $0x30] sm:$0xff] %vm14195_vm9, %v3457_v14  ;;  %vm4460_vm9 = vcmask 826368  }
 0x49a   :  { %v10186_v57 = vpack.i.bf16 %v3773_v48, %v3772_v31  ;;  %41 = vst.msk [vmem:[#allocation3 + $0x8] sm:$0xff] %vm40_vm11, %v10370_v4  ;;  %45 = vst.msk [vmem:[#allocation4 + $0x8] sm:$0xff] %vm40_vm11, %v10370_v4  ;;  %vm4754_vm11 = vcmask 375808  }
 0x49c   :  { %10187 = vrot.lane.b32.xlu1 %v10186_v57, %s10358_s18 }
 0x4a0   :  { %3991 = vrot.lane.b32.xlu1 %v3771_v6, %s10358_s18  ;;  %v12684_v41 = vld [vmem:[#allocation2 + $0x30] sm:$0xff] }
 0x4a1   :  { %3534 = vrot.lane.b32.xlu0 %v12684_v41, %s10374_s16 }
 0x4a4   :  { %3499 = vrot.lane.b32.xlu1 %v12684_v41, %s10373_s24 }
 0x4a5   :  { %3604 = vrot.lane.b32.xlu0 %v12684_v41, %s10376_s19 }
 0x4a8   :  { %3569 = vrot.lane.b32.xlu1 %v12684_v41, %s10375_s22 }
 0x4a9   :  { %3676 = vrot.lane.b32.xlu0 %v12684_v41, %s10378_s17 }
 0x4ac   :  { %3639 = vrot.lane.b32.xlu1 %v12684_v41, %s10377_s20  ;;  %s10381_s20 = smov 16  }
 0x4ad   :  { %3716 = vrot.lane.b32.xlu0 %v12698_v11, %s10379_s29 }
 0x4b0   :  { %3678 = vrot.lane.b32.xlu1 %v12698_v11, %s10378_s17  ;;  %s10383_s17 = smov 102  }
 0x4b4   :  { %3714 = vrot.lane.b32.xlu1 %v12684_v41, %s10379_s29  ;;  %s10384_s29 = smov 123  }
 0x4b8   :  { %3752 = vrot.lane.b32.xlu1 %v12684_v41, %s10380_s25 }
 0x4ea   :  { %v12714_v26 = vpop.permute.xlu1 %10157  ;;  %v12716_v32 = vpop.permute.xlu0 %10162 }
 0x4eb   :  { %v10160_v0 = vunpack.i.h.bf16 %v12714_v26  ;;  %v10159_v20 = vunpack.i.l.bf16 %v12714_v26  ;;  %v10165_v12 = vunpack.i.h.bf16 %v12716_v32  ;;  %v10164_v58 = vunpack.i.l.bf16 %v12716_v32 }
 0x4ed   :  { %v3505_v42 = vsel %vm3501_vm0, %v10084_v24, %v10159_v20  ;;  %v3506_v17 = vsel %vm3501_vm0, %v10159_v20, %v10160_v0  ;;  %v3540_v9 = vsel %vm3536_vm1, %v10094_v13, %v10164_v58  ;;  %v3541_v2 = vsel %vm3536_vm1, %v10164_v58, %v10165_v12 }
 0x4ee   :  { %v3518_v25 = vmax.f32 %v12325_v23, %v3505_v42  ;;  %v3519_v52 = vmax.f32 %v12472_v40, %v3506_v17  ;;  %v12736_v56 = vpop.permute.xlu1 %10167  ;;  %v12738_v39 = vpop.permute.xlu0 %10172 }
 0x4ef   :  { %v10170_v24 = vunpack.i.h.bf16 %v12736_v56  ;;  %v10169_v59 = vunpack.i.l.bf16 %v12736_v56  ;;  %v10175_v23 = vunpack.i.h.bf16 %v12738_v39  ;;  %v10174_v40 = vunpack.i.l.bf16 %v12738_v39  ;;  %v3858_v56 = vld [vmem:[%s14139_s2 + $0x280] sm:$0xff] }
 0x4f0   :  { %v3553_v51 = vmax.f32 %v3518_v25, %v3540_v9  ;;  %v3554_v8 = vmax.f32 %v3519_v52, %v3541_v2  ;;  %v3847_v9 = vld [vmem:[%s14139_s2 + $0x228] sm:$0xff] }
 0x4f1   :  { %v3575_v13 = vsel %vm3571_vm4, %v10104_v38, %v10169_v59  ;;  %v3576_v1 = vsel %vm3571_vm4, %v10169_v59, %v10170_v24  ;;  %v3610_v34 = vsel %vm3606_vm2, %v10114_v49, %v10174_v40  ;;  %v3611_v5 = vsel %vm3606_vm2, %v10174_v40, %v10175_v23 }
 0x4f2   :  { %v3588_v29 = vmax.f32 %v3553_v51, %v3575_v13  ;;  %v3589_v53 = vmax.f32 %v3554_v8, %v3576_v1  ;;  %v12756_v22 = vpop.permute.xlu1 %10177  ;;  %v12758_v43 = vpop.permute.xlu0 %10182  ;;  %v3846_v8 = vld [vmem:[%s14139_s2 + $0x220] sm:$0xff]  ;;  %v3848_v13 = vld [vmem:[%s14139_s2 + $0x230] sm:$0xff] }
 0x4f3   :  { %v10180_v50 = vunpack.i.h.bf16 %v12756_v22  ;;  %v10179_v38 = vunpack.i.l.bf16 %v12756_v22  ;;  %v10185_v31 = vunpack.i.h.bf16 %v12758_v43  ;;  %v10184_v60 = vunpack.i.l.bf16 %v12758_v43  ;;  %v3867_v22 = vld [vmem:[%s14139_s2 + $0x2c8] sm:$0xff] }
 0x4f4   :  { %v3623_v33 = vmax.f32 %v3588_v29, %v3610_v34  ;;  %v3624_v63 = vmax.f32 %v3589_v53, %v3611_v5  ;;  %v3851_v29 = vld [vmem:[%s14139_s2 + $0x248] sm:$0xff]  ;;  %v3853_v53 = vld [vmem:[%s14139_s2 + $0x258] sm:$0xff]  ;;  %v9505_v34 = vpack.c.bf16 %v3848_v13, %v3846_v8  ;;  %v3868_v8 = vld [vmem:[%s14139_s2 + $0x2d0] sm:$0xff] }
 0x4f5   :  { %v3645_v49 = vsel %vm3641_vm12, %v10124_v46, %v10179_v38  ;;  %v3646_v19 = vsel %vm3641_vm12, %v10179_v38, %v10180_v50  ;;  %v3684_v44 = vsel %vm3680_vm6, %v10134_v54, %v10184_v60  ;;  %v3685_v45 = vsel %vm3680_vm6, %v10184_v60, %v10185_v31 }
 0x4f6   :  { %v3658_v18 = vmax.f32 %v3623_v33, %v3645_v49  ;;  %v3659_v48 = vmax.f32 %v3624_v63, %v3646_v19  ;;  %v12770_v14 = vpop.permute.xlu0 %10192  ;;  %v9507_v60 = vpack.c.bf16 %v3853_v53, %v3851_v29  ;;  %v3850_v33 = vld [vmem:[%s14139_s2 + $0x240] sm:$0xff]  ;;  %v3852_v63 = vld [vmem:[%s14139_s2 + $0x250] sm:$0xff]  ;;  %v3855_v19 = vld [vmem:[%s14139_s2 + $0x268] sm:$0xff] }
 0x4f7   :  { %v10195_v3 = vunpack.i.h.bf16 %v12770_v14  ;;  %v10194_v46 = vunpack.i.l.bf16 %v12770_v14  ;;  %v3871_v29 = vld [vmem:[%s14139_s2 + $0x2e8] sm:$0xff]  ;;  %v3873_v53 = vld [vmem:[%s14139_s2 + $0x2f8] sm:$0xff]  ;;  %v3870_v14 = vld [vmem:[%s14139_s2 + $0x2e0] sm:$0xff] }
 0x4f8   :  { %v3698_v57 = vmax.f32 %v3658_v18, %v3684_v44  ;;  %v3699_v61 = vmax.f32 %v3659_v48, %v3685_v45  ;;  %v3857_v18 = vld [vmem:[%s14139_s2 + $0x278] sm:$0xff]  ;;  %v9509_v45 = vpack.c.bf16 %v3852_v63, %v3850_v33 }
 0x4f9   :  { %v3722_v62 = vsel %vm3718_vm3, %v10144_v36, %v10194_v46  ;;  %v3723_v15 = vsel %vm3718_vm3, %v10194_v46, %v10195_v3  ;;  %v9511_v46 = vpack.c.bf16 %v3857_v18, %v3855_v19  ;;  %v3877_v19 = vld [vmem:[%s14139_s2 + $0x318] sm:$0xff] }
 0x4fa   :  { %v12786_v6 = vpop.permute.xlu0 %10197  ;;  %v3736_v35 = vmax.f32 %v3698_v57, %v3722_v62  ;;  %v3737_v7 = vmax.f32 %v3699_v61, %v3723_v15  ;;  %v3854_v57 = vld [vmem:[%s14139_s2 + $0x260] sm:$0xff]  ;;  %v3861_v61 = vld [vmem:[%s14139_s2 + $0x298] sm:$0xff] }
 0x4fb   :  { %v10200_v54 = vunpack.i.h.bf16 %v12786_v6  ;;  %v10199_v21 = vunpack.i.l.bf16 %v12786_v6  ;;  %v3874_v6 = vld [vmem:[%s14139_s2 + $0x300] sm:$0xff] }
 0x4fd   :  { %v3760_v20 = vsel %vm3756_vm8, %v10154_v37, %v10199_v21  ;;  %v3761_v27 = vsel %vm3756_vm8, %v10199_v21, %v10200_v54  ;;  %v3844_v37 = vld [vmem:[%s14139_s2 + $0x210] sm:$0xff] }
 0x4fe   :  { %v3774_v36 = vmax.f32 %v3736_v35, %v3760_v20  ;;  %v3775_v58 = vmax.f32 %v3737_v7, %v3761_v27  ;;  %v9501_v59 = vpack.c.bf16 %v3844_v37, %v3842_v30  ;;  %v3863_v27 = vld [vmem:[%s14139_s2 + $0x2a8] sm:$0xff] }
 0x500   :  { %v10201_v42 = vpack.i.bf16 %v3775_v58, %v3774_v36  ;;  %v3865_v36 = vld [vmem:[%s14139_s2 + $0x2b8] sm:$0xff] }
 0x501   :  { %v9519_v39 = vpack.c.bf16 %v3865_v36, %v3863_v27 }
 0x502   :  { %10202 = vrot.lane.b32.xlu0 %v10201_v42, %s10358_s18 }
 0x506   :  { %3754 = vrot.lane.b32.xlu0 %v12698_v11, %s10380_s25  ;;  %v3849_v11 = vld [vmem:[%s14139_s2 + $0x238] sm:$0xff]  ;;  %s10389_s25 = smov 111  }
 0x507   :  { %v9503_v51 = vpack.c.bf16 %v3849_v11, %v3847_v9 }
 0x50e   :  { %v12799_v17 = vpop.permute.xlu1 %10187 }
 0x50f   :  { %v10190_v25 = vunpack.i.h.bf16 %v12799_v17  ;;  %v10189_v52 = vunpack.i.l.bf16 %v12799_v17  ;;  %v3917_v17 = vld [vmem:[%s14139_s2 + $0x458] sm:$0xff] }
 0x511   :  { %v4006_v2 = vsel %vm858_vm5, %v10189_v52, %v10190_v25 }
 0x512   :  { %v3992_v40 = vpop.permute.xlu1 %3991  ;;  %4090 = vmatprep.mubr.f32.mxu1 %v4006_v2 }
 0x513   :  { %v4005_v1 = vsel %vm858_vm5, %v3992_v40, %v10189_v52  ;;  %v12831_v5 = vpop.permute.xlu0 %3534  ;;  %v3864_v52 = vld [vmem:[%s14139_s2 + $0x2b0] sm:$0xff] }
 0x514   :  { %4091 = vmatmul.mubr.f32.vlgmr.msra.gmra.mrb[6].mxu1 %v4005_v1  ;;  %v3542_v44 = vsel %vm3536_vm1, %v10165_v12, %v12831_v5  ;;  %v3859_v12 = vld [vmem:[%s14139_s2 + $0x288] sm:$0xff]  ;;  %vm4376_vm1 = vcmask 924672  }
 0x515   :  { %9502 = vmatpush1.bf16.msra.mxu1 %v9501_v59  ;;  %v9515_v7 = vpack.c.bf16 %v3861_v61, %v3859_v12  ;;  %v3883_v12 = vld [vmem:[%s14139_s2 + $0x348] sm:$0xff]  ;;  %v3885_v61 = vld [vmem:[%s14139_s2 + $0x358] sm:$0xff] }
 0x516   :  { %v12833_v38 = vpop.permute.xlu1 %3499  ;;  %9504 = vmatprep.subr.bf16.mxu1 %v9503_v51  ;;  %v3866_v51 = vld [vmem:[%s14139_s2 + $0x2c0] sm:$0xff] }
 0x517   :  { %v3507_v49 = vsel %vm3501_vm0, %v10160_v0, %v12833_v38  ;;  %v12874_v62 = vpop.permute.xlu0 %3604  ;;  %vm4333_vm0 = vcmask 1006592  }
 0x518   :  { %v3520_v48 = vmax.f32 %v12487_v55, %v3507_v49  ;;  %v3856_v55 = vld [vmem:[%s14139_s2 + $0x270] sm:$0xff]  ;;  %v3612_v20 = vsel %vm3606_vm2, %v10175_v23, %v12874_v62  ;;  %v3862_v23 = vld [vmem:[%s14139_s2 + $0x2a0] sm:$0xff]  ;;  %v3875_v49 = vld [vmem:[%s14139_s2 + $0x308] sm:$0xff]  ;;  %vm4404_vm2 = vcmask 908288  }
 0x519   :  { %9506 = vmatpush1.bf16.msra.mxu1 %v9505_v34  ;;  %v9513_v21 = vpack.c.bf16 %v3856_v55, %v3854_v57  ;;  %v9521_v2 = vpack.c.bf16 %v3864_v52, %v3862_v23  ;;  %v3878_v55 = vld [vmem:[%s14139_s2 + $0x320] sm:$0xff] }
 0x51a   :  { %v12856_v26 = vpop.permute.xlu1 %3569  ;;  %v3555_v0 = vmax.f32 %v3520_v48, %v3542_v44  ;;  %9508 = vmatprep.subr.bf16.mxu1 %v9507_v60  ;;  %v9525_v60 = vpack.c.bf16 %v3868_v8, %v3866_v51  ;;  %v9531_v44 = vpack.c.bf16 %v3877_v19, %v3875_v49  ;;  %v3894_v8 = vld [vmem:[%s14139_s2 + $0x3a0] sm:$0xff]  ;;  %v3904_v19 = vld [vmem:[%s14139_s2 + $0x3f0] sm:$0xff] }
 0x51b   :  { %v3577_v32 = vsel %vm3571_vm4, %v10170_v24, %v12856_v26  ;;  %v3860_v24 = vld [vmem:[%s14139_s2 + $0x290] sm:$0xff]  ;;  %v12912_v9 = vpop.permute.xlu0 %3676  ;;  %v3902_v49 = vld [vmem:[%s14139_s2 + $0x3e0] sm:$0xff]  ;;  %vm4362_vm4 = vcmask 990208  }
 0x51c   :  { %v3590_v15 = vmax.f32 %v3555_v0, %v3577_v32  ;;  %v9517_v30 = vpack.c.bf16 %v3860_v24, %v3858_v56  ;;  %v3686_v13 = vsel %vm3680_vm6, %v10185_v31, %v12912_v9  ;;  %v9527_v31 = vpack.c.bf16 %v3873_v53, %v3871_v29  ;;  %v3881_v0 = vld [vmem:[%s14139_s2 + $0x338] sm:$0xff]  ;;  %v3880_v32 = vld [vmem:[%s14139_s2 + $0x330] sm:$0xff]  ;;  %v3887_v24 = vld [vmem:[%s14139_s2 + $0x368] sm:$0xff] }
 0x51d   :  { %9510 = vmatpush1.bf16.msra.mxu1 %v9509_v45  ;;  %v3879_v45 = vld [vmem:[%s14139_s2 + $0x328] sm:$0xff]  ;;  %v3884_v56 = vld [vmem:[%s14139_s2 + $0x350] sm:$0xff]  ;;  %v3901_v29 = vld [vmem:[%s14139_s2 + $0x3d8] sm:$0xff] }
 0x51e   :  { %v12876_v35 = vpop.permute.xlu1 %3639  ;;  %9512 = vmatprep.subr.bf16.mxu1 %v9511_v46  ;;  %v3625_v58 = vmax.f32 %v3590_v15, %v3612_v20  ;;  %v9535_v57 = vpack.c.bf16 %v3881_v0, %v3879_v45  ;;  %v9537_v15 = vpack.c.bf16 %v3880_v32, %v3878_v55  ;;  %v3889_v20 = vld [vmem:[%s14139_s2 + $0x378] sm:$0xff]  ;;  %v3906_v32 = vld [vmem:[%s14139_s2 + $0x400] sm:$0xff] }
 0x51f   :  { %v3647_v42 = vsel %vm3641_vm12, %v10180_v50, %v12876_v35  ;;  %v3869_v50 = vld [vmem:[%s14139_s2 + $0x2d8] sm:$0xff]  ;;  %v9543_v36 = vpack.c.bf16 %v3889_v20, %v3887_v24  ;;  %vm4422_vm12 = vcmask 842752  }
 0x520   :  { %v3660_v11 = vmax.f32 %v3625_v58, %v3647_v42  ;;  %v9523_v40 = vpack.c.bf16 %v3869_v50, %v3867_v22  ;;  %v3886_v58 = vld [vmem:[%s14139_s2 + $0x360] sm:$0xff]  ;;  %v3888_v42 = vld [vmem:[%s14139_s2 + $0x370] sm:$0xff] }
 0x521   :  { %9514 = vmatpush1.bf16.msra.mxu1 %v9513_v21  ;;  %v9539_v21 = vpack.c.bf16 %v3885_v61, %v3883_v12  ;;  %v9545_v23 = vpack.c.bf16 %v3888_v42, %v3886_v58  ;;  %v3890_v22 = vld [vmem:[%s14139_s2 + $0x380] sm:$0xff]  ;;  %v3892_v50 = vld [vmem:[%s14139_s2 + $0x390] sm:$0xff] }
 0x522   :  { %v12898_v37 = vpop.permute.xlu1 %3678  ;;  %9516 = vmatprep.subr.bf16.mxu1 %v9515_v7  ;;  %v3700_v34 = vmax.f32 %v3660_v11, %v3686_v13  ;;  %v3882_v7 = vld [vmem:[%s14139_s2 + $0x340] sm:$0xff]  ;;  %v3895_v11 = vld [vmem:[%s14139_s2 + $0x3a8] sm:$0xff]  ;;  %v3896_v13 = vld [vmem:[%s14139_s2 + $0x3b0] sm:$0xff] }
 0x523   :  { %v9541_v27 = vpack.c.bf16 %v3884_v56, %v3882_v7  ;;  %v9553_v53 = vpack.c.bf16 %v3896_v13, %v3894_v8  ;;  %v3687_v55 = vsel %vm3680_vm6, %v12912_v9, %v12898_v37  ;;  %v3908_v12 = vld [vmem:[%s14139_s2 + $0x410] sm:$0xff]  ;;  %v3910_v56 = vld [vmem:[%s14139_s2 + $0x420] sm:$0xff]  ;;  %vm4390_vm6 = vcmask 916480  }
 0x524   :  { %v3922_v13 = vld [vmem:[%s14139_s2 + $0x480] sm:$0xff] }
 0x525   :  { %9518 = vmatpush1.bf16.msra.mxu1 %v9517_v30  ;;  %v3891_v30 = vld [vmem:[%s14139_s2 + $0x388] sm:$0xff] }
 0x526   :  { %v12914_v59 = vpop.permute.xlu1 %3714  ;;  %9520 = vmatprep.subr.bf16.mxu1 %v9519_v39  ;;  %v3893_v39 = vld [vmem:[%s14139_s2 + $0x398] sm:$0xff] }
 0x527   :  { %v3724_v1 = vsel %vm3718_vm3, %v10195_v3, %v12914_v59  ;;  %v3872_v3 = vld [vmem:[%s14139_s2 + $0x2f0] sm:$0xff]  ;;  %v9547_v52 = vpack.c.bf16 %v3893_v39, %v3891_v30  ;;  %v3914_v30 = vld [vmem:[%s14139_s2 + $0x440] sm:$0xff] }
 0x528   :  { %v3738_v33 = vmax.f32 %v3700_v34, %v3724_v1  ;;  %v9529_v48 = vpack.c.bf16 %v3872_v3, %v3870_v14  ;;  %v3899_v1 = vld [vmem:[%s14139_s2 + $0x3c8] sm:$0xff]  ;;  %v3905_v14 = vld [vmem:[%s14139_s2 + $0x3f8] sm:$0xff]  ;;  %v3916_v39 = vld [vmem:[%s14139_s2 + $0x450] sm:$0xff] }
 0x529   :  { %9522 = vmatpush1.bf16.msra.mxu1 %v9521_v2  ;;  %v3897_v2 = vld [vmem:[%s14139_s2 + $0x3b8] sm:$0xff]  ;;  %v9555_v34 = vpack.c.bf16 %v3901_v29, %v3899_v1  ;;  %v3924_v1 = vld [vmem:[%s14139_s2 + $0x490] sm:$0xff]  ;;  %v3927_v29 = vld [vmem:[%s14139_s2 + $0x4a8] sm:$0xff] }
 0x52a   :  { %v12936_v43 = vpop.permute.xlu1 %3752  ;;  %9524 = vmatprep.subr.bf16.mxu1 %v9523_v40  ;;  %v9549_v40 = vpack.c.bf16 %v3892_v50, %v3890_v22  ;;  %v9551_v51 = vpack.c.bf16 %v3897_v2, %v3895_v11  ;;  %v3918_v50 = vld [vmem:[%s14139_s2 + $0x460] sm:$0xff]  ;;  %v3920_v11 = vld [vmem:[%s14139_s2 + $0x470] sm:$0xff]  ;;  %v3923_v2 = vld [vmem:[%s14139_s2 + $0x488] sm:$0xff] }
 0x52b   :  { %v3762_v63 = vsel %vm3756_vm8, %v10200_v54, %v12936_v43  ;;  %v3876_v54 = vld [vmem:[%s14139_s2 + $0x310] sm:$0xff] }
 0x52c   :  { %v3776_v18 = vmax.f32 %v3738_v33, %v3762_v63  ;;  %v9533_v46 = vpack.c.bf16 %v3876_v54, %v3874_v6  ;;  %v3900_v33 = vld [vmem:[%s14139_s2 + $0x3d0] sm:$0xff]  ;;  %v3521_v54 = vmax.f32 %v12684_v41, %v12833_v38  ;;  %v3911_v38 = vld [vmem:[%s14139_s2 + $0x428] sm:$0xff] }
 0x52d   :  { %9526 = vmatpush1.bf16.msra.mxu1 %v9525_v60  ;;  %v3898_v60 = vld [vmem:[%s14139_s2 + $0x3c0] sm:$0xff] }
 0x52e   :  { %4001 = vrot.lane.b32.xlu1 %v3776_v18, %s10358_s18  ;;  %9528 = vmatprep.subr.bf16.mxu1 %v9527_v31  ;;  %v3903_v31 = vld [vmem:[%s14139_s2 + $0x3e8] sm:$0xff]  ;;  %v9557_v3 = vpack.c.bf16 %v3900_v33, %v3898_v60  ;;  %v3556_v45 = vmax.f32 %v3521_v54, %v12831_v5  ;;  %v3926_v33 = vld [vmem:[%s14139_s2 + $0x4a0] sm:$0xff] }
 0x52f   :  { %v9559_v63 = vpack.c.bf16 %v3905_v14, %v3903_v31  ;;  %v3907_v18 = vld [vmem:[%s14139_s2 + $0x408] sm:$0xff]  ;;  %v3928_v31 = vld [vmem:[%s14139_s2 + $0x4b0] sm:$0xff] }
 0x530   :  { %v3591_v0 = vmax.f32 %v3556_v45, %v12856_v26  ;;  %v3913_v26 = vld [vmem:[%s14139_s2 + $0x438] sm:$0xff]  ;;  %v3931_v14 = vld [vmem:[%s14139_s2 + $0x4c8] sm:$0xff]  ;;  %v3934_v45 = vld [vmem:[%s14139_s2 + $0x4e0] sm:$0xff] }
 0x531   :  { %9530 = vmatpush1.bf16.msra.mxu1 %v9529_v48  ;;  %v3909_v48 = vld [vmem:[%s14139_s2 + $0x418] sm:$0xff]  ;;  %v9567_v7 = vpack.c.bf16 %v3913_v26, %v3911_v38  ;;  %v3943_v38 = vld [vmem:[%s14139_s2 + $0x528] sm:$0xff] }
 0x532   :  { %9532 = vmatprep.subr.bf16.mxu1 %v9531_v44  ;;  %v9561_v44 = vpack.c.bf16 %v3904_v19, %v3902_v49  ;;  %v9563_v6 = vpack.c.bf16 %v3909_v48, %v3907_v18  ;;  %v3930_v19 = vld [vmem:[%s14139_s2 + $0x4c0] sm:$0xff]  ;;  %v3932_v18 = vld [vmem:[%s14139_s2 + $0x4d0] sm:$0xff]  ;;  %v3935_v48 = vld [vmem:[%s14139_s2 + $0x4e8] sm:$0xff] }
 0x533   :  { %v3945_v26 = vld [vmem:[%s14139_s2 + $0x538] sm:$0xff] }
 0x535   :  { %9534 = vmatpush1.bf16.msra.mxu1 %v9533_v46  ;;  %v3626_v46 = vmax.f32 %v3591_v0, %v12874_v62  ;;  %v3936_v0 = vld [vmem:[%s14139_s2 + $0x4f0] sm:$0xff] }
 0x536   :  { %9536 = vmatprep.subr.bf16.mxu1 %v9535_v57  ;;  %v3717_v57 = vpop.permute.xlu0 %3716 }
 0x537   :  { %v3661_v41 = vmax.f32 %v3626_v46, %v12876_v35  ;;  %v3725_v62 = vsel %vm3718_vm3, %v12914_v59, %v3717_v57  ;;  %v3912_v59 = vld [vmem:[%s14139_s2 + $0x430] sm:$0xff]  ;;  %v3939_v46 = vld [vmem:[%s14139_s2 + $0x508] sm:$0xff]  ;;  %v3941_v57 = vld [vmem:[%s14139_s2 + $0x518] sm:$0xff]  ;;  %vm4441_vm3 = vcmask 834560  }
 0x538   :  { %v9569_v58 = vpack.c.bf16 %v3912_v59, %v3910_v56  ;;  %v3946_v59 = vld [vmem:[%s14139_s2 + $0x540] sm:$0xff] }
 0x539   :  { %9538 = vmatpush1.bf16.msra.mxu1 %v9537_v15  ;;  %v3701_v61 = vmax.f32 %v3661_v41, %v3687_v55  ;;  %v9565_v15 = vpack.c.bf16 %v3908_v12, %v3906_v32  ;;  %v9593_v55 = vpack.c.bf16 %v3936_v0, %v3934_v45  ;;  %v9595_v32 = vpack.c.bf16 %v3941_v57, %v3939_v46  ;;  %v3938_v12 = vld [vmem:[%s14139_s2 + $0x500] sm:$0xff]  ;;  %v3940_v41 = vld [vmem:[%s14139_s2 + $0x510] sm:$0xff]  ;;  %v3977_v45 = vld [vmem:[%s14139_s2 + $0x638] sm:$0xff] }
 0x53a   :  { %9540 = vmatprep.subr.bf16.mxu1 %v9539_v21 }
 0x53b   :  { %v3739_v24 = vmax.f32 %v3701_v61, %v3725_v62  ;;  %v9597_v62 = vpack.c.bf16 %v3940_v41, %v3938_v12  ;;  %v3942_v61 = vld [vmem:[%s14139_s2 + $0x520] sm:$0xff]  ;;  %v3976_v41 = vld [vmem:[%s14139_s2 + $0x630] sm:$0xff] }
 0x53c   :  { %v3974_v12 = vld [vmem:[%s14139_s2 + $0x620] sm:$0xff] }
 0x53d   :  { %9542 = vmatpush1.bf16.msra.mxu1 %v9541_v27  ;;  %v3915_v27 = vld [vmem:[%s14139_s2 + $0x448] sm:$0xff] }
 0x53e   :  { %9544 = vmatprep.subr.bf16.mxu1 %v9543_v36  ;;  %v9571_v42 = vpack.c.bf16 %v3917_v17, %v3915_v27  ;;  %v3953_v27 = vld [vmem:[%s14139_s2 + $0x578] sm:$0xff] }
 0x541   :  { %9546 = vmatpush1.bf16.msra.mxu1 %v9545_v23  ;;  %v3921_v23 = vld [vmem:[%s14139_s2 + $0x478] sm:$0xff] }
 0x542   :  { %9548 = vmatprep.subr.bf16.mxu1 %v9547_v52  ;;  %v9573_v52 = vpack.c.bf16 %v3916_v39, %v3914_v30  ;;  %v3957_v30 = vld [vmem:[%s14139_s2 + $0x598] sm:$0xff] }
 0x545   :  { %9550 = vmatpush1.bf16.msra.mxu1 %v9549_v40  ;;  %v3925_v40 = vld [vmem:[%s14139_s2 + $0x498] sm:$0xff] }
 0x546   :  { %9552 = vmatprep.subr.bf16.mxu1 %v9551_v51  ;;  %v9577_v51 = vpack.c.bf16 %v3920_v11, %v3918_v50  ;;  %v9579_v8 = vpack.c.bf16 %v3925_v40, %v3923_v2  ;;  %v3961_v50 = vld [vmem:[%s14139_s2 + $0x5b8] sm:$0xff]  ;;  %v3958_v40 = vld [vmem:[%s14139_s2 + $0x5a0] sm:$0xff] }
 0x549   :  { %9554 = vmatpush1.bf16.msra.mxu1 %v9553_v53  ;;  %v3929_v53 = vld [vmem:[%s14139_s2 + $0x4b8] sm:$0xff] }
 0x54a   :  { %9556 = vmatprep.subr.bf16.mxu1 %v9555_v34  ;;  %v9581_v34 = vpack.c.bf16 %v3924_v1, %v3922_v13  ;;  %v9583_v60 = vpack.c.bf16 %v3929_v53, %v3927_v29  ;;  %v3965_v13 = vld [vmem:[%s14139_s2 + $0x5d8] sm:$0xff]  ;;  %v3962_v53 = vld [vmem:[%s14139_s2 + $0x5c0] sm:$0xff] }
 0x54d   :  { %9558 = vmatpush1.bf16.msra.mxu1 %v9557_v3  ;;  %v3933_v3 = vld [vmem:[%s14139_s2 + $0x4d8] sm:$0xff] }
 0x54e   :  { %9560 = vmatprep.subr.bf16.mxu1 %v9559_v63  ;;  %v9585_v63 = vpack.c.bf16 %v3928_v31, %v3926_v33  ;;  %v9587_v49 = vpack.c.bf16 %v3933_v3, %v3931_v14  ;;  %v3969_v33 = vld [vmem:[%s14139_s2 + $0x5f8] sm:$0xff]  ;;  %v3966_v3 = vld [vmem:[%s14139_s2 + $0x5e0] sm:$0xff] }
 0x551   :  { %9562 = vmatpush1.bf16.msra.mxu1 %v9561_v44  ;;  %v3937_v44 = vld [vmem:[%s14139_s2 + $0x4f8] sm:$0xff] }
 0x552   :  { %9564 = vmatprep.subr.bf16.mxu1 %v9563_v6  ;;  %v9589_v6 = vpack.c.bf16 %v3932_v18, %v3930_v19  ;;  %v9591_v54 = vpack.c.bf16 %v3937_v44, %v3935_v48  ;;  %v3973_v19 = vld [vmem:[%s14139_s2 + $0x618] sm:$0xff]  ;;  %v3970_v44 = vld [vmem:[%s14139_s2 + $0x600] sm:$0xff] }
 0x574   :  { %v13066_v5 = vpop.permute.xlu0 %10202 }
 0x575   :  { %v10205_v37 = vunpack.i.h.bf16 %v13066_v5  ;;  %v10204_v9 = vunpack.i.l.bf16 %v13066_v5  ;;  %v3978_v5 = vld [vmem:[%s14139_s2 + $0x640] sm:$0xff] }
 0x577   :  { %v4008_v35 = vsel %vm858_vm5, %v10204_v9, %v10205_v37  ;;  %v4007_v21 = vsel %vm858_vm5, %v10190_v25, %v10204_v9  ;;  %v9599_v9 = vpack.c.bf16 %v3945_v26, %v3943_v38  ;;  %v3979_v26 = vld [vmem:[%s14139_s2 + $0x648] sm:$0xff] }
 0x578   :  { %v3755_v20 = vpop.permute.xlu0 %3754  ;;  %4161 = vmatprep.mubr.f32.mxu1 %v4008_v35  ;;  %v3947_v35 = vld [vmem:[%s14139_s2 + $0x548] sm:$0xff] }
 0x579   :  { %v3763_v25 = vsel %vm3756_vm8, %v12936_v43, %v3755_v20  ;;  %4162 = vmatmul.mubr.f32.vlgmr.msra.gmra.mrb[6].mxu1 %v4007_v21  ;;  %v3919_v43 = vld [vmem:[%s14139_s2 + $0x468] sm:$0xff]  ;;  %v3949_v21 = vld [vmem:[%s14139_s2 + $0x558] sm:$0xff] }
 0x57a   :  { %v3777_v36 = vmax.f32 %v3739_v24, %v3763_v25  ;;  %9566 = vmatpush1.bf16.msra.mxu1 %v9565_v15  ;;  %v9575_v22 = vpack.c.bf16 %v3921_v23, %v3919_v43  ;;  %v3944_v15 = vld [vmem:[%s14139_s2 + $0x530] sm:$0xff]  ;;  %v9603_v56 = vpack.c.bf16 %v3949_v21, %v3947_v35  ;;  %v3951_v20 = vld [vmem:[%s14139_s2 + $0x568] sm:$0xff]  ;;  %v3954_v23 = vld [vmem:[%s14139_s2 + $0x580] sm:$0xff] }
 0x57b   :  { %9568 = vmatprep.subr.bf16.mxu1 %v9567_v7  ;;  %v9601_v7 = vpack.c.bf16 %v3944_v15, %v3942_v61  ;;  %v3948_v24 = vld [vmem:[%s14139_s2 + $0x550] sm:$0xff]  ;;  %v9607_v25 = vpack.c.bf16 %v3953_v27, %v3951_v20  ;;  %v3983_v35 = vld [vmem:[%s14139_s2 + $0x668] sm:$0x3]  ;;  %v3982_v21 = vld [vmem:[%s14139_s2 + $0x660] sm:$0x3] }
 0x57c   :  { %4003 = vrot.lane.b32.xlu0 %v3777_v36, %s10358_s18  ;;  %v9605_v17 = vpack.c.bf16 %v3948_v24, %v3946_v59  ;;  %v3950_v36 = vld [vmem:[%s14139_s2 + $0x560] sm:$0xff]  ;;  %v13317_v59 = vld [vmem:[#allocation3 + $0x10] sm:$0xff]  ;;  %s10402_s18 = smov 55  }
 0x57e   :  { %9570 = vmatpush1.bf16.msra.mxu1 %v9569_v58  ;;  %v3952_v58 = vld [vmem:[%s14139_s2 + $0x570] sm:$0xff] }
 0x57f   :  { %9572 = vmatprep.subr.bf16.mxu1 %v9571_v42  ;;  %v3955_v42 = vld [vmem:[%s14139_s2 + $0x588] sm:$0xff]  ;;  %v9609_v39 = vpack.c.bf16 %v3952_v58, %v3950_v36  ;;  %v13365_v36 = vld [vmem:[%s14137_s7 + $0x18] sm:$0xff]  ;;  %v10392_v58 = vmov 81  }
 0x580   :  { %v9611_v43 = vpack.c.bf16 %v3957_v30, %v3955_v42  ;;  %10206 = vset.pattern.permute.xlu1 %v10392_v58 }
 0x582   :  { %9574 = vmatpush1.bf16.msra.mxu1 %v9573_v52  ;;  %v3956_v52 = vld [vmem:[%s14139_s2 + $0x590] sm:$0xff] }
 0x583   :  { %9576 = vmatprep.subr.bf16.mxu1 %v9575_v22  ;;  %v3959_v22 = vld [vmem:[%s14139_s2 + $0x5a8] sm:$0xff]  ;;  %v9613_v11 = vpack.c.bf16 %v3956_v52, %v3954_v23 }
 0x584   :  { %v9615_v2 = vpack.c.bf16 %v3961_v50, %v3959_v22 }
 0x586   :  { %9578 = vmatpush1.bf16.msra.mxu1 %v9577_v51  ;;  %v3960_v51 = vld [vmem:[%s14139_s2 + $0x5b0] sm:$0xff] }
 0x587   :  { %9580 = vmatprep.subr.bf16.mxu1 %v9579_v8  ;;  %v3963_v8 = vld [vmem:[%s14139_s2 + $0x5c8] sm:$0xff]  ;;  %v9617_v1 = vpack.c.bf16 %v3960_v51, %v3958_v40 }
 0x588   :  { %v9619_v29 = vpack.c.bf16 %v3965_v13, %v3963_v8 }
 0x58a   :  { %9582 = vmatpush1.bf16.msra.mxu1 %v9581_v34  ;;  %v3964_v34 = vld [vmem:[%s14139_s2 + $0x5d0] sm:$0xff] }
 0x58b   :  { %9584 = vmatprep.subr.bf16.mxu1 %v9583_v60  ;;  %v3967_v60 = vld [vmem:[%s14139_s2 + $0x5e8] sm:$0xff]  ;;  %v9621_v31 = vpack.c.bf16 %v3964_v34, %v3962_v53 }
 0x58c   :  { %v9623_v14 = vpack.c.bf16 %v3969_v33, %v3967_v60 }
 0x58e   :  { %9586 = vmatpush1.bf16.msra.mxu1 %v9585_v63  ;;  %v3968_v63 = vld [vmem:[%s14139_s2 + $0x5f0] sm:$0xff] }
 0x58f   :  { %9588 = vmatprep.subr.bf16.mxu1 %v9587_v49  ;;  %v3971_v49 = vld [vmem:[%s14139_s2 + $0x608] sm:$0xff]  ;;  %v9625_v18 = vpack.c.bf16 %v3968_v63, %v3966_v3 }
 0x590   :  { %v9627_v48 = vpack.c.bf16 %v3973_v19, %v3971_v49 }
 0x592   :  { %9590 = vmatpush1.bf16.msra.mxu1 %v9589_v6  ;;  %v3972_v6 = vld [vmem:[%s14139_s2 + $0x610] sm:$0xff] }
 0x593   :  { %9592 = vmatprep.subr.bf16.mxu1 %v9591_v54  ;;  %v3975_v54 = vld [vmem:[%s14139_s2 + $0x628] sm:$0xff]  ;;  %v9629_v57 = vpack.c.bf16 %v3972_v6, %v3970_v44 }
 0x596   :  { %9594 = vmatpush1.bf16.msra.mxu1 %v9593_v55 }
 0x597   :  { %9596 = vmatprep.subr.bf16.mxu1 %v9595_v32  ;;  %v9631_v32 = vpack.c.bf16 %v3977_v45, %v3975_v54 }
 0x59a   :  { %9598 = vmatpush1.bf16.msra.mxu1 %v9597_v62  ;;  %v3981_v62 = vld [vmem:[%s14139_s2 + $0x658] sm:$0xff] }
 0x59b   :  { %9600 = vmatprep.subr.bf16.mxu1 %v9599_v9  ;;  %v9633_v9 = vpack.c.bf16 %v3976_v41, %v3974_v12  ;;  %v9635_v61 = vpack.c.bf16 %v3981_v62, %v3979_v26 }
 0x59e   :  { %9602 = vmatpush1.bf16.msra.mxu1 %v9601_v7 }
 0x59f   :  { %9604 = vmatprep.subr.bf16.mxu1 %v9603_v56 }
 0x5a0   :  { %v4002_v0 = vpop.permute.xlu1 %4001 }
 0x5a1   :  { %v4009_v38 = vsel %vm858_vm5, %v10205_v37, %v4002_v0  ;;  %v3980_v37 = vld [vmem:[%s14139_s2 + $0x650] sm:$0xff]  ;;  %s10382_s2 = smov 103  }
 0x5a2   :  { %9606 = vmatpush1.bf16.msra.mxu1 %v9605_v17  ;;  %v9637_v15 = vpack.c.bf16 %v3980_v37, %v3978_v5 }
 0x5a3   :  { %9608 = vmatprep.subr.bf16.mxu1 %v9607_v25 }
 0x5a6   :  { %9610 = vmatpush1.bf16.msra.mxu1 %v9609_v39 }
 0x5a7   :  { %9612 = vmatprep.subr.bf16.mxu1 %v9611_v43 }
 0x5aa   :  { %9614 = vmatpush1.bf16.msra.mxu1 %v9613_v11 }
 0x5ab   :  { %9616 = vmatprep.subr.bf16.mxu1 %v9615_v2 }
 0x5ae   :  { %9618 = vmatpush1.bf16.msra.mxu1 %v9617_v1 }
 0x5af   :  { %9620 = vmatprep.subr.bf16.mxu1 %v9619_v29 }
 0x5b2   :  { %9622 = vmatpush1.bf16.msra.mxu1 %v9621_v31 }
 0x5b3   :  { %9624 = vmatprep.subr.bf16.mxu1 %v9623_v14 }
 0x5b6   :  { %9626 = vmatpush1.bf16.msra.mxu1 %v9625_v18 }
 0x5b7   :  { %9628 = vmatprep.subr.bf16.mxu1 %v9627_v48 }
 0x5ee   :  { %v4004_v46 = vpop.permute.xlu0 %4003 }
 0x5ef   :  { %v4010_v55 = vsel %vm858_vm5, %v4002_v0, %v4004_v46  ;;  %vm4019_vm5 = vcmask 1041408  }
 0x5f0   :  { %4232 = vmatprep.mubr.f32.mxu1 %v4010_v55 }
 0x5f1   :  { %4233 = vmatmul.mubr.f32.vlgmr.msra.gmra.mrb[6].mxu1 %v4009_v38 }
 0x5f2   :  { %9630 = vmatpush1.bf16.msra.mxu1 %v9629_v57  ;;  %4303 = vmatprep.mubr.f32.mxu1 %v10370_v4 }
 0x5f3   :  { %9632 = vmatprep.subr.bf16.mxu1 %v9631_v32 }
 0x5f6   :  { %9634 = vmatpush1.bf16.msra.mxu1 %v9633_v9 }
 0x5f7   :  { %9636 = vmatprep.subr.bf16.mxu1 %v9635_v61 }
 0x5fa   :  { %9638 = vmatpush1.bf16.msra.mxu1 %v9637_v15 }
 0x5fb   :  { %8642 = vmatprep.subr.msk.mxu1 %vm4019_vm5, %v3983_v35 }
 0x5fe   :  { %8643 = vmatpush1.msk.msra.mxu1 %vm4019_vm5, %v3982_v21  ;;  %vm4492_vm5 = vcmask 588800  }
 0x5ff   :  { %8644 = vmatmul.mubr.msk.f32.vlgmr.msra.gmra.mrb[6].mxu1 %vm104_vm7, %v4004_v46  ;;  %vm4319_vm7 = vcmask 1047680  }
 0x6d2   :  { %v4305_v7 = vpop.f32.mrb[6].mxu1 }
 0x6d3   :  { %4312 = vrot.lane.b32.xlu1 %v4305_v7, %s10381_s20  ;;  %v4307_v56 = vpop.f32.mrb[7].mxu1 }
 0x6d4   :  { %4314 = vrot.lane.b32.xlu0 %v4307_v56, %s10381_s20 }
 0x6d8   :  { %4420 = vrot.lane.b32.xlu0 %v13317_v59, %s10382_s2 }
 0x6dc   :  { %4439 = vrot.lane.b32.xlu0 %v13317_v59, %s10383_s17 }
 0x745   :  { %v4313_v24 = vpop.permute.xlu1 %4312 }
 0x746   :  { %4320 = vst.msk [vmem:[#allocation3] sm:$0xff] %vm4319_vm7, %v4313_v24  ;;  %v4315_v20 = vpop.permute.xlu0 %4314 }
 0x747   :  { %v4316_v27 = vsel %vm38_vm10, %v4313_v24, %v4315_v20  ;;  %v4323_v24 = vld [vmem:[%s14140_s3] sm:$0x3]  ;;  %s10394_s3 = smov 46  }
 0x748   :  { %4322 = vst.msk [vmem:[#allocation3 + $0x8] sm:$0xff] %vm4321_vm13, %v4316_v27 }
 0x74a   :  { %v4421_v42 = vpop.permute.xlu0 %4420 }
 0x74d   :  { %v13326_v17 = vld [vmem:[#allocation3] sm:$0xff] }
 0x74e   :  { %4329 = vrot.lane.b32.xlu1 %v13326_v17, %s10384_s29  ;;  %v4440_v30 = vpop.permute.xlu0 %4439 }
 0x74f   :  { %v13330_v25 = vld [vmem:[#allocation3 + $0x8] sm:$0xff] }
 0x750   :  { %4331 = vrot.lane.b32.xlu0 %v13330_v25, %s10384_s29 }
 0x752   :  { %4344 = vrot.lane.b32.xlu1 %v13326_v17, %s10385_s12 }
 0x754   :  { %4346 = vrot.lane.b32.xlu0 %v13330_v25, %s10385_s12 }
 0x756   :  { %4358 = vrot.lane.b32.xlu1 %v13326_v17, %s10386_s30 }
 0x758   :  { %4360 = vrot.lane.b32.xlu0 %v13330_v25, %s10386_s30 }
 0x75a   :  { %4372 = vrot.lane.b32.xlu1 %v13326_v17, %s10387_s11 }
 0x75c   :  { %4374 = vrot.lane.b32.xlu0 %v13330_v25, %s10387_s11 }
 0x75e   :  { %4386 = vrot.lane.b32.xlu1 %v13326_v17, %s10388_s0 }
 0x760   :  { %4388 = vrot.lane.b32.xlu0 %v13330_v25, %s10388_s0 }
 0x762   :  { %4400 = vrot.lane.b32.xlu1 %v13326_v17, %s10389_s25 }
 0x764   :  { %4402 = vrot.lane.b32.xlu0 %v13330_v25, %s10389_s25 }
 0x766   :  { %4416 = vrot.lane.b32.xlu1 %v13326_v17, %s10382_s2 }
 0x768   :  { %4435 = vrot.lane.b32.xlu0 %v13326_v17, %s10383_s17 }
 0x76a   :  { %4418 = vrot.lane.b32.xlu1 %v13330_v25, %s10382_s2 }
 0x76c   :  { %4458 = vrot.lane.b32.xlu0 %v13317_v59, %s10390_s28 }
 0x76e   :  { %4437 = vrot.lane.b32.xlu1 %v13330_v25, %s10383_s17 }
 0x770   :  { %4490 = vrot.lane.b32.xlu0 %v13365_v36, %s10391_s14 }
 0x772   :  { %4456 = vrot.lane.b32.xlu1 %v13330_v25, %s10390_s28 }
 0x776   :  { %4454 = vrot.lane.b32.xlu1 %v13326_v17, %s10390_s28 }
 0x77a   :  { %4487 = vperm.xlu1 %10206, %v13365_v36  }
 0x77e   :  { %10207 = vset.pattern.permute.xlu1 %v10393_v28 }
 0x7c0   :  { %v4330_v39 = vpop.permute.xlu1 %4329 }
 0x7c2   :  { %v4332_v43 = vpop.permute.xlu0 %4331 }
 0x7c3   :  { %4339 = vst.msk [vmem:[#allocation8 + $0x8] sm:$0xff] %vm4338_vm14, %v4332_v43  ;;  %v4334_v13 = vsel %vm4333_vm0, %v4330_v39, %v4332_v43  ;;  %v13408_v39 = vrot.slane %v4323_v24, %v3395_v10 }
 0x7c4   :  { %v4345_v23 = vpop.permute.xlu1 %4344 }
 0x7c6   :  { %v4347_v52 = vpop.permute.xlu0 %4346 }
 0x7c7   :  { %4353 = vst.msk [vmem:[#allocation8 + $0x18] sm:$0xff] %vm4338_vm14, %v4347_v52  ;;  %v4349_v2 = vsel %vm4348_vm15, %v4345_v23, %v4347_v52 }
 0x7c8   :  { %v4359_v22 = vpop.permute.xlu1 %4358  ;;  %v9641_v53 = vpack.c.bf16 %v4349_v2, %v4334_v13 }
 0x7ca   :  { %v4361_v50 = vpop.permute.xlu0 %4360  ;;  %v4468_v51 = vld [vmem:[#allocation8 + $0x8] sm:$0xff] }
 0x7cb   :  { %4367 = vst.msk [vmem:[#allocation8 + $0x28] sm:$0xff] %vm4338_vm14, %v4361_v50  ;;  %v4363_v63 = vsel %vm4362_vm4, %v4359_v22, %v4361_v50 }
 0x7cc   :  { %v4373_v11 = vpop.permute.xlu1 %4372 }
 0x7ce   :  { %v4375_v40 = vpop.permute.xlu0 %4374  ;;  %v4470_v8 = vld [vmem:[#allocation8 + $0x18] sm:$0xff] }
 0x7cf   :  { %4381 = vst.msk [vmem:[#allocation8 + $0x38] sm:$0xff] %vm4338_vm14, %v4375_v40  ;;  %v9639_v1 = vpack.c.bf16 %v4470_v8, %v4468_v51  ;;  %v4377_v33 = vsel %vm4376_vm1, %v4373_v11, %v4375_v40  ;;  %v13414_v11 = vld [vmem:[#allocation4 + $0x10] sm:$0xff]  ;;  %v13445_v8 = vld [vmem:[%s14137_s7 + $0x20] sm:$0xff] }
 0x7d0   :  { %v4387_v29 = vpop.permute.xlu1 %4386  ;;  %v9645_v18 = vpack.c.bf16 %v4377_v33, %v4363_v63 }
 0x7d1   :  { %9640 = vmatprep.subr.bf16.mxu0 %v9639_v1 }
 0x7d2   :  { %9642 = vmatpush1.bf16.msra.mxu0 %v9641_v53  ;;  %v4389_v34 = vpop.permute.xlu0 %4388  ;;  %v4472_v14 = vld [vmem:[#allocation8 + $0x28] sm:$0xff] }
 0x7d3   :  { %4395 = vst.msk [vmem:[#allocation8 + $0x48] sm:$0xff] %vm4338_vm14, %v4389_v34  ;;  %v4391_v46 = vsel %vm4390_vm6, %v4387_v29, %v4389_v34 }
 0x7d4   :  { %v4401_v60 = vpop.permute.xlu1 %4400 }
 0x7d6   :  { %v4403_v31 = vpop.permute.xlu0 %4402  ;;  %v4474_v3 = vld [vmem:[#allocation8 + $0x38] sm:$0xff] }
 0x7d7   :  { %4409 = vst.msk [vmem:[#allocation8 + $0x58] sm:$0xff] %vm4338_vm14, %v4403_v31  ;;  %v9643_v49 = vpack.c.bf16 %v4474_v3, %v4472_v14  ;;  %v4405_v44 = vsel %vm4404_vm2, %v4401_v60, %v4403_v31 }
 0x7d8   :  { %v4417_v19 = vpop.permute.xlu1 %4416  ;;  %v9649_v32 = vpack.c.bf16 %v4405_v44, %v4391_v46 }
 0x7d9   :  { %9644 = vmatprep.subr.bf16.mxu0 %v9643_v49 }
 0x7da   :  { %9646 = vmatpush1.bf16.msra.mxu0 %v9645_v18  ;;  %v4436_v54 = vpop.permute.xlu0 %4435  ;;  %v4476_v45 = vld [vmem:[#allocation8 + $0x48] sm:$0xff] }
 0x7dc   :  { %v4419_v48 = vpop.permute.xlu1 %4418 }
 0x7dd   :  { %v4424_v6 = vsel %vm4422_vm12, %v4419_v48, %v4421_v42  ;;  %v4423_v5 = vsel %vm4422_vm12, %v4417_v19, %v4419_v48  ;;  %v13404_v42 = vrot.slane %v4323_v24, %v3391_v16 }
 0x7de   :  { %4428 = vst.msk [vmem:[#allocation8 + $0x68] sm:$0xff] %vm4338_vm14, %v4424_v6  ;;  %v4478_v0 = vld [vmem:[#allocation8 + $0x58] sm:$0xff]  ;;  %v4459_v41 = vpop.permute.xlu0 %4458 }
 0x7df   :  { %v9647_v57 = vpack.c.bf16 %v4478_v0, %v4476_v45 }
 0x7e0   :  { %v4438_v55 = vpop.permute.xlu1 %4437 }
 0x7e1   :  { %v4443_v12 = vsel %vm4441_vm3, %v4438_v55, %v4440_v30  ;;  %9648 = vmatprep.subr.bf16.mxu0 %v9647_v57  ;;  %v4442_v62 = vsel %vm4441_vm3, %v4436_v54, %v4438_v55 }
 0x7e2   :  { %4447 = vst.msk [vmem:[#allocation8 + $0x78] sm:$0xff] %vm4338_vm14, %v4443_v12  ;;  %9650 = vmatpush1.bf16.msra.mxu0 %v9649_v32  ;;  %v9653_v15 = vpack.c.bf16 %v4442_v62, %v4423_v5  ;;  %v4491_v7 = vpop.permute.xlu0 %4490 }
 0x7e4   :  { %v4457_v38 = vpop.permute.xlu1 %4456 }
 0x7e5   :  { %v4462_v26 = vsel %vm4460_vm9, %v4457_v38, %v4459_v41  ;;  %v4480_v9 = vld [vmem:[#allocation8 + $0x68] sm:$0xff] }
 0x7e6   :  { %4466 = vst.msk [vmem:[#allocation8 + $0x88] sm:$0xff] %vm4338_vm14, %v4462_v26 }
 0x7e8   :  { %v4455_v35 = vpop.permute.xlu1 %4454 }
 0x7e9   :  { %v4482_v61 = vld [vmem:[#allocation8 + $0x78] sm:$0xff]  ;;  %v4461_v56 = vsel %vm4460_vm9, %v4455_v35, %v4457_v38 }
 0x7ea   :  { %v9651_v37 = vpack.c.bf16 %v4482_v61, %v4480_v9 }
 0x7ec   :  { %9652 = vmatprep.subr.bf16.mxu0 %v9651_v37 }
 0x7ed   :  { %9654 = vmatpush1.bf16.msra.mxu0 %v9653_v15  ;;  %v4484_v21 = vld [vmem:[#allocation8 + $0x88] sm:$0xff] }
 0x7ee   :  { %4511 = vmatprep.subr.mxu0 %v4484_v21 }
 0x7f1   :  { %4512 = vmatpush1.msra.mxu0 %v4461_v56 }
 0x7f2   :  { %8645 = vmatmul.mubr.msk.f32.vlgmr.msra.gmra.mrb[4].mxu0 %vm4492_vm5, %v4491_v7 }
 0x7f3   :  { %4822 = vmatprep.mubr.f32.mxu0 %v10370_v4 }
 0x7f9   :  { %v4488_v20 = vpop.permute.xlu1 %4487 }
 0x8c5   :  { %v4561_v27 = vpop.f32.mrb[4].mxu0 }
 0x8c6   :  { %v4562_v58 = vadd.f32 %v4561_v27, %v4488_v20  ;;  %v4563_v30 = vpop.f32.mrb[5].mxu0 }
 0x8c7   :  { %v4564_v43 = vadd.f32 %v4563_v30, %v4488_v20 }
 0x8c8   :  { %v4566_v23 = vmax.f32 %v4562_v58, 0.0 }
 0x8c9   :  { %v4567_v52 = vmax.f32 %v4564_v43, 0.0 }
 0x8ca   :  { %v4579_v22 = vmul.f32 %v13404_v42, %v4566_v23 }
 0x8cb   :  { %v4580_v50 = vmul.f32 %v13408_v39, %v4567_v52 }
 0x8cc   :  { %4583 = vrot.lane.b32.xlu0 %v4579_v22, %s10381_s20 }
 0x8cd   :  { %4585 = vrot.lane.b32.xlu1 %v4580_v50, %s10381_s20 }
 0x8d1   :  { %4682 = vrot.lane.b32.xlu1 %v13414_v11, %s10382_s2 }
 0x8d5   :  { %4700 = vrot.lane.b32.xlu1 %v13414_v11, %s10383_s17 }
 0x93e   :  { %v4584_v16 = vpop.permute.xlu0 %4583 }
 0x93f   :  { %4590 = vst.msk [vmem:[#allocation4] sm:$0xff] %vm4319_vm7, %v4584_v16  ;;  %v4586_v10 = vpop.permute.xlu1 %4585 }
 0x940   :  { %v4587_v2 = vsel %vm38_vm10, %v4584_v16, %v4586_v10 }
 0x941   :  { %4591 = vst.msk [vmem:[#allocation4 + $0x8] sm:$0xff] %vm4321_vm13, %v4587_v2 }
 0x946   :  { %v4594_v40 = vld [vmem:[#allocation4] sm:$0xff] }
 0x947   :  { %4598 = vrot.lane.b32.xlu0 %v4594_v40, %s10384_s29 }
 0x948   :  { %v4595_v51 = vld [vmem:[#allocation4 + $0x8] sm:$0xff] }
 0x949   :  { %4600 = vrot.lane.b32.xlu1 %v4595_v51, %s10384_s29 }
 0x94b   :  { %4611 = vrot.lane.b32.xlu0 %v4594_v40, %s10385_s12 }
 0x94d   :  { %4613 = vrot.lane.b32.xlu1 %v4595_v51, %s10385_s12 }
 0x94f   :  { %4624 = vrot.lane.b32.xlu0 %v4594_v40, %s10386_s30 }
 0x951   :  { %4626 = vrot.lane.b32.xlu1 %v4595_v51, %s10386_s30 }
 0x953   :  { %4637 = vrot.lane.b32.xlu0 %v4594_v40, %s10387_s11 }
 0x955   :  { %4639 = vrot.lane.b32.xlu1 %v4595_v51, %s10387_s11 }
 0x957   :  { %4650 = vrot.lane.b32.xlu0 %v4594_v40, %s10388_s0 }
 0x959   :  { %4652 = vrot.lane.b32.xlu1 %v4595_v51, %s10388_s0 }
 0x95b   :  { %4663 = vrot.lane.b32.xlu0 %v4594_v40, %s10389_s25 }
 0x95d   :  { %4665 = vrot.lane.b32.xlu1 %v4595_v51, %s10389_s25 }
 0x95f   :  { %4678 = vrot.lane.b32.xlu0 %v4594_v40, %s10382_s2 }
 0x961   :  { %4696 = vrot.lane.b32.xlu1 %v4594_v40, %s10383_s17 }
 0x963   :  { %4680 = vrot.lane.b32.xlu0 %v4595_v51, %s10382_s2 }
 0x965   :  { %4718 = vrot.lane.b32.xlu1 %v13414_v11, %s10390_s28 }
 0x967   :  { %4698 = vrot.lane.b32.xlu0 %v4595_v51, %s10383_s17 }
 0x969   :  { %4750 = vrot.lane.b32.xlu1 %v13365_v36, %s10394_s3  ;;  %v4683_v36 = vpop.permute.xlu1 %4682 }
 0x96b   :  { %4716 = vrot.lane.b32.xlu0 %v4595_v51, %s10390_s28 }
 0x96d   :  { %4746 = vperm.xlu1 %10207, %v13445_v8   ;;  %v4701_v13 = vpop.permute.xlu1 %4700 }
 0x96f   :  { %4714 = vrot.lane.b32.xlu0 %v4594_v40, %s10390_s28 }
 0x971   :  { %4831 = vrot.lane.b32.xlu1 %v13330_v25, %s10388_s0 }
 0x973   :  { %4752 = vrot.lane.b32.xlu0 %v13445_v8, %s10394_s3  ;;  %s10404_s3 = smov 125  }
 0x977   :  { %4829 = vrot.lane.b32.xlu0 %v13326_v17, %s10388_s0 }
 0x9b9   :  { %v4599_v1 = vpop.permute.xlu0 %4598 }
 0x9bb   :  { %v4601_v29 = vpop.permute.xlu1 %4600 }
 0x9bc   :  { %4606 = vst.msk [vmem:[#allocation8 + $0x8] sm:$0xff] %vm4338_vm14, %v4601_v29  ;;  %v4602_v63 = vsel %vm4333_vm0, %v4599_v1, %v4601_v29 }
 0x9bd   :  { %v4612_v53 = vpop.permute.xlu0 %4611 }
 0x9bf   :  { %v4614_v34 = vpop.permute.xlu1 %4613 }
 0x9c0   :  { %4619 = vst.msk [vmem:[#allocation8 + $0x18] sm:$0xff] %vm4338_vm14, %v4614_v34  ;;  %v4615_v31 = vsel %vm4348_vm15, %v4612_v53, %v4614_v34 }
 0x9c1   :  { %v4625_v60 = vpop.permute.xlu0 %4624  ;;  %v9657_v18 = vpack.c.bf16 %v4615_v31, %v4602_v63 }
 0x9c3   :  { %v4627_v33 = vpop.permute.xlu1 %4626  ;;  %v4727_v3 = vld [vmem:[#allocation8 + $0x8] sm:$0xff] }
 0x9c4   :  { %4632 = vst.msk [vmem:[#allocation8 + $0x28] sm:$0xff] %vm4338_vm14, %v4627_v33  ;;  %v4628_v46 = vsel %vm4362_vm4, %v4625_v60, %v4627_v33 }
 0x9c5   :  { %v4638_v25 = vpop.permute.xlu0 %4637 }
 0x9c7   :  { %v4640_v14 = vpop.permute.xlu1 %4639  ;;  %v4729_v17 = vld [vmem:[#allocation8 + $0x18] sm:$0xff] }
 0x9c8   :  { %4645 = vst.msk [vmem:[#allocation8 + $0x38] sm:$0xff] %vm4338_vm14, %v4640_v14  ;;  %v9655_v49 = vpack.c.bf16 %v4729_v17, %v4727_v3  ;;  %v4641_v6 = vsel %vm4376_vm1, %v4638_v25, %v4640_v14 }
 0x9c9   :  { %v4651_v19 = vpop.permute.xlu0 %4650  ;;  %v9661_v32 = vpack.c.bf16 %v4641_v6, %v4628_v46 }
 0x9ca   :  { %9656 = vmatprep.subr.bf16.mxu0 %v9655_v49 }
 0x9cb   :  { %9658 = vmatpush1.bf16.msra.mxu0 %v9657_v18  ;;  %v4653_v48 = vpop.permute.xlu1 %4652  ;;  %v4731_v45 = vld [vmem:[#allocation8 + $0x28] sm:$0xff] }
 0x9cc   :  { %4658 = vst.msk [vmem:[#allocation8 + $0x48] sm:$0xff] %vm4338_vm14, %v4653_v48  ;;  %v4654_v61 = vsel %vm4390_vm6, %v4651_v19, %v4653_v48  ;;  %v10395_v19 = vmov 99  }
 0x9cd   :  { %v4664_v44 = vpop.permute.xlu0 %4663  ;;  %10208 = vset.pattern.permute.xlu0 %v10395_v19 }
 0x9cf   :  { %v4666_v54 = vpop.permute.xlu1 %4665  ;;  %v4733_v0 = vld [vmem:[#allocation8 + $0x38] sm:$0xff] }
 0x9d0   :  { %4671 = vst.msk [vmem:[#allocation8 + $0x58] sm:$0xff] %vm4338_vm14, %v4666_v54  ;;  %v9659_v57 = vpack.c.bf16 %v4733_v0, %v4731_v45  ;;  %v4667_v41 = vsel %vm4404_vm2, %v4664_v44, %v4666_v54 }
 0x9d1   :  { %v4679_v55 = vpop.permute.xlu0 %4678  ;;  %v9665_v15 = vpack.c.bf16 %v4667_v41, %v4654_v61 }
 0x9d2   :  { %9660 = vmatprep.subr.bf16.mxu0 %v9659_v57 }
 0x9d3   :  { %9662 = vmatpush1.bf16.msra.mxu0 %v9661_v32  ;;  %v4697_v26 = vpop.permute.xlu1 %4696  ;;  %v4735_v62 = vld [vmem:[#allocation8 + $0x48] sm:$0xff] }
 0x9d5   :  { %v4681_v12 = vpop.permute.xlu0 %4680 }
 0x9d6   :  { %v4685_v38 = vsel %vm4422_vm12, %v4681_v12, %v4683_v36  ;;  %v4684_v30 = vsel %vm4422_vm12, %v4679_v55, %v4681_v12 }
 0x9d7   :  { %4689 = vst.msk [vmem:[#allocation8 + $0x68] sm:$0xff] %vm4338_vm14, %v4685_v38  ;;  %v4737_v9 = vld [vmem:[#allocation8 + $0x58] sm:$0xff]  ;;  %v4719_v21 = vpop.permute.xlu1 %4718 }
 0x9d8   :  { %v9663_v5 = vpack.c.bf16 %v4737_v9, %v4735_v62 }
 0x9d9   :  { %v4699_v37 = vpop.permute.xlu0 %4698 }
 0x9da   :  { %v4703_v35 = vsel %vm4441_vm3, %v4699_v37, %v4701_v13  ;;  %9664 = vmatprep.subr.bf16.mxu0 %v9663_v5  ;;  %v4702_v24 = vsel %vm4441_vm3, %v4697_v26, %v4699_v37 }
 0x9db   :  { %4707 = vst.msk [vmem:[#allocation8 + $0x78] sm:$0xff] %vm4338_vm14, %v4703_v35  ;;  %9666 = vmatpush1.bf16.msra.mxu0 %v9665_v15  ;;  %v9669_v23 = vpack.c.bf16 %v4702_v24, %v4684_v30  ;;  %v4751_v52 = vpop.permute.xlu1 %4750 }
 0x9dd   :  { %v4717_v7 = vpop.permute.xlu0 %4716 }
 0x9de   :  { %v4721_v56 = vsel %vm4460_vm9, %v4717_v7, %v4719_v21  ;;  %v4739_v27 = vld [vmem:[#allocation8 + $0x68] sm:$0xff] }
 0x9df   :  { %4725 = vst.msk [vmem:[#allocation8 + $0x88] sm:$0xff] %vm4338_vm14, %v4721_v56 }
 0x9e1   :  { %v4715_v20 = vpop.permute.xlu0 %4714 }
 0x9e2   :  { %v4741_v58 = vld [vmem:[#allocation8 + $0x78] sm:$0xff]  ;;  %v4720_v16 = vsel %vm4460_vm9, %v4715_v20, %v4717_v7 }
 0x9e3   :  { %v9667_v43 = vpack.c.bf16 %v4741_v58, %v4739_v27 }
 0x9e5   :  { %9668 = vmatprep.subr.bf16.mxu0 %v9667_v43  ;;  %v4753_v50 = vpop.permute.xlu0 %4752 }
 0x9e6   :  { %9670 = vmatpush1.bf16.msra.mxu0 %v9669_v23  ;;  %v4743_v22 = vld [vmem:[#allocation8 + $0x88] sm:$0xff]  ;;  %v4755_v28 = vsel %vm4754_vm11, %v4751_v52, %v4753_v50  ;;  %vm5261_vm11 = vcmask 228352  }
 0x9e7   :  { %4774 = vmatprep.subr.mxu0 %v4743_v22 }
 0x9e9   :  { %v4830_v51 = vpop.permute.xlu0 %4829 }
 0x9ea   :  { %4775 = vmatpush1.msra.mxu0 %v4720_v16 }
 0x9eb   :  { %8646 = vmatmul.mubr.msk.f32.vlgmr.msra.gmra.mrb[6].mxu0 %vm4492_vm5, %v4755_v28 }
 0x9ec   :  { %5077 = vmatprep.mubr.f32.mxu0 %v10370_v4  ;;  %v4747_v10 = vpop.permute.xlu1 %4746 }
 0x9f0   :  { %v4832_v2 = vpop.permute.xlu1 %4831 }
 0x9f1   :  { %v4833_v1 = vsel %vm4390_vm6, %v4830_v51, %v4832_v2 }
 0xabe   :  { %v4824_v40 = vpop.f32.mrb[6].mxu0 }
 0xabf   :  { %v4825_v36 = vadd.f32 %v4824_v40, %v4747_v10  ;;  %v4826_v13 = vpop.f32.mrb[7].mxu0 }
 0xac0   :  { %v4827_v29 = vadd.f32 %v4826_v13, %v4747_v10 }
 0xac1   :  { %v4836_v53 = vadd.f32 %v4833_v1, %v4825_v36 }
 0xac2   :  { %v4837_v34 = vadd.f32 %v4832_v2, %v4827_v29 }
 0xac3   :  { %v4838_v60 = vmax.f32 %v4836_v53, 0.0 }
 0xac4   :  { %v4839_v33 = vmax.f32 %v4837_v34, 0.0 }
 0xac5   :  { %v4840_v25 = vmul.f32 %v4838_v60, %v13404_v42 }
 0xac6   :  { %v4841_v31 = vmul.f32 %v4839_v33, %v13408_v39 }
 0xac7   :  { %4844 = vrot.lane.b32.xlu0 %v4840_v25, %s10381_s20 }
 0xac8   :  { %4846 = vrot.lane.b32.xlu1 %v4841_v31, %s10381_s20 }
 0xacc   :  { %4942 = vrot.lane.b32.xlu1 %v13317_v59, %s10382_s2 }
 0xad0   :  { %4960 = vrot.lane.b32.xlu1 %v13317_v59, %s10383_s17 }
 0xb39   :  { %v4845_v14 = vpop.permute.xlu0 %4844 }
 0xb3a   :  { %4851 = vst.msk [vmem:[#allocation3] sm:$0xff] %vm4319_vm7, %v4845_v14  ;;  %v4847_v3 = vpop.permute.xlu1 %4846 }
 0xb3b   :  { %v4848_v17 = vsel %vm38_vm10, %v4845_v14, %v4847_v3 }
 0xb3c   :  { %4852 = vst.msk [vmem:[#allocation3 + $0x8] sm:$0xff] %vm4321_vm13, %v4848_v17 }
 0xb3e   :  { %v4943_v18 = vpop.permute.xlu1 %4942 }
 0xb41   :  { %v13490_v63 = vld [vmem:[#allocation3] sm:$0xff] }
 0xb42   :  { %4858 = vrot.lane.b32.xlu0 %v13490_v63, %s10384_s29  ;;  %v4961_v48 = vpop.permute.xlu1 %4960 }
 0xb43   :  { %v13494_v49 = vld [vmem:[#allocation3 + $0x8] sm:$0xff] }
 0xb44   :  { %4860 = vrot.lane.b32.xlu1 %v13494_v49, %s10384_s29 }
 0xb46   :  { %4871 = vrot.lane.b32.xlu0 %v13490_v63, %s10385_s12 }
 0xb48   :  { %4873 = vrot.lane.b32.xlu1 %v13494_v49, %s10385_s12 }
 0xb4a   :  { %4884 = vrot.lane.b32.xlu0 %v13490_v63, %s10386_s30 }
 0xb4c   :  { %4886 = vrot.lane.b32.xlu1 %v13494_v49, %s10386_s30 }
 0xb4e   :  { %4897 = vrot.lane.b32.xlu0 %v13490_v63, %s10387_s11 }
 0xb50   :  { %4899 = vrot.lane.b32.xlu1 %v13494_v49, %s10387_s11 }
 0xb52   :  { %4910 = vrot.lane.b32.xlu0 %v13490_v63, %s10388_s0 }
 0xb54   :  { %4912 = vrot.lane.b32.xlu1 %v13494_v49, %s10388_s0 }
 0xb56   :  { %4923 = vrot.lane.b32.xlu0 %v13490_v63, %s10389_s25 }
 0xb58   :  { %4925 = vrot.lane.b32.xlu1 %v13494_v49, %s10389_s25 }
 0xb5a   :  { %4938 = vrot.lane.b32.xlu0 %v13490_v63, %s10382_s2 }
 0xb5c   :  { %4956 = vrot.lane.b32.xlu1 %v13490_v63, %s10383_s17 }
 0xb5e   :  { %4940 = vrot.lane.b32.xlu0 %v13494_v49, %s10382_s2 }
 0xb60   :  { %4978 = vrot.lane.b32.xlu1 %v13317_v59, %s10390_s28 }
 0xb62   :  { %4958 = vrot.lane.b32.xlu0 %v13494_v49, %s10383_s17 }
 0xb64   :  { %5009 = vrot.lane.b32.xlu1 %v13445_v8, %s10390_s28 }
 0xb66   :  { %4976 = vrot.lane.b32.xlu0 %v13494_v49, %s10390_s28 }
 0xb6a   :  { %4974 = vrot.lane.b32.xlu0 %v13490_v63, %s10390_s28 }
 0xb6e   :  { %5006 = vperm.xlu0 %10208, %v13445_v8  }
 0xbb4   :  { %v4859_v44 = vpop.permute.xlu0 %4858 }
 0xbb6   :  { %v4861_v59 = vpop.permute.xlu1 %4860 }
 0xbb7   :  { %4866 = vst.msk [vmem:[#allocation8 + $0x8] sm:$0xff] %vm4338_vm14, %v4861_v59  ;;  %v4862_v41 = vsel %vm4333_vm0, %v4859_v44, %v4861_v59 }
 0xbb8   :  { %v4872_v6 = vpop.permute.xlu0 %4871 }
 0xbba   :  { %v4874_v54 = vpop.permute.xlu1 %4873 }
 0xbbb   :  { %4879 = vst.msk [vmem:[#allocation8 + $0x18] sm:$0xff] %vm4338_vm14, %v4874_v54  ;;  %v4875_v57 = vsel %vm4348_vm15, %v4872_v6, %v4874_v54  ;;  %v10396_v6 = vmov 44  }
 0xbbc   :  { %v4885_v45 = vpop.permute.xlu0 %4884  ;;  %v9673_v62 = vpack.c.bf16 %v4875_v57, %v4862_v41  ;;  %10209 = vset.pattern.permute.xlu1 %v10396_v6 }
 0xbbe   :  { %v4887_v0 = vpop.permute.xlu1 %4886  ;;  %v4987_v32 = vld [vmem:[#allocation8 + $0x8] sm:$0xff] }
 0xbbf   :  { %4892 = vst.msk [vmem:[#allocation8 + $0x28] sm:$0xff] %vm4338_vm14, %v4887_v0  ;;  %v4888_v21 = vsel %vm4362_vm4, %v4885_v45, %v4887_v0 }
 0xbc0   :  { %v4898_v46 = vpop.permute.xlu0 %4897 }
 0xbc2   :  { %v4900_v55 = vpop.permute.xlu1 %4899  ;;  %v4989_v12 = vld [vmem:[#allocation8 + $0x18] sm:$0xff] }
 0xbc3   :  { %4905 = vst.msk [vmem:[#allocation8 + $0x38] sm:$0xff] %vm4338_vm14, %v4900_v55  ;;  %v9671_v38 = vpack.c.bf16 %v4989_v12, %v4987_v32  ;;  %v4901_v5 = vsel %vm4376_vm1, %v4898_v46, %v4900_v55  ;;  %v5100_v55 = vld [vmem:[%s14137_s7 + $0x28] sm:$0xff]  ;;  %s10409_s7 = smov 115  }
 0xbc4   :  { %v4911_v26 = vpop.permute.xlu0 %4910  ;;  %v9677_v24 = vpack.c.bf16 %v4901_v5, %v4888_v21 }
 0xbc5   :  { %9672 = vmatprep.subr.bf16.mxu0 %v9671_v38 }
 0xbc6   :  { %9674 = vmatpush1.bf16.msra.mxu0 %v9673_v62  ;;  %v4913_v9 = vpop.permute.xlu1 %4912  ;;  %v4991_v15 = vld [vmem:[#allocation8 + $0x28] sm:$0xff] }
 0xbc7   :  { %4918 = vst.msk [vmem:[#allocation8 + $0x48] sm:$0xff] %vm4338_vm14, %v4913_v9  ;;  %v4914_v52 = vsel %vm4390_vm6, %v4911_v26, %v4913_v9 }
 0xbc8   :  { %v4924_v61 = vpop.permute.xlu0 %4923 }
 0xbca   :  { %v4926_v37 = vpop.permute.xlu1 %4925  ;;  %v4993_v35 = vld [vmem:[#allocation8 + $0x38] sm:$0xff] }
 0xbcb   :  { %4931 = vst.msk [vmem:[#allocation8 + $0x58] sm:$0xff] %vm4338_vm14, %v4926_v37  ;;  %v9675_v7 = vpack.c.bf16 %v4993_v35, %v4991_v15  ;;  %v4927_v27 = vsel %vm4404_vm2, %v4924_v61, %v4926_v37 }
 0xbcc   :  { %v4939_v56 = vpop.permute.xlu0 %4938  ;;  %v9681_v28 = vpack.c.bf16 %v4927_v27, %v4914_v52 }
 0xbcd   :  { %9676 = vmatprep.subr.bf16.mxu0 %v9675_v7 }
 0xbce   :  { %9678 = vmatpush1.bf16.msra.mxu0 %v9677_v24  ;;  %v4957_v30 = vpop.permute.xlu1 %4956  ;;  %v4995_v43 = vld [vmem:[#allocation8 + $0x48] sm:$0xff] }
 0xbd0   :  { %v4941_v20 = vpop.permute.xlu0 %4940 }
 0xbd1   :  { %v4945_v58 = vsel %vm4422_vm12, %v4941_v20, %v4943_v18  ;;  %v4944_v1 = vsel %vm4422_vm12, %v4939_v56, %v4941_v20 }
 0xbd2   :  { %4949 = vst.msk [vmem:[#allocation8 + $0x68] sm:$0xff] %vm4338_vm14, %v4945_v58  ;;  %v4997_v23 = vld [vmem:[#allocation8 + $0x58] sm:$0xff]  ;;  %v4979_v10 = vpop.permute.xlu1 %4978 }
 0xbd3   :  { %v9679_v22 = vpack.c.bf16 %v4997_v23, %v4995_v43 }
 0xbd4   :  { %v4959_v50 = vpop.permute.xlu0 %4958 }
 0xbd5   :  { %v4963_v16 = vsel %vm4441_vm3, %v4959_v50, %v4961_v48  ;;  %9680 = vmatprep.subr.bf16.mxu0 %v9679_v22  ;;  %v4962_v51 = vsel %vm4441_vm3, %v4957_v30, %v4959_v50 }
 0xbd6   :  { %4967 = vst.msk [vmem:[#allocation8 + $0x78] sm:$0xff] %vm4338_vm14, %v4963_v16  ;;  %9682 = vmatpush1.bf16.msra.mxu0 %v9681_v28  ;;  %v9685_v53 = vpack.c.bf16 %v4962_v51, %v4944_v1  ;;  %v5010_v33 = vpop.permute.xlu1 %5009 }
 0xbd8   :  { %v4977_v2 = vpop.permute.xlu0 %4976 }
 0xbd9   :  { %v4981_v40 = vsel %vm4460_vm9, %v4977_v2, %v4979_v10  ;;  %v4999_v36 = vld [vmem:[#allocation8 + $0x68] sm:$0xff] }
 0xbda   :  { %4985 = vst.msk [vmem:[#allocation8 + $0x88] sm:$0xff] %vm4338_vm14, %v4981_v40 }
 0xbdc   :  { %v4975_v34 = vpop.permute.xlu0 %4974 }
 0xbdd   :  { %v5001_v13 = vld [vmem:[#allocation8 + $0x78] sm:$0xff]  ;;  %v4980_v25 = vsel %vm4460_vm9, %v4975_v34, %v4977_v2 }
 0xbde   :  { %v9683_v29 = vpack.c.bf16 %v5001_v13, %v4999_v36 }
 0xbe0   :  { %9684 = vmatprep.subr.bf16.mxu0 %v9683_v29 }
 0xbe1   :  { %9686 = vmatpush1.bf16.msra.mxu0 %v9685_v53  ;;  %v5003_v60 = vld [vmem:[#allocation8 + $0x88] sm:$0xff] }
 0xbe2   :  { %5029 = vmatprep.subr.mxu0 %v5003_v60 }
 0xbe5   :  { %5030 = vmatpush1.msra.mxu0 %v4980_v25 }
 0xbe6   :  { %8647 = vmatmul.mubr.msk.f32.vlgmr.msra.gmra.mrb[8].mxu0 %vm4492_vm5, %v5010_v33 }
 0xbe7   :  { %5329 = vmatprep.mubr.f32.mxu0 %v10370_v4 }
 0xbed   :  { %v5007_v31 = vpop.permute.xlu0 %5006 }
 0xcb9   :  { %v5079_v14 = vpop.f32.mrb[8].mxu0 }
 0xcba   :  { %v5080_v3 = vadd.f32 %v5079_v14, %v5007_v31  ;;  %v5081_v17 = vpop.f32.mrb[9].mxu0 }
 0xcbb   :  { %v5082_v19 = vadd.f32 %v5081_v17, %v5007_v31 }
 0xcbc   :  { %v5084_v18 = vmax.f32 %v5080_v3, 0.0 }
 0xcbd   :  { %v5085_v44 = vmax.f32 %v5082_v19, 0.0 }
 0xcbe   :  { %v5086_v48 = vmul.f32 %v5084_v18, %v13404_v42 }
 0xcbf   :  { %v5087_v59 = vmul.f32 %v5085_v44, %v13408_v39 }
 0xcc0   :  { %5090 = vrot.lane.b32.xlu1 %v5086_v48, %s10381_s20 }
 0xcc4   :  { %5092 = vrot.lane.b32.xlu1 %v5087_v59, %s10381_s20 }
 0xcc8   :  { %5189 = vrot.lane.b32.xlu1 %v13414_v11, %s10382_s2 }
 0xccc   :  { %5207 = vrot.lane.b32.xlu1 %v13414_v11, %s10383_s17 }
 0xd32   :  { %v5091_v54 = vpop.permute.xlu1 %5090 }
 0xd33   :  { %5097 = vst.msk [vmem:[#allocation4] sm:$0xff] %vm4319_vm7, %v5091_v54 }
 0xd36   :  { %v5093_v45 = vpop.permute.xlu1 %5092 }
 0xd37   :  { %v5094_v0 = vsel %vm38_vm10, %v5091_v54, %v5093_v45 }
 0xd38   :  { %5098 = vst.msk [vmem:[#allocation4 + $0x8] sm:$0xff] %vm4321_vm13, %v5094_v0 }
 0xd3a   :  { %v5101_v46 = vld [vmem:[#allocation4] sm:$0xff] }
 0xd3b   :  { %5105 = vrot.lane.b32.xlu0 %v5101_v46, %s10384_s29 }
 0xd3f   :  { %5118 = vrot.lane.b32.xlu0 %v5101_v46, %s10385_s12  ;;  %v5102_v57 = vld [vmem:[#allocation4 + $0x8] sm:$0xff] }
 0xd40   :  { %5107 = vrot.lane.b32.xlu1 %v5102_v57, %s10384_s29 }
 0xd43   :  { %5131 = vrot.lane.b32.xlu0 %v5101_v46, %s10386_s30 }
 0xd44   :  { %5120 = vrot.lane.b32.xlu1 %v5102_v57, %s10385_s12 }
 0xd47   :  { %5144 = vrot.lane.b32.xlu0 %v5101_v46, %s10387_s11 }
 0xd48   :  { %5133 = vrot.lane.b32.xlu1 %v5102_v57, %s10386_s30 }
 0xd4b   :  { %5157 = vrot.lane.b32.xlu0 %v5101_v46, %s10388_s0 }
 0xd4c   :  { %5146 = vrot.lane.b32.xlu1 %v5102_v57, %s10387_s11 }
 0xd4f   :  { %5170 = vrot.lane.b32.xlu0 %v5101_v46, %s10389_s25 }
 0xd50   :  { %5159 = vrot.lane.b32.xlu1 %v5102_v57, %s10388_s0 }
 0xd53   :  { %5185 = vrot.lane.b32.xlu0 %v5101_v46, %s10382_s2 }
 0xd54   :  { %5172 = vrot.lane.b32.xlu1 %v5102_v57, %s10389_s25 }
 0xd57   :  { %5187 = vrot.lane.b32.xlu0 %v5102_v57, %s10382_s2 }
 0xd58   :  { %5203 = vrot.lane.b32.xlu1 %v5101_v46, %s10383_s17 }
 0xd5b   :  { %5205 = vrot.lane.b32.xlu0 %v5102_v57, %s10383_s17 }
 0xd5c   :  { %5225 = vrot.lane.b32.xlu1 %v13414_v11, %s10390_s28  ;;  %v5190_v11 = vpop.permute.xlu1 %5189 }
 0xd5f   :  { %5223 = vrot.lane.b32.xlu0 %v5102_v57, %s10390_s28 }
 0xd60   :  { %5257 = vrot.lane.b32.xlu1 %v13445_v8, %s10397_s1  ;;  %v5208_v32 = vpop.permute.xlu1 %5207 }
 0xd63   :  { %5221 = vrot.lane.b32.xlu0 %v5101_v46, %s10390_s28 }
 0xd64   :  { %5253 = vperm.xlu1 %10209, %v5100_v55  }
 0xd67   :  { %5259 = vrot.lane.b32.xlu0 %v5100_v55, %s10397_s1 }
 0xd68   :  { %5338 = vrot.lane.b32.xlu1 %v13494_v49, %s10388_s0 }
 0xd6b   :  { %5336 = vrot.lane.b32.xlu0 %v13490_v63, %s10388_s0 }
 0xdad   :  { %v5106_v12 = vpop.permute.xlu0 %5105 }
 0xdb1   :  { %v5119_v41 = vpop.permute.xlu0 %5118 }
 0xdb2   :  { %v5108_v8 = vpop.permute.xlu1 %5107 }
 0xdb3   :  { %5113 = vst.msk [vmem:[#allocation8 + $0x8] sm:$0xff] %vm4338_vm14, %v5108_v8  ;;  %v5109_v15 = vsel %vm4333_vm0, %v5106_v12, %v5108_v8 }
 0xdb5   :  { %v5132_v38 = vpop.permute.xlu0 %5131 }
 0xdb6   :  { %v5121_v26 = vpop.permute.xlu1 %5120 }
 0xdb7   :  { %5126 = vst.msk [vmem:[#allocation8 + $0x18] sm:$0xff] %vm4338_vm14, %v5121_v26  ;;  %v5122_v49 = vsel %vm4348_vm15, %v5119_v41, %v5121_v26 }
 0xdb8   :  { %v9689_v21 = vpack.c.bf16 %v5122_v49, %v5109_v15 }
 0xdb9   :  { %v5145_v62 = vpop.permute.xlu0 %5144 }
 0xdba   :  { %v5134_v9 = vpop.permute.xlu1 %5133  ;;  %v5234_v63 = vld [vmem:[#allocation8 + $0x8] sm:$0xff] }
 0xdbb   :  { %5139 = vst.msk [vmem:[#allocation8 + $0x28] sm:$0xff] %vm4338_vm14, %v5134_v9  ;;  %v5135_v43 = vsel %vm4362_vm4, %v5132_v38, %v5134_v9  ;;  %v10398_v9 = vmov 72  }
 0xdbc   :  { %10210 = vset.pattern.permute.xlu1 %v10398_v9  ;;  %10211 = vset.pattern.permute.xlu0 %v10398_v9  ;;  %v5611_v9 = vld [vmem:[%s14142_s4 + $0x18] sm:$0xff] }
 0xdbd   :  { %v5158_v61 = vpop.permute.xlu0 %5157 }
 0xdbe   :  { %v5147_v5 = vpop.permute.xlu1 %5146  ;;  %v5236_v37 = vld [vmem:[#allocation8 + $0x18] sm:$0xff] }
 0xdbf   :  { %5152 = vst.msk [vmem:[#allocation8 + $0x38] sm:$0xff] %vm4338_vm14, %v5147_v5  ;;  %v9687_v35 = vpack.c.bf16 %v5236_v37, %v5234_v63  ;;  %v5148_v24 = vsel %vm4376_vm1, %v5145_v62, %v5147_v5  ;;  %v5443_v62 = vld [vmem:[#allocation3 + $0x10] sm:$0xff]  ;;  %v13651_v63 = vld [vmem:[%s14141_s8] sm:$0xff]  ;;  %v13662_v37 = vld [vmem:[%s14141_s8 + $0x28] sm:$0xff] }
 0xdc0   :  { %v9693_v52 = vpack.c.bf16 %v5148_v24, %v5135_v43 }
 0xdc1   :  { %v5171_v7 = vpop.permute.xlu0 %5170  ;;  %9688 = vmatprep.subr.bf16.mxu0 %v9687_v35 }
 0xdc2   :  { %9690 = vmatpush1.bf16.msra.mxu0 %v9689_v21  ;;  %v5160_v56 = vpop.permute.xlu1 %5159  ;;  %v5238_v58 = vld [vmem:[#allocation8 + $0x28] sm:$0xff] }
 0xdc3   :  { %5165 = vst.msk [vmem:[#allocation8 + $0x48] sm:$0xff] %vm4338_vm14, %v5160_v56  ;;  %v5161_v36 = vsel %vm4390_vm6, %v5158_v61, %v5160_v56 }
 0xdc5   :  { %v5186_v20 = vpop.permute.xlu0 %5185 }
 0xdc6   :  { %v5173_v27 = vpop.permute.xlu1 %5172  ;;  %v5240_v30 = vld [vmem:[#allocation8 + $0x38] sm:$0xff] }
 0xdc7   :  { %5178 = vst.msk [vmem:[#allocation8 + $0x58] sm:$0xff] %vm4338_vm14, %v5173_v27  ;;  %v9691_v23 = vpack.c.bf16 %v5240_v30, %v5238_v58  ;;  %v5174_v16 = vsel %vm4404_vm2, %v5171_v7, %v5173_v27 }
 0xdc8   :  { %v9697_v29 = vpack.c.bf16 %v5174_v16, %v5161_v36 }
 0xdc9   :  { %v5188_v22 = vpop.permute.xlu0 %5187  ;;  %9692 = vmatprep.subr.bf16.mxu0 %v9691_v23 }
 0xdca   :  { %v5192_v50 = vsel %vm4422_vm12, %v5188_v22, %v5190_v11  ;;  %9694 = vmatpush1.bf16.msra.mxu0 %v9693_v52  ;;  %v5204_v28 = vpop.permute.xlu1 %5203  ;;  %v5242_v40 = vld [vmem:[#allocation8 + $0x48] sm:$0xff]  ;;  %v5191_v14 = vsel %vm4422_vm12, %v5186_v20, %v5188_v22 }
 0xdcb   :  { %5196 = vst.msk [vmem:[#allocation8 + $0x68] sm:$0xff] %vm4338_vm14, %v5192_v50 }
 0xdcd   :  { %v5206_v10 = vpop.permute.xlu0 %5205 }
 0xdce   :  { %v5210_v2 = vsel %vm4441_vm3, %v5206_v10, %v5208_v32  ;;  %v5244_v51 = vld [vmem:[#allocation8 + $0x58] sm:$0xff]  ;;  %v5226_v1 = vpop.permute.xlu1 %5225  ;;  %v5209_v60 = vsel %vm4441_vm3, %v5204_v28, %v5206_v10 }
 0xdcf   :  { %5214 = vst.msk [vmem:[#allocation8 + $0x78] sm:$0xff] %vm4338_vm14, %v5210_v2  ;;  %v9695_v13 = vpack.c.bf16 %v5244_v51, %v5242_v40  ;;  %v9701_v17 = vpack.c.bf16 %v5209_v60, %v5191_v14 }
 0xdd1   :  { %v5224_v53 = vpop.permute.xlu0 %5223  ;;  %9696 = vmatprep.subr.bf16.mxu0 %v9695_v13 }
 0xdd2   :  { %v5228_v34 = vsel %vm4460_vm9, %v5224_v53, %v5226_v1  ;;  %9698 = vmatpush1.bf16.msra.mxu0 %v9697_v29  ;;  %v5246_v25 = vld [vmem:[#allocation8 + $0x68] sm:$0xff]  ;;  %v5258_v19 = vpop.permute.xlu1 %5257 }
 0xdd3   :  { %5232 = vst.msk [vmem:[#allocation8 + $0x88] sm:$0xff] %vm4338_vm14, %v5228_v34 }
 0xdd5   :  { %v5222_v33 = vpop.permute.xlu0 %5221 }
 0xdd6   :  { %v5248_v31 = vld [vmem:[#allocation8 + $0x78] sm:$0xff]  ;;  %v5227_v59 = vsel %vm4460_vm9, %v5222_v33, %v5224_v53 }
 0xdd7   :  { %v9699_v3 = vpack.c.bf16 %v5248_v31, %v5246_v25 }
 0xdd9   :  { %9700 = vmatprep.subr.bf16.mxu0 %v9699_v3  ;;  %v5260_v48 = vpop.permute.xlu0 %5259 }
 0xdda   :  { %9702 = vmatpush1.bf16.msra.mxu0 %v9701_v17  ;;  %v5250_v18 = vld [vmem:[#allocation8 + $0x88] sm:$0xff]  ;;  %v5262_v44 = vsel %vm5261_vm11, %v5258_v19, %v5260_v48 }
 0xddb   :  { %5281 = vmatprep.subr.mxu0 %v5250_v18 }
 0xddd   :  { %v5337_v0 = vpop.permute.xlu0 %5336 }
 0xdde   :  { %5282 = vmatpush1.msra.mxu0 %v5227_v59 }
 0xddf   :  { %8648 = vmatmul.mubr.msk.f32.vlgmr.msra.gmra.mrb[10].mxu0 %vm4492_vm5, %v5262_v44 }
 0xde0   :  { %5591 = vmatprep.mubr.f32.mxu0 %v10370_v4 }
 0xde3   :  { %v5254_v6 = vpop.permute.xlu1 %5253 }
 0xde7   :  { %v5339_v54 = vpop.permute.xlu1 %5338 }
 0xde8   :  { %v5340_v55 = vsel %vm4390_vm6, %v5337_v0, %v5339_v54 }
 0xeb2   :  { %v5331_v45 = vpop.f32.mrb[10].mxu0 }
 0xeb3   :  { %v5332_v46 = vadd.f32 %v5331_v45, %v5254_v6  ;;  %v5333_v57 = vpop.f32.mrb[11].mxu0 }
 0xeb4   :  { %v5334_v11 = vadd.f32 %v5333_v57, %v5254_v6 }
 0xeb5   :  { %v5343_v32 = vadd.f32 %v5340_v55, %v5332_v46 }
 0xeb6   :  { %v5344_v12 = vadd.f32 %v5339_v54, %v5334_v11 }
 0xeb7   :  { %v5345_v41 = vmax.f32 %v5343_v32, 0.0 }
 0xeb8   :  { %v5346_v8 = vmax.f32 %v5344_v12, 0.0 }
 0xeb9   :  { %v5347_v38 = vmul.f32 %v5345_v41, %v13404_v42  ;;  %v5608_v41 = vld [vmem:[%s14142_s4] sm:$0xff] }
 0xeba   :  { %v5348_v26 = vmul.f32 %v5346_v8, %v13408_v39  ;;  %v5609_v8 = vld [vmem:[%s14142_s4 + $0x8] sm:$0xff] }
 0xebb   :  { %5351 = vrot.lane.b32.xlu0 %v5347_v38, %s10381_s20 }
 0xebc   :  { %5353 = vrot.lane.b32.xlu1 %v5348_v26, %s10381_s20  ;;  %v13692_v26 = vpack.c.bf16 %v5609_v8, %v5608_v41  ;;  %s10410_s20 = smov 71  }
 0xec0   :  { %5451 = vrot.lane.b32.xlu1 %v5443_v62, %s10382_s2 }
 0xec4   :  { %5469 = vrot.lane.b32.xlu1 %v5443_v62, %s10383_s17 }
 0xf2d   :  { %v5352_v49 = vpop.permute.xlu0 %5351 }
 0xf2e   :  { %5358 = vst.msk [vmem:[#allocation3] sm:$0xff] %vm4319_vm7, %v5352_v49  ;;  %v5354_v61 = vpop.permute.xlu1 %5353  ;;  %vm49_vm7 = vcmask 851712  }
 0xf2f   :  { %v5355_v42 = vsel %vm38_vm10, %v5352_v49, %v5354_v61  ;;  %v5612_v61 = vld [vmem:[%s14142_s4 + $0x20] sm:$0xff]  ;;  %54 = vst.msk [vmem:[#allocation6] sm:$0xff] %vm49_vm7, %v10370_v4  ;;  %50 = vst.msk [vmem:[#allocation5] sm:$0xff] %vm49_vm7, %v10370_v4 }
 0xf30   :  { %5359 = vst.msk [vmem:[#allocation3 + $0x8] sm:$0xff] %vm4321_vm13, %v5355_v42  ;;  %v5613_v42 = vld [vmem:[%s14142_s4 + $0x28] sm:$0xff]  ;;  %vm5726_vm13 = vcmask 785472  }
 0xf31   :  { %51 = vst.msk [vmem:[#allocation5 + $0x8] sm:$0xff] %vm49_vm7, %v10370_v4  ;;  %55 = vst.msk [vmem:[#allocation6 + $0x8] sm:$0xff] %vm49_vm7, %v10370_v4 }
 0xf32   :  { %v5452_v15 = vpop.permute.xlu1 %5451 }
 0xf35   :  { %v5363_v39 = vld [vmem:[#allocation3] sm:$0xff] }
 0xf36   :  { %5367 = vrot.lane.b32.xlu0 %v5363_v39, %s10384_s29  ;;  %v5470_v35 = vpop.permute.xlu1 %5469 }
 0xf37   :  { %v5364_v5 = vld [vmem:[#allocation3 + $0x8] sm:$0xff] }
 0xf38   :  { %5369 = vrot.lane.b32.xlu1 %v5364_v5, %s10384_s29  ;;  %s10420_s29 = smov 12  }
 0xf3a   :  { %5380 = vrot.lane.b32.xlu0 %v5363_v39, %s10385_s12 }
 0xf3c   :  { %5382 = vrot.lane.b32.xlu1 %v5364_v5, %s10385_s12  ;;  %s10423_s12 = smov 44  }
 0xf3e   :  { %5393 = vrot.lane.b32.xlu0 %v5363_v39, %s10386_s30 }
 0xf40   :  { %5395 = vrot.lane.b32.xlu1 %v5364_v5, %s10386_s30 }
 0xf42   :  { %5406 = vrot.lane.b32.xlu0 %v5363_v39, %s10387_s11 }
 0xf44   :  { %5408 = vrot.lane.b32.xlu1 %v5364_v5, %s10387_s11 }
 0xf46   :  { %5419 = vrot.lane.b32.xlu0 %v5363_v39, %s10388_s0 }
 0xf48   :  { %5421 = vrot.lane.b32.xlu1 %v5364_v5, %s10388_s0 }
 0xf4a   :  { %5432 = vrot.lane.b32.xlu0 %v5363_v39, %s10389_s25 }
 0xf4c   :  { %5434 = vrot.lane.b32.xlu1 %v5364_v5, %s10389_s25  ;;  %s10413_s25 = smov 93  }
 0xf4e   :  { %5447 = vrot.lane.b32.xlu0 %v5363_v39, %s10382_s2 }
 0xf50   :  { %5465 = vrot.lane.b32.xlu1 %v5363_v39, %s10383_s17 }
 0xf52   :  { %5449 = vrot.lane.b32.xlu0 %v5364_v5, %s10382_s2 }
 0xf54   :  { %5487 = vrot.lane.b32.xlu1 %v5443_v62, %s10390_s28  ;;  %v5610_v62 = vld [vmem:[%s14142_s4 + $0x10] sm:$0xff] }
 0xf55   :  { %v13705_v49 = vpack.c.bf16 %v5611_v9, %v5610_v62 }
 0xf56   :  { %5467 = vrot.lane.b32.xlu0 %v5364_v5, %s10383_s17  ;;  %s10400_s17 = smov 38  }
 0xf58   :  { %5515 = vperm.xlu1 %10210, %v13651_v63  }
 0xf5a   :  { %5485 = vrot.lane.b32.xlu0 %v5364_v5, %s10390_s28 }
 0xf5c   :  { %5762 = vrot.lane.b32.xlu1 %v5363_v39, %s10388_s0 }
 0xf5e   :  { %5483 = vrot.lane.b32.xlu0 %v5363_v39, %s10390_s28  ;;  %v13717_v39 = vpack.c.bf16 %v5613_v42, %v5612_v61  ;;  %s10401_s28 = smov 39  }
 0xf60   :  { %5764 = vrot.lane.b32.xlu1 %v5364_v5, %s10388_s0  ;;  %v5614_v5 = vld [vmem:[%s14142_s4 + $0x30] sm:$0xff] }
 0xf62   :  { %5520 = vperm.xlu0 %10211, %v13662_v37  }
 0xfa8   :  { %v5368_v21 = vpop.permute.xlu0 %5367 }
 0xfaa   :  { %v5370_v7 = vpop.permute.xlu1 %5369 }
 0xfab   :  { %v5371_v56 = vsel %vm4333_vm0, %v5368_v21, %v5370_v7  ;;  %5375 = vst.msk [vmem:[#allocation8 + $0x8] sm:$0xff] %vm4338_vm14, %v5370_v7  ;;  %v5616_v21 = vld [vmem:[%s14142_s4 + $0x40] sm:$0xff]  ;;  %v5617_v7 = vld [vmem:[%s14142_s4 + $0x48] sm:$0xff]  ;;  %vm6224_vm0 = vcmask 56320  }
 0xfac   :  { %v5381_v24 = vpop.permute.xlu0 %5380 }
 0xfae   :  { %v5383_v20 = vpop.permute.xlu1 %5382 }
 0xfaf   :  { %v5384_v27 = vsel %vm4348_vm15, %v5381_v24, %v5383_v20  ;;  %5388 = vst.msk [vmem:[#allocation8 + $0x18] sm:$0xff] %vm4338_vm14, %v5383_v20  ;;  %v5618_v24 = vld [vmem:[%s14142_s4 + $0x50] sm:$0xff]  ;;  %v5619_v20 = vld [vmem:[%s14142_s4 + $0x58] sm:$0xff] }
 0xfb0   :  { %v5394_v58 = vpop.permute.xlu0 %5393  ;;  %v9705_v2 = vpack.c.bf16 %v5384_v27, %v5371_v56  ;;  %v13737_v56 = vpack.c.bf16 %v5617_v7, %v5616_v21  ;;  %v13747_v27 = vpack.c.bf16 %v5619_v20, %v5618_v24 }
 0xfb2   :  { %v5396_v30 = vpop.permute.xlu1 %5395  ;;  %v5496_v22 = vld [vmem:[#allocation8 + $0x8] sm:$0xff] }
 0xfb3   :  { %v5397_v43 = vsel %vm4362_vm4, %v5394_v58, %v5396_v30  ;;  %5401 = vst.msk [vmem:[#allocation8 + $0x28] sm:$0xff] %vm4338_vm14, %v5396_v30  ;;  %v5620_v58 = vld [vmem:[%s14142_s4 + $0x60] sm:$0xff]  ;;  %v5621_v30 = vld [vmem:[%s14142_s4 + $0x68] sm:$0xff]  ;;  %vm7770_vm4 = vcmask 97280  }
 0xfb4   :  { %v5407_v23 = vpop.permute.xlu0 %5406 }
 0xfb6   :  { %v5409_v52 = vpop.permute.xlu1 %5408  ;;  %v5498_v50 = vld [vmem:[#allocation8 + $0x18] sm:$0xff] }
 0xfb7   :  { %v5410_v28 = vsel %vm4376_vm1, %v5407_v23, %v5409_v52  ;;  %5414 = vst.msk [vmem:[#allocation8 + $0x38] sm:$0xff] %vm4338_vm14, %v5409_v52  ;;  %v9703_v16 = vpack.c.bf16 %v5498_v50, %v5496_v22  ;;  %v5622_v23 = vld [vmem:[%s14142_s4 + $0x70] sm:$0xff]  ;;  %v5623_v52 = vld [vmem:[%s14142_s4 + $0x78] sm:$0xff]  ;;  %v5624_v50 = vld [vmem:[%s14142_s4 + $0x80] sm:$0xff]  ;;  %vm6819_vm1 = vcmask 105472  }
 0xfb8   :  { %v5420_v10 = vpop.permute.xlu0 %5419  ;;  %v9709_v33 = vpack.c.bf16 %v5410_v28, %v5397_v43  ;;  %v13757_v43 = vpack.c.bf16 %v5621_v30, %v5620_v58  ;;  %v13767_v22 = vpack.c.bf16 %v5623_v52, %v5622_v23  ;;  %v5625_v28 = vld [vmem:[%s14142_s4 + $0x88] sm:$0xff] }
 0xfb9   :  { %9704 = vmatprep.subr.bf16.mxu0 %v9703_v16  ;;  %v13777_v16 = vpack.c.bf16 %v5625_v28, %v5624_v50 }
 0xfba   :  { %9706 = vmatpush1.bf16.msra.mxu0 %v9705_v2  ;;  %v5422_v40 = vpop.permute.xlu1 %5421  ;;  %v5500_v1 = vld [vmem:[#allocation8 + $0x28] sm:$0xff]  ;;  %v5627_v2 = vld [vmem:[%s14142_s4 + $0x98] sm:$0xff] }
 0xfbb   :  { %v5423_v51 = vsel %vm4390_vm6, %v5420_v10, %v5422_v40  ;;  %5427 = vst.msk [vmem:[#allocation8 + $0x48] sm:$0xff] %vm4338_vm14, %v5422_v40  ;;  %v5626_v10 = vld [vmem:[%s14142_s4 + $0x90] sm:$0xff] }
 0xfbc   :  { %v5433_v36 = vpop.permute.xlu0 %5432  ;;  %v13787_v40 = vpack.c.bf16 %v5627_v2, %v5626_v10 }
 0xfbe   :  { %v5435_v13 = vpop.permute.xlu1 %5434  ;;  %v5502_v29 = vld [vmem:[#allocation8 + $0x38] sm:$0xff] }
 0xfbf   :  { %v5436_v53 = vsel %vm4404_vm2, %v5433_v36, %v5435_v13  ;;  %5440 = vst.msk [vmem:[#allocation8 + $0x58] sm:$0xff] %vm4338_vm14, %v5435_v13  ;;  %v9707_v34 = vpack.c.bf16 %v5502_v29, %v5500_v1  ;;  %v5629_v36 = vld [vmem:[%s14142_s4 + $0xa8] sm:$0xff]  ;;  %v5630_v1 = vld [vmem:[%s14142_s4 + $0xb0] sm:$0xff]  ;;  %v5631_v29 = vld [vmem:[%s14142_s4 + $0xb8] sm:$0xff] }
 0xfc0   :  { %v5448_v60 = vpop.permute.xlu0 %5447  ;;  %v9713_v44 = vpack.c.bf16 %v5436_v53, %v5423_v51  ;;  %v5628_v51 = vld [vmem:[%s14142_s4 + $0xa0] sm:$0xff]  ;;  %v9753_v53 = vpack.c.bf16 %v5631_v29, %v5630_v1 }
 0xfc1   :  { %9708 = vmatprep.subr.bf16.mxu0 %v9707_v34  ;;  %v9750_v13 = vpack.c.bf16 %v5629_v36, %v5628_v51  ;;  %v5632_v34 = vld [vmem:[%s14142_s4 + $0xc0] sm:$0xff] }
 0xfc2   :  { %9710 = vmatpush1.bf16.msra.mxu0 %v9709_v33  ;;  %v5466_v3 = vpop.permute.xlu1 %5465  ;;  %v5504_v17 = vld [vmem:[#allocation8 + $0x48] sm:$0xff] }
 0xfc4   :  { %v5450_v25 = vpop.permute.xlu0 %5449 }
 0xfc5   :  { %v5453_v31 = vsel %vm4422_vm12, %v5448_v60, %v5450_v25  ;;  %v5454_v14 = vsel %vm4422_vm12, %v5450_v25, %v5452_v15  ;;  %v5615_v15 = vld [vmem:[%s14142_s4 + $0x38] sm:$0xff]  ;;  %v5633_v60 = vld [vmem:[%s14142_s4 + $0xc8] sm:$0xff]  ;;  %v5634_v25 = vld [vmem:[%s14142_s4 + $0xd0] sm:$0xff] }
 0xfc6   :  { %5458 = vst.msk [vmem:[#allocation8 + $0x68] sm:$0xff] %vm4338_vm14, %v5454_v14  ;;  %v5506_v19 = vld [vmem:[#allocation8 + $0x58] sm:$0xff]  ;;  %v5488_v54 = vpop.permute.xlu1 %5487  ;;  %v9756_v33 = vpack.c.bf16 %v5633_v60, %v5632_v34 }
 0xfc7   :  { %v9711_v18 = vpack.c.bf16 %v5506_v19, %v5504_v17 }
 0xfc8   :  { %v5468_v48 = vpop.permute.xlu0 %5467 }
 0xfc9   :  { %v5471_v59 = vsel %vm4441_vm3, %v5466_v3, %v5468_v48  ;;  %v5472_v6 = vsel %vm4441_vm3, %v5468_v48, %v5470_v35  ;;  %9712 = vmatprep.subr.bf16.mxu0 %v9711_v18  ;;  %v13727_v35 = vpack.c.bf16 %v5615_v15, %v5614_v5  ;;  %v5636_v3 = vld [vmem:[%s14142_s4 + $0xe0] sm:$0xff] }
 0xfca   :  { %5476 = vst.msk [vmem:[#allocation8 + $0x78] sm:$0xff] %vm4338_vm14, %v5472_v6  ;;  %9714 = vmatpush1.bf16.msra.mxu0 %v9713_v44  ;;  %v9717_v12 = vpack.c.bf16 %v5471_v59, %v5453_v31  ;;  %v5635_v31 = vld [vmem:[%s14142_s4 + $0xd8] sm:$0xff]  ;;  %s10399_s4 = smov 8  }
 0xfcb   :  { %v9759_v14 = vpack.c.bf16 %v5635_v31, %v5634_v25 }
 0xfcc   :  { %v5486_v45 = vpop.permute.xlu0 %5485 }
 0xfcd   :  { %v5490_v0 = vsel %vm4460_vm9, %v5486_v45, %v5488_v54  ;;  %v5508_v55 = vld [vmem:[#allocation8 + $0x68] sm:$0xff] }
 0xfce   :  { %5494 = vst.msk [vmem:[#allocation8 + $0x88] sm:$0xff] %vm4338_vm14, %v5490_v0 }
 0xfd0   :  { %v5484_v46 = vpop.permute.xlu0 %5483 }
 0xfd1   :  { %v5489_v57 = vsel %vm4460_vm9, %v5484_v46, %v5486_v45  ;;  %v5510_v11 = vld [vmem:[#allocation8 + $0x78] sm:$0xff] }
 0xfd2   :  { %v9715_v32 = vpack.c.bf16 %v5510_v11, %v5508_v55 }
 0xfd4   :  { %9716 = vmatprep.subr.bf16.mxu0 %v9715_v32 }
 0xfd5   :  { %9718 = vmatpush1.bf16.msra.mxu0 %v9717_v12  ;;  %v5512_v38 = vld [vmem:[#allocation8 + $0x88] sm:$0xff] }
 0xfd6   :  { %5543 = vmatprep.subr.mxu0 %v5512_v38  ;;  %v13860_v38 = vld [vmem:[%s14141_s8 + $0x8] sm:$0xff] }
 0xfd7   :  { %v5516_v17 = vpop.permute.xlu1 %5515 }
 0xfd9   :  { %5544 = vmatpush1.msra.mxu0 %v5489_v57 }
 0xfda   :  { %8649 = vmatmul.mubr.msk.f32.vlgmr.msra.gmra.mrb[12].mxu0 %vm4492_vm5, %v13651_v63  ;;  %9719 = vmatprep.subr.bf16.mxu0 %v10371_v47 }
 0xfdb   :  { %5597 = vmatprep.mubr.f32.mxu0 %v10370_v4  ;;  %9721 = vmatpush1.bf16.msra.mxu0 %v13692_v26  ;;  %v5763_v45 = vpop.permute.xlu1 %5762 }
 0xfdc   :  { %9722 = vmatprep.subr.bf16.mxu0 %v10371_v47 }
 0xfde   :  { %8650 = vmatmul.mubr.msk.f32.gmra.mrb[14].mxu0 %vm4492_vm5, %v13662_v37 }
 0xfdf   :  { %9724 = vmatpush1.bf16.msra.mxu0 %v13705_v49  ;;  %v5765_v12 = vpop.permute.xlu1 %5764 }
 0xfe0   :  { %9725 = vmatprep.subr.bf16.mxu0 %v10371_v47  ;;  %v5766_v41 = vsel %vm4390_vm6, %v5763_v45, %v5765_v12 }
 0xfe1   :  { %v5521_v59 = vpop.permute.xlu0 %5520 }
 0xfe3   :  { %9727 = vmatpush1.bf16.msra.mxu0 %v13717_v39 }
 0xfe4   :  { %9728 = vmatprep.subr.bf16.mxu0 %v10371_v47 }
 0xfe7   :  { %9730 = vmatpush1.bf16.msra.mxu0 %v13727_v35 }
 0xfe8   :  { %9731 = vmatprep.subr.bf16.mxu0 %v10371_v47 }
 0xfeb   :  { %9733 = vmatpush1.bf16.msra.mxu0 %v13737_v56 }
 0xfec   :  { %9734 = vmatprep.subr.bf16.mxu0 %v10371_v47 }
 0xfef   :  { %9736 = vmatpush1.bf16.msra.mxu0 %v13747_v27 }
 0xff0   :  { %9737 = vmatprep.subr.bf16.mxu0 %v10371_v47 }
 0xff3   :  { %9739 = vmatpush1.bf16.msra.mxu0 %v13757_v43 }
 0xff4   :  { %9740 = vmatprep.subr.bf16.mxu0 %v10371_v47 }
 0xff7   :  { %9742 = vmatpush1.bf16.msra.mxu0 %v13767_v22 }
 0xff8   :  { %9743 = vmatprep.subr.bf16.mxu0 %v10371_v47 }
 0xffb   :  { %9745 = vmatpush1.bf16.msra.mxu0 %v13777_v16 }
 0xffc   :  { %9746 = vmatprep.subr.bf16.mxu0 %v10371_v47 }
 0xfff   :  { %9748 = vmatpush1.bf16.msra.mxu0 %v13787_v40 }
0x1000   :  { %9749 = vmatprep.subr.bf16.mxu0 %v10371_v47 }
0x1003   :  { %9751 = vmatpush1.bf16.msra.mxu0 %v9750_v13 }
0x1004   :  { %9752 = vmatprep.subr.bf16.mxu0 %v10371_v47 }
0x1007   :  { %9754 = vmatpush1.bf16.msra.mxu0 %v9753_v53 }
0x1008   :  { %9755 = vmatprep.subr.bf16.mxu0 %v10371_v47 }
0x100b   :  { %9757 = vmatpush1.bf16.msra.mxu0 %v9756_v33 }
0x100c   :  { %9758 = vmatprep.subr.bf16.mxu0 %v10371_v47 }
0x100f   :  { %9760 = vmatpush1.bf16.msra.mxu0 %v9759_v14 }
0x1010   :  { %5699 = vmatprep.subr.mxu0 %v10370_v4 }
0x1013   :  { %5700 = vmatpush1.msra.mxu0 %v5636_v3 }
0x1014   :  { %9761 = vmatprep.subr.bf16.mxu0 %v10371_v47 }
0x10ad   :  { %v5593_v19 = vpop.f32.mrb[12].mxu0 }
0x10ae   :  { %v5594_v18 = vadd.f32 %v5593_v19, %v5516_v17  ;;  %v5595_v48 = vpop.f32.mrb[13].mxu0 }
0x10af   :  { %v5596_v44 = vadd.f32 %v5595_v48, %v5516_v17 }
0x10b0   :  { %v5604_v0 = vmax.f32 %v5594_v18, 0.0 }
0x10b1   :  { %v5605_v6 = vmax.f32 %v5596_v44, 0.0  ;;  %v5599_v54 = vpop.f32.mrb[14].mxu0 }
0x10b2   :  { %v5600_v46 = vadd.f32 %v5599_v54, %v5521_v59  ;;  %v5601_v57 = vpop.f32.mrb[15].mxu0 }
0x10b3   :  { %v5602_v55 = vadd.f32 %v5601_v57, %v5521_v59  ;;  %8651 = vmatprep.mubr.msk.f32.mxu0 %vm4338_vm14, %v5605_v6 }
0x10b4   :  { %5708 = vmatmul.mubr.f32.vlgmr.msra.gmra.mrb[16].mxu0 %v5604_v0  ;;  %v5606_v32 = vmax.f32 %v5600_v46, 0.0 }
0x10b5   :  { %v5607_v11 = vmax.f32 %v5602_v55, 0.0  ;;  %9763 = vmatpush1.bf16.msra.mxu0 %v13692_v26 }
0x10b6   :  { %9764 = vmatprep.subr.bf16.mxu0 %v10371_v47 }
0x10b7   :  { %8652 = vmatprep.mubr.msk.f32.mxu0 %vm4338_vm14, %v5607_v11 }
0x10b8   :  { %5713 = vmatmul.mubr.f32.gmra.mrb[18].mxu0 %v5606_v32 }
0x10b9   :  { %9766 = vmatpush1.bf16.msra.mxu0 %v13705_v49  ;;  %8653 = vmatprep.mubr.msk.f32.mxu0 %vm4338_vm14, %v5765_v12  ;;  %vm14196_vm14 = vcmask 64512  }
0x10ba   :  { %9767 = vmatprep.subr.bf16.mxu0 %v10371_v47  ;;  %vm14197_vm15 = vmmov %vm14196_vm14 }
0x10bd   :  { %9769 = vmatpush1.bf16.msra.mxu0 %v13717_v39 }
0x10be   :  { %9770 = vmatprep.subr.bf16.mxu0 %v10371_v47 }
0x10c1   :  { %9772 = vmatpush1.bf16.msra.mxu0 %v13727_v35 }
0x10c2   :  { %9773 = vmatprep.subr.bf16.mxu0 %v10371_v47 }
0x10c5   :  { %9775 = vmatpush1.bf16.msra.mxu0 %v13737_v56 }
0x10c6   :  { %9776 = vmatprep.subr.bf16.mxu0 %v10371_v47 }
0x10c9   :  { %9778 = vmatpush1.bf16.msra.mxu0 %v13747_v27 }
0x10ca   :  { %9779 = vmatprep.subr.bf16.mxu0 %v10371_v47 }
0x10cd   :  { %9781 = vmatpush1.bf16.msra.mxu0 %v13757_v43 }
0x10ce   :  { %9782 = vmatprep.subr.bf16.mxu0 %v10371_v47 }
0x10d1   :  { %9784 = vmatpush1.bf16.msra.mxu0 %v13767_v22 }
0x10d2   :  { %9785 = vmatprep.subr.bf16.mxu0 %v10371_v47 }
0x10d5   :  { %9787 = vmatpush1.bf16.msra.mxu0 %v13777_v16 }
0x10d6   :  { %9788 = vmatprep.subr.bf16.mxu0 %v10371_v47 }
0x10d9   :  { %9790 = vmatpush1.bf16.msra.mxu0 %v13787_v40 }
0x10da   :  { %9791 = vmatprep.subr.bf16.mxu0 %v10371_v47 }
0x10dd   :  { %9793 = vmatpush1.bf16.msra.mxu0 %v9750_v13 }
0x10de   :  { %9794 = vmatprep.subr.bf16.mxu0 %v10371_v47 }
0x10e1   :  { %9796 = vmatpush1.bf16.msra.mxu0 %v9753_v53 }
0x10e2   :  { %9797 = vmatprep.subr.bf16.mxu0 %v10371_v47 }
0x10e5   :  { %9799 = vmatpush1.bf16.msra.mxu0 %v9756_v33 }
0x10e6   :  { %9800 = vmatprep.subr.bf16.mxu0 %v10371_v47 }
0x10e9   :  { %9802 = vmatpush1.bf16.msra.mxu0 %v9759_v14 }
0x10ea   :  { %5826 = vmatprep.subr.mxu0 %v10370_v4  ;;  %v13867_v4 = vld [vmem:[%s14141_s8 + $0x30] sm:$0xff] }
0x10ed   :  { %5827 = vmatpush1.msra.mxu0 %v5636_v3 }
0x10ee   :  { %5835 = vmatmul.mubr.f32.vlgmr.msra.gmra.mrb[20].mxu0 %v5766_v41 }
0x1187   :  { %v5709_v8 = vpop.f32.mrb[16].mxu0 }
0x1188   :  { %5720 = vrot.lane.b32.xlu0 %v5709_v8, %s10399_s4  ;;  %v5711_v47 = vpop.f32.mrb[17].mxu0 }
0x118b   :  { %v5714_v26 = vpop.f32.mrb[18].mxu0 }
0x118c   :  { %5722 = vrot.lane.b32.xlu1 %v5714_v26, %s10399_s4  ;;  %v5716_v62 = vpop.f32.mrb[19].mxu0  ;;  %5852 = vrot.lane.b32.xlu0 %v13860_v38, %s10400_s17 }
0x1190   :  { %5854 = vrot.lane.b32.xlu1 %v13867_v4, %s10400_s17 }
0x1194   :  { %5941 = vrot.lane.b32.xlu1 %v13651_v63, %s10401_s28 }
0x11c1   :  { %v5836_v9 = vpop.f32.mrb[20].mxu0 }
0x11c2   :  { %v5838_v49 = vpop.f32.mrb[21].mxu0  ;;  %8872 = vmatprep.subr.mxu1 %v5836_v9 }
0x11c3   :  { %8873 = vmatpush3.msra.mxu1 %v5836_v9 }
0x11fa   :  { %v5721_v61 = vpop.permute.xlu0 %5720 }
0x11fb   :  { %5727 = vst.msk [vmem:[#allocation6] sm:$0xff] %vm5726_vm13, %v5721_v61 }
0x11fe   :  { %v5723_v42 = vpop.permute.xlu1 %5722  ;;  %v5853_v39 = vpop.permute.xlu0 %5852 }
0x11ff   :  { %5728 = vst.msk [vmem:[#allocation6 + $0x8] sm:$0xff] %vm5726_vm13, %v5723_v42  ;;  %8874 = vmatprep.mubr.msk.f32.mxu1 %vm14196_vm14, %v5853_v39 }
0x1202   :  { %v5855_v5 = vpop.permute.xlu1 %5854  ;;  %v5937_v15 = vld [vmem:[#allocation6] sm:$0xff] }
0x1203   :  { %8875 = vmatmul.mubr.msk.f32.vlgmr.msra.gmra.mrb[8].mxu1 %vm14197_vm15, %v5855_v5 }
0x1206   :  { %v5938_v35 = vld [vmem:[#allocation6 + $0x8] sm:$0xff]  ;;  %v5942_v21 = vpop.permute.xlu1 %5941 }
0x1207   :  { %v10217_v7 = vpack.i.bf16 %v5938_v35, %v5937_v15  ;;  %8881 = vmatprep.mubr.msk.f32.mxu1 %vm38_vm10, %v5942_v21 }
0x1209   :  { %10218 = vrot.lane.b32.xlu1 %v10217_v7, %s10373_s24  ;;  %10213 = vrot.lane.b32.xlu0 %v10217_v7, %s10374_s16 }
0x120d   :  { %6034 = vrot.lane.b32.xlu1 %v13662_v37, %s10402_s18  ;;  %5943 = vrot.lane.b32.xlu0 %v13662_v37, %s10401_s28  ;;  %s10414_s28 = smov 77  }
0x1211   :  { %6121 = vrot.lane.b32.xlu1 %v13651_v63, %s10403_s10  ;;  %6032 = vrot.lane.b32.xlu0 %v13651_v63, %s10402_s18 }
0x1215   :  { %10228 = vrot.lane.b32.xlu1 %v10217_v7, %s10386_s30  ;;  %10223 = vrot.lane.b32.xlu0 %v10217_v7, %s10404_s3 }
0x1219   :  { %6218 = vrot.lane.b32.xlu1 %v13860_v38, %s10405_s13  ;;  %6123 = vrot.lane.b32.xlu0 %v13662_v37, %s10403_s10  ;;  %s10417_s10 = smov 29  }
0x121d   :  { %6222 = vrot.lane.b32.xlu1 %v13867_v4, %s10405_s13  ;;  %6216 = vrot.lane.b32.xlu0 %v13651_v63, %s10405_s13  ;;  %v10411_v63 = vmov 98  }
0x121e   :  { %10257 = vset.pattern.permute.xlu1 %v10411_v63  ;;  %10258 = vset.pattern.permute.xlu0 %v10411_v63 }
0x1221   :  { %6314 = vrot.lane.b32.xlu1 %v13860_v38, %s10391_s14  ;;  %6220 = vrot.lane.b32.xlu0 %v13662_v37, %s10405_s13  ;;  %v10412_v37 = vmov 89  }
0x1225   :  { %10238 = vrot.lane.b32.xlu1 %v10217_v7, %s10391_s14  ;;  %10233 = vrot.lane.b32.xlu0 %v10217_v7, %s10406_s23 }
0x1229   :  { %6407 = vrot.lane.b32.xlu1 %v13867_v4, %s10382_s2  ;;  %6316 = vrot.lane.b32.xlu0 %v13867_v4, %s10391_s14 }
0x122d   :  { %6496 = vrot.lane.b32.xlu1 %v13860_v38, %s10407_s21  ;;  %6405 = vrot.lane.b32.xlu0 %v13860_v38, %s10382_s2 }
0x1231   :  { %10248 = vrot.lane.b32.xlu1 %v10217_v7, %s10408_s27  ;;  %10243 = vrot.lane.b32.xlu0 %v10217_v7, %s10409_s7 }
0x1235   :  { %6498 = vrot.lane.b32.xlu0 %v13867_v4, %s10407_s21  ;;  %6589 = vrot.lane.b32.xlu1 %v13867_v4, %s10410_s20  ;;  %s10419_s21 = smov 124  }
0x1239   :  { %6587 = vrot.lane.b32.xlu0 %v13860_v38, %s10410_s20  ;;  %6678 = vrot.lane.b32.xlu1 %v13860_v38, %s10402_s18 }
0x123d   :  { %10253 = vrot.lane.b32.xlu0 %v10217_v7, %s10387_s11  ;;  %5844 = vperm.xlu1 %10257, %v13860_v38  }
0x1241   :  { %6680 = vrot.lane.b32.xlu0 %v13867_v4, %s10402_s18  ;;  %10259 = vset.pattern.permute.xlu1 %v10412_v37  ;;  %s10415_s18 = smov 13  }
0x1242   :  { %6770 = vperm.xlu1 %10259, %v13860_v38  }
0x1245   :  { %5849 = vperm.xlu0 %10258, %v13867_v4  }
0x1246   :  { %6774 = vperm.xlu1 %10259, %v13867_v4  }
0x127b   :  { %v10214_v56 = vpop.permute.xlu0 %10213  ;;  %v10219_v24 = vpop.permute.xlu1 %10218 }
0x127c   :  { %v10216_v20 = vunpack.i.h.bf16 %v10214_v56  ;;  %v10215_v27 = vunpack.i.l.bf16 %v10214_v56  ;;  %v10221_v58 = vunpack.i.h.bf16 %v10219_v24  ;;  %v10220_v30 = vunpack.i.l.bf16 %v10219_v24 }
0x127e   :  { %v9803_v43 = vpack.c.bf16 %v10216_v20, %v10215_v27  ;;  %v9807_v22 = vpack.c.bf16 %v10221_v58, %v10220_v30  ;;  %v13938_v58 = vld [vmem:[%s14143_s5] ss:$0 sm:$0xff] }
0x127f   :  { %v5944_v23 = vpop.permute.xlu0 %5943  ;;  %v6035_v52 = vpop.permute.xlu1 %6034 }
0x1280   :  { %9804 = vmatprep.subr.bf16.mxu1 %v9803_v43 }
0x1281   :  { %9806 = vmatpush3.bf16.msra.mxu1 %v9803_v43 }
0x1282   :  { %9808 = vmatprep.subr.bf16.mxu1 %v9807_v22 }
0x1283   :  { %v6033_v50 = vpop.permute.xlu0 %6032  ;;  %v6122_v28 = vpop.permute.xlu1 %6121 }
0x1284   :  { %8882 = vmatmul.mubr.msk.f32.vlgmr.msra.gmra.mrb[8].mxu1 %vm38_vm10, %v5944_v23 }
0x1285   :  { %9810 = vmatpush3.bf16.msra.mxu1 %v9807_v22  ;;  %8888 = vmatprep.mubr.msk.f32.mxu1 %vm38_vm10, %v6033_v50  ;;  %v13947_v50 = vld [vmem:[%s14141_s8 + $0x10] sm:$0xff] }
0x1287   :  { %v10224_v16 = vpop.permute.xlu0 %10223  ;;  %v10229_v10 = vpop.permute.xlu1 %10228 }
0x1288   :  { %v10226_v2 = vunpack.i.h.bf16 %v10224_v16  ;;  %v10225_v40 = vunpack.i.l.bf16 %v10224_v16  ;;  %v10231_v51 = vunpack.i.h.bf16 %v10229_v10  ;;  %v10230_v36 = vunpack.i.l.bf16 %v10229_v10 }
0x128a   :  { %v9811_v13 = vpack.c.bf16 %v10226_v2, %v10225_v40  ;;  %v9815_v53 = vpack.c.bf16 %v10231_v51, %v10230_v36 }
0x128b   :  { %v6124_v1 = vpop.permute.xlu0 %6123  ;;  %v6219_v29 = vpop.permute.xlu1 %6218 }
0x128c   :  { %8889 = vmatmul.mubr.msk.f32.vlgmr.msra.gmra.mrb[8].mxu1 %vm38_vm10, %v6035_v52  ;;  %9812 = vmatprep.subr.bf16.mxu1 %v9811_v13 }
0x128d   :  { %9814 = vmatpush3.bf16.msra.mxu1 %v9811_v13  ;;  %8895 = vmatprep.mubr.msk.f32.mxu1 %vm38_vm10, %v6122_v28  ;;  %v13954_v28 = vld [vmem:[%s14141_s8 + $0x38] sm:$0xff]  ;;  %v10418_v13 = vmov 115  }
0x128e   :  { %9816 = vmatprep.subr.bf16.mxu1 %v9815_v53  ;;  %10301 = vset.pattern.permute.xlu1 %v10418_v13 }
0x128f   :  { %v6217_v34 = vpop.permute.xlu0 %6216  ;;  %v6223_v60 = vpop.permute.xlu1 %6222  ;;  %10300 = vset.pattern.permute.xlu0 %v10418_v13 }
0x1290   :  { %v6225_v33 = vsel %vm6224_vm0, %v6217_v34, %v6219_v29 }
0x1293   :  { %v6221_v25 = vpop.permute.xlu0 %6220  ;;  %v6315_v31 = vpop.permute.xlu1 %6314 }
0x1294   :  { %8896 = vmatmul.mubr.msk.f32.vlgmr.msra.gmra.mrb[8].mxu1 %vm38_vm10, %v6124_v1  ;;  %v6226_v59 = vsel %vm6224_vm0, %v6221_v25, %v6223_v60 }
0x1295   :  { %9818 = vmatpush3.bf16.msra.mxu1 %v9815_v53  ;;  %8902 = vmatprep.mubr.msk.f32.mxu1 %vm38_vm10, %v6225_v33 }
0x1297   :  { %v10234_v14 = vpop.permute.xlu0 %10233  ;;  %v10239_v3 = vpop.permute.xlu1 %10238 }
0x1298   :  { %v10236_v17 = vunpack.i.h.bf16 %v10234_v14  ;;  %v10235_v19 = vunpack.i.l.bf16 %v10234_v14  ;;  %v10241_v18 = vunpack.i.h.bf16 %v10239_v3  ;;  %v10240_v48 = vunpack.i.l.bf16 %v10239_v3 }
0x129a   :  { %v9819_v44 = vpack.c.bf16 %v10236_v17, %v10235_v19  ;;  %v9823_v45 = vpack.c.bf16 %v10241_v18, %v10240_v48 }
0x129b   :  { %v6317_v6 = vpop.permute.xlu0 %6316  ;;  %v6408_v54 = vpop.permute.xlu1 %6407 }
0x129c   :  { %8903 = vmatmul.mubr.msk.f32.vlgmr.msra.gmra.mrb[8].mxu1 %vm38_vm10, %v6226_v59  ;;  %9820 = vmatprep.subr.bf16.mxu1 %v9819_v44 }
0x129d   :  { %9822 = vmatpush3.bf16.msra.mxu1 %v9819_v44  ;;  %8909 = vmatprep.mubr.msk.f32.mxu1 %vm38_vm10, %v6315_v31 }
0x129e   :  { %9824 = vmatprep.subr.bf16.mxu1 %v9823_v45 }
0x129f   :  { %v6406_v0 = vpop.permute.xlu0 %6405  ;;  %v6497_v46 = vpop.permute.xlu1 %6496 }
0x12a3   :  { %v10244_v57 = vpop.permute.xlu0 %10243  ;;  %v10249_v32 = vpop.permute.xlu1 %10248 }
0x12a4   :  { %v10246_v55 = vunpack.i.h.bf16 %v10244_v57  ;;  %v10245_v11 = vunpack.i.l.bf16 %v10244_v57  ;;  %8910 = vmatmul.mubr.msk.f32.vlgmr.msra.gmra.mrb[8].mxu1 %vm38_vm10, %v6317_v6  ;;  %v10251_v8 = vunpack.i.h.bf16 %v10249_v32  ;;  %v10250_v47 = vunpack.i.l.bf16 %v10249_v32 }
0x12a5   :  { %9826 = vmatpush3.bf16.msra.mxu1 %v9823_v45  ;;  %8916 = vmatprep.mubr.msk.f32.mxu1 %vm38_vm10, %v6406_v0 }
0x12a6   :  { %v9827_v12 = vpack.c.bf16 %v10246_v55, %v10245_v11  ;;  %v9831_v62 = vpack.c.bf16 %v10251_v8, %v10250_v47 }
0x12a7   :  { %v6499_v41 = vpop.permute.xlu0 %6498  ;;  %v6590_v39 = vpop.permute.xlu1 %6589 }
0x12a8   :  { %9828 = vmatprep.subr.bf16.mxu1 %v9827_v12 }
0x12ab   :  { %v6588_v26 = vpop.permute.xlu0 %6587  ;;  %v6679_v5 = vpop.permute.xlu1 %6678 }
0x12ac   :  { %8917 = vmatmul.mubr.msk.f32.vlgmr.msra.gmra.mrb[8].mxu1 %vm38_vm10, %v6408_v54 }
0x12ad   :  { %9830 = vmatpush3.bf16.msra.mxu1 %v9827_v12  ;;  %8923 = vmatprep.mubr.msk.f32.mxu1 %vm38_vm10, %v6497_v46 }
0x12ae   :  { %9832 = vmatprep.subr.bf16.mxu1 %v9831_v62 }
0x12af   :  { %v10254_v9 = vpop.permute.xlu0 %10253 }
0x12b0   :  { %v10256_v49 = vunpack.i.h.bf16 %v10254_v9  ;;  %v10255_v61 = vunpack.i.l.bf16 %v10254_v9 }
0x12b2   :  { %v9835_v42 = vpack.c.bf16 %v10256_v49, %v10255_v61 }
0x12b3   :  { %v6681_v15 = vpop.permute.xlu0 %6680 }
0x12b4   :  { %8924 = vmatmul.mubr.msk.f32.vlgmr.msra.gmra.mrb[8].mxu1 %vm38_vm10, %v6499_v41 }
0x12b5   :  { %9834 = vmatpush3.bf16.msra.mxu1 %v9831_v62  ;;  %8930 = vmatprep.mubr.msk.f32.mxu1 %vm38_vm10, %v6588_v26 }
0x12b6   :  { %9836 = vmatprep.subr.bf16.mxu1 %v9835_v42 }
0x12bc   :  { %8931 = vmatmul.mubr.msk.f32.vlgmr.msra.gmra.mrb[8].mxu1 %vm38_vm10, %v6590_v39  ;;  %v5845_v35 = vpop.permute.xlu1 %5844 }
0x12bd   :  { %9838 = vmatpush3.bf16.msra.mxu1 %v9835_v42  ;;  %8937 = vmatprep.mubr.msk.f32.mxu1 %vm38_vm10, %v6679_v5 }
0x12c1   :  { %v6771_v21 = vpop.permute.xlu1 %6770 }
0x12c4   :  { %8938 = vmatmul.mubr.msk.f32.vlgmr.msra.gmra.mrb[8].mxu1 %vm38_vm10, %v6681_v15  ;;  %v5850_v7 = vpop.permute.xlu0 %5849 }
0x12c5   :  { %v6775_v24 = vpop.permute.xlu1 %6774 }
0x1397   :  { %v8939_v63 = vpop.f32.mrb[8].mxu1 }
0x1398   :  { %v9937_v37 = vadd.f32 %v8939_v63, %v5850_v7  ;;  %v6758_v56 = vpop.f32.mrb[9].mxu1 }
0x1399   :  { %v9939_v20 = vadd.f32 %v6758_v56, %v5845_v35 }
0x139a   :  { %v9938_v27 = vadd.f32 %v9937_v37, %v6775_v24 }
0x139b   :  { %v9940_v30 = vadd.f32 %v9939_v20, %v6771_v21 }
0x139c   :  { %v6782_v43 = vmax.f32 %v9938_v27, 0.0 }
0x139d   :  { %v6781_v23 = vmax.f32 %v9940_v30, 0.0 }
0x139e   :  { %v6790_v52 = vmul.f32 %v13938_v58, %v6782_v43 }
0x139f   :  { %v6789_v22 = vmul.f32 %v13938_v58, %v6781_v23 }
0x13a0   :  { %6795 = vrot.lane.b32.xlu1 %v6790_v52, %s10399_s4 }
0x13a1   :  { %6793 = vrot.lane.b32.xlu0 %v6789_v22, %s10399_s4 }
0x13a4   :  { %6998 = vrot.lane.b32.xlu1 %v13947_v50, %s10404_s3 }
0x13a8   :  { %7091 = vrot.lane.b32.xlu1 %v13954_v28, %s10375_s22 }
0x1412   :  { %v6796_v16 = vpop.permute.xlu1 %6795 }
0x1413   :  { %6800 = vst.msk [vmem:[#allocation5 + $0x8] sm:$0xff] %vm5726_vm13, %v6796_v16  ;;  %v6794_v10 = vpop.permute.xlu0 %6793 }
0x1414   :  { %6799 = vst.msk [vmem:[#allocation5] sm:$0xff] %vm5726_vm13, %v6794_v10 }
0x1416   :  { %v6999_v2 = vpop.permute.xlu1 %6998 }
0x1417   :  { %8958 = vmatprep.mubr.msk.f32.mxu0 %vm38_vm10, %v6999_v2 }
0x141a   :  { %v6802_v40 = vld [vmem:[#allocation5 + $0x8] sm:$0xff]  ;;  %v7092_v1 = vpop.permute.xlu1 %7091 }
0x141b   :  { %v6801_v51 = vld [vmem:[#allocation5] sm:$0xff] }
0x141c   :  { %v10265_v36 = vpack.i.bf16 %v6802_v40, %v6801_v51 }
0x141e   :  { %10266 = vrot.lane.b32.xlu1 %v10265_v36, %s10386_s30  ;;  %10261 = vrot.lane.b32.xlu0 %v10265_v36, %s10404_s3 }
0x1422   :  { %7186 = vrot.lane.b32.xlu1 %v6802_v40, %s10406_s23  ;;  %7000 = vrot.lane.b32.xlu0 %v13954_v28, %s10404_s3 }
0x1426   :  { %7182 = vrot.lane.b32.xlu1 %v13954_v28, %s10413_s25  ;;  %7089 = vrot.lane.b32.xlu0 %v13947_v50, %s10375_s22  ;;  %s10416_s22 = smov 45  }
0x142a   :  { %7271 = vrot.lane.b32.xlu1 %v13947_v50, %s10414_s28  ;;  %7180 = vrot.lane.b32.xlu0 %v13947_v50, %s10413_s25 }
0x142e   :  { %7364 = vrot.lane.b32.xlu1 %v13954_v28, %s10362_s26  ;;  %7184 = vrot.lane.b32.xlu0 %v6801_v51, %s10406_s23 }
0x1432   :  { %6813 = vrot.lane.b32.xlu1 %v13947_v50, %s10415_s18  ;;  %7273 = vrot.lane.b32.xlu0 %v13954_v28, %s10414_s28 }
0x1436   :  { %10276 = vrot.lane.b32.xlu1 %v10265_v36, %s10409_s7  ;;  %10271 = vrot.lane.b32.xlu0 %v10265_v36, %s10391_s14 }
0x143a   :  { %6817 = vrot.lane.b32.xlu1 %v13954_v28, %s10415_s18  ;;  %7362 = vrot.lane.b32.xlu0 %v13947_v50, %s10362_s26 }
0x143e   :  { %10286 = vrot.lane.b32.xlu1 %v10265_v36, %s10408_s27  ;;  %6811 = vrot.lane.b32.xlu0 %v13860_v38, %s10415_s18 }
0x1442   :  { %7455 = vrot.lane.b32.xlu1 %v13954_v28, %s10416_s22  ;;  %6815 = vrot.lane.b32.xlu0 %v13867_v4, %s10415_s18 }
0x1446   :  { %10296 = vrot.lane.b32.xlu1 %v10265_v36, %s10387_s11  ;;  %10281 = vrot.lane.b32.xlu0 %v10265_v36, %s10374_s16 }
0x144a   :  { %7453 = vrot.lane.b32.xlu0 %v13947_v50, %s10416_s22  ;;  %7544 = vrot.lane.b32.xlu1 %v13947_v50, %s10417_s10 }
0x144e   :  { %10291 = vrot.lane.b32.xlu0 %v10265_v36, %s10373_s24  ;;  %7546 = vrot.lane.b32.xlu1 %v13954_v28, %s10417_s10 }
0x1452   :  { %6909 = vrot.lane.b32.xlu0 %v13860_v38, %s10417_s10  ;;  %7640 = vperm.xlu1 %10301, %v13954_v28  }
0x1456   :  { %6911 = vrot.lane.b32.xlu0 %v13867_v4, %s10417_s10 }
0x145a   :  { %7636 = vperm.xlu0 %10300, %v13947_v50  }
0x1490   :  { %v10267_v29 = vpop.permute.xlu1 %10266  ;;  %v10262_v53 = vpop.permute.xlu0 %10261 }
0x1491   :  { %v10269_v34 = vunpack.i.h.bf16 %v10267_v29  ;;  %v10268_v60 = vunpack.i.l.bf16 %v10267_v29  ;;  %v10264_v33 = vunpack.i.h.bf16 %v10262_v53  ;;  %v10263_v25 = vunpack.i.l.bf16 %v10262_v53 }
0x1493   :  { %v9847_v31 = vpack.c.bf16 %v10264_v33, %v10263_v25  ;;  %v9851_v17 = vpack.c.bf16 %v10269_v34, %v10268_v60 }
0x1494   :  { %v13995_v14 = vpop.permute.xlu1 %7186  ;;  %v7001_v3 = vpop.permute.xlu0 %7000 }
0x1495   :  { %9848 = vmatprep.subr.bf16.mxu0 %v9847_v31 }
0x1496   :  { %9850 = vmatpush3.bf16.msra.mxu0 %v9847_v31 }
0x1497   :  { %9852 = vmatprep.subr.bf16.mxu0 %v9851_v17 }
0x1498   :  { %v7183_v38 = vpop.permute.xlu1 %7182  ;;  %v7090_v19 = vpop.permute.xlu0 %7089 }
0x1499   :  { %8959 = vmatmul.mubr.msk.f32.vlgmr.msra.gmra.mrb[22].mxu0 %vm38_vm10, %v7001_v3 }
0x149a   :  { %9854 = vmatpush3.bf16.msra.mxu0 %v9851_v17  ;;  %8965 = vmatprep.mubr.msk.f32.mxu0 %vm38_vm10, %v7090_v19  ;;  %v7662_v17 = vld [vmem:[%s14141_s8 + $0x18] sm:$0xff] }
0x149c   :  { %v7272_v4 = vpop.permute.xlu1 %7271  ;;  %v7181_v18 = vpop.permute.xlu0 %7180 }
0x14a0   :  { %v7365_v48 = vpop.permute.xlu1 %7364  ;;  %v13999_v44 = vpop.permute.xlu0 %7184 }
0x14a1   :  { %v9855_v59 = vpack.c.bf16 %v13995_v14, %v13999_v44  ;;  %8966 = vmatmul.mubr.msk.f32.vlgmr.msra.gmra.mrb[22].mxu0 %vm38_vm10, %v7092_v1 }
0x14a2   :  { %8972 = vmatprep.mubr.msk.f32.mxu0 %vm38_vm10, %v7181_v18 }
0x14a3   :  { %9856 = vmatprep.subr.bf16.mxu0 %v9855_v59 }
0x14a4   :  { %v6814_v6 = vpop.permute.xlu1 %6813  ;;  %v7274_v54 = vpop.permute.xlu0 %7273  ;;  %9858 = vmatpush3.bf16.msra.mxu0 %v9855_v59 }
0x14a8   :  { %v10277_v45 = vpop.permute.xlu1 %10276  ;;  %v10272_v0 = vpop.permute.xlu0 %10271 }
0x14a9   :  { %v10279_v46 = vunpack.i.h.bf16 %v10277_v45  ;;  %v10278_v57 = vunpack.i.l.bf16 %v10277_v45  ;;  %v10274_v55 = vunpack.i.h.bf16 %v10272_v0  ;;  %v10273_v11 = vunpack.i.l.bf16 %v10272_v0  ;;  %8973 = vmatmul.mubr.msk.f32.vlgmr.msra.gmra.mrb[22].mxu0 %vm38_vm10, %v7183_v38 }
0x14aa   :  { %8979 = vmatprep.mubr.msk.f32.mxu0 %vm38_vm10, %v7272_v4 }
0x14ab   :  { %v9859_v32 = vpack.c.bf16 %v10274_v55, %v10273_v11  ;;  %v9863_v8 = vpack.c.bf16 %v10279_v46, %v10278_v57 }
0x14ac   :  { %v6818_v12 = vpop.permute.xlu1 %6817  ;;  %v7363_v41 = vpop.permute.xlu0 %7362 }
0x14ad   :  { %9860 = vmatprep.subr.bf16.mxu0 %v9859_v32 }
0x14ae   :  { %9862 = vmatpush3.bf16.msra.mxu0 %v9859_v32 }
0x14af   :  { %9864 = vmatprep.subr.bf16.mxu0 %v9863_v8 }
0x14b0   :  { %v10287_v47 = vpop.permute.xlu1 %10286  ;;  %v6812_v26 = vpop.permute.xlu0 %6811 }
0x14b1   :  { %v10289_v62 = vunpack.i.h.bf16 %v10287_v47  ;;  %v10288_v9 = vunpack.i.l.bf16 %v10287_v47  ;;  %v6820_v49 = vsel %vm6819_vm1, %v6812_v26, %v6814_v6  ;;  %8980 = vmatmul.mubr.msk.f32.vlgmr.msra.gmra.mrb[22].mxu0 %vm38_vm10, %v7274_v54  ;;  %v7664_v6 = vld [vmem:[%s14141_s8 + $0x40] sm:$0xff]  ;;  %v10424_v54 = vmov 4  }
0x14b2   :  { %8944 = vmatprep.mubr.msk.f32.mxu1 %vm38_vm10, %v6820_v49  ;;  %9866 = vmatpush3.bf16.msra.mxu0 %v9863_v8 }
0x14b3   :  { %v9867_v61 = vpack.c.bf16 %v10289_v62, %v10288_v9  ;;  %8986 = vmatprep.mubr.msk.f32.mxu0 %vm38_vm10, %v7363_v41  ;;  %10347 = vset.pattern.permute.xlu0 %v10424_v54 }
0x14b4   :  { %v7456_v42 = vpop.permute.xlu1 %7455  ;;  %v6816_v39 = vpop.permute.xlu0 %6815  ;;  %10348 = vset.pattern.permute.xlu1 %v10424_v54 }
0x14b5   :  { %9868 = vmatprep.subr.bf16.mxu0 %v9867_v61  ;;  %v6821_v27 = vsel %vm6819_vm1, %v6816_v39, %v6818_v12 }
0x14b8   :  { %v10297_v5 = vpop.permute.xlu1 %10296  ;;  %v10282_v15 = vpop.permute.xlu0 %10281 }
0x14b9   :  { %v10299_v35 = vunpack.i.h.bf16 %v10297_v5  ;;  %v10298_v21 = vunpack.i.l.bf16 %v10297_v5  ;;  %v10284_v7 = vunpack.i.h.bf16 %v10282_v15  ;;  %v10283_v63 = vunpack.i.l.bf16 %v10282_v15  ;;  %8987 = vmatmul.mubr.msk.f32.vlgmr.msra.gmra.mrb[22].mxu0 %vm38_vm10, %v7365_v48 }
0x14ba   :  { %9870 = vmatpush3.bf16.msra.mxu0 %v9867_v61 }
0x14bb   :  { %v9871_v37 = vpack.c.bf16 %v10299_v35, %v10298_v21  ;;  %v9839_v56 = vpack.c.bf16 %v10284_v7, %v10283_v63 }
0x14bc   :  { %v7454_v24 = vpop.permute.xlu0 %7453  ;;  %v7545_v20 = vpop.permute.xlu1 %7544 }
0x14bd   :  { %9840 = vmatprep.subr.bf16.mxu1 %v9839_v56  ;;  %8993 = vmatprep.mubr.msk.f32.mxu0 %vm38_vm10, %v7454_v24 }
0x14be   :  { %9872 = vmatprep.subr.bf16.mxu0 %v9871_v37  ;;  %9842 = vmatpush3.bf16.msra.mxu1 %v9839_v56 }
0x14c0   :  { %v10292_v30 = vpop.permute.xlu0 %10291  ;;  %v7547_v16 = vpop.permute.xlu1 %7546 }
0x14c1   :  { %v10294_v43 = vunpack.i.h.bf16 %v10292_v30  ;;  %v10293_v23 = vunpack.i.l.bf16 %v10292_v30  ;;  %8945 = vmatmul.mubr.msk.f32.vlgmr.msra.gmra.mrb[10].mxu1 %vm38_vm10, %v6821_v27  ;;  %8994 = vmatmul.mubr.msk.f32.vlgmr.msra.gmra.mrb[22].mxu0 %vm38_vm10, %v7456_v42 }
0x14c2   :  { %9874 = vmatpush3.bf16.msra.mxu0 %v9871_v37  ;;  %9000 = vmatprep.mubr.msk.f32.mxu0 %vm38_vm10, %v7545_v20 }
0x14c3   :  { %v9843_v52 = vpack.c.bf16 %v10294_v43, %v10293_v23 }
0x14c4   :  { %v6910_v22 = vpop.permute.xlu0 %6909 }
0x14c5   :  { %9844 = vmatprep.subr.bf16.mxu1 %v9843_v52  ;;  %8951 = vmatprep.mubr.msk.f32.mxu1 %vm38_vm10, %v6910_v22 }
0x14c6   :  { %9846 = vmatpush3.bf16.msra.mxu1 %v9843_v52 }
0x14c8   :  { %v6912_v10 = vpop.permute.xlu0 %6911 }
0x14c9   :  { %8952 = vmatmul.mubr.msk.f32.vlgmr.msra.gmra.mrb[10].mxu1 %vm38_vm10, %v6912_v10  ;;  %9001 = vmatmul.mubr.msk.f32.vlgmr.msra.gmra.mrb[22].mxu0 %vm38_vm10, %v7547_v16 }
0x14d1   :  { %v7641_v2 = vpop.permute.xlu1 %7640 }
0x14d9   :  { %v7637_v40 = vpop.permute.xlu0 %7636 }
0x159c   :  { %v8953_v51 = vpop.f32.mrb[10].mxu1  ;;  %v9002_v36 = vpop.f32.mrb[22].mxu0 }
0x159d   :  { %v9941_v13 = vadd.f32 %v9002_v36, %v8953_v51  ;;  %v6989_v1 = vpop.f32.mrb[11].mxu1  ;;  %v7624_v29 = vpop.f32.mrb[23].mxu0 }
0x159e   :  { %v9942_v53 = vadd.f32 %v7624_v29, %v6989_v1 }
0x159f   :  { %v7644_v34 = vadd.f32 %v9941_v13, %v7641_v2 }
0x15a0   :  { %v7643_v60 = vadd.f32 %v9942_v53, %v7637_v40 }
0x15a1   :  { %v7646_v33 = vmax.f32 %v7644_v34, 0.0 }
0x15a2   :  { %v7645_v25 = vmax.f32 %v7643_v60, 0.0 }
0x15a3   :  { %v7648_v31 = vmul.f32 %v13938_v58, %v7646_v33 }
0x15a4   :  { %v7647_v3 = vmul.f32 %v13938_v58, %v7645_v25 }
0x15a5   :  { %7653 = vrot.lane.b32.xlu0 %v7648_v31, %s10399_s4 }
0x15a6   :  { %7651 = vrot.lane.b32.xlu1 %v7647_v3, %s10399_s4 }
0x15a9   :  { %7669 = vrot.lane.b32.xlu0 %v7662_v17, %s10419_s21 }
0x1617   :  { %v7654_v38 = vpop.permute.xlu0 %7653 }
0x1618   :  { %7658 = vst.msk [vmem:[#allocation6 + $0x8] sm:$0xff] %vm5726_vm13, %v7654_v38  ;;  %v7652_v19 = vpop.permute.xlu1 %7651 }
0x1619   :  { %7657 = vst.msk [vmem:[#allocation6] sm:$0xff] %vm5726_vm13, %v7652_v19 }
0x161b   :  { %v7670_v4 = vpop.permute.xlu0 %7669 }
0x161c   :  { %9007 = vmatprep.mubr.msk.f32.mxu1 %vm38_vm10, %v7670_v4 }
0x161f   :  { %v7666_v18 = vld [vmem:[#allocation6 + $0x8] sm:$0xff] }
0x1620   :  { %v7665_v48 = vld [vmem:[#allocation6] sm:$0xff] }
0x1621   :  { %v10307_v59 = vpack.i.bf16 %v7666_v18, %v7665_v48 }
0x1623   :  { %10308 = vrot.lane.b32.xlu0 %v10307_v59, %s10373_s24  ;;  %10303 = vrot.lane.b32.xlu1 %v10307_v59, %s10374_s16  ;;  %s10421_s24 = smov 92   ;;  %s10422_s16 = smov 76  }
0x1627   :  { %7764 = vrot.lane.b32.xlu0 %v7662_v17, %s10420_s29  ;;  %7671 = vrot.lane.b32.xlu1 %v7664_v6, %s10419_s21 }
0x162b   :  { %7768 = vrot.lane.b32.xlu0 %v7664_v6, %s10420_s29  ;;  %7762 = vrot.lane.b32.xlu1 %v13947_v50, %s10420_s29  ;;  %v7659_v50 = vld [vmem:[%s14141_s8 + $0x20] sm:$0xff] }
0x162f   :  { %7858 = vrot.lane.b32.xlu0 %v7662_v17, %s10376_s19  ;;  %7766 = vrot.lane.b32.xlu1 %v13954_v28, %s10420_s29  ;;  %v7660_v28 = vld [vmem:[%s14141_s8 + $0x48] sm:$0xff] }
0x1633   :  { %10318 = vrot.lane.b32.xlu0 %v10307_v59, %s10386_s30  ;;  %10313 = vrot.lane.b32.xlu1 %v10307_v59, %s10404_s3 }
0x1637   :  { %7951 = vrot.lane.b32.xlu0 %v7664_v6, %s10421_s24  ;;  %7860 = vrot.lane.b32.xlu1 %v7664_v6, %s10376_s19 }
0x163b   :  { %8040 = vrot.lane.b32.xlu0 %v7662_v17, %s10422_s16  ;;  %7949 = vrot.lane.b32.xlu1 %v7662_v17, %s10421_s24 }
0x163f   :  { %10328 = vrot.lane.b32.xlu0 %v10307_v59, %s10391_s14  ;;  %10323 = vrot.lane.b32.xlu1 %v10307_v59, %s10406_s23 }
0x1643   :  { %8133 = vrot.lane.b32.xlu0 %v7664_v6, %s10363_s15  ;;  %8042 = vrot.lane.b32.xlu1 %v7664_v6, %s10422_s16 }
0x1647   :  { %8222 = vrot.lane.b32.xlu0 %v7662_v17, %s10423_s12  ;;  %8131 = vrot.lane.b32.xlu1 %v7662_v17, %s10363_s15 }
0x164b   :  { %10338 = vrot.lane.b32.xlu0 %v10307_v59, %s10408_s27  ;;  %10333 = vrot.lane.b32.xlu1 %v10307_v59, %s10409_s7 }
0x164f   :  { %8224 = vrot.lane.b32.xlu1 %v7664_v6, %s10423_s12  ;;  %8315 = vrot.lane.b32.xlu0 %v7664_v6, %s10397_s1 }
0x1653   :  { %8313 = vrot.lane.b32.xlu1 %v7662_v17, %s10397_s1  ;;  %8410 = vrot.lane.b32.xlu0 %v7662_v17, %s10420_s29 }
0x1657   :  { %10343 = vrot.lane.b32.xlu1 %v10307_v59, %s10387_s11  ;;  %8414 = vrot.lane.b32.xlu0 %v7664_v6, %s10420_s29 }
0x165b   :  { %8412 = vrot.lane.b32.xlu1 %v7659_v50, %s10420_s29  ;;  %8508 = vperm.xlu0 %10347, %v7659_v50  }
0x165f   :  { %8416 = vrot.lane.b32.xlu1 %v7660_v28, %s10420_s29 }
0x1663   :  { %8512 = vperm.xlu1 %10348, %v7660_v28  }
0x1695   :  { %v10309_v45 = vpop.permute.xlu0 %10308  ;;  %v10304_v0 = vpop.permute.xlu1 %10303 }
0x1696   :  { %v10311_v46 = vunpack.i.h.bf16 %v10309_v45  ;;  %v10310_v57 = vunpack.i.l.bf16 %v10309_v45  ;;  %v10306_v55 = vunpack.i.h.bf16 %v10304_v0  ;;  %v10305_v11 = vunpack.i.l.bf16 %v10304_v0 }
0x1698   :  { %v9875_v32 = vpack.c.bf16 %v10306_v55, %v10305_v11  ;;  %v9879_v8 = vpack.c.bf16 %v10311_v46, %v10310_v57 }
0x1699   :  { %v7765_v12 = vpop.permute.xlu0 %7764  ;;  %v7672_v41 = vpop.permute.xlu1 %7671 }
0x169a   :  { %9876 = vmatprep.subr.bf16.mxu1 %v9875_v32 }
0x169b   :  { %9878 = vmatpush3.bf16.msra.mxu1 %v9875_v32 }
0x169c   :  { %9880 = vmatprep.subr.bf16.mxu1 %v9879_v8 }
0x169d   :  { %v7769_v47 = vpop.permute.xlu0 %7768  ;;  %v7763_v26 = vpop.permute.xlu1 %7762 }
0x169e   :  { %v7771_v62 = vsel %vm7770_vm4, %v7763_v26, %v7765_v12  ;;  %9008 = vmatmul.mubr.msk.f32.vlgmr.msra.gmra.mrb[12].mxu1 %vm38_vm10, %v7672_v41  ;;  %v8536_v26 = vld [vmem:[%s14144_s6 + $0x8] sm:$0xff] }
0x169f   :  { %9882 = vmatpush3.bf16.msra.mxu1 %v9879_v8  ;;  %9014 = vmatprep.mubr.msk.f32.mxu1 %vm38_vm10, %v7771_v62  ;;  %v8537_v62 = vld [vmem:[%s14144_s6 + $0x10] sm:$0xff] }
0x16a1   :  { %v7859_v9 = vpop.permute.xlu0 %7858  ;;  %v7767_v49 = vpop.permute.xlu1 %7766 }
0x16a2   :  { %v7772_v61 = vsel %vm7770_vm4, %v7767_v49, %v7769_v47  ;;  %v8535_v47 = vld [vmem:[%s14144_s6] sm:$0xff] }
0x16a3   :  { %v9911_v49 = vpack.c.bf16 %v8536_v26, %v8535_v47 }
0x16a5   :  { %v10319_v42 = vpop.permute.xlu0 %10318  ;;  %v10314_v39 = vpop.permute.xlu1 %10313  ;;  %9912 = vmatprep.subr.bf16.mxu0 %v9911_v49 }
0x16a6   :  { %v10321_v5 = vunpack.i.h.bf16 %v10319_v42  ;;  %v10320_v15 = vunpack.i.l.bf16 %v10319_v42  ;;  %v10316_v35 = vunpack.i.h.bf16 %v10314_v39  ;;  %v10315_v21 = vunpack.i.l.bf16 %v10314_v39  ;;  %9015 = vmatmul.mubr.msk.f32.vlgmr.msra.gmra.mrb[12].mxu1 %vm38_vm10, %v7772_v61  ;;  %v8539_v42 = vld [vmem:[%s14144_s6 + $0x20] sm:$0xff]  ;;  %v8540_v39 = vld [vmem:[%s14144_s6 + $0x28] sm:$0xff]  ;;  %9914 = vmatpush3.bf16.msra.mxu0 %v9911_v49 }
0x16a7   :  { %9021 = vmatprep.mubr.msk.f32.mxu1 %vm38_vm10, %v7859_v9 }
0x16a8   :  { %v9883_v7 = vpack.c.bf16 %v10316_v35, %v10315_v21  ;;  %v9887_v56 = vpack.c.bf16 %v10321_v5, %v10320_v15  ;;  %v9919_v5 = vpack.c.bf16 %v8540_v39, %v8539_v42  ;;  %v8542_v15 = vld [vmem:[%s14144_s6 + $0x38] sm:$0xff]  ;;  %v8543_v21 = vld [vmem:[%s14144_s6 + $0x40] sm:$0xff] }
0x16a9   :  { %v7952_v63 = vpop.permute.xlu0 %7951  ;;  %v7861_v37 = vpop.permute.xlu1 %7860 }
0x16aa   :  { %9884 = vmatprep.subr.bf16.mxu1 %v9883_v7 }
0x16ab   :  { %9886 = vmatpush3.bf16.msra.mxu1 %v9883_v7  ;;  %v8544_v7 = vld [vmem:[%s14144_s6 + $0x48] sm:$0xff] }
0x16ac   :  { %9888 = vmatprep.subr.bf16.mxu1 %v9887_v56 }
0x16ad   :  { %v8041_v24 = vpop.permute.xlu0 %8040  ;;  %v7950_v20 = vpop.permute.xlu1 %7949 }
0x16ae   :  { %9022 = vmatmul.mubr.msk.f32.vlgmr.msra.gmra.mrb[12].mxu1 %vm38_vm10, %v7861_v37  ;;  %v8545_v37 = vld [vmem:[%s14144_s6 + $0x50] sm:$0xff] }
0x16af   :  { %9890 = vmatpush3.bf16.msra.mxu1 %v9887_v56  ;;  %9028 = vmatprep.mubr.msk.f32.mxu1 %vm38_vm10, %v7950_v20 }
0x16b1   :  { %v10329_v27 = vpop.permute.xlu0 %10328  ;;  %v10324_v30 = vpop.permute.xlu1 %10323 }
0x16b2   :  { %v10331_v43 = vunpack.i.h.bf16 %v10329_v27  ;;  %v10330_v23 = vunpack.i.l.bf16 %v10329_v27  ;;  %v10326_v52 = vunpack.i.h.bf16 %v10324_v30  ;;  %v10325_v22 = vunpack.i.l.bf16 %v10324_v30 }
0x16b4   :  { %v9891_v16 = vpack.c.bf16 %v10326_v52, %v10325_v22  ;;  %v9895_v40 = vpack.c.bf16 %v10331_v43, %v10330_v23 }
0x16b5   :  { %v8134_v10 = vpop.permute.xlu0 %8133  ;;  %v8043_v2 = vpop.permute.xlu1 %8042 }
0x16b6   :  { %9029 = vmatmul.mubr.msk.f32.vlgmr.msra.gmra.mrb[12].mxu1 %vm38_vm10, %v7952_v63  ;;  %9892 = vmatprep.subr.bf16.mxu1 %v9891_v16  ;;  %v9927_v63 = vpack.c.bf16 %v8544_v7, %v8543_v21 }
0x16b7   :  { %9894 = vmatpush3.bf16.msra.mxu1 %v9891_v16  ;;  %9035 = vmatprep.mubr.msk.f32.mxu1 %vm38_vm10, %v8041_v24 }
0x16b8   :  { %9896 = vmatprep.subr.bf16.mxu1 %v9895_v40 }
0x16b9   :  { %v8223_v51 = vpop.permute.xlu0 %8222  ;;  %v8132_v36 = vpop.permute.xlu1 %8131 }
0x16bd   :  { %v10334_v13 = vpop.permute.xlu1 %10333  ;;  %v10339_v53 = vpop.permute.xlu0 %10338 }
0x16be   :  { %v10336_v1 = vunpack.i.h.bf16 %v10334_v13  ;;  %v10335_v29 = vunpack.i.l.bf16 %v10334_v13  ;;  %9036 = vmatmul.mubr.msk.f32.vlgmr.msra.gmra.mrb[12].mxu1 %vm38_vm10, %v8043_v2  ;;  %v10341_v33 = vunpack.i.h.bf16 %v10339_v53  ;;  %v10340_v25 = vunpack.i.l.bf16 %v10339_v53 }
0x16bf   :  { %9898 = vmatpush3.bf16.msra.mxu1 %v9895_v40  ;;  %9042 = vmatprep.mubr.msk.f32.mxu1 %vm38_vm10, %v8132_v36 }
0x16c0   :  { %v9899_v34 = vpack.c.bf16 %v10336_v1, %v10335_v29  ;;  %v9903_v3 = vpack.c.bf16 %v10341_v33, %v10340_v25 }
0x16c1   :  { %v8225_v60 = vpop.permute.xlu1 %8224  ;;  %v8316_v4 = vpop.permute.xlu0 %8315 }
0x16c2   :  { %9900 = vmatprep.subr.bf16.mxu1 %v9899_v34 }
0x16c5   :  { %v8314_v31 = vpop.permute.xlu1 %8313  ;;  %v8411_v48 = vpop.permute.xlu0 %8410 }
0x16c6   :  { %9043 = vmatmul.mubr.msk.f32.vlgmr.msra.gmra.mrb[12].mxu1 %vm38_vm10, %v8134_v10 }
0x16c7   :  { %9902 = vmatpush3.bf16.msra.mxu1 %v9899_v34  ;;  %9049 = vmatprep.mubr.msk.f32.mxu1 %vm38_vm10, %v8223_v51 }
0x16c8   :  { %9904 = vmatprep.subr.bf16.mxu1 %v9903_v3 }
0x16c9   :  { %v10344_v17 = vpop.permute.xlu1 %10343  ;;  %v8415_v50 = vpop.permute.xlu0 %8414 }
0x16ca   :  { %v10346_v38 = vunpack.i.h.bf16 %v10344_v17  ;;  %v10345_v19 = vunpack.i.l.bf16 %v10344_v17 }
0x16cc   :  { %v9907_v18 = vpack.c.bf16 %v10346_v38, %v10345_v19 }
0x16cd   :  { %v8413_v59 = vpop.permute.xlu1 %8412 }
0x16ce   :  { %9050 = vmatmul.mubr.msk.f32.vlgmr.msra.gmra.mrb[12].mxu1 %vm38_vm10, %v8225_v60  ;;  %v8418_v6 = vsel %vm7770_vm4, %v8411_v48, %v8413_v59 }
0x16cf   :  { %9906 = vmatpush3.bf16.msra.mxu1 %v9903_v3  ;;  %9056 = vmatprep.mubr.msk.f32.mxu1 %vm38_vm10, %v8314_v31 }
0x16d0   :  { %9908 = vmatprep.subr.bf16.mxu1 %v9907_v18 }
0x16d1   :  { %v8417_v28 = vpop.permute.xlu1 %8416 }
0x16d2   :  { %v8419_v54 = vsel %vm7770_vm4, %v8415_v50, %v8417_v28 }
0x16d6   :  { %9057 = vmatmul.mubr.msk.f32.vlgmr.msra.gmra.mrb[12].mxu1 %vm38_vm10, %v8316_v4 }
0x16d7   :  { %9910 = vmatpush3.bf16.msra.mxu1 %v9907_v18  ;;  %9063 = vmatprep.mubr.msk.f32.mxu1 %vm38_vm10, %v8418_v6 }
0x16da   :  { %v8509_v0 = vpop.permute.xlu0 %8508 }
0x16de   :  { %9064 = vmatmul.mubr.msk.f32.vlgmr.msra.gmra.mrb[12].mxu1 %vm38_vm10, %v8419_v54  ;;  %vm8631_vm10 = vcmask 15360  }
0x16e2   :  { %v8513_v45 = vpop.permute.xlu1 %8512 }
0x17b1   :  { %v9065_v46 = vpop.f32.mrb[12].mxu1 }
0x17b2   :  { %v8516_v57 = vadd.f32 %v9065_v46, %v8513_v45  ;;  %v8496_v55 = vpop.f32.mrb[13].mxu1 }
0x17b3   :  { %v8515_v11 = vadd.f32 %v8509_v0, %v8496_v55 }
0x17b4   :  { %v8518_v32 = vadd.f32 %v8516_v57, %v13995_v14  ;;  %v8538_v14 = vld [vmem:[%s14144_s6 + $0x18] sm:$0xff] }
0x17b5   :  { %v8517_v12 = vadd.f32 %v8515_v11, %v13999_v44  ;;  %v9915_v61 = vpack.c.bf16 %v8538_v14, %v8537_v62 }
0x17b6   :  { %v8520_v41 = vmax.f32 %v8518_v32, 0.0 }
0x17b7   :  { %v8519_v8 = vmax.f32 %v8517_v12, 0.0  ;;  %9916 = vmatprep.subr.bf16.mxu0 %v9915_v61 }
0x17b8   :  { %v8522_v9 = vmul.f32 %v13938_v58, %v8520_v41  ;;  %9918 = vmatpush3.bf16.msra.mxu0 %v9915_v61 }
0x17b9   :  { %v8521_v44 = vmul.f32 %v13938_v58, %v8519_v8  ;;  %v8541_v58 = vld [vmem:[%s14144_s6 + $0x30] sm:$0xff]  ;;  %9920 = vmatprep.subr.bf16.mxu0 %v9919_v5 }
0x17ba   :  { %8527 = vrot.lane.b32.xlu0 %v8522_v9, %s10399_s4  ;;  %v9923_v35 = vpack.c.bf16 %v8542_v15, %v8541_v58 }
0x17bb   :  { %8525 = vrot.lane.b32.xlu1 %v8521_v44, %s10399_s4 }
0x17bc   :  { %9922 = vmatpush3.bf16.msra.mxu0 %v9919_v5 }
0x17bd   :  { %9924 = vmatprep.subr.bf16.mxu0 %v9923_v35 }
0x17c0   :  { %9926 = vmatpush3.bf16.msra.mxu0 %v9923_v35 }
0x17c1   :  { %9928 = vmatprep.subr.bf16.mxu0 %v9927_v63 }
0x17c4   :  { %9930 = vmatpush3.bf16.msra.mxu0 %v9927_v63 }
0x17c5   :  { %9086 = vmatprep.subr.mxu0 %v8545_v37 }
0x17c8   :  { %9087 = vmatpush3.msra.mxu0 %v8545_v37 }
0x182c   :  { %v8528_v56 = vpop.permute.xlu0 %8527 }
0x182d   :  { %8532 = vst.msk [vmem:[#allocation5 + $0x8] sm:$0xff] %vm5726_vm13, %v8528_v56  ;;  %v8526_v24 = vpop.permute.xlu1 %8525 }
0x182e   :  { %8531 = vst.msk [vmem:[#allocation5] sm:$0xff] %vm5726_vm13, %v8526_v24 }
0x1834   :  { %v8534_v20 = vld [vmem:[#allocation5 + $0x8] sm:$0xff] }
0x1835   :  { %8550 = vrot.lane.b32.xlu0 %v8534_v20, %s10406_s23  ;;  %v8533_v27 = vld [vmem:[#allocation5] sm:$0xff] }
0x1836   :  { %8548 = vrot.lane.b32.xlu1 %v8533_v27, %s10406_s23 }
0x18a7   :  { %v8551_v43 = vpop.permute.xlu0 %8550 }
0x18a8   :  { %v8549_v30 = vpop.permute.xlu1 %8548 }
0x18a9   :  { %9088 = vmatprep.mubr.msk.f32.mxu0 %vm3756_vm8, %v8549_v30 }
0x18aa   :  { %9089 = vmatmul.mubr.msk.f32.vlgmr.msra.gmra.mrb[24].mxu0 %vm3756_vm8, %v8551_v43 }
0x197d   :  { %v9090_v23 = vpop.f32.mrb[24].mxu0 }
0x197e   :  { %8633 = vst.msk [vmem:[%s14145_s9 + $0x8] sm:$0xff] %vm8631_vm10, %v9090_v23  ;;  %v8622_v52 = vpop.f32.mrb[25].mxu0 }
0x197f   :  { %8632 = vst.msk [vmem:[%s14145_s9] sm:$0xff] %vm8631_vm10, %v8622_v52 }

</bundles_post_ra>
